<compile_context>
chip_gen: v5e
topology: v5e:2x2
jax: 0.10.0
libtpu: 0.0.40
codegen_flags: <defaults>
</compile_context>

<pallas_src>
import functools

import jax
import jax.numpy as jnp
from jax import lax
from jax.experimental import pallas as pl
from jax.experimental.pallas import tpu as pltpu


def _sepconv_kernel(x_ref, wdw_ref, wpw_ref, o_ref, xpad_ref, *,
                    TH, W, KH, KW, Cin, M, Cout, ph, pw, LH, LW):
    # x_ref   : (1, Cin, TH, W)            input tile, W on the lane axis
    # wdw_ref : (Cin*M, KH*KW)   in SMEM   depthwise taps (f32 scalars)
    # wpw_ref : (Cout, Cin*M)    in SMEM   pointwise weights (f32 scalars)
    # o_ref   : (1, Cout, TH, W)           lane-dense output tile
    # xpad_ref: (Cin, LH+TH+ph, LW+W+pw)   VMEM scratch with zero halo; live data at (LH, LW)
    if ph or pw:
        # zero the halo (cheap full-tile memset, once per grid step; interior overwritten below)
        xpad_ref[...] = jnp.zeros_like(xpad_ref)
    # aligned, unmasked placement of the tile interior
    xpad_ref[:, LH:LH + TH, LW:LW + W] = x_ref[0]

    D = Cin * M

    # Depthwise conv: one (TH, W) slab per depthwise output channel.
    dw_all = []
    for j in range(D):                 # depthwise output channel
        c = j // M                     # PyTorch grouped-conv: out-ch j reads in-ch j // M
        dw = None
        for kh in range(KH):
            r0 = LH - ph + kh
            for kw in range(KW):
                c0 = LW - pw + kw
                tap = wdw_ref[j, kh * KW + kw]                      # scalar from SMEM
                term = xpad_ref[c, r0:r0 + TH, c0:c0 + W].astype(jnp.float32) * tap
                dw = term if dw is None else dw + term
        dw_all.append(dw)

    # Pointwise 1x1 conv: chained scalar-FMA sum per output channel (VPU), single store each.
    for o in range(Cout):
        out = None
        for j in range(D):
            term = dw_all[j] * wpw_ref[o, j]
            out = term if out is None else out + term
        o_ref[0, o] = out.astype(o_ref.dtype)                       # lane-dense store


def _pick_th(H, W, Cin, Cout, D, KH, padded_w, budget_bytes=8 * 1024 * 1024):
    """Largest multiple-of-8 divisor of H whose per-step working set fits the budget."""
    if KH != 1 or H <= 8 or H % 8 != 0:
        return H
    best = 8
    for th in range(8, H + 1, 8):
        if H % th:
            continue
        per_step = th * 4 * (
            2 * Cin * W          # double-buffered input block
            + 2 * Cout * W       # double-buffered output block
            + Cin * padded_w     # padded scratch
            + D * W              # depthwise intermediates
            + Cout * W)          # slack for output-channel temporaries
        if per_step <= budget_bytes:
            best = th
    return best


def separable_conv2d(x_nchw, w_depth, w_point, *, depth_multiplier):
    """
    x_nchw : (N, Cin, H, W)          float32
    w_depth: (Cin*M, 1, KH, KW)      PyTorch depthwise weight layout
    w_point: (Cout, Cin*M, 1, 1)     PyTorch pointwise weight layout
    returns: (N, Cout, H, W)
    """
    N, Cin, H, W = x_nchw.shape
    M = int(depth_multiplier)
    D = Cin * M
    Cout = int(w_point.shape[0])
    KH, KW = int(w_depth.shape[2]), int(w_depth.shape[3])
    assert w_depth.shape[0] == D and w_point.shape[1] == D
    # TODO(synk): even kernel sizes need PyTorch's asymmetric 'same' padding.
    assert KH % 2 == 1 and KW % 2 == 1, "use odd kernel so 'same' padding is symmetric"
    ph, pw = (KH - 1) // 2, (KW - 1) // 2

    # Aligned placement offsets for the in-kernel padded scratch.
    LH = 0 if ph == 0 else 8 * ((ph + 7) // 8)
    LW = 0 if pw == 0 else 128 * ((pw + 127) // 128)
    padded_w = LW + W + pw

    # Spatial (H) tiling: only without halo (KH == 1); tile chosen from a VMEM budget.
    TH = _pick_th(H, W, Cin, Cout, D, KH, padded_w)
    HT = H // TH

    # Small weight tables -> SMEM scalars (long axis last to keep SMEM padding tiny).
    wdw = w_depth[:, 0, :, :].reshape(D, KH * KW).astype(jnp.float32)   # (D, KH*KW)
    wpw = w_point[:, :, 0, 0].astype(jnp.float32)                       # (Cout, D)

    kernel = functools.partial(
        _sepconv_kernel, TH=TH, W=W, KH=KH, KW=KW,
        Cin=Cin, M=M, Cout=Cout, ph=ph, pw=pw, LH=LH, LW=LW)

    itemsize = x_nchw.dtype.itemsize
    flops = 2 * N * H * W * (D * KH * KW + Cout * D)
    bytes_accessed = (N * Cin * H * W * itemsize          # input
                      + N * Cout * H * W * itemsize       # output
                      + wdw.size * 4 + wpw.size * 4)      # weights

    out = pl.pallas_call(
        kernel,
        out_shape=jax.ShapeDtypeStruct((N, Cout, H, W), x_nchw.dtype),
        grid=(N, HT),
        in_specs=[
            pl.BlockSpec((1, Cin, TH, W), lambda n, h: (n, 0, h, 0)),
            pl.BlockSpec(memory_space=pltpu.MemorySpace.SMEM),
            pl.BlockSpec(memory_space=pltpu.MemorySpace.SMEM),
        ],
        out_specs=pl.BlockSpec((1, Cout, TH, W), lambda n, h: (n, 0, h, 0)),
        scratch_shapes=[pltpu.VMEM((Cin, LH + TH + ph, padded_w), x_nchw.dtype)],
        compiler_params=pltpu.CompilerParams(
            dimension_semantics=("parallel", "parallel"),
            vmem_limit_bytes=32 * 1024 * 1024,
        ),
        cost_estimate=pl.CostEstimate(
            flops=flops, transcendentals=0, bytes_accessed=bytes_accessed),
    )(x_nchw, wdw, wpw)
    return out


def _reference(x_nchw, w_depth, w_point):
    """Pure-JAX reference using lax.conv_general_dilated (NCHW, 'same')."""
    Cin = x_nchw.shape[1]
    dw = lax.conv_general_dilated(
        x_nchw, w_depth,
        window_strides=(1, 1), padding="SAME",
        dimension_numbers=("NCHW", "OIHW", "NCHW"),
        feature_group_count=Cin,
    )
    pw = lax.conv_general_dilated(
        dw, w_point,
        window_strides=(1, 1), padding="SAME",
        dimension_numbers=("NCHW", "OIHW", "NCHW"),
    )
    return pw


if __name__ == "__main__":
    # Module config: SeparableConv2d(in_channels=4, out_channels=8, kernel_size=(1, 15),
    #                                depth_multiplier=2)  -> defaults: bias=False, no norms.
    N, Cin, H, W = 2, 4, 16, 128       # lane-dense W; grid = (batch, H-tiles)
    M, Cout = 2, 8
    KH, KW = 1, 15

    key = jax.random.PRNGKey(0)
    kx, kd, kp = jax.random.split(key, 3)

    x = jax.random.normal(kx, (N, Cin, H, W), dtype=jnp.float32)
    # PyTorch shapes: depthwise (Cin*M, 1, KH, KW), pointwise (Cout, Cin*M, 1, 1).
    w_depth = 0.3 * jax.random.normal(kd, (Cin * M, 1, KH, KW), dtype=jnp.float32)
    w_point = 0.3 * jax.random.normal(kp, (Cout, Cin * M, 1, 1), dtype=jnp.float32)

    out = separable_conv2d(x, w_depth, w_point, depth_multiplier=M)
    out = jax.block_until_ready(out)

    ref = _reference(x, w_depth, w_point)
    assert out.shape == (N, Cout, H, W)
    assert jnp.isfinite(out).all()
    assert jnp.allclose(out, ref, atol=1e-5, rtol=1e-5), float(jnp.max(jnp.abs(out - ref)))

    print("KERNEL_OK")
</pallas_src>

<mosaic_0001>
module attributes {stable_mosaic.version = 11 : i64} {
  func.func @_sepconv_kernel(%arg0: i32, %arg1: i32, %arg2: memref<1x4x16x128xf32, #tpu.memory_space<vmem>>, %arg3: memref<8x15xf32, #tpu.memory_space<smem>>, %arg4: memref<8x8xf32, #tpu.memory_space<smem>>, %arg5: memref<1x8x16x128xf32, #tpu.memory_space<vmem>>, %arg6: memref<4x16x263xf32, #tpu.memory_space<vmem>>) attributes {dimension_semantics = [#tpu.dimension_semantics<parallel>, #tpu.dimension_semantics<parallel>], iteration_bounds = array<i64: 2, 1>, scalar_prefetch = 0 : i64, scratch_operands = 1 : i64, tpu.core_type = #tpu.core_type<tc>, window_params = [{transform_indices = @transform_0, window_bounds = array<i64: 1, 4, 16, 128>}, {transform_indices = @transform_1, window_bounds = array<i64: 8, 15>}, {transform_indices = @transform_2, window_bounds = array<i64: 8, 8>}, {transform_indices = @transform_3, window_bounds = array<i64: 1, 8, 16, 128>}]} {
    %cst = arith.constant 0.000000e+00 : f32
    %0 = vector.broadcast %cst : f32 to vector<4x16x263xf32>
    %c0 = arith.constant 0 : index
    %c0_0 = arith.constant 0 : index
    %c0_1 = arith.constant 0 : index
    %1 = vector.load %arg6[%c0, %c0_0, %c0_1] : memref<4x16x263xf32, #tpu.memory_space<vmem>>, vector<4x16x263xf32>
    tpu.vector_store %arg6[%c0, %c0_0, %c0_1], %0 {strides = array<i32>} : memref<4x16x263xf32, #tpu.memory_space<vmem>>, vector<4x16x263xf32>,
    %c0_2 = arith.constant 0 : index
    %c0_3 = arith.constant 0 : index
    %c0_4 = arith.constant 0 : index
    %c0_5 = arith.constant 0 : index
    %2 = vector.load %arg2[%c0_2, %c0_3, %c0_4, %c0_5] : memref<1x4x16x128xf32, #tpu.memory_space<vmem>>, vector<1x4x16x128xf32>
    %3 = vector.shape_cast %2 : vector<1x4x16x128xf32> to vector<4x16x128xf32>
    %c0_6 = arith.constant 0 : index
    %c0_7 = arith.constant 0 : index
    %c128 = arith.constant 128 : index
    %4 = vector.load %arg6[%c0_6, %c0_7, %c128] : memref<4x16x263xf32, #tpu.memory_space<vmem>>, vector<4x16x128xf32>
    tpu.vector_store %arg6[%c0_6, %c0_7, %c128], %3 {strides = array<i32>} : memref<4x16x263xf32, #tpu.memory_space<vmem>>, vector<4x16x128xf32>,
    %c0_8 = arith.constant 0 : index
    %c0_9 = arith.constant 0 : index
    %5 = memref.load %arg3[%c0_8, %c0_9] : memref<8x15xf32, #tpu.memory_space<smem>>
    %c0_10 = arith.constant 0 : index
    %c0_11 = arith.constant 0 : index
    %c121 = arith.constant 121 : index
    %6 = vector.load %arg6[%c0_10, %c0_11, %c121] : memref<4x16x263xf32, #tpu.memory_space<vmem>>, vector<1x16x128xf32>
    %7 = vector.shape_cast %6 : vector<1x16x128xf32> to vector<16x128xf32>
    %8 = vector.broadcast %5 : f32 to vector<16x128xf32>
    %9 = arith.mulf %7, %8 : vector<16x128xf32>
    %c0_12 = arith.constant 0 : index
    %c1 = arith.constant 1 : index
    %10 = memref.load %arg3[%c0_12, %c1] : memref<8x15xf32, #tpu.memory_space<smem>>
    %c0_13 = arith.constant 0 : index
    %c0_14 = arith.constant 0 : index
    %c122 = arith.constant 122 : index
    %11 = vector.load %arg6[%c0_13, %c0_14, %c122] : memref<4x16x263xf32, #tpu.memory_space<vmem>>, vector<1x16x128xf32>
    %12 = vector.shape_cast %11 : vector<1x16x128xf32> to vector<16x128xf32>
    %13 = vector.broadcast %10 : f32 to vector<16x128xf32>
    %14 = arith.mulf %12, %13 : vector<16x128xf32>
    %15 = arith.addf %9, %14 : vector<16x128xf32>
    %c0_15 = arith.constant 0 : index
    %c2 = arith.constant 2 : index
    %16 = memref.load %arg3[%c0_15, %c2] : memref<8x15xf32, #tpu.memory_space<smem>>
    %c0_16 = arith.constant 0 : index
    %c0_17 = arith.constant 0 : index
    %c123 = arith.constant 123 : index
    %17 = vector.load %arg6[%c0_16, %c0_17, %c123] : memref<4x16x263xf32, #tpu.memory_space<vmem>>, vector<1x16x128xf32>
    %18 = vector.shape_cast %17 : vector<1x16x128xf32> to vector<16x128xf32>
    %19 = vector.broadcast %16 : f32 to vector<16x128xf32>
    %20 = arith.mulf %18, %19 : vector<16x128xf32>
    %21 = arith.addf %15, %20 : vector<16x128xf32>
    %c0_18 = arith.constant 0 : index
    %c3 = arith.constant 3 : index
    %22 = memref.load %arg3[%c0_18, %c3] : memref<8x15xf32, #tpu.memory_space<smem>>
    %c0_19 = arith.constant 0 : index
    %c0_20 = arith.constant 0 : index
    %c124 = arith.constant 124 : index
    %23 = vector.load %arg6[%c0_19, %c0_20, %c124] : memref<4x16x263xf32, #tpu.memory_space<vmem>>, vector<1x16x128xf32>
    %24 = vector.shape_cast %23 : vector<1x16x128xf32> to vector<16x128xf32>
    %25 = vector.broadcast %22 : f32 to vector<16x128xf32>
    %26 = arith.mulf %24, %25 : vector<16x128xf32>
    %27 = arith.addf %21, %26 : vector<16x128xf32>
    %c0_21 = arith.constant 0 : index
    %c4 = arith.constant 4 : index
    %28 = memref.load %arg3[%c0_21, %c4] : memref<8x15xf32, #tpu.memory_space<smem>>
    %c0_22 = arith.constant 0 : index
    %c0_23 = arith.constant 0 : index
    %c125 = arith.constant 125 : index
    %29 = vector.load %arg6[%c0_22, %c0_23, %c125] : memref<4x16x263xf32, #tpu.memory_space<vmem>>, vector<1x16x128xf32>
    %30 = vector.shape_cast %29 : vector<1x16x128xf32> to vector<16x128xf32>
    %31 = vector.broadcast %28 : f32 to vector<16x128xf32>
    %32 = arith.mulf %30, %31 : vector<16x128xf32>
    %33 = arith.addf %27, %32 : vector<16x128xf32>
    %c0_24 = arith.constant 0 : index
    %c5 = arith.constant 5 : index
    %34 = memref.load %arg3[%c0_24, %c5] : memref<8x15xf32, #tpu.memory_space<smem>>
    %c0_25 = arith.constant 0 : index
    %c0_26 = arith.constant 0 : index
    %c126 = arith.constant 126 : index
    %35 = vector.load %arg6[%c0_25, %c0_26, %c126] : memref<4x16x263xf32, #tpu.memory_space<vmem>>, vector<1x16x128xf32>
    %36 = vector.shape_cast %35 : vector<1x16x128xf32> to vector<16x128xf32>
    %37 = vector.broadcast %34 : f32 to vector<16x128xf32>
    %38 = arith.mulf %36, %37 : vector<16x128xf32>
    %39 = arith.addf %33, %38 : vector<16x128xf32>
    %c0_27 = arith.constant 0 : index
    %c6 = arith.constant 6 : index
    %40 = memref.load %arg3[%c0_27, %c6] : memref<8x15xf32, #tpu.memory_space<smem>>
    %c0_28 = arith.constant 0 : index
    %c0_29 = arith.constant 0 : index
    %c127 = arith.constant 127 : index
    %41 = vector.load %arg6[%c0_28, %c0_29, %c127] : memref<4x16x263xf32, #tpu.memory_space<vmem>>, vector<1x16x128xf32>
    %42 = vector.shape_cast %41 : vector<1x16x128xf32> to vector<16x128xf32>
    %43 = vector.broadcast %40 : f32 to vector<16x128xf32>
    %44 = arith.mulf %42, %43 : vector<16x128xf32>
    %45 = arith.addf %39, %44 : vector<16x128xf32>
    %c0_30 = arith.constant 0 : index
    %c7 = arith.constant 7 : index
    %46 = memref.load %arg3[%c0_30, %c7] : memref<8x15xf32, #tpu.memory_space<smem>>
    %c0_31 = arith.constant 0 : index
    %c0_32 = arith.constant 0 : index
    %c128_33 = arith.constant 128 : index
    %47 = vector.load %arg6[%c0_31, %c0_32, %c128_33] : memref<4x16x263xf32, #tpu.memory_space<vmem>>, vector<1x16x128xf32>
    %48 = vector.shape_cast %47 : vector<1x16x128xf32> to vector<16x128xf32>
    %49 = vector.broadcast %46 : f32 to vector<16x128xf32>
    %50 = arith.mulf %48, %49 : vector<16x128xf32>
    %51 = arith.addf %45, %50 : vector<16x128xf32>
    %c0_34 = arith.constant 0 : index
    %c8 = arith.constant 8 : index
    %52 = memref.load %arg3[%c0_34, %c8] : memref<8x15xf32, #tpu.memory_space<smem>>
    %c0_35 = arith.constant 0 : index
    %c0_36 = arith.constant 0 : index
    %c129 = arith.constant 129 : index
    %53 = vector.load %arg6[%c0_35, %c0_36, %c129] : memref<4x16x263xf32, #tpu.memory_space<vmem>>, vector<1x16x128xf32>
    %54 = vector.shape_cast %53 : vector<1x16x128xf32> to vector<16x128xf32>
    %55 = vector.broadcast %52 : f32 to vector<16x128xf32>
    %56 = arith.mulf %54, %55 : vector<16x128xf32>
    %57 = arith.addf %51, %56 : vector<16x128xf32>
    %c0_37 = arith.constant 0 : index
    %c9 = arith.constant 9 : index
    %58 = memref.load %arg3[%c0_37, %c9] : memref<8x15xf32, #tpu.memory_space<smem>>
    %c0_38 = arith.constant 0 : index
    %c0_39 = arith.constant 0 : index
    %c130 = arith.constant 130 : index
    %59 = vector.load %arg6[%c0_38, %c0_39, %c130] : memref<4x16x263xf32, #tpu.memory_space<vmem>>, vector<1x16x128xf32>
    %60 = vector.shape_cast %59 : vector<1x16x128xf32> to vector<16x128xf32>
    %61 = vector.broadcast %58 : f32 to vector<16x128xf32>
    %62 = arith.mulf %60, %61 : vector<16x128xf32>
    %63 = arith.addf %57, %62 : vector<16x128xf32>
    %c0_40 = arith.constant 0 : index
    %c10 = arith.constant 10 : index
    %64 = memref.load %arg3[%c0_40, %c10] : memref<8x15xf32, #tpu.memory_space<smem>>
    %c0_41 = arith.constant 0 : index
    %c0_42 = arith.constant 0 : index
    %c131 = arith.constant 131 : index
    %65 = vector.load %arg6[%c0_41, %c0_42, %c131] : memref<4x16x263xf32, #tpu.memory_space<vmem>>, vector<1x16x128xf32>
    %66 = vector.shape_cast %65 : vector<1x16x128xf32> to vector<16x128xf32>
    %67 = vector.broadcast %64 : f32 to vector<16x128xf32>
    %68 = arith.mulf %66, %67 : vector<16x128xf32>
    %69 = arith.addf %63, %68 : vector<16x128xf32>
    %c0_43 = arith.constant 0 : index
    %c11 = arith.constant 11 : index
    %70 = memref.load %arg3[%c0_43, %c11] : memref<8x15xf32, #tpu.memory_space<smem>>
    %c0_44 = arith.constant 0 : index
    %c0_45 = arith.constant 0 : index
    %c132 = arith.constant 132 : index
    %71 = vector.load %arg6[%c0_44, %c0_45, %c132] : memref<4x16x263xf32, #tpu.memory_space<vmem>>, vector<1x16x128xf32>
    %72 = vector.shape_cast %71 : vector<1x16x128xf32> to vector<16x128xf32>
    %73 = vector.broadcast %70 : f32 to vector<16x128xf32>
    %74 = arith.mulf %72, %73 : vector<16x128xf32>
    %75 = arith.addf %69, %74 : vector<16x128xf32>
    %c0_46 = arith.constant 0 : index
    %c12 = arith.constant 12 : index
    %76 = memref.load %arg3[%c0_46, %c12] : memref<8x15xf32, #tpu.memory_space<smem>>
    %c0_47 = arith.constant 0 : index
    %c0_48 = arith.constant 0 : index
    %c133 = arith.constant 133 : index
    %77 = vector.load %arg6[%c0_47, %c0_48, %c133] : memref<4x16x263xf32, #tpu.memory_space<vmem>>, vector<1x16x128xf32>
    %78 = vector.shape_cast %77 : vector<1x16x128xf32> to vector<16x128xf32>
    %79 = vector.broadcast %76 : f32 to vector<16x128xf32>
    %80 = arith.mulf %78, %79 : vector<16x128xf32>
    %81 = arith.addf %75, %80 : vector<16x128xf32>
    %c0_49 = arith.constant 0 : index
    %c13 = arith.constant 13 : index
    %82 = memref.load %arg3[%c0_49, %c13] : memref<8x15xf32, #tpu.memory_space<smem>>
    %c0_50 = arith.constant 0 : index
    %c0_51 = arith.constant 0 : index
    %c134 = arith.constant 134 : index
    %83 = vector.load %arg6[%c0_50, %c0_51, %c134] : memref<4x16x263xf32, #tpu.memory_space<vmem>>, vector<1x16x128xf32>
    %84 = vector.shape_cast %83 : vector<1x16x128xf32> to vector<16x128xf32>
    %85 = vector.broadcast %82 : f32 to vector<16x128xf32>
    %86 = arith.mulf %84, %85 : vector<16x128xf32>
    %87 = arith.addf %81, %86 : vector<16x128xf32>
    %c0_52 = arith.constant 0 : index
    %c14 = arith.constant 14 : index
    %88 = memref.load %arg3[%c0_52, %c14] : memref<8x15xf32, #tpu.memory_space<smem>>
    %c0_53 = arith.constant 0 : index
    %c0_54 = arith.constant 0 : index
    %c135 = arith.constant 135 : index
    %89 = vector.load %arg6[%c0_53, %c0_54, %c135] : memref<4x16x263xf32, #tpu.memory_space<vmem>>, vector<1x16x128xf32>
    %90 = vector.shape_cast %89 : vector<1x16x128xf32> to vector<16x128xf32>
    %91 = vector.broadcast %88 : f32 to vector<16x128xf32>
    %92 = arith.mulf %90, %91 : vector<16x128xf32>
    %93 = arith.addf %87, %92 : vector<16x128xf32>
    %c1_55 = arith.constant 1 : index
    %c0_56 = arith.constant 0 : index
    %94 = memref.load %arg3[%c1_55, %c0_56] : memref<8x15xf32, #tpu.memory_space<smem>>
    %c0_57 = arith.constant 0 : index
    %c0_58 = arith.constant 0 : index
    %c121_59 = arith.constant 121 : index
    %95 = vector.load %arg6[%c0_57, %c0_58, %c121_59] : memref<4x16x263xf32, #tpu.memory_space<vmem>>, vector<1x16x128xf32>
    %96 = vector.shape_cast %95 : vector<1x16x128xf32> to vector<16x128xf32>
    %97 = vector.broadcast %94 : f32 to vector<16x128xf32>
    %98 = arith.mulf %96, %97 : vector<16x128xf32>
    %c1_60 = arith.constant 1 : index
    %c1_61 = arith.constant 1 : index
    %99 = memref.load %arg3[%c1_60, %c1_61] : memref<8x15xf32, #tpu.memory_space<smem>>
    %c0_62 = arith.constant 0 : index
    %c0_63 = arith.constant 0 : index
    %c122_64 = arith.constant 122 : index
    %100 = vector.load %arg6[%c0_62, %c0_63, %c122_64] : memref<4x16x263xf32, #tpu.memory_space<vmem>>, vector<1x16x128xf32>
    %101 = vector.shape_cast %100 : vector<1x16x128xf32> to vector<16x128xf32>
    %102 = vector.broadcast %99 : f32 to vector<16x128xf32>
    %103 = arith.mulf %101, %102 : vector<16x128xf32>
    %104 = arith.addf %98, %103 : vector<16x128xf32>
    %c1_65 = arith.constant 1 : index
    %c2_66 = arith.constant 2 : index
    %105 = memref.load %arg3[%c1_65, %c2_66] : memref<8x15xf32, #tpu.memory_space<smem>>
    %c0_67 = arith.constant 0 : index
    %c0_68 = arith.constant 0 : index
    %c123_69 = arith.constant 123 : index
    %106 = vector.load %arg6[%c0_67, %c0_68, %c123_69] : memref<4x16x263xf32, #tpu.memory_space<vmem>>, vector<1x16x128xf32>
    %107 = vector.shape_cast %106 : vector<1x16x128xf32> to vector<16x128xf32>
    %108 = vector.broadcast %105 : f32 to vector<16x128xf32>
    %109 = arith.mulf %107, %108 : vector<16x128xf32>
    %110 = arith.addf %104, %109 : vector<16x128xf32>
    %c1_70 = arith.constant 1 : index
    %c3_71 = arith.constant 3 : index
    %111 = memref.load %arg3[%c1_70, %c3_71] : memref<8x15xf32, #tpu.memory_space<smem>>
    %c0_72 = arith.constant 0 : index
    %c0_73 = arith.constant 0 : index
    %c124_74 = arith.constant 124 : index
    %112 = vector.load %arg6[%c0_72, %c0_73, %c124_74] : memref<4x16x263xf32, #tpu.memory_space<vmem>>, vector<1x16x128xf32>
    %113 = vector.shape_cast %112 : vector<1x16x128xf32> to vector<16x128xf32>
    %114 = vector.broadcast %111 : f32 to vector<16x128xf32>
    %115 = arith.mulf %113, %114 : vector<16x128xf32>
    %116 = arith.addf %110, %115 : vector<16x128xf32>
    %c1_75 = arith.constant 1 : index
    %c4_76 = arith.constant 4 : index
    %117 = memref.load %arg3[%c1_75, %c4_76] : memref<8x15xf32, #tpu.memory_space<smem>>
    %c0_77 = arith.constant 0 : index
    %c0_78 = arith.constant 0 : index
    %c125_79 = arith.constant 125 : index
    %118 = vector.load %arg6[%c0_77, %c0_78, %c125_79] : memref<4x16x263xf32, #tpu.memory_space<vmem>>, vector<1x16x128xf32>
    %119 = vector.shape_cast %118 : vector<1x16x128xf32> to vector<16x128xf32>
    %120 = vector.broadcast %117 : f32 to vector<16x128xf32>
    %121 = arith.mulf %119, %120 : vector<16x128xf32>
    %122 = arith.addf %116, %121 : vector<16x128xf32>
    %c1_80 = arith.constant 1 : index
    %c5_81 = arith.constant 5 : index
    %123 = memref.load %arg3[%c1_80, %c5_81] : memref<8x15xf32, #tpu.memory_space<smem>>
    %c0_82 = arith.constant 0 : index
    %c0_83 = arith.constant 0 : index
    %c126_84 = arith.constant 126 : index
    %124 = vector.load %arg6[%c0_82, %c0_83, %c126_84] : memref<4x16x263xf32, #tpu.memory_space<vmem>>, vector<1x16x128xf32>
    %125 = vector.shape_cast %124 : vector<1x16x128xf32> to vector<16x128xf32>
    %126 = vector.broadcast %123 : f32 to vector<16x128xf32>
    %127 = arith.mulf %125, %126 : vector<16x128xf32>
    %128 = arith.addf %122, %127 : vector<16x128xf32>
    %c1_85 = arith.constant 1 : index
    %c6_86 = arith.constant 6 : index
    %129 = memref.load %arg3[%c1_85, %c6_86] : memref<8x15xf32, #tpu.memory_space<smem>>
    %c0_87 = arith.constant 0 : index
    %c0_88 = arith.constant 0 : index
    %c127_89 = arith.constant 127 : index
    %130 = vector.load %arg6[%c0_87, %c0_88, %c127_89] : memref<4x16x263xf32, #tpu.memory_space<vmem>>, vector<1x16x128xf32>
    %131 = vector.shape_cast %130 : vector<1x16x128xf32> to vector<16x128xf32>
    %132 = vector.broadcast %129 : f32 to vector<16x128xf32>
    %133 = arith.mulf %131, %132 : vector<16x128xf32>
    %134 = arith.addf %128, %133 : vector<16x128xf32>
    %c1_90 = arith.constant 1 : index
    %c7_91 = arith.constant 7 : index
    %135 = memref.load %arg3[%c1_90, %c7_91] : memref<8x15xf32, #tpu.memory_space<smem>>
    %c0_92 = arith.constant 0 : index
    %c0_93 = arith.constant 0 : index
    %c128_94 = arith.constant 128 : index
    %136 = vector.load %arg6[%c0_92, %c0_93, %c128_94] : memref<4x16x263xf32, #tpu.memory_space<vmem>>, vector<1x16x128xf32>
    %137 = vector.shape_cast %136 : vector<1x16x128xf32> to vector<16x128xf32>
    %138 = vector.broadcast %135 : f32 to vector<16x128xf32>
    %139 = arith.mulf %137, %138 : vector<16x128xf32>
    %140 = arith.addf %134, %139 : vector<16x128xf32>
    %c1_95 = arith.constant 1 : index
    %c8_96 = arith.constant 8 : index
    %141 = memref.load %arg3[%c1_95, %c8_96] : memref<8x15xf32, #tpu.memory_space<smem>>
    %c0_97 = arith.constant 0 : index
    %c0_98 = arith.constant 0 : index
    %c129_99 = arith.constant 129 : index
    %142 = vector.load %arg6[%c0_97, %c0_98, %c129_99] : memref<4x16x263xf32, #tpu.memory_space<vmem>>, vector<1x16x128xf32>
    %143 = vector.shape_cast %142 : vector<1x16x128xf32> to vector<16x128xf32>
    %144 = vector.broadcast %141 : f32 to vector<16x128xf32>
    %145 = arith.mulf %143, %144 : vector<16x128xf32>
    %146 = arith.addf %140, %145 : vector<16x128xf32>
    %c1_100 = arith.constant 1 : index
    %c9_101 = arith.constant 9 : index
    %147 = memref.load %arg3[%c1_100, %c9_101] : memref<8x15xf32, #tpu.memory_space<smem>>
    %c0_102 = arith.constant 0 : index
    %c0_103 = arith.constant 0 : index
    %c130_104 = arith.constant 130 : index
    %148 = vector.load %arg6[%c0_102, %c0_103, %c130_104] : memref<4x16x263xf32, #tpu.memory_space<vmem>>, vector<1x16x128xf32>
    %149 = vector.shape_cast %148 : vector<1x16x128xf32> to vector<16x128xf32>
    %150 = vector.broadcast %147 : f32 to vector<16x128xf32>
    %151 = arith.mulf %149, %150 : vector<16x128xf32>
    %152 = arith.addf %146, %151 : vector<16x128xf32>
    %c1_105 = arith.constant 1 : index
    %c10_106 = arith.constant 10 : index
    %153 = memref.load %arg3[%c1_105, %c10_106] : memref<8x15xf32, #tpu.memory_space<smem>>
    %c0_107 = arith.constant 0 : index
    %c0_108 = arith.constant 0 : index
    %c131_109 = arith.constant 131 : index
    %154 = vector.load %arg6[%c0_107, %c0_108, %c131_109] : memref<4x16x263xf32, #tpu.memory_space<vmem>>, vector<1x16x128xf32>
    %155 = vector.shape_cast %154 : vector<1x16x128xf32> to vector<16x128xf32>
    %156 = vector.broadcast %153 : f32 to vector<16x128xf32>
    %157 = arith.mulf %155, %156 : vector<16x128xf32>
    %158 = arith.addf %152, %157 : vector<16x128xf32>
    %c1_110 = arith.constant 1 : index
    %c11_111 = arith.constant 11 : index
    %159 = memref.load %arg3[%c1_110, %c11_111] : memref<8x15xf32, #tpu.memory_space<smem>>
    %c0_112 = arith.constant 0 : index
    %c0_113 = arith.constant 0 : index
    %c132_114 = arith.constant 132 : index
    %160 = vector.load %arg6[%c0_112, %c0_113, %c132_114] : memref<4x16x263xf32, #tpu.memory_space<vmem>>, vector<1x16x128xf32>
    %161 = vector.shape_cast %160 : vector<1x16x128xf32> to vector<16x128xf32>
    %162 = vector.broadcast %159 : f32 to vector<16x128xf32>
    %163 = arith.mulf %161, %162 : vector<16x128xf32>
    %164 = arith.addf %158, %163 : vector<16x128xf32>
    %c1_115 = arith.constant 1 : index
    %c12_116 = arith.constant 12 : index
    %165 = memref.load %arg3[%c1_115, %c12_116] : memref<8x15xf32, #tpu.memory_space<smem>>
    %c0_117 = arith.constant 0 : index
    %c0_118 = arith.constant 0 : index
    %c133_119 = arith.constant 133 : index
    %166 = vector.load %arg6[%c0_117, %c0_118, %c133_119] : memref<4x16x263xf32, #tpu.memory_space<vmem>>, vector<1x16x128xf32>
    %167 = vector.shape_cast %166 : vector<1x16x128xf32> to vector<16x128xf32>
    %168 = vector.broadcast %165 : f32 to vector<16x128xf32>
    %169 = arith.mulf %167, %168 : vector<16x128xf32>
    %170 = arith.addf %164, %169 : vector<16x128xf32>
    %c1_120 = arith.constant 1 : index
    %c13_121 = arith.constant 13 : index
    %171 = memref.load %arg3[%c1_120, %c13_121] : memref<8x15xf32, #tpu.memory_space<smem>>
    %c0_122 = arith.constant 0 : index
    %c0_123 = arith.constant 0 : index
    %c134_124 = arith.constant 134 : index
    %172 = vector.load %arg6[%c0_122, %c0_123, %c134_124] : memref<4x16x263xf32, #tpu.memory_space<vmem>>, vector<1x16x128xf32>
    %173 = vector.shape_cast %172 : vector<1x16x128xf32> to vector<16x128xf32>
    %174 = vector.broadcast %171 : f32 to vector<16x128xf32>
    %175 = arith.mulf %173, %174 : vector<16x128xf32>
    %176 = arith.addf %170, %175 : vector<16x128xf32>
    %c1_125 = arith.constant 1 : index
    %c14_126 = arith.constant 14 : index
    %177 = memref.load %arg3[%c1_125, %c14_126] : memref<8x15xf32, #tpu.memory_space<smem>>
    %c0_127 = arith.constant 0 : index
    %c0_128 = arith.constant 0 : index
    %c135_129 = arith.constant 135 : index
    %178 = vector.load %arg6[%c0_127, %c0_128, %c135_129] : memref<4x16x263xf32, #tpu.memory_space<vmem>>, vector<1x16x128xf32>
    %179 = vector.shape_cast %178 : vector<1x16x128xf32> to vector<16x128xf32>
    %180 = vector.broadcast %177 : f32 to vector<16x128xf32>
    %181 = arith.mulf %179, %180 : vector<16x128xf32>
    %182 = arith.addf %176, %181 : vector<16x128xf32>
    %c2_130 = arith.constant 2 : index
    %c0_131 = arith.constant 0 : index
    %183 = memref.load %arg3[%c2_130, %c0_131] : memref<8x15xf32, #tpu.memory_space<smem>>
    %c1_132 = arith.constant 1 : index
    %c0_133 = arith.constant 0 : index
    %c121_134 = arith.constant 121 : index
    %184 = vector.load %arg6[%c1_132, %c0_133, %c121_134] : memref<4x16x263xf32, #tpu.memory_space<vmem>>, vector<1x16x128xf32>
    %185 = vector.shape_cast %184 : vector<1x16x128xf32> to vector<16x128xf32>
    %186 = vector.broadcast %183 : f32 to vector<16x128xf32>
    %187 = arith.mulf %185, %186 : vector<16x128xf32>
    %c2_135 = arith.constant 2 : index
    %c1_136 = arith.constant 1 : index
    %188 = memref.load %arg3[%c2_135, %c1_136] : memref<8x15xf32, #tpu.memory_space<smem>>
    %c1_137 = arith.constant 1 : index
    %c0_138 = arith.constant 0 : index
    %c122_139 = arith.constant 122 : index
    %189 = vector.load %arg6[%c1_137, %c0_138, %c122_139] : memref<4x16x263xf32, #tpu.memory_space<vmem>>, vector<1x16x128xf32>
    %190 = vector.shape_cast %189 : vector<1x16x128xf32> to vector<16x128xf32>
    %191 = vector.broadcast %188 : f32 to vector<16x128xf32>
    %192 = arith.mulf %190, %191 : vector<16x128xf32>
    %193 = arith.addf %187, %192 : vector<16x128xf32>
    %c2_140 = arith.constant 2 : index
    %c2_141 = arith.constant 2 : index
    %194 = memref.load %arg3[%c2_140, %c2_141] : memref<8x15xf32, #tpu.memory_space<smem>>
    %c1_142 = arith.constant 1 : index
    %c0_143 = arith.constant 0 : index
    %c123_144 = arith.constant 123 : index
    %195 = vector.load %arg6[%c1_142, %c0_143, %c123_144] : memref<4x16x263xf32, #tpu.memory_space<vmem>>, vector<1x16x128xf32>
    %196 = vector.shape_cast %195 : vector<1x16x128xf32> to vector<16x128xf32>
    %197 = vector.broadcast %194 : f32 to vector<16x128xf32>
    %198 = arith.mulf %196, %197 : vector<16x128xf32>
    %199 = arith.addf %193, %198 : vector<16x128xf32>
    %c2_145 = arith.constant 2 : index
    %c3_146 = arith.constant 3 : index
    %200 = memref.load %arg3[%c2_145, %c3_146] : memref<8x15xf32, #tpu.memory_space<smem>>
    %c1_147 = arith.constant 1 : index
    %c0_148 = arith.constant 0 : index
    %c124_149 = arith.constant 124 : index
    %201 = vector.load %arg6[%c1_147, %c0_148, %c124_149] : memref<4x16x263xf32, #tpu.memory_space<vmem>>, vector<1x16x128xf32>
    %202 = vector.shape_cast %201 : vector<1x16x128xf32> to vector<16x128xf32>
    %203 = vector.broadcast %200 : f32 to vector<16x128xf32>
    %204 = arith.mulf %202, %203 : vector<16x128xf32>
    %205 = arith.addf %199, %204 : vector<16x128xf32>
    %c2_150 = arith.constant 2 : index
    %c4_151 = arith.constant 4 : index
    %206 = memref.load %arg3[%c2_150, %c4_151] : memref<8x15xf32, #tpu.memory_space<smem>>
    %c1_152 = arith.constant 1 : index
    %c0_153 = arith.constant 0 : index
    %c125_154 = arith.constant 125 : index
    %207 = vector.load %arg6[%c1_152, %c0_153, %c125_154] : memref<4x16x263xf32, #tpu.memory_space<vmem>>, vector<1x16x128xf32>
    %208 = vector.shape_cast %207 : vector<1x16x128xf32> to vector<16x128xf32>
    %209 = vector.broadcast %206 : f32 to vector<16x128xf32>
    %210 = arith.mulf %208, %209 : vector<16x128xf32>
    %211 = arith.addf %205, %210 : vector<16x128xf32>
    %c2_155 = arith.constant 2 : index
    %c5_156 = arith.constant 5 : index
    %212 = memref.load %arg3[%c2_155, %c5_156] : memref<8x15xf32, #tpu.memory_space<smem>>
    %c1_157 = arith.constant 1 : index
    %c0_158 = arith.constant 0 : index
    %c126_159 = arith.constant 126 : index
    %213 = vector.load %arg6[%c1_157, %c0_158, %c126_159] : memref<4x16x263xf32, #tpu.memory_space<vmem>>, vector<1x16x128xf32>
    %214 = vector.shape_cast %213 : vector<1x16x128xf32> to vector<16x128xf32>
    %215 = vector.broadcast %212 : f32 to vector<16x128xf32>
    %216 = arith.mulf %214, %215 : vector<16x128xf32>
    %217 = arith.addf %211, %216 : vector<16x128xf32>
    %c2_160 = arith.constant 2 : index
    %c6_161 = arith.constant 6 : index
    %218 = memref.load %arg3[%c2_160, %c6_161] : memref<8x15xf32, #tpu.memory_space<smem>>
    %c1_162 = arith.constant 1 : index
    %c0_163 = arith.constant 0 : index
    %c127_164 = arith.constant 127 : index
    %219 = vector.load %arg6[%c1_162, %c0_163, %c127_164] : memref<4x16x263xf32, #tpu.memory_space<vmem>>, vector<1x16x128xf32>
    %220 = vector.shape_cast %219 : vector<1x16x128xf32> to vector<16x128xf32>
    %221 = vector.broadcast %218 : f32 to vector<16x128xf32>
    %222 = arith.mulf %220, %221 : vector<16x128xf32>
    %223 = arith.addf %217, %222 : vector<16x128xf32>
    %c2_165 = arith.constant 2 : index
    %c7_166 = arith.constant 7 : index
    %224 = memref.load %arg3[%c2_165, %c7_166] : memref<8x15xf32, #tpu.memory_space<smem>>
    %c1_167 = arith.constant 1 : index
    %c0_168 = arith.constant 0 : index
    %c128_169 = arith.constant 128 : index
    %225 = vector.load %arg6[%c1_167, %c0_168, %c128_169] : memref<4x16x263xf32, #tpu.memory_space<vmem>>, vector<1x16x128xf32>
    %226 = vector.shape_cast %225 : vector<1x16x128xf32> to vector<16x128xf32>
    %227 = vector.broadcast %224 : f32 to vector<16x128xf32>
    %228 = arith.mulf %226, %227 : vector<16x128xf32>
    %229 = arith.addf %223, %228 : vector<16x128xf32>
    %c2_170 = arith.constant 2 : index
    %c8_171 = arith.constant 8 : index
    %230 = memref.load %arg3[%c2_170, %c8_171] : memref<8x15xf32, #tpu.memory_space<smem>>
    %c1_172 = arith.constant 1 : index
    %c0_173 = arith.constant 0 : index
    %c129_174 = arith.constant 129 : index
    %231 = vector.load %arg6[%c1_172, %c0_173, %c129_174] : memref<4x16x263xf32, #tpu.memory_space<vmem>>, vector<1x16x128xf32>
    %232 = vector.shape_cast %231 : vector<1x16x128xf32> to vector<16x128xf32>
    %233 = vector.broadcast %230 : f32 to vector<16x128xf32>
    %234 = arith.mulf %232, %233 : vector<16x128xf32>
    %235 = arith.addf %229, %234 : vector<16x128xf32>
    %c2_175 = arith.constant 2 : index
    %c9_176 = arith.constant 9 : index
    %236 = memref.load %arg3[%c2_175, %c9_176] : memref<8x15xf32, #tpu.memory_space<smem>>
    %c1_177 = arith.constant 1 : index
    %c0_178 = arith.constant 0 : index
    %c130_179 = arith.constant 130 : index
    %237 = vector.load %arg6[%c1_177, %c0_178, %c130_179] : memref<4x16x263xf32, #tpu.memory_space<vmem>>, vector<1x16x128xf32>
    %238 = vector.shape_cast %237 : vector<1x16x128xf32> to vector<16x128xf32>
    %239 = vector.broadcast %236 : f32 to vector<16x128xf32>
    %240 = arith.mulf %238, %239 : vector<16x128xf32>
    %241 = arith.addf %235, %240 : vector<16x128xf32>
    %c2_180 = arith.constant 2 : index
    %c10_181 = arith.constant 10 : index
    %242 = memref.load %arg3[%c2_180, %c10_181] : memref<8x15xf32, #tpu.memory_space<smem>>
    %c1_182 = arith.constant 1 : index
    %c0_183 = arith.constant 0 : index
    %c131_184 = arith.constant 131 : index
    %243 = vector.load %arg6[%c1_182, %c0_183, %c131_184] : memref<4x16x263xf32, #tpu.memory_space<vmem>>, vector<1x16x128xf32>
    %244 = vector.shape_cast %243 : vector<1x16x128xf32> to vector<16x128xf32>
    %245 = vector.broadcast %242 : f32 to vector<16x128xf32>
    %246 = arith.mulf %244, %245 : vector<16x128xf32>
    %247 = arith.addf %241, %246 : vector<16x128xf32>
    %c2_185 = arith.constant 2 : index
    %c11_186 = arith.constant 11 : index
    %248 = memref.load %arg3[%c2_185, %c11_186] : memref<8x15xf32, #tpu.memory_space<smem>>
    %c1_187 = arith.constant 1 : index
    %c0_188 = arith.constant 0 : index
    %c132_189 = arith.constant 132 : index
    %249 = vector.load %arg6[%c1_187, %c0_188, %c132_189] : memref<4x16x263xf32, #tpu.memory_space<vmem>>, vector<1x16x128xf32>
    %250 = vector.shape_cast %249 : vector<1x16x128xf32> to vector<16x128xf32>
    %251 = vector.broadcast %248 : f32 to vector<16x128xf32>
    %252 = arith.mulf %250, %251 : vector<16x128xf32>
    %253 = arith.addf %247, %252 : vector<16x128xf32>
    %c2_190 = arith.constant 2 : index
    %c12_191 = arith.constant 12 : index
    %254 = memref.load %arg3[%c2_190, %c12_191] : memref<8x15xf32, #tpu.memory_space<smem>>
    %c1_192 = arith.constant 1 : index
    %c0_193 = arith.constant 0 : index
    %c133_194 = arith.constant 133 : index
    %255 = vector.load %arg6[%c1_192, %c0_193, %c133_194] : memref<4x16x263xf32, #tpu.memory_space<vmem>>, vector<1x16x128xf32>
    %256 = vector.shape_cast %255 : vector<1x16x128xf32> to vector<16x128xf32>
    %257 = vector.broadcast %254 : f32 to vector<16x128xf32>
    %258 = arith.mulf %256, %257 : vector<16x128xf32>
    %259 = arith.addf %253, %258 : vector<16x128xf32>
    %c2_195 = arith.constant 2 : index
    %c13_196 = arith.constant 13 : index
    %260 = memref.load %arg3[%c2_195, %c13_196] : memref<8x15xf32, #tpu.memory_space<smem>>
    %c1_197 = arith.constant 1 : index
    %c0_198 = arith.constant 0 : index
    %c134_199 = arith.constant 134 : index
    %261 = vector.load %arg6[%c1_197, %c0_198, %c134_199] : memref<4x16x263xf32, #tpu.memory_space<vmem>>, vector<1x16x128xf32>
    %262 = vector.shape_cast %261 : vector<1x16x128xf32> to vector<16x128xf32>
    %263 = vector.broadcast %260 : f32 to vector<16x128xf32>
    %264 = arith.mulf %262, %263 : vector<16x128xf32>
    %265 = arith.addf %259, %264 : vector<16x128xf32>
    %c2_200 = arith.constant 2 : index
    %c14_201 = arith.constant 14 : index
    %266 = memref.load %arg3[%c2_200, %c14_201] : memref<8x15xf32, #tpu.memory_space<smem>>
    %c1_202 = arith.constant 1 : index
    %c0_203 = arith.constant 0 : index
    %c135_204 = arith.constant 135 : index
    %267 = vector.load %arg6[%c1_202, %c0_203, %c135_204] : memref<4x16x263xf32, #tpu.memory_space<vmem>>, vector<1x16x128xf32>
    %268 = vector.shape_cast %267 : vector<1x16x128xf32> to vector<16x128xf32>
    %269 = vector.broadcast %266 : f32 to vector<16x128xf32>
    %270 = arith.mulf %268, %269 : vector<16x128xf32>
    %271 = arith.addf %265, %270 : vector<16x128xf32>
    %c3_205 = arith.constant 3 : index
    %c0_206 = arith.constant 0 : index
    %272 = memref.load %arg3[%c3_205, %c0_206] : memref<8x15xf32, #tpu.memory_space<smem>>
    %c1_207 = arith.constant 1 : index
    %c0_208 = arith.constant 0 : index
    %c121_209 = arith.constant 121 : index
    %273 = vector.load %arg6[%c1_207, %c0_208, %c121_209] : memref<4x16x263xf32, #tpu.memory_space<vmem>>, vector<1x16x128xf32>
    %274 = vector.shape_cast %273 : vector<1x16x128xf32> to vector<16x128xf32>
    %275 = vector.broadcast %272 : f32 to vector<16x128xf32>
    %276 = arith.mulf %274, %275 : vector<16x128xf32>
    %c3_210 = arith.constant 3 : index
    %c1_211 = arith.constant 1 : index
    %277 = memref.load %arg3[%c3_210, %c1_211] : memref<8x15xf32, #tpu.memory_space<smem>>
    %c1_212 = arith.constant 1 : index
    %c0_213 = arith.constant 0 : index
    %c122_214 = arith.constant 122 : index
    %278 = vector.load %arg6[%c1_212, %c0_213, %c122_214] : memref<4x16x263xf32, #tpu.memory_space<vmem>>, vector<1x16x128xf32>
    %279 = vector.shape_cast %278 : vector<1x16x128xf32> to vector<16x128xf32>
    %280 = vector.broadcast %277 : f32 to vector<16x128xf32>
    %281 = arith.mulf %279, %280 : vector<16x128xf32>
    %282 = arith.addf %276, %281 : vector<16x128xf32>
    %c3_215 = arith.constant 3 : index
    %c2_216 = arith.constant 2 : index
    %283 = memref.load %arg3[%c3_215, %c2_216] : memref<8x15xf32, #tpu.memory_space<smem>>
    %c1_217 = arith.constant 1 : index
    %c0_218 = arith.constant 0 : index
    %c123_219 = arith.constant 123 : index
    %284 = vector.load %arg6[%c1_217, %c0_218, %c123_219] : memref<4x16x263xf32, #tpu.memory_space<vmem>>, vector<1x16x128xf32>
    %285 = vector.shape_cast %284 : vector<1x16x128xf32> to vector<16x128xf32>
    %286 = vector.broadcast %283 : f32 to vector<16x128xf32>
    %287 = arith.mulf %285, %286 : vector<16x128xf32>
    %288 = arith.addf %282, %287 : vector<16x128xf32>
    %c3_220 = arith.constant 3 : index
    %c3_221 = arith.constant 3 : index
    %289 = memref.load %arg3[%c3_220, %c3_221] : memref<8x15xf32, #tpu.memory_space<smem>>
    %c1_222 = arith.constant 1 : index
    %c0_223 = arith.constant 0 : index
    %c124_224 = arith.constant 124 : index
    %290 = vector.load %arg6[%c1_222, %c0_223, %c124_224] : memref<4x16x263xf32, #tpu.memory_space<vmem>>, vector<1x16x128xf32>
    %291 = vector.shape_cast %290 : vector<1x16x128xf32> to vector<16x128xf32>
    %292 = vector.broadcast %289 : f32 to vector<16x128xf32>
    %293 = arith.mulf %291, %292 : vector<16x128xf32>
    %294 = arith.addf %288, %293 : vector<16x128xf32>
    %c3_225 = arith.constant 3 : index
    %c4_226 = arith.constant 4 : index
    %295 = memref.load %arg3[%c3_225, %c4_226] : memref<8x15xf32, #tpu.memory_space<smem>>
    %c1_227 = arith.constant 1 : index
    %c0_228 = arith.constant 0 : index
    %c125_229 = arith.constant 125 : index
    %296 = vector.load %arg6[%c1_227, %c0_228, %c125_229] : memref<4x16x263xf32, #tpu.memory_space<vmem>>, vector<1x16x128xf32>
    %297 = vector.shape_cast %296 : vector<1x16x128xf32> to vector<16x128xf32>
    %298 = vector.broadcast %295 : f32 to vector<16x128xf32>
    %299 = arith.mulf %297, %298 : vector<16x128xf32>
    %300 = arith.addf %294, %299 : vector<16x128xf32>
    %c3_230 = arith.constant 3 : index
    %c5_231 = arith.constant 5 : index
    %301 = memref.load %arg3[%c3_230, %c5_231] : memref<8x15xf32, #tpu.memory_space<smem>>
    %c1_232 = arith.constant 1 : index
    %c0_233 = arith.constant 0 : index
    %c126_234 = arith.constant 126 : index
    %302 = vector.load %arg6[%c1_232, %c0_233, %c126_234] : memref<4x16x263xf32, #tpu.memory_space<vmem>>, vector<1x16x128xf32>
    %303 = vector.shape_cast %302 : vector<1x16x128xf32> to vector<16x128xf32>
    %304 = vector.broadcast %301 : f32 to vector<16x128xf32>
    %305 = arith.mulf %303, %304 : vector<16x128xf32>
    %306 = arith.addf %300, %305 : vector<16x128xf32>
    %c3_235 = arith.constant 3 : index
    %c6_236 = arith.constant 6 : index
    %307 = memref.load %arg3[%c3_235, %c6_236] : memref<8x15xf32, #tpu.memory_space<smem>>
    %c1_237 = arith.constant 1 : index
    %c0_238 = arith.constant 0 : index
    %c127_239 = arith.constant 127 : index
    %308 = vector.load %arg6[%c1_237, %c0_238, %c127_239] : memref<4x16x263xf32, #tpu.memory_space<vmem>>, vector<1x16x128xf32>
    %309 = vector.shape_cast %308 : vector<1x16x128xf32> to vector<16x128xf32>
    %310 = vector.broadcast %307 : f32 to vector<16x128xf32>
    %311 = arith.mulf %309, %310 : vector<16x128xf32>
    %312 = arith.addf %306, %311 : vector<16x128xf32>
    %c3_240 = arith.constant 3 : index
    %c7_241 = arith.constant 7 : index
    %313 = memref.load %arg3[%c3_240, %c7_241] : memref<8x15xf32, #tpu.memory_space<smem>>
    %c1_242 = arith.constant 1 : index
    %c0_243 = arith.constant 0 : index
    %c128_244 = arith.constant 128 : index
    %314 = vector.load %arg6[%c1_242, %c0_243, %c128_244] : memref<4x16x263xf32, #tpu.memory_space<vmem>>, vector<1x16x128xf32>
    %315 = vector.shape_cast %314 : vector<1x16x128xf32> to vector<16x128xf32>
    %316 = vector.broadcast %313 : f32 to vector<16x128xf32>
    %317 = arith.mulf %315, %316 : vector<16x128xf32>
    %318 = arith.addf %312, %317 : vector<16x128xf32>
    %c3_245 = arith.constant 3 : index
    %c8_246 = arith.constant 8 : index
    %319 = memref.load %arg3[%c3_245, %c8_246] : memref<8x15xf32, #tpu.memory_space<smem>>
    %c1_247 = arith.constant 1 : index
    %c0_248 = arith.constant 0 : index
    %c129_249 = arith.constant 129 : index
    %320 = vector.load %arg6[%c1_247, %c0_248, %c129_249] : memref<4x16x263xf32, #tpu.memory_space<vmem>>, vector<1x16x128xf32>
    %321 = vector.shape_cast %320 : vector<1x16x128xf32> to vector<16x128xf32>
    %322 = vector.broadcast %319 : f32 to vector<16x128xf32>
    %323 = arith.mulf %321, %322 : vector<16x128xf32>
    %324 = arith.addf %318, %323 : vector<16x128xf32>
    %c3_250 = arith.constant 3 : index
    %c9_251 = arith.constant 9 : index
    %325 = memref.load %arg3[%c3_250, %c9_251] : memref<8x15xf32, #tpu.memory_space<smem>>
    %c1_252 = arith.constant 1 : index
    %c0_253 = arith.constant 0 : index
    %c130_254 = arith.constant 130 : index
    %326 = vector.load %arg6[%c1_252, %c0_253, %c130_254] : memref<4x16x263xf32, #tpu.memory_space<vmem>>, vector<1x16x128xf32>
    %327 = vector.shape_cast %326 : vector<1x16x128xf32> to vector<16x128xf32>
    %328 = vector.broadcast %325 : f32 to vector<16x128xf32>
    %329 = arith.mulf %327, %328 : vector<16x128xf32>
    %330 = arith.addf %324, %329 : vector<16x128xf32>
    %c3_255 = arith.constant 3 : index
    %c10_256 = arith.constant 10 : index
    %331 = memref.load %arg3[%c3_255, %c10_256] : memref<8x15xf32, #tpu.memory_space<smem>>
    %c1_257 = arith.constant 1 : index
    %c0_258 = arith.constant 0 : index
    %c131_259 = arith.constant 131 : index
    %332 = vector.load %arg6[%c1_257, %c0_258, %c131_259] : memref<4x16x263xf32, #tpu.memory_space<vmem>>, vector<1x16x128xf32>
    %333 = vector.shape_cast %332 : vector<1x16x128xf32> to vector<16x128xf32>
    %334 = vector.broadcast %331 : f32 to vector<16x128xf32>
    %335 = arith.mulf %333, %334 : vector<16x128xf32>
    %336 = arith.addf %330, %335 : vector<16x128xf32>
    %c3_260 = arith.constant 3 : index
    %c11_261 = arith.constant 11 : index
    %337 = memref.load %arg3[%c3_260, %c11_261] : memref<8x15xf32, #tpu.memory_space<smem>>
    %c1_262 = arith.constant 1 : index
    %c0_263 = arith.constant 0 : index
    %c132_264 = arith.constant 132 : index
    %338 = vector.load %arg6[%c1_262, %c0_263, %c132_264] : memref<4x16x263xf32, #tpu.memory_space<vmem>>, vector<1x16x128xf32>
    %339 = vector.shape_cast %338 : vector<1x16x128xf32> to vector<16x128xf32>
    %340 = vector.broadcast %337 : f32 to vector<16x128xf32>
    %341 = arith.mulf %339, %340 : vector<16x128xf32>
    %342 = arith.addf %336, %341 : vector<16x128xf32>
    %c3_265 = arith.constant 3 : index
    %c12_266 = arith.constant 12 : index
    %343 = memref.load %arg3[%c3_265, %c12_266] : memref<8x15xf32, #tpu.memory_space<smem>>
    %c1_267 = arith.constant 1 : index
    %c0_268 = arith.constant 0 : index
    %c133_269 = arith.constant 133 : index
    %344 = vector.load %arg6[%c1_267, %c0_268, %c133_269] : memref<4x16x263xf32, #tpu.memory_space<vmem>>, vector<1x16x128xf32>
    %345 = vector.shape_cast %344 : vector<1x16x128xf32> to vector<16x128xf32>
    %346 = vector.broadcast %343 : f32 to vector<16x128xf32>
    %347 = arith.mulf %345, %346 : vector<16x128xf32>
    %348 = arith.addf %342, %347 : vector<16x128xf32>
    %c3_270 = arith.constant 3 : index
    %c13_271 = arith.constant 13 : index
    %349 = memref.load %arg3[%c3_270, %c13_271] : memref<8x15xf32, #tpu.memory_space<smem>>
    %c1_272 = arith.constant 1 : index
    %c0_273 = arith.constant 0 : index
    %c134_274 = arith.constant 134 : index
    %350 = vector.load %arg6[%c1_272, %c0_273, %c134_274] : memref<4x16x263xf32, #tpu.memory_space<vmem>>, vector<1x16x128xf32>
    %351 = vector.shape_cast %350 : vector<1x16x128xf32> to vector<16x128xf32>
    %352 = vector.broadcast %349 : f32 to vector<16x128xf32>
    %353 = arith.mulf %351, %352 : vector<16x128xf32>
    %354 = arith.addf %348, %353 : vector<16x128xf32>
    %c3_275 = arith.constant 3 : index
    %c14_276 = arith.constant 14 : index
    %355 = memref.load %arg3[%c3_275, %c14_276] : memref<8x15xf32, #tpu.memory_space<smem>>
    %c1_277 = arith.constant 1 : index
    %c0_278 = arith.constant 0 : index
    %c135_279 = arith.constant 135 : index
    %356 = vector.load %arg6[%c1_277, %c0_278, %c135_279] : memref<4x16x263xf32, #tpu.memory_space<vmem>>, vector<1x16x128xf32>
    %357 = vector.shape_cast %356 : vector<1x16x128xf32> to vector<16x128xf32>
    %358 = vector.broadcast %355 : f32 to vector<16x128xf32>
    %359 = arith.mulf %357, %358 : vector<16x128xf32>
    %360 = arith.addf %354, %359 : vector<16x128xf32>
    %c4_280 = arith.constant 4 : index
    %c0_281 = arith.constant 0 : index
    %361 = memref.load %arg3[%c4_280, %c0_281] : memref<8x15xf32, #tpu.memory_space<smem>>
    %c2_282 = arith.constant 2 : index
    %c0_283 = arith.constant 0 : index
    %c121_284 = arith.constant 121 : index
    %362 = vector.load %arg6[%c2_282, %c0_283, %c121_284] : memref<4x16x263xf32, #tpu.memory_space<vmem>>, vector<1x16x128xf32>
    %363 = vector.shape_cast %362 : vector<1x16x128xf32> to vector<16x128xf32>
    %364 = vector.broadcast %361 : f32 to vector<16x128xf32>
    %365 = arith.mulf %363, %364 : vector<16x128xf32>
    %c4_285 = arith.constant 4 : index
    %c1_286 = arith.constant 1 : index
    %366 = memref.load %arg3[%c4_285, %c1_286] : memref<8x15xf32, #tpu.memory_space<smem>>
    %c2_287 = arith.constant 2 : index
    %c0_288 = arith.constant 0 : index
    %c122_289 = arith.constant 122 : index
    %367 = vector.load %arg6[%c2_287, %c0_288, %c122_289] : memref<4x16x263xf32, #tpu.memory_space<vmem>>, vector<1x16x128xf32>
    %368 = vector.shape_cast %367 : vector<1x16x128xf32> to vector<16x128xf32>
    %369 = vector.broadcast %366 : f32 to vector<16x128xf32>
    %370 = arith.mulf %368, %369 : vector<16x128xf32>
    %371 = arith.addf %365, %370 : vector<16x128xf32>
    %c4_290 = arith.constant 4 : index
    %c2_291 = arith.constant 2 : index
    %372 = memref.load %arg3[%c4_290, %c2_291] : memref<8x15xf32, #tpu.memory_space<smem>>
    %c2_292 = arith.constant 2 : index
    %c0_293 = arith.constant 0 : index
    %c123_294 = arith.constant 123 : index
    %373 = vector.load %arg6[%c2_292, %c0_293, %c123_294] : memref<4x16x263xf32, #tpu.memory_space<vmem>>, vector<1x16x128xf32>
    %374 = vector.shape_cast %373 : vector<1x16x128xf32> to vector<16x128xf32>
    %375 = vector.broadcast %372 : f32 to vector<16x128xf32>
    %376 = arith.mulf %374, %375 : vector<16x128xf32>
    %377 = arith.addf %371, %376 : vector<16x128xf32>
    %c4_295 = arith.constant 4 : index
    %c3_296 = arith.constant 3 : index
    %378 = memref.load %arg3[%c4_295, %c3_296] : memref<8x15xf32, #tpu.memory_space<smem>>
    %c2_297 = arith.constant 2 : index
    %c0_298 = arith.constant 0 : index
    %c124_299 = arith.constant 124 : index
    %379 = vector.load %arg6[%c2_297, %c0_298, %c124_299] : memref<4x16x263xf32, #tpu.memory_space<vmem>>, vector<1x16x128xf32>
    %380 = vector.shape_cast %379 : vector<1x16x128xf32> to vector<16x128xf32>
    %381 = vector.broadcast %378 : f32 to vector<16x128xf32>
    %382 = arith.mulf %380, %381 : vector<16x128xf32>
    %383 = arith.addf %377, %382 : vector<16x128xf32>
    %c4_300 = arith.constant 4 : index
    %c4_301 = arith.constant 4 : index
    %384 = memref.load %arg3[%c4_300, %c4_301] : memref<8x15xf32, #tpu.memory_space<smem>>
    %c2_302 = arith.constant 2 : index
    %c0_303 = arith.constant 0 : index
    %c125_304 = arith.constant 125 : index
    %385 = vector.load %arg6[%c2_302, %c0_303, %c125_304] : memref<4x16x263xf32, #tpu.memory_space<vmem>>, vector<1x16x128xf32>
    %386 = vector.shape_cast %385 : vector<1x16x128xf32> to vector<16x128xf32>
    %387 = vector.broadcast %384 : f32 to vector<16x128xf32>
    %388 = arith.mulf %386, %387 : vector<16x128xf32>
    %389 = arith.addf %383, %388 : vector<16x128xf32>
    %c4_305 = arith.constant 4 : index
    %c5_306 = arith.constant 5 : index
    %390 = memref.load %arg3[%c4_305, %c5_306] : memref<8x15xf32, #tpu.memory_space<smem>>
    %c2_307 = arith.constant 2 : index
    %c0_308 = arith.constant 0 : index
    %c126_309 = arith.constant 126 : index
    %391 = vector.load %arg6[%c2_307, %c0_308, %c126_309] : memref<4x16x263xf32, #tpu.memory_space<vmem>>, vector<1x16x128xf32>
    %392 = vector.shape_cast %391 : vector<1x16x128xf32> to vector<16x128xf32>
    %393 = vector.broadcast %390 : f32 to vector<16x128xf32>
    %394 = arith.mulf %392, %393 : vector<16x128xf32>
    %395 = arith.addf %389, %394 : vector<16x128xf32>
    %c4_310 = arith.constant 4 : index
    %c6_311 = arith.constant 6 : index
    %396 = memref.load %arg3[%c4_310, %c6_311] : memref<8x15xf32, #tpu.memory_space<smem>>
    %c2_312 = arith.constant 2 : index
    %c0_313 = arith.constant 0 : index
    %c127_314 = arith.constant 127 : index
    %397 = vector.load %arg6[%c2_312, %c0_313, %c127_314] : memref<4x16x263xf32, #tpu.memory_space<vmem>>, vector<1x16x128xf32>
    %398 = vector.shape_cast %397 : vector<1x16x128xf32> to vector<16x128xf32>
    %399 = vector.broadcast %396 : f32 to vector<16x128xf32>
    %400 = arith.mulf %398, %399 : vector<16x128xf32>
    %401 = arith.addf %395, %400 : vector<16x128xf32>
    %c4_315 = arith.constant 4 : index
    %c7_316 = arith.constant 7 : index
    %402 = memref.load %arg3[%c4_315, %c7_316] : memref<8x15xf32, #tpu.memory_space<smem>>
    %c2_317 = arith.constant 2 : index
    %c0_318 = arith.constant 0 : index
    %c128_319 = arith.constant 128 : index
    %403 = vector.load %arg6[%c2_317, %c0_318, %c128_319] : memref<4x16x263xf32, #tpu.memory_space<vmem>>, vector<1x16x128xf32>
    %404 = vector.shape_cast %403 : vector<1x16x128xf32> to vector<16x128xf32>
    %405 = vector.broadcast %402 : f32 to vector<16x128xf32>
    %406 = arith.mulf %404, %405 : vector<16x128xf32>
    %407 = arith.addf %401, %406 : vector<16x128xf32>
    %c4_320 = arith.constant 4 : index
    %c8_321 = arith.constant 8 : index
    %408 = memref.load %arg3[%c4_320, %c8_321] : memref<8x15xf32, #tpu.memory_space<smem>>
    %c2_322 = arith.constant 2 : index
    %c0_323 = arith.constant 0 : index
    %c129_324 = arith.constant 129 : index
    %409 = vector.load %arg6[%c2_322, %c0_323, %c129_324] : memref<4x16x263xf32, #tpu.memory_space<vmem>>, vector<1x16x128xf32>
    %410 = vector.shape_cast %409 : vector<1x16x128xf32> to vector<16x128xf32>
    %411 = vector.broadcast %408 : f32 to vector<16x128xf32>
    %412 = arith.mulf %410, %411 : vector<16x128xf32>
    %413 = arith.addf %407, %412 : vector<16x128xf32>
    %c4_325 = arith.constant 4 : index
    %c9_326 = arith.constant 9 : index
    %414 = memref.load %arg3[%c4_325, %c9_326] : memref<8x15xf32, #tpu.memory_space<smem>>
    %c2_327 = arith.constant 2 : index
    %c0_328 = arith.constant 0 : index
    %c130_329 = arith.constant 130 : index
    %415 = vector.load %arg6[%c2_327, %c0_328, %c130_329] : memref<4x16x263xf32, #tpu.memory_space<vmem>>, vector<1x16x128xf32>
    %416 = vector.shape_cast %415 : vector<1x16x128xf32> to vector<16x128xf32>
    %417 = vector.broadcast %414 : f32 to vector<16x128xf32>
    %418 = arith.mulf %416, %417 : vector<16x128xf32>
    %419 = arith.addf %413, %418 : vector<16x128xf32>
    %c4_330 = arith.constant 4 : index
    %c10_331 = arith.constant 10 : index
    %420 = memref.load %arg3[%c4_330, %c10_331] : memref<8x15xf32, #tpu.memory_space<smem>>
    %c2_332 = arith.constant 2 : index
    %c0_333 = arith.constant 0 : index
    %c131_334 = arith.constant 131 : index
    %421 = vector.load %arg6[%c2_332, %c0_333, %c131_334] : memref<4x16x263xf32, #tpu.memory_space<vmem>>, vector<1x16x128xf32>
    %422 = vector.shape_cast %421 : vector<1x16x128xf32> to vector<16x128xf32>
    %423 = vector.broadcast %420 : f32 to vector<16x128xf32>
    %424 = arith.mulf %422, %423 : vector<16x128xf32>
    %425 = arith.addf %419, %424 : vector<16x128xf32>
    %c4_335 = arith.constant 4 : index
    %c11_336 = arith.constant 11 : index
    %426 = memref.load %arg3[%c4_335, %c11_336] : memref<8x15xf32, #tpu.memory_space<smem>>
    %c2_337 = arith.constant 2 : index
    %c0_338 = arith.constant 0 : index
    %c132_339 = arith.constant 132 : index
    %427 = vector.load %arg6[%c2_337, %c0_338, %c132_339] : memref<4x16x263xf32, #tpu.memory_space<vmem>>, vector<1x16x128xf32>
    %428 = vector.shape_cast %427 : vector<1x16x128xf32> to vector<16x128xf32>
    %429 = vector.broadcast %426 : f32 to vector<16x128xf32>
    %430 = arith.mulf %428, %429 : vector<16x128xf32>
    %431 = arith.addf %425, %430 : vector<16x128xf32>
    %c4_340 = arith.constant 4 : index
    %c12_341 = arith.constant 12 : index
    %432 = memref.load %arg3[%c4_340, %c12_341] : memref<8x15xf32, #tpu.memory_space<smem>>
    %c2_342 = arith.constant 2 : index
    %c0_343 = arith.constant 0 : index
    %c133_344 = arith.constant 133 : index
    %433 = vector.load %arg6[%c2_342, %c0_343, %c133_344] : memref<4x16x263xf32, #tpu.memory_space<vmem>>, vector<1x16x128xf32>
    %434 = vector.shape_cast %433 : vector<1x16x128xf32> to vector<16x128xf32>
    %435 = vector.broadcast %432 : f32 to vector<16x128xf32>
    %436 = arith.mulf %434, %435 : vector<16x128xf32>
    %437 = arith.addf %431, %436 : vector<16x128xf32>
    %c4_345 = arith.constant 4 : index
    %c13_346 = arith.constant 13 : index
    %438 = memref.load %arg3[%c4_345, %c13_346] : memref<8x15xf32, #tpu.memory_space<smem>>
    %c2_347 = arith.constant 2 : index
    %c0_348 = arith.constant 0 : index
    %c134_349 = arith.constant 134 : index
    %439 = vector.load %arg6[%c2_347, %c0_348, %c134_349] : memref<4x16x263xf32, #tpu.memory_space<vmem>>, vector<1x16x128xf32>
    %440 = vector.shape_cast %439 : vector<1x16x128xf32> to vector<16x128xf32>
    %441 = vector.broadcast %438 : f32 to vector<16x128xf32>
    %442 = arith.mulf %440, %441 : vector<16x128xf32>
    %443 = arith.addf %437, %442 : vector<16x128xf32>
    %c4_350 = arith.constant 4 : index
    %c14_351 = arith.constant 14 : index
    %444 = memref.load %arg3[%c4_350, %c14_351] : memref<8x15xf32, #tpu.memory_space<smem>>
    %c2_352 = arith.constant 2 : index
    %c0_353 = arith.constant 0 : index
    %c135_354 = arith.constant 135 : index
    %445 = vector.load %arg6[%c2_352, %c0_353, %c135_354] : memref<4x16x263xf32, #tpu.memory_space<vmem>>, vector<1x16x128xf32>
    %446 = vector.shape_cast %445 : vector<1x16x128xf32> to vector<16x128xf32>
    %447 = vector.broadcast %444 : f32 to vector<16x128xf32>
    %448 = arith.mulf %446, %447 : vector<16x128xf32>
    %449 = arith.addf %443, %448 : vector<16x128xf32>
    %c5_355 = arith.constant 5 : index
    %c0_356 = arith.constant 0 : index
    %450 = memref.load %arg3[%c5_355, %c0_356] : memref<8x15xf32, #tpu.memory_space<smem>>
    %c2_357 = arith.constant 2 : index
    %c0_358 = arith.constant 0 : index
    %c121_359 = arith.constant 121 : index
    %451 = vector.load %arg6[%c2_357, %c0_358, %c121_359] : memref<4x16x263xf32, #tpu.memory_space<vmem>>, vector<1x16x128xf32>
    %452 = vector.shape_cast %451 : vector<1x16x128xf32> to vector<16x128xf32>
    %453 = vector.broadcast %450 : f32 to vector<16x128xf32>
    %454 = arith.mulf %452, %453 : vector<16x128xf32>
    %c5_360 = arith.constant 5 : index
    %c1_361 = arith.constant 1 : index
    %455 = memref.load %arg3[%c5_360, %c1_361] : memref<8x15xf32, #tpu.memory_space<smem>>
    %c2_362 = arith.constant 2 : index
    %c0_363 = arith.constant 0 : index
    %c122_364 = arith.constant 122 : index
    %456 = vector.load %arg6[%c2_362, %c0_363, %c122_364] : memref<4x16x263xf32, #tpu.memory_space<vmem>>, vector<1x16x128xf32>
    %457 = vector.shape_cast %456 : vector<1x16x128xf32> to vector<16x128xf32>
    %458 = vector.broadcast %455 : f32 to vector<16x128xf32>
    %459 = arith.mulf %457, %458 : vector<16x128xf32>
    %460 = arith.addf %454, %459 : vector<16x128xf32>
    %c5_365 = arith.constant 5 : index
    %c2_366 = arith.constant 2 : index
    %461 = memref.load %arg3[%c5_365, %c2_366] : memref<8x15xf32, #tpu.memory_space<smem>>
    %c2_367 = arith.constant 2 : index
    %c0_368 = arith.constant 0 : index
    %c123_369 = arith.constant 123 : index
    %462 = vector.load %arg6[%c2_367, %c0_368, %c123_369] : memref<4x16x263xf32, #tpu.memory_space<vmem>>, vector<1x16x128xf32>
    %463 = vector.shape_cast %462 : vector<1x16x128xf32> to vector<16x128xf32>
    %464 = vector.broadcast %461 : f32 to vector<16x128xf32>
    %465 = arith.mulf %463, %464 : vector<16x128xf32>
    %466 = arith.addf %460, %465 : vector<16x128xf32>
    %c5_370 = arith.constant 5 : index
    %c3_371 = arith.constant 3 : index
    %467 = memref.load %arg3[%c5_370, %c3_371] : memref<8x15xf32, #tpu.memory_space<smem>>
    %c2_372 = arith.constant 2 : index
    %c0_373 = arith.constant 0 : index
    %c124_374 = arith.constant 124 : index
    %468 = vector.load %arg6[%c2_372, %c0_373, %c124_374] : memref<4x16x263xf32, #tpu.memory_space<vmem>>, vector<1x16x128xf32>
    %469 = vector.shape_cast %468 : vector<1x16x128xf32> to vector<16x128xf32>
    %470 = vector.broadcast %467 : f32 to vector<16x128xf32>
    %471 = arith.mulf %469, %470 : vector<16x128xf32>
    %472 = arith.addf %466, %471 : vector<16x128xf32>
    %c5_375 = arith.constant 5 : index
    %c4_376 = arith.constant 4 : index
    %473 = memref.load %arg3[%c5_375, %c4_376] : memref<8x15xf32, #tpu.memory_space<smem>>
    %c2_377 = arith.constant 2 : index
    %c0_378 = arith.constant 0 : index
    %c125_379 = arith.constant 125 : index
    %474 = vector.load %arg6[%c2_377, %c0_378, %c125_379] : memref<4x16x263xf32, #tpu.memory_space<vmem>>, vector<1x16x128xf32>
    %475 = vector.shape_cast %474 : vector<1x16x128xf32> to vector<16x128xf32>
    %476 = vector.broadcast %473 : f32 to vector<16x128xf32>
    %477 = arith.mulf %475, %476 : vector<16x128xf32>
    %478 = arith.addf %472, %477 : vector<16x128xf32>
    %c5_380 = arith.constant 5 : index
    %c5_381 = arith.constant 5 : index
    %479 = memref.load %arg3[%c5_380, %c5_381] : memref<8x15xf32, #tpu.memory_space<smem>>
    %c2_382 = arith.constant 2 : index
    %c0_383 = arith.constant 0 : index
    %c126_384 = arith.constant 126 : index
    %480 = vector.load %arg6[%c2_382, %c0_383, %c126_384] : memref<4x16x263xf32, #tpu.memory_space<vmem>>, vector<1x16x128xf32>
    %481 = vector.shape_cast %480 : vector<1x16x128xf32> to vector<16x128xf32>
    %482 = vector.broadcast %479 : f32 to vector<16x128xf32>
    %483 = arith.mulf %481, %482 : vector<16x128xf32>
    %484 = arith.addf %478, %483 : vector<16x128xf32>
    %c5_385 = arith.constant 5 : index
    %c6_386 = arith.constant 6 : index
    %485 = memref.load %arg3[%c5_385, %c6_386] : memref<8x15xf32, #tpu.memory_space<smem>>
    %c2_387 = arith.constant 2 : index
    %c0_388 = arith.constant 0 : index
    %c127_389 = arith.constant 127 : index
    %486 = vector.load %arg6[%c2_387, %c0_388, %c127_389] : memref<4x16x263xf32, #tpu.memory_space<vmem>>, vector<1x16x128xf32>
    %487 = vector.shape_cast %486 : vector<1x16x128xf32> to vector<16x128xf32>
    %488 = vector.broadcast %485 : f32 to vector<16x128xf32>
    %489 = arith.mulf %487, %488 : vector<16x128xf32>
    %490 = arith.addf %484, %489 : vector<16x128xf32>
    %c5_390 = arith.constant 5 : index
    %c7_391 = arith.constant 7 : index
    %491 = memref.load %arg3[%c5_390, %c7_391] : memref<8x15xf32, #tpu.memory_space<smem>>
    %c2_392 = arith.constant 2 : index
    %c0_393 = arith.constant 0 : index
    %c128_394 = arith.constant 128 : index
    %492 = vector.load %arg6[%c2_392, %c0_393, %c128_394] : memref<4x16x263xf32, #tpu.memory_space<vmem>>, vector<1x16x128xf32>
    %493 = vector.shape_cast %492 : vector<1x16x128xf32> to vector<16x128xf32>
    %494 = vector.broadcast %491 : f32 to vector<16x128xf32>
    %495 = arith.mulf %493, %494 : vector<16x128xf32>
    %496 = arith.addf %490, %495 : vector<16x128xf32>
    %c5_395 = arith.constant 5 : index
    %c8_396 = arith.constant 8 : index
    %497 = memref.load %arg3[%c5_395, %c8_396] : memref<8x15xf32, #tpu.memory_space<smem>>
    %c2_397 = arith.constant 2 : index
    %c0_398 = arith.constant 0 : index
    %c129_399 = arith.constant 129 : index
    %498 = vector.load %arg6[%c2_397, %c0_398, %c129_399] : memref<4x16x263xf32, #tpu.memory_space<vmem>>, vector<1x16x128xf32>
    %499 = vector.shape_cast %498 : vector<1x16x128xf32> to vector<16x128xf32>
    %500 = vector.broadcast %497 : f32 to vector<16x128xf32>
    %501 = arith.mulf %499, %500 : vector<16x128xf32>
    %502 = arith.addf %496, %501 : vector<16x128xf32>
    %c5_400 = arith.constant 5 : index
    %c9_401 = arith.constant 9 : index
    %503 = memref.load %arg3[%c5_400, %c9_401] : memref<8x15xf32, #tpu.memory_space<smem>>
    %c2_402 = arith.constant 2 : index
    %c0_403 = arith.constant 0 : index
    %c130_404 = arith.constant 130 : index
    %504 = vector.load %arg6[%c2_402, %c0_403, %c130_404] : memref<4x16x263xf32, #tpu.memory_space<vmem>>, vector<1x16x128xf32>
    %505 = vector.shape_cast %504 : vector<1x16x128xf32> to vector<16x128xf32>
    %506 = vector.broadcast %503 : f32 to vector<16x128xf32>
    %507 = arith.mulf %505, %506 : vector<16x128xf32>
    %508 = arith.addf %502, %507 : vector<16x128xf32>
    %c5_405 = arith.constant 5 : index
    %c10_406 = arith.constant 10 : index
    %509 = memref.load %arg3[%c5_405, %c10_406] : memref<8x15xf32, #tpu.memory_space<smem>>
    %c2_407 = arith.constant 2 : index
    %c0_408 = arith.constant 0 : index
    %c131_409 = arith.constant 131 : index
    %510 = vector.load %arg6[%c2_407, %c0_408, %c131_409] : memref<4x16x263xf32, #tpu.memory_space<vmem>>, vector<1x16x128xf32>
    %511 = vector.shape_cast %510 : vector<1x16x128xf32> to vector<16x128xf32>
    %512 = vector.broadcast %509 : f32 to vector<16x128xf32>
    %513 = arith.mulf %511, %512 : vector<16x128xf32>
    %514 = arith.addf %508, %513 : vector<16x128xf32>
    %c5_410 = arith.constant 5 : index
    %c11_411 = arith.constant 11 : index
    %515 = memref.load %arg3[%c5_410, %c11_411] : memref<8x15xf32, #tpu.memory_space<smem>>
    %c2_412 = arith.constant 2 : index
    %c0_413 = arith.constant 0 : index
    %c132_414 = arith.constant 132 : index
    %516 = vector.load %arg6[%c2_412, %c0_413, %c132_414] : memref<4x16x263xf32, #tpu.memory_space<vmem>>, vector<1x16x128xf32>
    %517 = vector.shape_cast %516 : vector<1x16x128xf32> to vector<16x128xf32>
    %518 = vector.broadcast %515 : f32 to vector<16x128xf32>
    %519 = arith.mulf %517, %518 : vector<16x128xf32>
    %520 = arith.addf %514, %519 : vector<16x128xf32>
    %c5_415 = arith.constant 5 : index
    %c12_416 = arith.constant 12 : index
    %521 = memref.load %arg3[%c5_415, %c12_416] : memref<8x15xf32, #tpu.memory_space<smem>>
    %c2_417 = arith.constant 2 : index
    %c0_418 = arith.constant 0 : index
    %c133_419 = arith.constant 133 : index
    %522 = vector.load %arg6[%c2_417, %c0_418, %c133_419] : memref<4x16x263xf32, #tpu.memory_space<vmem>>, vector<1x16x128xf32>
    %523 = vector.shape_cast %522 : vector<1x16x128xf32> to vector<16x128xf32>
    %524 = vector.broadcast %521 : f32 to vector<16x128xf32>
    %525 = arith.mulf %523, %524 : vector<16x128xf32>
    %526 = arith.addf %520, %525 : vector<16x128xf32>
    %c5_420 = arith.constant 5 : index
    %c13_421 = arith.constant 13 : index
    %527 = memref.load %arg3[%c5_420, %c13_421] : memref<8x15xf32, #tpu.memory_space<smem>>
    %c2_422 = arith.constant 2 : index
    %c0_423 = arith.constant 0 : index
    %c134_424 = arith.constant 134 : index
    %528 = vector.load %arg6[%c2_422, %c0_423, %c134_424] : memref<4x16x263xf32, #tpu.memory_space<vmem>>, vector<1x16x128xf32>
    %529 = vector.shape_cast %528 : vector<1x16x128xf32> to vector<16x128xf32>
    %530 = vector.broadcast %527 : f32 to vector<16x128xf32>
    %531 = arith.mulf %529, %530 : vector<16x128xf32>
    %532 = arith.addf %526, %531 : vector<16x128xf32>
    %c5_425 = arith.constant 5 : index
    %c14_426 = arith.constant 14 : index
    %533 = memref.load %arg3[%c5_425, %c14_426] : memref<8x15xf32, #tpu.memory_space<smem>>
    %c2_427 = arith.constant 2 : index
    %c0_428 = arith.constant 0 : index
    %c135_429 = arith.constant 135 : index
    %534 = vector.load %arg6[%c2_427, %c0_428, %c135_429] : memref<4x16x263xf32, #tpu.memory_space<vmem>>, vector<1x16x128xf32>
    %535 = vector.shape_cast %534 : vector<1x16x128xf32> to vector<16x128xf32>
    %536 = vector.broadcast %533 : f32 to vector<16x128xf32>
    %537 = arith.mulf %535, %536 : vector<16x128xf32>
    %538 = arith.addf %532, %537 : vector<16x128xf32>
    %c6_430 = arith.constant 6 : index
    %c0_431 = arith.constant 0 : index
    %539 = memref.load %arg3[%c6_430, %c0_431] : memref<8x15xf32, #tpu.memory_space<smem>>
    %c3_432 = arith.constant 3 : index
    %c0_433 = arith.constant 0 : index
    %c121_434 = arith.constant 121 : index
    %540 = vector.load %arg6[%c3_432, %c0_433, %c121_434] : memref<4x16x263xf32, #tpu.memory_space<vmem>>, vector<1x16x128xf32>
    %541 = vector.shape_cast %540 : vector<1x16x128xf32> to vector<16x128xf32>
    %542 = vector.broadcast %539 : f32 to vector<16x128xf32>
    %543 = arith.mulf %541, %542 : vector<16x128xf32>
    %c6_435 = arith.constant 6 : index
    %c1_436 = arith.constant 1 : index
    %544 = memref.load %arg3[%c6_435, %c1_436] : memref<8x15xf32, #tpu.memory_space<smem>>
    %c3_437 = arith.constant 3 : index
    %c0_438 = arith.constant 0 : index
    %c122_439 = arith.constant 122 : index
    %545 = vector.load %arg6[%c3_437, %c0_438, %c122_439] : memref<4x16x263xf32, #tpu.memory_space<vmem>>, vector<1x16x128xf32>
    %546 = vector.shape_cast %545 : vector<1x16x128xf32> to vector<16x128xf32>
    %547 = vector.broadcast %544 : f32 to vector<16x128xf32>
    %548 = arith.mulf %546, %547 : vector<16x128xf32>
    %549 = arith.addf %543, %548 : vector<16x128xf32>
    %c6_440 = arith.constant 6 : index
    %c2_441 = arith.constant 2 : index
    %550 = memref.load %arg3[%c6_440, %c2_441] : memref<8x15xf32, #tpu.memory_space<smem>>
    %c3_442 = arith.constant 3 : index
    %c0_443 = arith.constant 0 : index
    %c123_444 = arith.constant 123 : index
    %551 = vector.load %arg6[%c3_442, %c0_443, %c123_444] : memref<4x16x263xf32, #tpu.memory_space<vmem>>, vector<1x16x128xf32>
    %552 = vector.shape_cast %551 : vector<1x16x128xf32> to vector<16x128xf32>
    %553 = vector.broadcast %550 : f32 to vector<16x128xf32>
    %554 = arith.mulf %552, %553 : vector<16x128xf32>
    %555 = arith.addf %549, %554 : vector<16x128xf32>
    %c6_445 = arith.constant 6 : index
    %c3_446 = arith.constant 3 : index
    %556 = memref.load %arg3[%c6_445, %c3_446] : memref<8x15xf32, #tpu.memory_space<smem>>
    %c3_447 = arith.constant 3 : index
    %c0_448 = arith.constant 0 : index
    %c124_449 = arith.constant 124 : index
    %557 = vector.load %arg6[%c3_447, %c0_448, %c124_449] : memref<4x16x263xf32, #tpu.memory_space<vmem>>, vector<1x16x128xf32>
    %558 = vector.shape_cast %557 : vector<1x16x128xf32> to vector<16x128xf32>
    %559 = vector.broadcast %556 : f32 to vector<16x128xf32>
    %560 = arith.mulf %558, %559 : vector<16x128xf32>
    %561 = arith.addf %555, %560 : vector<16x128xf32>
    %c6_450 = arith.constant 6 : index
    %c4_451 = arith.constant 4 : index
    %562 = memref.load %arg3[%c6_450, %c4_451] : memref<8x15xf32, #tpu.memory_space<smem>>
    %c3_452 = arith.constant 3 : index
    %c0_453 = arith.constant 0 : index
    %c125_454 = arith.constant 125 : index
    %563 = vector.load %arg6[%c3_452, %c0_453, %c125_454] : memref<4x16x263xf32, #tpu.memory_space<vmem>>, vector<1x16x128xf32>
    %564 = vector.shape_cast %563 : vector<1x16x128xf32> to vector<16x128xf32>
    %565 = vector.broadcast %562 : f32 to vector<16x128xf32>
    %566 = arith.mulf %564, %565 : vector<16x128xf32>
    %567 = arith.addf %561, %566 : vector<16x128xf32>
    %c6_455 = arith.constant 6 : index
    %c5_456 = arith.constant 5 : index
    %568 = memref.load %arg3[%c6_455, %c5_456] : memref<8x15xf32, #tpu.memory_space<smem>>
    %c3_457 = arith.constant 3 : index
    %c0_458 = arith.constant 0 : index
    %c126_459 = arith.constant 126 : index
    %569 = vector.load %arg6[%c3_457, %c0_458, %c126_459] : memref<4x16x263xf32, #tpu.memory_space<vmem>>, vector<1x16x128xf32>
    %570 = vector.shape_cast %569 : vector<1x16x128xf32> to vector<16x128xf32>
    %571 = vector.broadcast %568 : f32 to vector<16x128xf32>
    %572 = arith.mulf %570, %571 : vector<16x128xf32>
    %573 = arith.addf %567, %572 : vector<16x128xf32>
    %c6_460 = arith.constant 6 : index
    %c6_461 = arith.constant 6 : index
    %574 = memref.load %arg3[%c6_460, %c6_461] : memref<8x15xf32, #tpu.memory_space<smem>>
    %c3_462 = arith.constant 3 : index
    %c0_463 = arith.constant 0 : index
    %c127_464 = arith.constant 127 : index
    %575 = vector.load %arg6[%c3_462, %c0_463, %c127_464] : memref<4x16x263xf32, #tpu.memory_space<vmem>>, vector<1x16x128xf32>
    %576 = vector.shape_cast %575 : vector<1x16x128xf32> to vector<16x128xf32>
    %577 = vector.broadcast %574 : f32 to vector<16x128xf32>
    %578 = arith.mulf %576, %577 : vector<16x128xf32>
    %579 = arith.addf %573, %578 : vector<16x128xf32>
    %c6_465 = arith.constant 6 : index
    %c7_466 = arith.constant 7 : index
    %580 = memref.load %arg3[%c6_465, %c7_466] : memref<8x15xf32, #tpu.memory_space<smem>>
    %c3_467 = arith.constant 3 : index
    %c0_468 = arith.constant 0 : index
    %c128_469 = arith.constant 128 : index
    %581 = vector.load %arg6[%c3_467, %c0_468, %c128_469] : memref<4x16x263xf32, #tpu.memory_space<vmem>>, vector<1x16x128xf32>
    %582 = vector.shape_cast %581 : vector<1x16x128xf32> to vector<16x128xf32>
    %583 = vector.broadcast %580 : f32 to vector<16x128xf32>
    %584 = arith.mulf %582, %583 : vector<16x128xf32>
    %585 = arith.addf %579, %584 : vector<16x128xf32>
    %c6_470 = arith.constant 6 : index
    %c8_471 = arith.constant 8 : index
    %586 = memref.load %arg3[%c6_470, %c8_471] : memref<8x15xf32, #tpu.memory_space<smem>>
    %c3_472 = arith.constant 3 : index
    %c0_473 = arith.constant 0 : index
    %c129_474 = arith.constant 129 : index
    %587 = vector.load %arg6[%c3_472, %c0_473, %c129_474] : memref<4x16x263xf32, #tpu.memory_space<vmem>>, vector<1x16x128xf32>
    %588 = vector.shape_cast %587 : vector<1x16x128xf32> to vector<16x128xf32>
    %589 = vector.broadcast %586 : f32 to vector<16x128xf32>
    %590 = arith.mulf %588, %589 : vector<16x128xf32>
    %591 = arith.addf %585, %590 : vector<16x128xf32>
    %c6_475 = arith.constant 6 : index
    %c9_476 = arith.constant 9 : index
    %592 = memref.load %arg3[%c6_475, %c9_476] : memref<8x15xf32, #tpu.memory_space<smem>>
    %c3_477 = arith.constant 3 : index
    %c0_478 = arith.constant 0 : index
    %c130_479 = arith.constant 130 : index
    %593 = vector.load %arg6[%c3_477, %c0_478, %c130_479] : memref<4x16x263xf32, #tpu.memory_space<vmem>>, vector<1x16x128xf32>
    %594 = vector.shape_cast %593 : vector<1x16x128xf32> to vector<16x128xf32>
    %595 = vector.broadcast %592 : f32 to vector<16x128xf32>
    %596 = arith.mulf %594, %595 : vector<16x128xf32>
    %597 = arith.addf %591, %596 : vector<16x128xf32>
    %c6_480 = arith.constant 6 : index
    %c10_481 = arith.constant 10 : index
    %598 = memref.load %arg3[%c6_480, %c10_481] : memref<8x15xf32, #tpu.memory_space<smem>>
    %c3_482 = arith.constant 3 : index
    %c0_483 = arith.constant 0 : index
    %c131_484 = arith.constant 131 : index
    %599 = vector.load %arg6[%c3_482, %c0_483, %c131_484] : memref<4x16x263xf32, #tpu.memory_space<vmem>>, vector<1x16x128xf32>
    %600 = vector.shape_cast %599 : vector<1x16x128xf32> to vector<16x128xf32>
    %601 = vector.broadcast %598 : f32 to vector<16x128xf32>
    %602 = arith.mulf %600, %601 : vector<16x128xf32>
    %603 = arith.addf %597, %602 : vector<16x128xf32>
    %c6_485 = arith.constant 6 : index
    %c11_486 = arith.constant 11 : index
    %604 = memref.load %arg3[%c6_485, %c11_486] : memref<8x15xf32, #tpu.memory_space<smem>>
    %c3_487 = arith.constant 3 : index
    %c0_488 = arith.constant 0 : index
    %c132_489 = arith.constant 132 : index
    %605 = vector.load %arg6[%c3_487, %c0_488, %c132_489] : memref<4x16x263xf32, #tpu.memory_space<vmem>>, vector<1x16x128xf32>
    %606 = vector.shape_cast %605 : vector<1x16x128xf32> to vector<16x128xf32>
    %607 = vector.broadcast %604 : f32 to vector<16x128xf32>
    %608 = arith.mulf %606, %607 : vector<16x128xf32>
    %609 = arith.addf %603, %608 : vector<16x128xf32>
    %c6_490 = arith.constant 6 : index
    %c12_491 = arith.constant 12 : index
    %610 = memref.load %arg3[%c6_490, %c12_491] : memref<8x15xf32, #tpu.memory_space<smem>>
    %c3_492 = arith.constant 3 : index
    %c0_493 = arith.constant 0 : index
    %c133_494 = arith.constant 133 : index
    %611 = vector.load %arg6[%c3_492, %c0_493, %c133_494] : memref<4x16x263xf32, #tpu.memory_space<vmem>>, vector<1x16x128xf32>
    %612 = vector.shape_cast %611 : vector<1x16x128xf32> to vector<16x128xf32>
    %613 = vector.broadcast %610 : f32 to vector<16x128xf32>
    %614 = arith.mulf %612, %613 : vector<16x128xf32>
    %615 = arith.addf %609, %614 : vector<16x128xf32>
    %c6_495 = arith.constant 6 : index
    %c13_496 = arith.constant 13 : index
    %616 = memref.load %arg3[%c6_495, %c13_496] : memref<8x15xf32, #tpu.memory_space<smem>>
    %c3_497 = arith.constant 3 : index
    %c0_498 = arith.constant 0 : index
    %c134_499 = arith.constant 134 : index
    %617 = vector.load %arg6[%c3_497, %c0_498, %c134_499] : memref<4x16x263xf32, #tpu.memory_space<vmem>>, vector<1x16x128xf32>
    %618 = vector.shape_cast %617 : vector<1x16x128xf32> to vector<16x128xf32>
    %619 = vector.broadcast %616 : f32 to vector<16x128xf32>
    %620 = arith.mulf %618, %619 : vector<16x128xf32>
    %621 = arith.addf %615, %620 : vector<16x128xf32>
    %c6_500 = arith.constant 6 : index
    %c14_501 = arith.constant 14 : index
    %622 = memref.load %arg3[%c6_500, %c14_501] : memref<8x15xf32, #tpu.memory_space<smem>>
    %c3_502 = arith.constant 3 : index
    %c0_503 = arith.constant 0 : index
    %c135_504 = arith.constant 135 : index
    %623 = vector.load %arg6[%c3_502, %c0_503, %c135_504] : memref<4x16x263xf32, #tpu.memory_space<vmem>>, vector<1x16x128xf32>
    %624 = vector.shape_cast %623 : vector<1x16x128xf32> to vector<16x128xf32>
    %625 = vector.broadcast %622 : f32 to vector<16x128xf32>
    %626 = arith.mulf %624, %625 : vector<16x128xf32>
    %627 = arith.addf %621, %626 : vector<16x128xf32>
    %c7_505 = arith.constant 7 : index
    %c0_506 = arith.constant 0 : index
    %628 = memref.load %arg3[%c7_505, %c0_506] : memref<8x15xf32, #tpu.memory_space<smem>>
    %c3_507 = arith.constant 3 : index
    %c0_508 = arith.constant 0 : index
    %c121_509 = arith.constant 121 : index
    %629 = vector.load %arg6[%c3_507, %c0_508, %c121_509] : memref<4x16x263xf32, #tpu.memory_space<vmem>>, vector<1x16x128xf32>
    %630 = vector.shape_cast %629 : vector<1x16x128xf32> to vector<16x128xf32>
    %631 = vector.broadcast %628 : f32 to vector<16x128xf32>
    %632 = arith.mulf %630, %631 : vector<16x128xf32>
    %c7_510 = arith.constant 7 : index
    %c1_511 = arith.constant 1 : index
    %633 = memref.load %arg3[%c7_510, %c1_511] : memref<8x15xf32, #tpu.memory_space<smem>>
    %c3_512 = arith.constant 3 : index
    %c0_513 = arith.constant 0 : index
    %c122_514 = arith.constant 122 : index
    %634 = vector.load %arg6[%c3_512, %c0_513, %c122_514] : memref<4x16x263xf32, #tpu.memory_space<vmem>>, vector<1x16x128xf32>
    %635 = vector.shape_cast %634 : vector<1x16x128xf32> to vector<16x128xf32>
    %636 = vector.broadcast %633 : f32 to vector<16x128xf32>
    %637 = arith.mulf %635, %636 : vector<16x128xf32>
    %638 = arith.addf %632, %637 : vector<16x128xf32>
    %c7_515 = arith.constant 7 : index
    %c2_516 = arith.constant 2 : index
    %639 = memref.load %arg3[%c7_515, %c2_516] : memref<8x15xf32, #tpu.memory_space<smem>>
    %c3_517 = arith.constant 3 : index
    %c0_518 = arith.constant 0 : index
    %c123_519 = arith.constant 123 : index
    %640 = vector.load %arg6[%c3_517, %c0_518, %c123_519] : memref<4x16x263xf32, #tpu.memory_space<vmem>>, vector<1x16x128xf32>
    %641 = vector.shape_cast %640 : vector<1x16x128xf32> to vector<16x128xf32>
    %642 = vector.broadcast %639 : f32 to vector<16x128xf32>
    %643 = arith.mulf %641, %642 : vector<16x128xf32>
    %644 = arith.addf %638, %643 : vector<16x128xf32>
    %c7_520 = arith.constant 7 : index
    %c3_521 = arith.constant 3 : index
    %645 = memref.load %arg3[%c7_520, %c3_521] : memref<8x15xf32, #tpu.memory_space<smem>>
    %c3_522 = arith.constant 3 : index
    %c0_523 = arith.constant 0 : index
    %c124_524 = arith.constant 124 : index
    %646 = vector.load %arg6[%c3_522, %c0_523, %c124_524] : memref<4x16x263xf32, #tpu.memory_space<vmem>>, vector<1x16x128xf32>
    %647 = vector.shape_cast %646 : vector<1x16x128xf32> to vector<16x128xf32>
    %648 = vector.broadcast %645 : f32 to vector<16x128xf32>
    %649 = arith.mulf %647, %648 : vector<16x128xf32>
    %650 = arith.addf %644, %649 : vector<16x128xf32>
    %c7_525 = arith.constant 7 : index
    %c4_526 = arith.constant 4 : index
    %651 = memref.load %arg3[%c7_525, %c4_526] : memref<8x15xf32, #tpu.memory_space<smem>>
    %c3_527 = arith.constant 3 : index
    %c0_528 = arith.constant 0 : index
    %c125_529 = arith.constant 125 : index
    %652 = vector.load %arg6[%c3_527, %c0_528, %c125_529] : memref<4x16x263xf32, #tpu.memory_space<vmem>>, vector<1x16x128xf32>
    %653 = vector.shape_cast %652 : vector<1x16x128xf32> to vector<16x128xf32>
    %654 = vector.broadcast %651 : f32 to vector<16x128xf32>
    %655 = arith.mulf %653, %654 : vector<16x128xf32>
    %656 = arith.addf %650, %655 : vector<16x128xf32>
    %c7_530 = arith.constant 7 : index
    %c5_531 = arith.constant 5 : index
    %657 = memref.load %arg3[%c7_530, %c5_531] : memref<8x15xf32, #tpu.memory_space<smem>>
    %c3_532 = arith.constant 3 : index
    %c0_533 = arith.constant 0 : index
    %c126_534 = arith.constant 126 : index
    %658 = vector.load %arg6[%c3_532, %c0_533, %c126_534] : memref<4x16x263xf32, #tpu.memory_space<vmem>>, vector<1x16x128xf32>
    %659 = vector.shape_cast %658 : vector<1x16x128xf32> to vector<16x128xf32>
    %660 = vector.broadcast %657 : f32 to vector<16x128xf32>
    %661 = arith.mulf %659, %660 : vector<16x128xf32>
    %662 = arith.addf %656, %661 : vector<16x128xf32>
    %c7_535 = arith.constant 7 : index
    %c6_536 = arith.constant 6 : index
    %663 = memref.load %arg3[%c7_535, %c6_536] : memref<8x15xf32, #tpu.memory_space<smem>>
    %c3_537 = arith.constant 3 : index
    %c0_538 = arith.constant 0 : index
    %c127_539 = arith.constant 127 : index
    %664 = vector.load %arg6[%c3_537, %c0_538, %c127_539] : memref<4x16x263xf32, #tpu.memory_space<vmem>>, vector<1x16x128xf32>
    %665 = vector.shape_cast %664 : vector<1x16x128xf32> to vector<16x128xf32>
    %666 = vector.broadcast %663 : f32 to vector<16x128xf32>
    %667 = arith.mulf %665, %666 : vector<16x128xf32>
    %668 = arith.addf %662, %667 : vector<16x128xf32>
    %c7_540 = arith.constant 7 : index
    %c7_541 = arith.constant 7 : index
    %669 = memref.load %arg3[%c7_540, %c7_541] : memref<8x15xf32, #tpu.memory_space<smem>>
    %c3_542 = arith.constant 3 : index
    %c0_543 = arith.constant 0 : index
    %c128_544 = arith.constant 128 : index
    %670 = vector.load %arg6[%c3_542, %c0_543, %c128_544] : memref<4x16x263xf32, #tpu.memory_space<vmem>>, vector<1x16x128xf32>
    %671 = vector.shape_cast %670 : vector<1x16x128xf32> to vector<16x128xf32>
    %672 = vector.broadcast %669 : f32 to vector<16x128xf32>
    %673 = arith.mulf %671, %672 : vector<16x128xf32>
    %674 = arith.addf %668, %673 : vector<16x128xf32>
    %c7_545 = arith.constant 7 : index
    %c8_546 = arith.constant 8 : index
    %675 = memref.load %arg3[%c7_545, %c8_546] : memref<8x15xf32, #tpu.memory_space<smem>>
    %c3_547 = arith.constant 3 : index
    %c0_548 = arith.constant 0 : index
    %c129_549 = arith.constant 129 : index
    %676 = vector.load %arg6[%c3_547, %c0_548, %c129_549] : memref<4x16x263xf32, #tpu.memory_space<vmem>>, vector<1x16x128xf32>
    %677 = vector.shape_cast %676 : vector<1x16x128xf32> to vector<16x128xf32>
    %678 = vector.broadcast %675 : f32 to vector<16x128xf32>
    %679 = arith.mulf %677, %678 : vector<16x128xf32>
    %680 = arith.addf %674, %679 : vector<16x128xf32>
    %c7_550 = arith.constant 7 : index
    %c9_551 = arith.constant 9 : index
    %681 = memref.load %arg3[%c7_550, %c9_551] : memref<8x15xf32, #tpu.memory_space<smem>>
    %c3_552 = arith.constant 3 : index
    %c0_553 = arith.constant 0 : index
    %c130_554 = arith.constant 130 : index
    %682 = vector.load %arg6[%c3_552, %c0_553, %c130_554] : memref<4x16x263xf32, #tpu.memory_space<vmem>>, vector<1x16x128xf32>
    %683 = vector.shape_cast %682 : vector<1x16x128xf32> to vector<16x128xf32>
    %684 = vector.broadcast %681 : f32 to vector<16x128xf32>
    %685 = arith.mulf %683, %684 : vector<16x128xf32>
    %686 = arith.addf %680, %685 : vector<16x128xf32>
    %c7_555 = arith.constant 7 : index
    %c10_556 = arith.constant 10 : index
    %687 = memref.load %arg3[%c7_555, %c10_556] : memref<8x15xf32, #tpu.memory_space<smem>>
    %c3_557 = arith.constant 3 : index
    %c0_558 = arith.constant 0 : index
    %c131_559 = arith.constant 131 : index
    %688 = vector.load %arg6[%c3_557, %c0_558, %c131_559] : memref<4x16x263xf32, #tpu.memory_space<vmem>>, vector<1x16x128xf32>
    %689 = vector.shape_cast %688 : vector<1x16x128xf32> to vector<16x128xf32>
    %690 = vector.broadcast %687 : f32 to vector<16x128xf32>
    %691 = arith.mulf %689, %690 : vector<16x128xf32>
    %692 = arith.addf %686, %691 : vector<16x128xf32>
    %c7_560 = arith.constant 7 : index
    %c11_561 = arith.constant 11 : index
    %693 = memref.load %arg3[%c7_560, %c11_561] : memref<8x15xf32, #tpu.memory_space<smem>>
    %c3_562 = arith.constant 3 : index
    %c0_563 = arith.constant 0 : index
    %c132_564 = arith.constant 132 : index
    %694 = vector.load %arg6[%c3_562, %c0_563, %c132_564] : memref<4x16x263xf32, #tpu.memory_space<vmem>>, vector<1x16x128xf32>
    %695 = vector.shape_cast %694 : vector<1x16x128xf32> to vector<16x128xf32>
    %696 = vector.broadcast %693 : f32 to vector<16x128xf32>
    %697 = arith.mulf %695, %696 : vector<16x128xf32>
    %698 = arith.addf %692, %697 : vector<16x128xf32>
    %c7_565 = arith.constant 7 : index
    %c12_566 = arith.constant 12 : index
    %699 = memref.load %arg3[%c7_565, %c12_566] : memref<8x15xf32, #tpu.memory_space<smem>>
    %c3_567 = arith.constant 3 : index
    %c0_568 = arith.constant 0 : index
    %c133_569 = arith.constant 133 : index
    %700 = vector.load %arg6[%c3_567, %c0_568, %c133_569] : memref<4x16x263xf32, #tpu.memory_space<vmem>>, vector<1x16x128xf32>
    %701 = vector.shape_cast %700 : vector<1x16x128xf32> to vector<16x128xf32>
    %702 = vector.broadcast %699 : f32 to vector<16x128xf32>
    %703 = arith.mulf %701, %702 : vector<16x128xf32>
    %704 = arith.addf %698, %703 : vector<16x128xf32>
    %c7_570 = arith.constant 7 : index
    %c13_571 = arith.constant 13 : index
    %705 = memref.load %arg3[%c7_570, %c13_571] : memref<8x15xf32, #tpu.memory_space<smem>>
    %c3_572 = arith.constant 3 : index
    %c0_573 = arith.constant 0 : index
    %c134_574 = arith.constant 134 : index
    %706 = vector.load %arg6[%c3_572, %c0_573, %c134_574] : memref<4x16x263xf32, #tpu.memory_space<vmem>>, vector<1x16x128xf32>
    %707 = vector.shape_cast %706 : vector<1x16x128xf32> to vector<16x128xf32>
    %708 = vector.broadcast %705 : f32 to vector<16x128xf32>
    %709 = arith.mulf %707, %708 : vector<16x128xf32>
    %710 = arith.addf %704, %709 : vector<16x128xf32>
    %c7_575 = arith.constant 7 : index
    %c14_576 = arith.constant 14 : index
    %711 = memref.load %arg3[%c7_575, %c14_576] : memref<8x15xf32, #tpu.memory_space<smem>>
    %c3_577 = arith.constant 3 : index
    %c0_578 = arith.constant 0 : index
    %c135_579 = arith.constant 135 : index
    %712 = vector.load %arg6[%c3_577, %c0_578, %c135_579] : memref<4x16x263xf32, #tpu.memory_space<vmem>>, vector<1x16x128xf32>
    %713 = vector.shape_cast %712 : vector<1x16x128xf32> to vector<16x128xf32>
    %714 = vector.broadcast %711 : f32 to vector<16x128xf32>
    %715 = arith.mulf %713, %714 : vector<16x128xf32>
    %716 = arith.addf %710, %715 : vector<16x128xf32>
    %c0_580 = arith.constant 0 : index
    %c0_581 = arith.constant 0 : index
    %717 = memref.load %arg4[%c0_580, %c0_581] : memref<8x8xf32, #tpu.memory_space<smem>>
    %718 = vector.broadcast %717 : f32 to vector<16x128xf32>
    %719 = arith.mulf %93, %718 : vector<16x128xf32>
    %c0_582 = arith.constant 0 : index
    %c1_583 = arith.constant 1 : index
    %720 = memref.load %arg4[%c0_582, %c1_583] : memref<8x8xf32, #tpu.memory_space<smem>>
    %721 = vector.broadcast %720 : f32 to vector<16x128xf32>
    %722 = arith.mulf %182, %721 : vector<16x128xf32>
    %723 = arith.addf %719, %722 : vector<16x128xf32>
    %c0_584 = arith.constant 0 : index
    %c2_585 = arith.constant 2 : index
    %724 = memref.load %arg4[%c0_584, %c2_585] : memref<8x8xf32, #tpu.memory_space<smem>>
    %725 = vector.broadcast %724 : f32 to vector<16x128xf32>
    %726 = arith.mulf %271, %725 : vector<16x128xf32>
    %727 = arith.addf %723, %726 : vector<16x128xf32>
    %c0_586 = arith.constant 0 : index
    %c3_587 = arith.constant 3 : index
    %728 = memref.load %arg4[%c0_586, %c3_587] : memref<8x8xf32, #tpu.memory_space<smem>>
    %729 = vector.broadcast %728 : f32 to vector<16x128xf32>
    %730 = arith.mulf %360, %729 : vector<16x128xf32>
    %731 = arith.addf %727, %730 : vector<16x128xf32>
    %c0_588 = arith.constant 0 : index
    %c4_589 = arith.constant 4 : index
    %732 = memref.load %arg4[%c0_588, %c4_589] : memref<8x8xf32, #tpu.memory_space<smem>>
    %733 = vector.broadcast %732 : f32 to vector<16x128xf32>
    %734 = arith.mulf %449, %733 : vector<16x128xf32>
    %735 = arith.addf %731, %734 : vector<16x128xf32>
    %c0_590 = arith.constant 0 : index
    %c5_591 = arith.constant 5 : index
    %736 = memref.load %arg4[%c0_590, %c5_591] : memref<8x8xf32, #tpu.memory_space<smem>>
    %737 = vector.broadcast %736 : f32 to vector<16x128xf32>
    %738 = arith.mulf %538, %737 : vector<16x128xf32>
    %739 = arith.addf %735, %738 : vector<16x128xf32>
    %c0_592 = arith.constant 0 : index
    %c6_593 = arith.constant 6 : index
    %740 = memref.load %arg4[%c0_592, %c6_593] : memref<8x8xf32, #tpu.memory_space<smem>>
    %741 = vector.broadcast %740 : f32 to vector<16x128xf32>
    %742 = arith.mulf %627, %741 : vector<16x128xf32>
    %743 = arith.addf %739, %742 : vector<16x128xf32>
    %c0_594 = arith.constant 0 : index
    %c7_595 = arith.constant 7 : index
    %744 = memref.load %arg4[%c0_594, %c7_595] : memref<8x8xf32, #tpu.memory_space<smem>>
    %745 = vector.broadcast %744 : f32 to vector<16x128xf32>
    %746 = arith.mulf %716, %745 : vector<16x128xf32>
    %747 = arith.addf %743, %746 : vector<16x128xf32>
    %c0_596 = arith.constant 0 : index
    %c0_597 = arith.constant 0 : index
    %c0_598 = arith.constant 0 : index
    %c0_599 = arith.constant 0 : index
    %748 = vector.load %arg5[%c0_596, %c0_597, %c0_598, %c0_599] : memref<1x8x16x128xf32, #tpu.memory_space<vmem>>, vector<1x1x16x128xf32>
    %749 = vector.shape_cast %748 : vector<1x1x16x128xf32> to vector<16x128xf32>
    %750 = vector.shape_cast %747 : vector<16x128xf32> to vector<1x1x16x128xf32>
    tpu.vector_store %arg5[%c0_596, %c0_597, %c0_598, %c0_599], %750 {strides = array<i32>} : memref<1x8x16x128xf32, #tpu.memory_space<vmem>>, vector<1x1x16x128xf32>,
    %c1_600 = arith.constant 1 : index
    %c0_601 = arith.constant 0 : index
    %751 = memref.load %arg4[%c1_600, %c0_601] : memref<8x8xf32, #tpu.memory_space<smem>>
    %752 = vector.broadcast %751 : f32 to vector<16x128xf32>
    %753 = arith.mulf %93, %752 : vector<16x128xf32>
    %c1_602 = arith.constant 1 : index
    %c1_603 = arith.constant 1 : index
    %754 = memref.load %arg4[%c1_602, %c1_603] : memref<8x8xf32, #tpu.memory_space<smem>>
    %755 = vector.broadcast %754 : f32 to vector<16x128xf32>
    %756 = arith.mulf %182, %755 : vector<16x128xf32>
    %757 = arith.addf %753, %756 : vector<16x128xf32>
    %c1_604 = arith.constant 1 : index
    %c2_605 = arith.constant 2 : index
    %758 = memref.load %arg4[%c1_604, %c2_605] : memref<8x8xf32, #tpu.memory_space<smem>>
    %759 = vector.broadcast %758 : f32 to vector<16x128xf32>
    %760 = arith.mulf %271, %759 : vector<16x128xf32>
    %761 = arith.addf %757, %760 : vector<16x128xf32>
    %c1_606 = arith.constant 1 : index
    %c3_607 = arith.constant 3 : index
    %762 = memref.load %arg4[%c1_606, %c3_607] : memref<8x8xf32, #tpu.memory_space<smem>>
    %763 = vector.broadcast %762 : f32 to vector<16x128xf32>
    %764 = arith.mulf %360, %763 : vector<16x128xf32>
    %765 = arith.addf %761, %764 : vector<16x128xf32>
    %c1_608 = arith.constant 1 : index
    %c4_609 = arith.constant 4 : index
    %766 = memref.load %arg4[%c1_608, %c4_609] : memref<8x8xf32, #tpu.memory_space<smem>>
    %767 = vector.broadcast %766 : f32 to vector<16x128xf32>
    %768 = arith.mulf %449, %767 : vector<16x128xf32>
    %769 = arith.addf %765, %768 : vector<16x128xf32>
    %c1_610 = arith.constant 1 : index
    %c5_611 = arith.constant 5 : index
    %770 = memref.load %arg4[%c1_610, %c5_611] : memref<8x8xf32, #tpu.memory_space<smem>>
    %771 = vector.broadcast %770 : f32 to vector<16x128xf32>
    %772 = arith.mulf %538, %771 : vector<16x128xf32>
    %773 = arith.addf %769, %772 : vector<16x128xf32>
    %c1_612 = arith.constant 1 : index
    %c6_613 = arith.constant 6 : index
    %774 = memref.load %arg4[%c1_612, %c6_613] : memref<8x8xf32, #tpu.memory_space<smem>>
    %775 = vector.broadcast %774 : f32 to vector<16x128xf32>
    %776 = arith.mulf %627, %775 : vector<16x128xf32>
    %777 = arith.addf %773, %776 : vector<16x128xf32>
    %c1_614 = arith.constant 1 : index
    %c7_615 = arith.constant 7 : index
    %778 = memref.load %arg4[%c1_614, %c7_615] : memref<8x8xf32, #tpu.memory_space<smem>>
    %779 = vector.broadcast %778 : f32 to vector<16x128xf32>
    %780 = arith.mulf %716, %779 : vector<16x128xf32>
    %781 = arith.addf %777, %780 : vector<16x128xf32>
    %c0_616 = arith.constant 0 : index
    %c1_617 = arith.constant 1 : index
    %c0_618 = arith.constant 0 : index
    %c0_619 = arith.constant 0 : index
    %782 = vector.load %arg5[%c0_616, %c1_617, %c0_618, %c0_619] : memref<1x8x16x128xf32, #tpu.memory_space<vmem>>, vector<1x1x16x128xf32>
    %783 = vector.shape_cast %782 : vector<1x1x16x128xf32> to vector<16x128xf32>
    %784 = vector.shape_cast %781 : vector<16x128xf32> to vector<1x1x16x128xf32>
    tpu.vector_store %arg5[%c0_616, %c1_617, %c0_618, %c0_619], %784 {strides = array<i32>} : memref<1x8x16x128xf32, #tpu.memory_space<vmem>>, vector<1x1x16x128xf32>,
    %c2_620 = arith.constant 2 : index
    %c0_621 = arith.constant 0 : index
    %785 = memref.load %arg4[%c2_620, %c0_621] : memref<8x8xf32, #tpu.memory_space<smem>>
    %786 = vector.broadcast %785 : f32 to vector<16x128xf32>
    %787 = arith.mulf %93, %786 : vector<16x128xf32>
    %c2_622 = arith.constant 2 : index
    %c1_623 = arith.constant 1 : index
    %788 = memref.load %arg4[%c2_622, %c1_623] : memref<8x8xf32, #tpu.memory_space<smem>>
    %789 = vector.broadcast %788 : f32 to vector<16x128xf32>
    %790 = arith.mulf %182, %789 : vector<16x128xf32>
    %791 = arith.addf %787, %790 : vector<16x128xf32>
    %c2_624 = arith.constant 2 : index
    %c2_625 = arith.constant 2 : index
    %792 = memref.load %arg4[%c2_624, %c2_625] : memref<8x8xf32, #tpu.memory_space<smem>>
    %793 = vector.broadcast %792 : f32 to vector<16x128xf32>
    %794 = arith.mulf %271, %793 : vector<16x128xf32>
    %795 = arith.addf %791, %794 : vector<16x128xf32>
    %c2_626 = arith.constant 2 : index
    %c3_627 = arith.constant 3 : index
    %796 = memref.load %arg4[%c2_626, %c3_627] : memref<8x8xf32, #tpu.memory_space<smem>>
    %797 = vector.broadcast %796 : f32 to vector<16x128xf32>
    %798 = arith.mulf %360, %797 : vector<16x128xf32>
    %799 = arith.addf %795, %798 : vector<16x128xf32>
    %c2_628 = arith.constant 2 : index
    %c4_629 = arith.constant 4 : index
    %800 = memref.load %arg4[%c2_628, %c4_629] : memref<8x8xf32, #tpu.memory_space<smem>>
    %801 = vector.broadcast %800 : f32 to vector<16x128xf32>
    %802 = arith.mulf %449, %801 : vector<16x128xf32>
    %803 = arith.addf %799, %802 : vector<16x128xf32>
    %c2_630 = arith.constant 2 : index
    %c5_631 = arith.constant 5 : index
    %804 = memref.load %arg4[%c2_630, %c5_631] : memref<8x8xf32, #tpu.memory_space<smem>>
    %805 = vector.broadcast %804 : f32 to vector<16x128xf32>
    %806 = arith.mulf %538, %805 : vector<16x128xf32>
    %807 = arith.addf %803, %806 : vector<16x128xf32>
    %c2_632 = arith.constant 2 : index
    %c6_633 = arith.constant 6 : index
    %808 = memref.load %arg4[%c2_632, %c6_633] : memref<8x8xf32, #tpu.memory_space<smem>>
    %809 = vector.broadcast %808 : f32 to vector<16x128xf32>
    %810 = arith.mulf %627, %809 : vector<16x128xf32>
    %811 = arith.addf %807, %810 : vector<16x128xf32>
    %c2_634 = arith.constant 2 : index
    %c7_635 = arith.constant 7 : index
    %812 = memref.load %arg4[%c2_634, %c7_635] : memref<8x8xf32, #tpu.memory_space<smem>>
    %813 = vector.broadcast %812 : f32 to vector<16x128xf32>
    %814 = arith.mulf %716, %813 : vector<16x128xf32>
    %815 = arith.addf %811, %814 : vector<16x128xf32>
    %c0_636 = arith.constant 0 : index
    %c2_637 = arith.constant 2 : index
    %c0_638 = arith.constant 0 : index
    %c0_639 = arith.constant 0 : index
    %816 = vector.load %arg5[%c0_636, %c2_637, %c0_638, %c0_639] : memref<1x8x16x128xf32, #tpu.memory_space<vmem>>, vector<1x1x16x128xf32>
    %817 = vector.shape_cast %816 : vector<1x1x16x128xf32> to vector<16x128xf32>
    %818 = vector.shape_cast %815 : vector<16x128xf32> to vector<1x1x16x128xf32>
    tpu.vector_store %arg5[%c0_636, %c2_637, %c0_638, %c0_639], %818 {strides = array<i32>} : memref<1x8x16x128xf32, #tpu.memory_space<vmem>>, vector<1x1x16x128xf32>,
    %c3_640 = arith.constant 3 : index
    %c0_641 = arith.constant 0 : index
    %819 = memref.load %arg4[%c3_640, %c0_641] : memref<8x8xf32, #tpu.memory_space<smem>>
    %820 = vector.broadcast %819 : f32 to vector<16x128xf32>
    %821 = arith.mulf %93, %820 : vector<16x128xf32>
    %c3_642 = arith.constant 3 : index
    %c1_643 = arith.constant 1 : index
    %822 = memref.load %arg4[%c3_642, %c1_643] : memref<8x8xf32, #tpu.memory_space<smem>>
    %823 = vector.broadcast %822 : f32 to vector<16x128xf32>
    %824 = arith.mulf %182, %823 : vector<16x128xf32>
    %825 = arith.addf %821, %824 : vector<16x128xf32>
    %c3_644 = arith.constant 3 : index
    %c2_645 = arith.constant 2 : index
    %826 = memref.load %arg4[%c3_644, %c2_645] : memref<8x8xf32, #tpu.memory_space<smem>>
    %827 = vector.broadcast %826 : f32 to vector<16x128xf32>
    %828 = arith.mulf %271, %827 : vector<16x128xf32>
    %829 = arith.addf %825, %828 : vector<16x128xf32>
    %c3_646 = arith.constant 3 : index
    %c3_647 = arith.constant 3 : index
    %830 = memref.load %arg4[%c3_646, %c3_647] : memref<8x8xf32, #tpu.memory_space<smem>>
    %831 = vector.broadcast %830 : f32 to vector<16x128xf32>
    %832 = arith.mulf %360, %831 : vector<16x128xf32>
    %833 = arith.addf %829, %832 : vector<16x128xf32>
    %c3_648 = arith.constant 3 : index
    %c4_649 = arith.constant 4 : index
    %834 = memref.load %arg4[%c3_648, %c4_649] : memref<8x8xf32, #tpu.memory_space<smem>>
    %835 = vector.broadcast %834 : f32 to vector<16x128xf32>
    %836 = arith.mulf %449, %835 : vector<16x128xf32>
    %837 = arith.addf %833, %836 : vector<16x128xf32>
    %c3_650 = arith.constant 3 : index
    %c5_651 = arith.constant 5 : index
    %838 = memref.load %arg4[%c3_650, %c5_651] : memref<8x8xf32, #tpu.memory_space<smem>>
    %839 = vector.broadcast %838 : f32 to vector<16x128xf32>
    %840 = arith.mulf %538, %839 : vector<16x128xf32>
    %841 = arith.addf %837, %840 : vector<16x128xf32>
    %c3_652 = arith.constant 3 : index
    %c6_653 = arith.constant 6 : index
    %842 = memref.load %arg4[%c3_652, %c6_653] : memref<8x8xf32, #tpu.memory_space<smem>>
    %843 = vector.broadcast %842 : f32 to vector<16x128xf32>
    %844 = arith.mulf %627, %843 : vector<16x128xf32>
    %845 = arith.addf %841, %844 : vector<16x128xf32>
    %c3_654 = arith.constant 3 : index
    %c7_655 = arith.constant 7 : index
    %846 = memref.load %arg4[%c3_654, %c7_655] : memref<8x8xf32, #tpu.memory_space<smem>>
    %847 = vector.broadcast %846 : f32 to vector<16x128xf32>
    %848 = arith.mulf %716, %847 : vector<16x128xf32>
    %849 = arith.addf %845, %848 : vector<16x128xf32>
    %c0_656 = arith.constant 0 : index
    %c3_657 = arith.constant 3 : index
    %c0_658 = arith.constant 0 : index
    %c0_659 = arith.constant 0 : index
    %850 = vector.load %arg5[%c0_656, %c3_657, %c0_658, %c0_659] : memref<1x8x16x128xf32, #tpu.memory_space<vmem>>, vector<1x1x16x128xf32>
    %851 = vector.shape_cast %850 : vector<1x1x16x128xf32> to vector<16x128xf32>
    %852 = vector.shape_cast %849 : vector<16x128xf32> to vector<1x1x16x128xf32>
    tpu.vector_store %arg5[%c0_656, %c3_657, %c0_658, %c0_659], %852 {strides = array<i32>} : memref<1x8x16x128xf32, #tpu.memory_space<vmem>>, vector<1x1x16x128xf32>,
    %c4_660 = arith.constant 4 : index
    %c0_661 = arith.constant 0 : index
    %853 = memref.load %arg4[%c4_660, %c0_661] : memref<8x8xf32, #tpu.memory_space<smem>>
    %854 = vector.broadcast %853 : f32 to vector<16x128xf32>
    %855 = arith.mulf %93, %854 : vector<16x128xf32>
    %c4_662 = arith.constant 4 : index
    %c1_663 = arith.constant 1 : index
    %856 = memref.load %arg4[%c4_662, %c1_663] : memref<8x8xf32, #tpu.memory_space<smem>>
    %857 = vector.broadcast %856 : f32 to vector<16x128xf32>
    %858 = arith.mulf %182, %857 : vector<16x128xf32>
    %859 = arith.addf %855, %858 : vector<16x128xf32>
    %c4_664 = arith.constant 4 : index
    %c2_665 = arith.constant 2 : index
    %860 = memref.load %arg4[%c4_664, %c2_665] : memref<8x8xf32, #tpu.memory_space<smem>>
    %861 = vector.broadcast %860 : f32 to vector<16x128xf32>
    %862 = arith.mulf %271, %861 : vector<16x128xf32>
    %863 = arith.addf %859, %862 : vector<16x128xf32>
    %c4_666 = arith.constant 4 : index
    %c3_667 = arith.constant 3 : index
    %864 = memref.load %arg4[%c4_666, %c3_667] : memref<8x8xf32, #tpu.memory_space<smem>>
    %865 = vector.broadcast %864 : f32 to vector<16x128xf32>
    %866 = arith.mulf %360, %865 : vector<16x128xf32>
    %867 = arith.addf %863, %866 : vector<16x128xf32>
    %c4_668 = arith.constant 4 : index
    %c4_669 = arith.constant 4 : index
    %868 = memref.load %arg4[%c4_668, %c4_669] : memref<8x8xf32, #tpu.memory_space<smem>>
    %869 = vector.broadcast %868 : f32 to vector<16x128xf32>
    %870 = arith.mulf %449, %869 : vector<16x128xf32>
    %871 = arith.addf %867, %870 : vector<16x128xf32>
    %c4_670 = arith.constant 4 : index
    %c5_671 = arith.constant 5 : index
    %872 = memref.load %arg4[%c4_670, %c5_671] : memref<8x8xf32, #tpu.memory_space<smem>>
    %873 = vector.broadcast %872 : f32 to vector<16x128xf32>
    %874 = arith.mulf %538, %873 : vector<16x128xf32>
    %875 = arith.addf %871, %874 : vector<16x128xf32>
    %c4_672 = arith.constant 4 : index
    %c6_673 = arith.constant 6 : index
    %876 = memref.load %arg4[%c4_672, %c6_673] : memref<8x8xf32, #tpu.memory_space<smem>>
    %877 = vector.broadcast %876 : f32 to vector<16x128xf32>
    %878 = arith.mulf %627, %877 : vector<16x128xf32>
    %879 = arith.addf %875, %878 : vector<16x128xf32>
    %c4_674 = arith.constant 4 : index
    %c7_675 = arith.constant 7 : index
    %880 = memref.load %arg4[%c4_674, %c7_675] : memref<8x8xf32, #tpu.memory_space<smem>>
    %881 = vector.broadcast %880 : f32 to vector<16x128xf32>
    %882 = arith.mulf %716, %881 : vector<16x128xf32>
    %883 = arith.addf %879, %882 : vector<16x128xf32>
    %c0_676 = arith.constant 0 : index
    %c4_677 = arith.constant 4 : index
    %c0_678 = arith.constant 0 : index
    %c0_679 = arith.constant 0 : index
    %884 = vector.load %arg5[%c0_676, %c4_677, %c0_678, %c0_679] : memref<1x8x16x128xf32, #tpu.memory_space<vmem>>, vector<1x1x16x128xf32>
    %885 = vector.shape_cast %884 : vector<1x1x16x128xf32> to vector<16x128xf32>
    %886 = vector.shape_cast %883 : vector<16x128xf32> to vector<1x1x16x128xf32>
    tpu.vector_store %arg5[%c0_676, %c4_677, %c0_678, %c0_679], %886 {strides = array<i32>} : memref<1x8x16x128xf32, #tpu.memory_space<vmem>>, vector<1x1x16x128xf32>,
    %c5_680 = arith.constant 5 : index
    %c0_681 = arith.constant 0 : index
    %887 = memref.load %arg4[%c5_680, %c0_681] : memref<8x8xf32, #tpu.memory_space<smem>>
    %888 = vector.broadcast %887 : f32 to vector<16x128xf32>
    %889 = arith.mulf %93, %888 : vector<16x128xf32>
    %c5_682 = arith.constant 5 : index
    %c1_683 = arith.constant 1 : index
    %890 = memref.load %arg4[%c5_682, %c1_683] : memref<8x8xf32, #tpu.memory_space<smem>>
    %891 = vector.broadcast %890 : f32 to vector<16x128xf32>
    %892 = arith.mulf %182, %891 : vector<16x128xf32>
    %893 = arith.addf %889, %892 : vector<16x128xf32>
    %c5_684 = arith.constant 5 : index
    %c2_685 = arith.constant 2 : index
    %894 = memref.load %arg4[%c5_684, %c2_685] : memref<8x8xf32, #tpu.memory_space<smem>>
    %895 = vector.broadcast %894 : f32 to vector<16x128xf32>
    %896 = arith.mulf %271, %895 : vector<16x128xf32>
    %897 = arith.addf %893, %896 : vector<16x128xf32>
    %c5_686 = arith.constant 5 : index
    %c3_687 = arith.constant 3 : index
    %898 = memref.load %arg4[%c5_686, %c3_687] : memref<8x8xf32, #tpu.memory_space<smem>>
    %899 = vector.broadcast %898 : f32 to vector<16x128xf32>
    %900 = arith.mulf %360, %899 : vector<16x128xf32>
    %901 = arith.addf %897, %900 : vector<16x128xf32>
    %c5_688 = arith.constant 5 : index
    %c4_689 = arith.constant 4 : index
    %902 = memref.load %arg4[%c5_688, %c4_689] : memref<8x8xf32, #tpu.memory_space<smem>>
    %903 = vector.broadcast %902 : f32 to vector<16x128xf32>
    %904 = arith.mulf %449, %903 : vector<16x128xf32>
    %905 = arith.addf %901, %904 : vector<16x128xf32>
    %c5_690 = arith.constant 5 : index
    %c5_691 = arith.constant 5 : index
    %906 = memref.load %arg4[%c5_690, %c5_691] : memref<8x8xf32, #tpu.memory_space<smem>>
    %907 = vector.broadcast %906 : f32 to vector<16x128xf32>
    %908 = arith.mulf %538, %907 : vector<16x128xf32>
    %909 = arith.addf %905, %908 : vector<16x128xf32>
    %c5_692 = arith.constant 5 : index
    %c6_693 = arith.constant 6 : index
    %910 = memref.load %arg4[%c5_692, %c6_693] : memref<8x8xf32, #tpu.memory_space<smem>>
    %911 = vector.broadcast %910 : f32 to vector<16x128xf32>
    %912 = arith.mulf %627, %911 : vector<16x128xf32>
    %913 = arith.addf %909, %912 : vector<16x128xf32>
    %c5_694 = arith.constant 5 : index
    %c7_695 = arith.constant 7 : index
    %914 = memref.load %arg4[%c5_694, %c7_695] : memref<8x8xf32, #tpu.memory_space<smem>>
    %915 = vector.broadcast %914 : f32 to vector<16x128xf32>
    %916 = arith.mulf %716, %915 : vector<16x128xf32>
    %917 = arith.addf %913, %916 : vector<16x128xf32>
    %c0_696 = arith.constant 0 : index
    %c5_697 = arith.constant 5 : index
    %c0_698 = arith.constant 0 : index
    %c0_699 = arith.constant 0 : index
    %918 = vector.load %arg5[%c0_696, %c5_697, %c0_698, %c0_699] : memref<1x8x16x128xf32, #tpu.memory_space<vmem>>, vector<1x1x16x128xf32>
    %919 = vector.shape_cast %918 : vector<1x1x16x128xf32> to vector<16x128xf32>
    %920 = vector.shape_cast %917 : vector<16x128xf32> to vector<1x1x16x128xf32>
    tpu.vector_store %arg5[%c0_696, %c5_697, %c0_698, %c0_699], %920 {strides = array<i32>} : memref<1x8x16x128xf32, #tpu.memory_space<vmem>>, vector<1x1x16x128xf32>,
    %c6_700 = arith.constant 6 : index
    %c0_701 = arith.constant 0 : index
    %921 = memref.load %arg4[%c6_700, %c0_701] : memref<8x8xf32, #tpu.memory_space<smem>>
    %922 = vector.broadcast %921 : f32 to vector<16x128xf32>
    %923 = arith.mulf %93, %922 : vector<16x128xf32>
    %c6_702 = arith.constant 6 : index
    %c1_703 = arith.constant 1 : index
    %924 = memref.load %arg4[%c6_702, %c1_703] : memref<8x8xf32, #tpu.memory_space<smem>>
    %925 = vector.broadcast %924 : f32 to vector<16x128xf32>
    %926 = arith.mulf %182, %925 : vector<16x128xf32>
    %927 = arith.addf %923, %926 : vector<16x128xf32>
    %c6_704 = arith.constant 6 : index
    %c2_705 = arith.constant 2 : index
    %928 = memref.load %arg4[%c6_704, %c2_705] : memref<8x8xf32, #tpu.memory_space<smem>>
    %929 = vector.broadcast %928 : f32 to vector<16x128xf32>
    %930 = arith.mulf %271, %929 : vector<16x128xf32>
    %931 = arith.addf %927, %930 : vector<16x128xf32>
    %c6_706 = arith.constant 6 : index
    %c3_707 = arith.constant 3 : index
    %932 = memref.load %arg4[%c6_706, %c3_707] : memref<8x8xf32, #tpu.memory_space<smem>>
    %933 = vector.broadcast %932 : f32 to vector<16x128xf32>
    %934 = arith.mulf %360, %933 : vector<16x128xf32>
    %935 = arith.addf %931, %934 : vector<16x128xf32>
    %c6_708 = arith.constant 6 : index
    %c4_709 = arith.constant 4 : index
    %936 = memref.load %arg4[%c6_708, %c4_709] : memref<8x8xf32, #tpu.memory_space<smem>>
    %937 = vector.broadcast %936 : f32 to vector<16x128xf32>
    %938 = arith.mulf %449, %937 : vector<16x128xf32>
    %939 = arith.addf %935, %938 : vector<16x128xf32>
    %c6_710 = arith.constant 6 : index
    %c5_711 = arith.constant 5 : index
    %940 = memref.load %arg4[%c6_710, %c5_711] : memref<8x8xf32, #tpu.memory_space<smem>>
    %941 = vector.broadcast %940 : f32 to vector<16x128xf32>
    %942 = arith.mulf %538, %941 : vector<16x128xf32>
    %943 = arith.addf %939, %942 : vector<16x128xf32>
    %c6_712 = arith.constant 6 : index
    %c6_713 = arith.constant 6 : index
    %944 = memref.load %arg4[%c6_712, %c6_713] : memref<8x8xf32, #tpu.memory_space<smem>>
    %945 = vector.broadcast %944 : f32 to vector<16x128xf32>
    %946 = arith.mulf %627, %945 : vector<16x128xf32>
    %947 = arith.addf %943, %946 : vector<16x128xf32>
    %c6_714 = arith.constant 6 : index
    %c7_715 = arith.constant 7 : index
    %948 = memref.load %arg4[%c6_714, %c7_715] : memref<8x8xf32, #tpu.memory_space<smem>>
    %949 = vector.broadcast %948 : f32 to vector<16x128xf32>
    %950 = arith.mulf %716, %949 : vector<16x128xf32>
    %951 = arith.addf %947, %950 : vector<16x128xf32>
    %c0_716 = arith.constant 0 : index
    %c6_717 = arith.constant 6 : index
    %c0_718 = arith.constant 0 : index
    %c0_719 = arith.constant 0 : index
    %952 = vector.load %arg5[%c0_716, %c6_717, %c0_718, %c0_719] : memref<1x8x16x128xf32, #tpu.memory_space<vmem>>, vector<1x1x16x128xf32>
    %953 = vector.shape_cast %952 : vector<1x1x16x128xf32> to vector<16x128xf32>
    %954 = vector.shape_cast %951 : vector<16x128xf32> to vector<1x1x16x128xf32>
    tpu.vector_store %arg5[%c0_716, %c6_717, %c0_718, %c0_719], %954 {strides = array<i32>} : memref<1x8x16x128xf32, #tpu.memory_space<vmem>>, vector<1x1x16x128xf32>,
    %c7_720 = arith.constant 7 : index
    %c0_721 = arith.constant 0 : index
    %955 = memref.load %arg4[%c7_720, %c0_721] : memref<8x8xf32, #tpu.memory_space<smem>>
    %956 = vector.broadcast %955 : f32 to vector<16x128xf32>
    %957 = arith.mulf %93, %956 : vector<16x128xf32>
    %c7_722 = arith.constant 7 : index
    %c1_723 = arith.constant 1 : index
    %958 = memref.load %arg4[%c7_722, %c1_723] : memref<8x8xf32, #tpu.memory_space<smem>>
    %959 = vector.broadcast %958 : f32 to vector<16x128xf32>
    %960 = arith.mulf %182, %959 : vector<16x128xf32>
    %961 = arith.addf %957, %960 : vector<16x128xf32>
    %c7_724 = arith.constant 7 : index
    %c2_725 = arith.constant 2 : index
    %962 = memref.load %arg4[%c7_724, %c2_725] : memref<8x8xf32, #tpu.memory_space<smem>>
    %963 = vector.broadcast %962 : f32 to vector<16x128xf32>
    %964 = arith.mulf %271, %963 : vector<16x128xf32>
    %965 = arith.addf %961, %964 : vector<16x128xf32>
    %c7_726 = arith.constant 7 : index
    %c3_727 = arith.constant 3 : index
    %966 = memref.load %arg4[%c7_726, %c3_727] : memref<8x8xf32, #tpu.memory_space<smem>>
    %967 = vector.broadcast %966 : f32 to vector<16x128xf32>
    %968 = arith.mulf %360, %967 : vector<16x128xf32>
    %969 = arith.addf %965, %968 : vector<16x128xf32>
    %c7_728 = arith.constant 7 : index
    %c4_729 = arith.constant 4 : index
    %970 = memref.load %arg4[%c7_728, %c4_729] : memref<8x8xf32, #tpu.memory_space<smem>>
    %971 = vector.broadcast %970 : f32 to vector<16x128xf32>
    %972 = arith.mulf %449, %971 : vector<16x128xf32>
    %973 = arith.addf %969, %972 : vector<16x128xf32>
    %c7_730 = arith.constant 7 : index
    %c5_731 = arith.constant 5 : index
    %974 = memref.load %arg4[%c7_730, %c5_731] : memref<8x8xf32, #tpu.memory_space<smem>>
    %975 = vector.broadcast %974 : f32 to vector<16x128xf32>
    %976 = arith.mulf %538, %975 : vector<16x128xf32>
    %977 = arith.addf %973, %976 : vector<16x128xf32>
    %c7_732 = arith.constant 7 : index
    %c6_733 = arith.constant 6 : index
    %978 = memref.load %arg4[%c7_732, %c6_733] : memref<8x8xf32, #tpu.memory_space<smem>>
    %979 = vector.broadcast %978 : f32 to vector<16x128xf32>
    %980 = arith.mulf %627, %979 : vector<16x128xf32>
    %981 = arith.addf %977, %980 : vector<16x128xf32>
    %c7_734 = arith.constant 7 : index
    %c7_735 = arith.constant 7 : index
    %982 = memref.load %arg4[%c7_734, %c7_735] : memref<8x8xf32, #tpu.memory_space<smem>>
    %983 = vector.broadcast %982 : f32 to vector<16x128xf32>
    %984 = arith.mulf %716, %983 : vector<16x128xf32>
    %985 = arith.addf %981, %984 : vector<16x128xf32>
    %c0_736 = arith.constant 0 : index
    %c7_737 = arith.constant 7 : index
    %c0_738 = arith.constant 0 : index
    %c0_739 = arith.constant 0 : index
    %986 = vector.load %arg5[%c0_736, %c7_737, %c0_738, %c0_739] : memref<1x8x16x128xf32, #tpu.memory_space<vmem>>, vector<1x1x16x128xf32>
    %987 = vector.shape_cast %986 : vector<1x1x16x128xf32> to vector<16x128xf32>
    %988 = vector.shape_cast %985 : vector<16x128xf32> to vector<1x1x16x128xf32>
    tpu.vector_store %arg5[%c0_736, %c7_737, %c0_738, %c0_739], %988 {strides = array<i32>} : memref<1x8x16x128xf32, #tpu.memory_space<vmem>>, vector<1x1x16x128xf32>,
    return
  }
  func.func @transform_0(%arg0: i32, %arg1: i32) -> (i32, i32, i32, i32) {
    %c0_i32 = arith.constant 0 : i32
    %c0_i32_0 = arith.constant 0 : i32
    %c0_i32_1 = arith.constant 0 : i32
    return %arg0, %c0_i32, %arg1, %c0_i32_0 : i32, i32, i32, i32
  }
  func.func @transform_1(%arg0: i32, %arg1: i32) -> (i32, i32) {
    %c0_i32 = arith.constant 0 : i32
    %c0_i32_0 = arith.constant 0 : i32
    %c0_i32_1 = arith.constant 0 : i32
    return %c0_i32, %c0_i32_0 : i32, i32
  }
  func.func @transform_2(%arg0: i32, %arg1: i32) -> (i32, i32) {
    %c0_i32 = arith.constant 0 : i32
    %c0_i32_0 = arith.constant 0 : i32
    %c0_i32_1 = arith.constant 0 : i32
    return %c0_i32, %c0_i32_0 : i32, i32
  }
  func.func @transform_3(%arg0: i32, %arg1: i32) -> (i32, i32, i32, i32) {
    %c0_i32 = arith.constant 0 : i32
    %c0_i32_0 = arith.constant 0 : i32
    %c0_i32_1 = arith.constant 0 : i32
    return %arg0, %c0_i32, %arg1, %c0_i32_0 : i32, i32, i32, i32
  }
}

</mosaic_0001>

<bundles_post_ra>
// kernel: tpu_custom_call.1
= control target key start
LH: loop header
LB: loop body
LE: loop exit
PB: predicated region body
PF: predicated region fallthrough
CT: control target
= control target key end

     0   :  { %s8768_s0 = inlined_call_operand.hbm [shape: f32[2,4,16,128], index: 0, kind: input, shape index: {}]   ;;  %s8769_s1 = inlined_call_operand.hbm [shape: f32[8,15], index: 1, kind: input, shape index: {}]   ;;  %s8770_s2 = inlined_call_operand.hbm [shape: f32[8,8], index: 2, kind: input, shape index: {}]   ;;  %s8771_s3 = inlined_call_operand.hbm [shape: f32[2,8,16,128], index: 3, kind: output, shape index: {}]  }
   0x1   :  { %8885 = sst [smem:[#allocation67_spill]] %s8768_s0 }
   0x2   :  { %8886 = sst [smem:[#allocation68_spill]] %s8769_s1 }
   0x3   :  { %8887 = sst [smem:[#allocation69_spill]] %s8770_s2 }
   0x4   :  { %8 = vsyncpa [#allocation4], 0 }
   0x5   :  { %10 = vsyncpa [#allocation4 + $0x1], 0 }
   0x6   :  { %11 = vsyncpa [#allocation6], 0 }
   0x7   :  { %12 = vsyncpa [#allocation9], 0 }
   0x8   :  { %13 = vsyncpa [#allocation5], 0 }
   0x9   :  { %15 = vsyncpa [#allocation5 + $0x1], 0  ;;  %s4832_s12 = smov 0   ;;  %s4834_s13 = smov 0  }
   0xa   :  { %s4836_s14 = smov 0   ;;  %s4838_s15 = smov 0  }
   0xb   :  { %s4840_s16 = smov 0   ;;  %s4842_s17 = smov 0  }
   0xc LB: > { %8888 = sst [smem:[#allocation15_spill]] %s4776_s14  ;;  %s4301_s18 = sadd.s32 4294967295, %s4788_s17   ;;  %s4788_s17 = sphi %s4842_s17, %s21_s17   ;;  %s4784_s16 = sphi %s4840_s16, %s9155_s16   ;;  %s4780_s15 = sphi %s4838_s15, %s9154_s15   ;;  %s4776_s14 = sphi %s4836_s14, %s9153_s14   ;;  %s4772_s13 = sphi %s4834_s13, %s9157_s13   ;;  %s4768_s12 = sphi %s4832_s12, %s9156_s12  }
   0xd   : > { %8889 = sst [smem:[#allocation16_spill]] %s4784_s16  ;;  %s4302_s19 = sadd.s32 4294967294, %s4788_s17  }
   0xe   : > { %s42_s20 = sadd.s32 1, %s4776_s14  ;;  %p49_p0 = scmp.ne.s32.totalorder %s4776_s14, %s4772_s13 }
   0xf   : > { %p50_p1 = scmp.eq.s32.totalorder %s4788_s17, 0  ;;  %p55_p2 = scmp.ne.s32.totalorder %s4772_s13, %s4768_s12 }
  0x10   : > { %p4870_p3 = scmp.eq.s32.totalorder %s4301_s18, 0  ;;  %p123_p4 = scmp.eq.s32.totalorder %s4301_s18, 1 }
  0x11   : > { %p4874_p5 = por %p50_p1, %p49_p0  ;;  %p129_p6 = scmp.eq.s32.totalorder %s4302_s19, 1 }
  0x12   : > { %p4880_p7 = por %p4870_p3, %p55_p2  ;;  %p4884_p8 = por %p123_p4, %p49_p0 }
  0x13   : > { %p4888_p9 = por %p129_p6, %p55_p2  ;;  %p4303_p10 = scmp.ge.s32.totalorder %s4788_s17, 1 }
  0x14   : > { %p136_p11 = scmp.lt.s32.totalorder %s4788_s17, 3  ;;  %s8895_s1 = sld [smem:[#allocation68_spill]] }
  0x15   : > { %p4306_p13 = scmp.ge.s32.totalorder %s4788_s17, 2  ;;  %p4547_p0 = scmp.lt.s32.totalorder %s4788_s17, 2 }
  0x16   : > { %p4897_p12 = pnand %p4303_p10, %p136_p11  ;;  %s8897_s2 = sld [smem:[#allocation69_spill]] }
  0x17   : > { %p4910_p2 = pnand %p4547_p0, %p4874_p5  ;;  %s4790_s7 = smov [#allocation7]  }
  0x18   : > { %p4530_p1 = pneg %p4897_p12  ;;  %s4791_s8 = smov [#allocation8]  }
  0x19   : > { %s33_s9 = sadd.s32 1, %s4784_s16  ;;  %s169_s10 = sand.u32 1, %s4776_s14  }
  0x1a   : > { %s148_s28 = sshll.u32 %s8895_s1, 4  ;;  %p4531_p4 = pnand %p4530_p1, %p4870_p3  ;;  %s149_s28 = int_to_ptr.hbm [resolvable:$true] %s148_s28 }
  0x1b   : > { %p35_p6 = scmp.ge.s32.totalorder %s33_s9, 2  ;;  %s4307_s11 = sshll.u32 %s169_s10, 6 }
  0x1c   : > { %s158_s5 = sshll.u32 %s8897_s2, 4  ;;  %s4516_s18 = sshll.u32 %s4784_s16, 6  ;;  %s159_s5 = int_to_ptr.hbm [resolvable:$true] %s158_s5 }
  0x1d   : > { %4533 = dma.hbm_to_smem (!%p4531_p4), %s149_s28, 128, %s4790_s7, [#allocation6]  }
  0x1e   : > { %4536 = dma.hbm_to_smem (!%p4531_p4), %s159_s5, 128, %s4791_s8, [#allocation9]  }
  0x1f   : > { %s9159_s9 = smov (%p35_p6, %s33_s9), 0  ;;  %s8900_s0 = sld [smem:[#allocation67_spill]] }
  0x20   : > { %8899 = sst [smem:[#allocation17_spill]] %s9159_s9  ;;  %s37_s27 = ssub.s32 %s4784_s16, %s9159_s9 }
  0x21   : > { %p40_p5 = scmp.eq.s32.totalorder %s37_s27, 0  ;;  %s173_s28 = scalar_lea.vmem [#allocation3], %s4307_s11 }
  0x22   : > { %s183_s4 = sshll.u32 %s173_s28, 4  ;;  %s170_s7 = scalar_lea.sflag [#allocation4], %s169_s10  ;;  %s184_s4 = int_to_ptr.vmem [resolvable:$true] %s183_s4 }
  0x23   : > { %s4929_s5 = scalar_select %p40_p5, %s4776_s14, %s42_s20  }
  0x24   : > { %s4792_s8 = smov 128   ;;  %s4793_s1 = smov 8  }
  0x25   : > { %s180_s26 = scalar_lea.hbm %s8900_s0, %s4516_s18  ;;  %8901 = sst [smem:[#allocation18_spill]] %s4929_s5 }
  0x26   : > { %s181_s30 = sshll.u32 %s180_s26, 4  ;;  %195 = sbr.rel (%p4897_p12) target bundleno = 1528 (0x5f8), region = 32  ;;  %s182_s30 = int_to_ptr.hbm [resolvable:$true] %s181_s30 }
  0x27   : > { %4540 = dma.hbm_to_vmem [thread:$0]  (!%p4910_p2), %s182_s30, 1024, %s184_s4, %s170_s7, %s4792_s8, %s4792_s8, %s4793_s1  }
  0x2b   : > { %s4936_s18 = sand.u32 1, %s4772_s13  }
  0x2c   : > { %s4311_s11 = sshll.u32 %s4936_s18, 6  ;;  %s198_s19 = scalar_lea.sflag [#allocation4], %s4936_s18 }
  0x2d   : > { %s4940_s22 = scalar_lea.vmem [#allocation3], %s4311_s11 }
  0x2e   : > { %4751 = dma.done.wait (%p4880_p7), %s198_s19, 1024  }
  0x2f   : > { %4753 = vsyncadd (%p4880_p7), %s198_s19, 4294966272 }
  0x30   : > { %4755 = dma.done.wait (%p4870_p3), [#allocation6], 128  }
  0x31   : > { %4757 = vsyncadd (%p4870_p3), [#allocation6], 4294967168 }
  0x32   : > { %4759 = dma.done.wait (%p4870_p3), [#allocation9], 128  }
  0x33   : > { %4761 = vsyncadd (%p4870_p3), [#allocation9], 4294967168 }
  0x34   : > { %217 = sfence }
  0x35   : > { %s4315_s1 = sld [smem:[#allocation7 + $0x1]]  ;;  %v4794_v0 = vmov 0.0   ;;  %v4955_v4 = vld [vmem:[%s4940_s22 + $0x8] sm:$0xff]  ;;  %s8796_s23 = smov 127   ;;  %v4961_v6 = vld [vmem:[%s4940_s22] sm:$0xff]  ;;  %vm240_vm0 = vcmask 56320  }
  0x36   : > { %242 = vst [vmem:[#allocation2 + $0x18] sm:$0xff] %v4794_v0  ;;  %s4316_s20 = sld [smem:[#allocation7 + $0x2]]  ;;  %s8792_s21 = smov 126   ;;  %vm307_vm1 = vcmask 1039360   ;;  %vm336_vm2 = vcmask 1031168   ;;  %vm365_vm3 = vcmask 1022976  }
  0x37   : > { %272 = vst [vmem:[#allocation2 + $0x20] sm:$0xff] %v4955_v4  ;;  %s4317_s29 = sld [smem:[#allocation7 + $0x3]]  ;;  %s8790_s10 = smov 125   ;;  %vm394_vm4 = vcmask 1014784   ;;  %vm423_vm5 = vcmask 1006592   ;;  %vm452_vm6 = vcmask 998400  }
  0x38   : > { %271 = vst [vmem:[#allocation2 + $0x8] sm:$0xff] %v4961_v6  ;;  %s4318_s6 = sld [smem:[#allocation7 + $0x4]]  ;;  %s8772_s27 = smov 124   ;;  %vm501_vm7 = vcmask 982016   ;;  %vm530_vm8 = vcmask 973824   ;;  %vm559_vm9 = vcmask 965632  }
  0x39   : > { %s4319_s26 = sld [smem:[#allocation7 + $0x5]]  ;;  %241 = vst.msk [vmem:[#allocation2 + $0x10] sm:$0xff] %vm240_vm0, %v4794_v0  ;;  %s8866_s28 = smov 123   ;;  %vm588_vm10 = vcmask 957440   ;;  %vm617_vm11 = vcmask 949248   ;;  %vm646_vm12 = vcmask 941056  }
  0x3a   : > { %244 = vst.msk [vmem:[#allocation2 + $0x28] sm:$0xff] %vm240_vm0, %v4794_v0  ;;  %s4320_s30 = sld [smem:[#allocation7 + $0x6]]  ;;  %s8864_s7 = smov 122   ;;  %vm675_vm13 = vcmask 932864  }
  0x3b   : > { %v290_v1 = vstv %s4315_s1  ;;  %247 = vst.msk [vmem:[#allocation2 + $0x40] sm:$0xff] %vm240_vm0, %v4794_v0  ;;  %s4321_s4 = sld [smem:[#allocation7 + $0x7]]  ;;  %s8862_s11 = smov 121  }
  0x3c   : > { %v293_v2 = vmul.f32 0.0, %v290_v1  ;;  %v319_v3 = vstv %s4316_s20  ;;  %v294_v7 = vmul.f32 %v290_v1, %v4955_v4  ;;  %v292_v8 = vmul.f32 %v290_v1, %v4961_v6  ;;  %250 = vst.msk [vmem:[#allocation2 + $0x58] sm:$0xff] %vm240_vm0, %v4794_v0  ;;  %s4322_s8 = sld [smem:[#allocation7 + $0x8]]  ;;  %s8860_s1 = smov 120  }
  0x3d   : > { %v322_v5 = vmul.f32 0.0, %v319_v3  ;;  %v321_v9 = vmul.f32 %v319_v3, %v4961_v6  ;;  %v323_v10 = vmul.f32 %v319_v3, %v4955_v4  ;;  %v348_v11 = vstv %s4317_s29  ;;  %253 = vst.msk [vmem:[#allocation2 + $0x70] sm:$0xff] %vm240_vm0, %v4794_v0  ;;  %s4323_s19 = sld [smem:[#allocation7 + $0x9]]  ;;  %s8850_s29 = smov 119  }
  0x3e   : > { %303 = vrot.lane.b32.xlu1 %v293_v2, %s8796_s23  ;;  %299 = vrot.lane.b32.xlu0 %v293_v2, %s8796_s23  ;;  %v351_v12 = vmul.f32 0.0, %v348_v11  ;;  %v350_v13 = vmul.f32 %v348_v11, %v4961_v6  ;;  %v352_v14 = vmul.f32 %v348_v11, %v4955_v4  ;;  %v377_v15 = vstv %s4318_s6  ;;  %256 = vst.msk [vmem:[#allocation2 + $0x88] sm:$0xff] %vm240_vm0, %v4794_v0  ;;  %s4324_s20 = sld [smem:[#allocation7 + $0xa]] }
  0x3f   : > { %328 = vrot.lane.b32.xlu2 %v322_v5, %s8792_s21  ;;  %v379_v16 = vmul.f32 %v377_v15, %v4961_v6  ;;  %v378_v17 = vmul.f32 0.0, %v377_v15  ;;  %v406_v18 = vstv %s4319_s26  ;;  %v381_v20 = vmul.f32 %v377_v15, %v4955_v4  ;;  %259 = vst.msk [vmem:[#allocation2 + $0xa0] sm:$0xff] %vm240_vm0, %v4794_v0  ;;  %s4325_s6 = sld [smem:[#allocation7 + $0xb]]  ;;  %s8838_s26 = smov 118  }
  0x40   : > { %v407_v19 = vmul.f32 0.0, %v406_v18  ;;  %v408_v21 = vmul.f32 %v406_v18, %v4961_v6  ;;  %262 = vst.msk [vmem:[#allocation2 + $0xb8] sm:$0xff] %vm240_vm0, %v4794_v0  ;;  %v410_v22 = vmul.f32 %v406_v18, %v4955_v4  ;;  %v435_v23 = vstv %s4320_s30  ;;  %v5011_v32 = vld [vmem:[#allocation2 + $0x10] sm:$0xff]  ;;  %s4326_s30 = sld [smem:[#allocation7 + $0xc]] }
  0x41   : > { %v438_v24 = vmul.f32 0.0, %v435_v23  ;;  %v437_v25 = vmul.f32 %v435_v23, %v4961_v6  ;;  %v439_v26 = vmul.f32 %v435_v23, %v4955_v4  ;;  %v464_v27 = vstv %s4321_s4  ;;  %v5016_v35 = vld [vmem:[#allocation2 + $0x28] sm:$0xff]  ;;  %s8836_s4 = smov 117   ;;  %s7324_s0 = sld [smem:[#allocation8 + $0x1]] }
  0x42   : > { %v466_v28 = vmul.f32 %v464_v27, %v4955_v4  ;;  %v465_v29 = vmul.f32 %v464_v27, %v4961_v6  ;;  %v484_v30 = vstv %s4322_s8  ;;  %s4327_s8 = sld [smem:[#allocation7 + $0xd]] }
  0x43   : > { %v485_v31 = vmul.f32 %v484_v30, %v4961_v6  ;;  %v487_v33 = vmul.f32 %v484_v30, %v4955_v4  ;;  %v486_v34 = vmul.f32 %v484_v30, %v5011_v32  ;;  %v488_v36 = vmul.f32 %v484_v30, %v5016_v35  ;;  %s7326_s2 = sld [smem:[#allocation8 + $0x81]] }
  0x44   : > { %v513_v37 = vstv %s4323_s19  ;;  %v542_v41 = vstv %s4324_s20  ;;  %s8826_s19 = smov 116   ;;  %s4328_s20 = sld [smem:[#allocation7 + $0xe]] }
  0x45   : > { %v515_v38 = vmul.f32 %v513_v37, %v5011_v32  ;;  %v514_v39 = vmul.f32 %v513_v37, %v4961_v6  ;;  %v516_v40 = vmul.f32 %v513_v37, %v4955_v4  ;;  %v543_v42 = vmul.f32 %v542_v41, %v4961_v6  ;;  %s7328_s9 = sld [smem:[#allocation8 + $0x101]] }
  0x46   : > { %305 = vrot.lane.b32.xlu1 %v294_v7, %s8796_s23  ;;  %301 = vrot.lane.b32.xlu0 %v292_v8, %s8796_s23  ;;  %v517_v43 = vmul.f32 %v513_v37, %v5016_v35  ;;  %v544_v44 = vmul.f32 %v542_v41, %v5011_v32  ;;  %v546_v46 = vmul.f32 %v542_v41, %v5016_v35  ;;  %v571_v48 = vstv %s4325_s6  ;;  %s8824_s6 = smov 115   ;;  %s7332_s16 = sld [smem:[#allocation8 + $0x181]] }
  0x47   : > { %330 = vrot.lane.b32.xlu2 %v321_v9, %s8792_s21  ;;  %v545_v47 = vmul.f32 %v542_v41, %v4955_v4  ;;  %v572_v49 = vmul.f32 %v571_v48, %v4961_v6  ;;  %v574_v51 = vmul.f32 %v571_v48, %v4955_v4  ;;  %v573_v52 = vmul.f32 %v571_v48, %v5011_v32  ;;  %s7334_s5 = sld [smem:[#allocation7 + $0x382]] }
  0x48   : > { %v575_v53 = vmul.f32 %v571_v48, %v5016_v35  ;;  %v600_v54 = vstv %s4326_s30  ;;  %v629_v59 = vstv %s4327_s8  ;;  %s4330_s30 = sld [smem:[#allocation7 + $0x81]]  ;;  %s8804_s8 = smov 114  }
  0x49   : > { %v602_v56 = vmul.f32 %v600_v54, %v5011_v32  ;;  %v601_v57 = vmul.f32 %v600_v54, %v4961_v6  ;;  %v603_v58 = vmul.f32 %v600_v54, %v4955_v4  ;;  %v630_v63 = vmul.f32 %v629_v59, %v4961_v6  ;;  %s7341_s14 = sld [smem:[#allocation8 + $0x201]] }
  0x4a   : > { %v604_v0 = vmul.f32 %v600_v54, %v5016_v35  ;;  %v631_v1 = vmul.f32 %v629_v59, %v5011_v32  ;;  %v633_v7 = vmul.f32 %v629_v59, %v5016_v35  ;;  %v632_v8 = vmul.f32 %v629_v59, %v4955_v4 }
  0x4b   : > { %v658_v9 = vstv %s4328_s20  ;;  %s4331_s20 = sld [smem:[#allocation7 + $0x82]] }
  0x4c   : > { %v660_v15 = vmul.f32 %v658_v9, %v5011_v32 }
  0x4e   : > { %334 = vrot.lane.b32.xlu1 %v323_v10, %s8792_s21  ;;  %332 = vrot.lane.b32.xlu0 %v322_v5, %s8792_s21  ;;  %v659_v10 = vmul.f32 %v658_v9, %v4961_v6 }
  0x4f   : > { %357 = vrot.lane.b32.xlu2 %v351_v12, %s8790_s10 }
  0x51   : > { %v721_v23 = vstv %s4331_s20  ;;  %s4333_s20 = sld [smem:[#allocation7 + $0x84]] }
  0x52   : > { %v722_v27 = vmul.f32 0.0, %v721_v23 }
  0x56   : > { %361 = vrot.lane.b32.xlu1 %v351_v12, %s8790_s10  ;;  %359 = vrot.lane.b32.xlu0 %v350_v13, %s8790_s10 }
  0x57   : > { %363 = vrot.lane.b32.xlu2 %v352_v14, %s8790_s10  ;;  %v661_v14 = vmul.f32 %v658_v9, %v4955_v4 }
  0x5e   : > { %388 = vrot.lane.b32.xlu1 %v379_v16, %s8772_s27  ;;  %386 = vrot.lane.b32.xlu0 %v378_v17, %s8772_s27  ;;  %v662_v16 = vmul.f32 %v658_v9, %v5016_v35 }
  0x5f   : > { %390 = vrot.lane.b32.xlu2 %v378_v17, %s8772_s27  ;;  %v693_v17 = vstv %s4330_s30  ;;  %s4332_s30 = sld [smem:[#allocation7 + $0x83]] }
  0x66   : > { %415 = vrot.lane.b32.xlu1 %v407_v19, %s8866_s28  ;;  %392 = vrot.lane.b32.xlu0 %v381_v20, %s8772_s27 }
  0x67   : > { %417 = vrot.lane.b32.xlu2 %v408_v21, %s8866_s28  ;;  %v695_v21 = vmul.f32 %v693_v17, %v4961_v6 }
  0x6e   : > { %421 = vrot.lane.b32.xlu1 %v410_v22, %s8866_s28  ;;  %419 = vrot.lane.b32.xlu0 %v407_v19, %s8866_s28  ;;  %v694_v22 = vmul.f32 0.0, %v693_v17 }
  0x6f   : > { %444 = vrot.lane.b32.xlu2 %v438_v24, %s8864_s7 }
  0x76   : > { %448 = vrot.lane.b32.xlu1 %v438_v24, %s8864_s7  ;;  %446 = vrot.lane.b32.xlu0 %v437_v25, %s8864_s7 }
  0x77   : > { %450 = vrot.lane.b32.xlu2 %v439_v26, %s8864_s7 }
  0x7e   : > { %471 = vrot.lane.b32.xlu1 %v466_v28, %s8862_s11  ;;  %469 = vrot.lane.b32.xlu0 %v465_v29, %s8862_s11  ;;  %v697_v28 = vmul.f32 %v693_v17, %v4955_v4  ;;  %v723_v29 = vmul.f32 %v721_v23, %v4961_v6 }
  0x7f   : > { %493 = vrot.lane.b32.xlu2 %v485_v31, %s8860_s1 }
  0x86   : > { %497 = vrot.lane.b32.xlu1 %v487_v33, %s8860_s1  ;;  %495 = vrot.lane.b32.xlu0 %v486_v34, %s8860_s1  ;;  %v725_v34 = vmul.f32 %v721_v23, %v4955_v4 }
  0x87   : > { %499 = vrot.lane.b32.xlu2 %v488_v36, %s8860_s1  ;;  %v749_v36 = vstv %s4332_s30  ;;  %s4334_s30 = sld [smem:[#allocation7 + $0x85]] }
  0x88   : > { %v752_v37 = vmul.f32 0.0, %v749_v36  ;;  %v751_v41 = vmul.f32 %v749_v36, %v4961_v6 }
  0x8e   : > { %524 = vrot.lane.b32.xlu1 %v515_v38, %s8850_s29  ;;  %522 = vrot.lane.b32.xlu0 %v514_v39, %s8850_s29 }
  0x8f   : > { %526 = vrot.lane.b32.xlu2 %v516_v40, %s8850_s29 }
  0x96   : > { %551 = vrot.lane.b32.xlu1 %v543_v42, %s8838_s26  ;;  %528 = vrot.lane.b32.xlu0 %v517_v43, %s8850_s29  ;;  %v753_v42 = vmul.f32 %v749_v36, %v4955_v4  ;;  %v777_v43 = vstv %s4333_s20  ;;  %s4335_s20 = sld [smem:[#allocation7 + $0x86]] }
  0x97   : > { %553 = vrot.lane.b32.xlu2 %v544_v44, %s8838_s26  ;;  %v779_v48 = vmul.f32 %v777_v43, %v4961_v6 }
  0x99   : > { %v5034_v45 = vpop.permute.xlu2 %328 }
  0x9e   : > { %557 = vrot.lane.b32.xlu1 %v546_v46, %s8838_s26  ;;  %555 = vrot.lane.b32.xlu0 %v545_v47, %s8838_s26 }
  0x9f   : > { %580 = vrot.lane.b32.xlu2 %v572_v49, %s8836_s4  ;;  %v778_v49 = vmul.f32 0.0, %v777_v43 }
  0xa1   : > { %v5042_v50 = vpop.permute.xlu2 %330 }
  0xa6   : > { %584 = vrot.lane.b32.xlu1 %v574_v51, %s8836_s4  ;;  %582 = vrot.lane.b32.xlu0 %v573_v52, %s8836_s4  ;;  %v805_v51 = vstv %s4334_s30  ;;  %s4336_s30 = sld [smem:[#allocation7 + $0x87]] }
  0xa7   : > { %586 = vrot.lane.b32.xlu2 %v575_v53, %s8836_s4 }
  0xa9   : > { %v5050_v55 = vpop.permute.xlu2 %357 }
  0xac   : > { %v861_v17 = vstv %s4336_s30  ;;  %s4340_s30 = sld [smem:[#allocation7 + $0x8b]] }
  0xae   : > { %611 = vrot.lane.b32.xlu1 %v602_v56, %s8826_s19  ;;  %609 = vrot.lane.b32.xlu0 %v601_v57, %s8826_s19  ;;  %v806_v56 = vmul.f32 0.0, %v805_v51  ;;  %v781_v57 = vmul.f32 %v777_v43, %v4955_v4 }
  0xaf   : > { %613 = vrot.lane.b32.xlu2 %v603_v58, %s8826_s19  ;;  %v807_v58 = vmul.f32 %v805_v51, %v4961_v6 }
  0xb0   : > { %v5058_v60 = vpop.permute.xlu1 %303  ;;  %v5060_v61 = vpop.permute.xlu0 %299 }
  0xb1   : > { %v5062_v62 = vpop.permute.xlu2 %363 }
  0xb6   : > { %638 = vrot.lane.b32.xlu1 %v630_v63, %s8824_s6  ;;  %615 = vrot.lane.b32.xlu0 %v604_v0, %s8826_s19 }
  0xb7   : > { %640 = vrot.lane.b32.xlu2 %v631_v1, %s8824_s6  ;;  %v809_v1 = vmul.f32 %v805_v51, %v4955_v4 }
  0xb8   : > { %v5070_v2 = vpop.permute.xlu1 %305  ;;  %v5072_v3 = vpop.permute.xlu0 %301 }
  0xb9   : > { %v5074_v5 = vpop.permute.xlu2 %390 }
  0xbe   : > { %644 = vrot.lane.b32.xlu1 %v633_v7, %s8824_s6  ;;  %642 = vrot.lane.b32.xlu0 %v632_v8, %s8824_s6  ;;  %v833_v7 = vstv %s4335_s20  ;;  %s4338_s20 = sld [smem:[#allocation7 + $0x89]] }
  0xbf   : > { %667 = vrot.lane.b32.xlu2 %v659_v10, %s8804_s8  ;;  %v836_v8 = vmul.f32 0.0, %v833_v7 }
  0xc0   : > { %v5082_v11 = vpop.permute.xlu1 %334  ;;  %v5084_v12 = vpop.permute.xlu0 %332 }
  0xc1   : > { %v5086_v13 = vpop.permute.xlu2 %417 }
  0xc6   : > { %671 = vrot.lane.b32.xlu1 %v661_v14, %s8804_s8  ;;  %669 = vrot.lane.b32.xlu0 %v660_v15, %s8804_s8  ;;  %v835_v15 = vmul.f32 %v833_v7, %v4961_v6 }
  0xc7   : > { %673 = vrot.lane.b32.xlu2 %v662_v16, %s8804_s8  ;;  %v837_v16 = vmul.f32 %v833_v7, %v4955_v4 }
  0xc8   : > { %v5094_v18 = vpop.permute.xlu1 %361  ;;  %v5096_v19 = vpop.permute.xlu0 %359 }
  0xc9   : > { %v5098_v20 = vpop.permute.xlu2 %444 }
  0xce   : > { %704 = vrot.lane.b32.xlu1 %v695_v21, %s8796_s23  ;;  %702 = vrot.lane.b32.xlu0 %v694_v22, %s8796_s23 }
  0xcf   : > { %706 = vrot.lane.b32.xlu2 %v694_v22, %s8796_s23 }
  0xd0   : > { %v5104_v24 = vpop.permute.xlu1 %388  ;;  %v5106_v25 = vpop.permute.xlu0 %386 }
  0xd1   : > { %v5108_v26 = vpop.permute.xlu2 %450 }
  0xd6   : > { %730 = vrot.lane.b32.xlu1 %v722_v27, %s8792_s21  ;;  %708 = vrot.lane.b32.xlu0 %v697_v28, %s8796_s23  ;;  %v862_v28 = vmul.f32 %v861_v17, %v4961_v6 }
  0xd7   : > { %732 = vrot.lane.b32.xlu2 %v723_v29, %s8792_s21 }
  0xd8   : > { %v5115_v30 = vpop.permute.xlu1 %415  ;;  %v5117_v31 = vpop.permute.xlu0 %392 }
  0xd9   : > { %v5119_v33 = vpop.permute.xlu2 %493 }
  0xde   : > { %736 = vrot.lane.b32.xlu1 %v725_v34, %s8792_s21  ;;  %734 = vrot.lane.b32.xlu0 %v722_v27, %s8792_s21  ;;  %v863_v27 = vmul.f32 %v861_v17, %v4955_v4 }
  0xdf   : > { %758 = vrot.lane.b32.xlu2 %v752_v37, %s8790_s10 }
  0xe0   : > { %v5125_v38 = vpop.permute.xlu1 %421  ;;  %v5127_v39 = vpop.permute.xlu0 %419 }
  0xe1   : > { %v5129_v40 = vpop.permute.xlu2 %499 }
  0xe6   : > { %762 = vrot.lane.b32.xlu1 %v752_v37, %s8790_s10  ;;  %760 = vrot.lane.b32.xlu0 %v751_v41, %s8790_s10 }
  0xe7   : > { %764 = vrot.lane.b32.xlu2 %v753_v42, %s8790_s10 }
  0xe8   : > { %v5136_v44 = vpop.permute.xlu1 %448  ;;  %v5138_v46 = vpop.permute.xlu0 %446 }
  0xe9   : > { %v5140_v47 = vpop.permute.xlu2 %526 }
  0xea   : > { %8902 = vst [vmem:[#allocation19_spill] sm:$0xff] %v5140_v47 }
  0xee   : > { %788 = vrot.lane.b32.xlu1 %v779_v48, %s8772_s27  ;;  %786 = vrot.lane.b32.xlu0 %v778_v49, %s8772_s27 }
  0xef   : > { %790 = vrot.lane.b32.xlu2 %v778_v49, %s8772_s27  ;;  %v905_v49 = vstv %s4338_s20  ;;  %s4341_s20 = sld [smem:[#allocation7 + $0x8c]] }
  0xf0   : > { %v5146_v52 = vpop.permute.xlu1 %471  ;;  %v5148_v53 = vpop.permute.xlu0 %469  ;;  %v908_v7 = vmul.f32 %v905_v49, %v4955_v4 }
  0xf1   : > { %v5150_v54 = vpop.permute.xlu2 %553 }
  0xf2   : > { %8903 = vst [vmem:[#allocation20_spill] sm:$0xff] %v5150_v54 }
  0xf6   : > { %814 = vrot.lane.b32.xlu1 %v806_v56, %s8866_s28  ;;  %792 = vrot.lane.b32.xlu0 %v781_v57, %s8772_s27  ;;  %s4337_s27 = sld [smem:[#allocation7 + $0x88]] }
  0xf7   : > { %816 = vrot.lane.b32.xlu2 %v807_v58, %s8866_s28  ;;  %v907_v58 = vmul.f32 %v905_v49, %v5011_v32 }
  0xf8   : > { %v5157_v59 = vpop.permute.xlu1 %497  ;;  %v5159_v63 = vpop.permute.xlu0 %495 }
  0xf9   : > { %8904 = vst [vmem:[#allocation21_spill] sm:$0xff] %v5159_v63  ;;  %v5161_v0 = vpop.permute.xlu2 %580 }
  0xfa   : > { %8905 = vst [vmem:[#allocation22_spill] sm:$0xff] %v5161_v0 }
  0xfc   : > { %v877_v29 = vstv %s4337_s27  ;;  %s4339_s27 = sld [smem:[#allocation7 + $0x8a]] }
  0xfd   : > { %v878_v34 = vmul.f32 %v877_v29, %v4961_v6  ;;  %v880_v42 = vmul.f32 %v877_v29, %v4955_v4  ;;  %v879_v43 = vmul.f32 %v877_v29, %v5011_v32  ;;  %v881_v48 = vmul.f32 %v877_v29, %v5016_v35 }
  0xfe   : > { %820 = vrot.lane.b32.xlu1 %v809_v1, %s8866_s28  ;;  %818 = vrot.lane.b32.xlu0 %v806_v56, %s8866_s28  ;;  %v906_v1 = vmul.f32 %v905_v49, %v4961_v6 }
  0xff   : > { %842 = vrot.lane.b32.xlu2 %v836_v8, %s8864_s7 }
 0x100   : > { %v5167_v9 = vpop.permute.xlu1 %524  ;;  %v5169_v10 = vpop.permute.xlu0 %522 }
 0x101   : > { %8906 = vst [vmem:[#allocation23_spill] sm:$0xff] %v5167_v9  ;;  %v5171_v14 = vpop.permute.xlu2 %586 }
 0x102   : > { %8907 = vst [vmem:[#allocation24_spill] sm:$0xff] %v5171_v14 }
 0x106   : > { %846 = vrot.lane.b32.xlu1 %v836_v8, %s8864_s7  ;;  %844 = vrot.lane.b32.xlu0 %v835_v15, %s8864_s7  ;;  %v933_v8 = vstv %s4339_s27  ;;  %s4342_s27 = sld [smem:[#allocation7 + $0x8d]] }
 0x107   : > { %848 = vrot.lane.b32.xlu2 %v837_v16, %s8864_s7  ;;  %v935_v29 = vmul.f32 %v933_v8, %v5011_v32 }
 0x108   : > { %v5178_v21 = vpop.permute.xlu1 %551  ;;  %v5180_v22 = vpop.permute.xlu0 %528 }
 0x109   : > { %8908 = vst [vmem:[#allocation25_spill] sm:$0xff] %v5180_v22  ;;  %v5182_v23 = vpop.permute.xlu2 %613 }
 0x10a   : > { %8909 = vst [vmem:[#allocation26_spill] sm:$0xff] %v5182_v23 }
 0x10e   : > { %868 = vrot.lane.b32.xlu1 %v863_v27, %s8862_s11  ;;  %866 = vrot.lane.b32.xlu0 %v862_v28, %s8862_s11  ;;  %v934_v27 = vmul.f32 %v933_v8, %v4961_v6  ;;  %v909_v28 = vmul.f32 %v905_v49, %v5016_v35  ;;  %v961_v49 = vstv %s4340_s30  ;;  %s4343_s30 = sld [smem:[#allocation7 + $0x8e]] }
 0x10f   : > { %886 = vrot.lane.b32.xlu2 %v878_v34, %s8860_s1 }
 0x110   : > { %v5190_v36 = vpop.permute.xlu1 %557  ;;  %v5192_v37 = vpop.permute.xlu0 %555 }
 0x111   : > { %8910 = vst [vmem:[#allocation27_spill] sm:$0xff] %v5190_v36  ;;  %v5194_v41 = vpop.permute.xlu2 %640 }
 0x112   : > { %8911 = vst [vmem:[#allocation28_spill] sm:$0xff] %v5192_v37 }
 0x113   : > { %8912 = vst [vmem:[#allocation29_spill] sm:$0xff] %v5194_v41 }
 0x114   : > { %v1045_v14 = vstv %s4343_s30  ;;  %s4347_s30 = sld [smem:[#allocation7 + $0x103]] }
 0x115   : > { %v1048_v37 = vmul.f32 %v1045_v14, %v4955_v4  ;;  %v1049_v36 = vmul.f32 %v1045_v14, %v5016_v35 }
 0x116   : > { %890 = vrot.lane.b32.xlu1 %v880_v42, %s8860_s1  ;;  %888 = vrot.lane.b32.xlu0 %v879_v43, %s8860_s1 }
 0x117   : > { %892 = vrot.lane.b32.xlu2 %v881_v48, %s8860_s1  ;;  %v937_v48 = vmul.f32 %v933_v8, %v5016_v35 }
 0x118   : > { %v5202_v51 = vpop.permute.xlu1 %584  ;;  %v5204_v56 = vpop.permute.xlu0 %582 }
 0x119   : > { %8913 = vst [vmem:[#allocation30_spill] sm:$0xff] %v5202_v51  ;;  %v5206_v57 = vpop.permute.xlu2 %667 }
 0x11a   : > { %8914 = vst [vmem:[#allocation31_spill] sm:$0xff] %v5204_v56  ;;  %v5276_v56 = vld [vmem:[%s4940_s22 + $0x18] sm:$0xff] }
 0x11b   : > { %8915 = vst [vmem:[#allocation32_spill] sm:$0xff] %v5206_v57  ;;  %v1046_v57 = vmul.f32 %v1045_v14, %v4961_v6 }
 0x11c   : > { %274 = vst [vmem:[#allocation2 + $0x50] sm:$0xff] %v5276_v56 }
 0x11e   : > { %916 = vrot.lane.b32.xlu1 %v907_v58, %s8850_s29  ;;  %914 = vrot.lane.b32.xlu0 %v906_v1, %s8850_s29  ;;  %v936_v58 = vmul.f32 %v933_v8, %v4955_v4  ;;  %v962_v1 = vmul.f32 %v961_v49, %v4961_v6  ;;  %v963_v8 = vmul.f32 %v961_v49, %v5011_v32 }
 0x11f   : > { %918 = vrot.lane.b32.xlu2 %v908_v7, %s8850_s29 }
 0x120   : > { %v5214_v15 = vpop.permute.xlu1 %611  ;;  %v5216_v16 = vpop.permute.xlu0 %609 }
 0x121   : > { %8916 = vst [vmem:[#allocation33_spill] sm:$0xff] %v5214_v15  ;;  %v5218_v17 = vpop.permute.xlu2 %673 }
 0x122   : > { %8917 = vst [vmem:[#allocation34_spill] sm:$0xff] %v5216_v16 }
 0x123   : > { %8918 = vst [vmem:[#allocation35_spill] sm:$0xff] %v5218_v17  ;;  %v965_v17 = vmul.f32 %v961_v49, %v5016_v35 }
 0x126   : > { %942 = vrot.lane.b32.xlu1 %v934_v27, %s8838_s26  ;;  %920 = vrot.lane.b32.xlu0 %v909_v28, %s8850_s29 }
 0x127   : > { %944 = vrot.lane.b32.xlu2 %v935_v29, %s8838_s26  ;;  %v964_v29 = vmul.f32 %v961_v49, %v4955_v4  ;;  %v5259_v49 = vld [vmem:[%s4940_s22 + $0x10] sm:$0xff] }
 0x128   : > { %v5226_v34 = vpop.permute.xlu1 %638  ;;  %v5228_v42 = vpop.permute.xlu0 %615  ;;  %273 = vst [vmem:[#allocation2 + $0x38] sm:$0xff] %v5259_v49 }
 0x129   : > { %8919 = vst [vmem:[#allocation36_spill] sm:$0xff] %v5226_v34  ;;  %v5230_v43 = vpop.permute.xlu2 %706 }
 0x12a   : > { %8920 = vst [vmem:[#allocation37_spill] sm:$0xff] %v5228_v42 }
 0x12b   : > { %8921 = vst [vmem:[#allocation38_spill] sm:$0xff] %v5230_v43 }
 0x12e   : > { %948 = vrot.lane.b32.xlu1 %v937_v48, %s8838_s26  ;;  %946 = vrot.lane.b32.xlu0 %v936_v58, %s8838_s26  ;;  %v989_v48 = vstv %s4341_s20  ;;  %s4345_s20 = sld [smem:[#allocation7 + $0x101]] }
 0x12f   : > { %970 = vrot.lane.b32.xlu2 %v962_v1, %s8836_s4  ;;  %v990_v42 = vmul.f32 %v989_v48, %v4961_v6  ;;  %v993_v23 = vmul.f32 %v989_v48, %v5016_v35 }
 0x130   : > { %v5238_v7 = vpop.permute.xlu1 %644  ;;  %v5240_v27 = vpop.permute.xlu0 %642 }
 0x131   : > { %8922 = vst [vmem:[#allocation39_spill] sm:$0xff] %v5238_v7  ;;  %v5242_v28 = vpop.permute.xlu2 %732  ;;  %v991_v7 = vmul.f32 %v989_v48, %v5011_v32 }
 0x132   : > { %8923 = vst [vmem:[#allocation40_spill] sm:$0xff] %v5240_v27 }
 0x136   : > { %974 = vrot.lane.b32.xlu1 %v964_v29, %s8836_s4  ;;  %972 = vrot.lane.b32.xlu0 %v963_v8, %s8836_s4  ;;  %v992_v29 = vmul.f32 %v989_v48, %v4955_v4 }
 0x137   : > { %976 = vrot.lane.b32.xlu2 %v965_v17, %s8836_s4  ;;  %v1017_v17 = vstv %s4342_s27  ;;  %s4346_s27 = sld [smem:[#allocation7 + $0x102]] }
 0x138   : > { %v5250_v58 = vpop.permute.xlu1 %671  ;;  %v5252_v1 = vpop.permute.xlu0 %669  ;;  %v1018_v41 = vmul.f32 %v1017_v17, %v4961_v6  ;;  %v1019_v15 = vmul.f32 %v1017_v17, %v5011_v32  ;;  %v1021_v48 = vmul.f32 %v1017_v17, %v5016_v35  ;;  %v1020_v51 = vmul.f32 %v1017_v17, %v4955_v4 }
 0x139   : > { %8924 = vst [vmem:[#allocation41_spill] sm:$0xff] %v5250_v58  ;;  %v5254_v27 = vpop.permute.xlu2 %758  ;;  %v1047_v17 = vmul.f32 %v1045_v14, %v5011_v32 }
 0x13a   : > { %8925 = vst [vmem:[#allocation42_spill] sm:$0xff] %v5252_v1 }
 0x13d   : > { %v1112_v32 = vstv %s4346_s27  ;;  %s4349_s27 = sld [smem:[#allocation7 + $0x105]] }
 0x13e   : > { %1000 = vrot.lane.b32.xlu1 %v991_v7, %s8826_s19  ;;  %998 = vrot.lane.b32.xlu0 %v990_v42, %s8826_s19  ;;  %v1114_v16 = vmul.f32 %v1112_v32, %v5259_v49 }
 0x13f   : > { %1002 = vrot.lane.b32.xlu2 %v992_v29, %s8826_s19 }
 0x140   : > { %v5266_v8 = vpop.permute.xlu1 %704  ;;  %v5268_v1 = vpop.permute.xlu0 %702 }
 0x141   : > { %8926 = vst [vmem:[#allocation43_spill] sm:$0xff] %v5266_v8  ;;  %v5270_v58 = vpop.permute.xlu2 %764 }
 0x142   : > { %8927 = vst [vmem:[#allocation44_spill] sm:$0xff] %v5270_v58  ;;  %v1140_v58 = vstv %s4347_s30  ;;  %s8939_s30 = smov 124  }
 0x143   : > { %v1143_v47 = vmul.f32 0.0, %v1140_v58  ;;  %v1144_v22 = vmul.f32 %v1140_v58, %v5276_v56 }
 0x146   : > { %1026 = vrot.lane.b32.xlu1 %v1018_v41, %s8824_s6  ;;  %1004 = vrot.lane.b32.xlu0 %v993_v23, %s8826_s19 }
 0x147   : > { %1028 = vrot.lane.b32.xlu2 %v1019_v15, %s8824_s6 }
 0x148   : > { %v5282_v42 = vpop.permute.xlu1 %730  ;;  %v5284_v7 = vpop.permute.xlu0 %708 }
 0x149   : > { %v5286_v29 = vpop.permute.xlu2 %790 }
 0x14a   : > { %8928 = vst [vmem:[#allocation45_spill] sm:$0xff] %v5286_v29 }
 0x14e   : > { %1032 = vrot.lane.b32.xlu1 %v1021_v48, %s8824_s6  ;;  %1030 = vrot.lane.b32.xlu0 %v1020_v51, %s8824_s6  ;;  %v1084_v51 = vstv %s4345_s20  ;;  %s4348_s20 = sld [smem:[#allocation7 + $0x104]] }
 0x14f   : > { %1054 = vrot.lane.b32.xlu2 %v1046_v57, %s8804_s8  ;;  %v1086_v34 = vmul.f32 %v1084_v51, %v5259_v49  ;;  %v1085_v29 = vmul.f32 0.0, %v1084_v51 }
 0x150   : > { %v5294_v23 = vpop.permute.xlu1 %736  ;;  %v5296_v41 = vpop.permute.xlu0 %734 }
 0x151   : > { %8929 = vst [vmem:[#allocation46_spill] sm:$0xff] %v5294_v23  ;;  %v5298_v15 = vpop.permute.xlu2 %816 }
 0x152   : > { %8930 = vst [vmem:[#allocation47_spill] sm:$0xff] %v5296_v41 }
 0x156   : > { %1058 = vrot.lane.b32.xlu1 %v1048_v37, %s8804_s8  ;;  %1056 = vrot.lane.b32.xlu0 %v1047_v17, %s8804_s8  ;;  %v1113_v37 = vmul.f32 0.0, %v1112_v32  ;;  %v1088_v17 = vmul.f32 %v1084_v51, %v5276_v56 }
 0x157   : > { %1060 = vrot.lane.b32.xlu2 %v1049_v36, %s8804_s8 }
 0x158   : > { %v5306_v57 = vpop.permute.xlu1 %762  ;;  %v5308_v48 = vpop.permute.xlu0 %760 }
 0x159   : > { %8931 = vst [vmem:[#allocation48_spill] sm:$0xff] %v5306_v57  ;;  %v5310_v54 = vpop.permute.xlu2 %842 }
 0x15e   : > { %1095 = vrot.lane.b32.xlu1 %v1086_v34, %s8796_s23  ;;  %1093 = vrot.lane.b32.xlu0 %v1085_v29, %s8796_s23 }
 0x15f   : > { %1097 = vrot.lane.b32.xlu2 %v1085_v29, %s8796_s23 }
 0x160   : > { %v5316_v35 = vpop.permute.xlu1 %788  ;;  %v5318_v14 = vpop.permute.xlu0 %786 }
 0x161   : > { %v5320_v36 = vpop.permute.xlu2 %848 }
 0x162   : > { %8932 = vst [vmem:[#allocation49_spill] sm:$0xff] %v5320_v36  ;;  %v1116_v36 = vmul.f32 %v1112_v32, %v5276_v56  ;;  %v1168_v32 = vstv %s4348_s20  ;;  %s4350_s20 = sld [smem:[#allocation7 + $0x106]] }
 0x163   : > { %v1172_v9 = vmul.f32 %v1168_v32, %v5276_v56 }
 0x166   : > { %1121 = vrot.lane.b32.xlu1 %v1113_v37, %s8792_s21  ;;  %1099 = vrot.lane.b32.xlu0 %v1088_v17, %s8796_s23  ;;  %s4352_s23 = sld [smem:[#allocation7 + $0x108]] }
 0x167   : > { %1123 = vrot.lane.b32.xlu2 %v1114_v16, %s8792_s21 }
 0x168   : > { %v5327_v34 = vpop.permute.xlu1 %814  ;;  %v5329_v29 = vpop.permute.xlu0 %792  ;;  %v1224_v0 = vstv %s4350_s20  ;;  %s5546_s20 = sld [smem:[#allocation7 + $0x10b]] }
 0x169   : > { %8933 = vst [vmem:[#allocation50_spill] sm:$0xff] %v5329_v29  ;;  %v5331_v57 = vpop.permute.xlu2 %886  ;;  %v1142_v29 = vmul.f32 %v1140_v58, %v5259_v49 }
 0x16e   : > { %1127 = vrot.lane.b32.xlu1 %v1116_v36, %s8792_s21  ;;  %1125 = vrot.lane.b32.xlu0 %v1113_v37, %s8792_s21  ;;  %s4351_s21 = sld [smem:[#allocation7 + $0x107]] }
 0x16f   : > { %1149 = vrot.lane.b32.xlu2 %v1143_v47, %s8790_s10 }
 0x170   : > { %v5337_v51 = vpop.permute.xlu1 %820  ;;  %v5339_v16 = vpop.permute.xlu0 %818 }
 0x171   : > { %8934 = vst [vmem:[#allocation51_spill] sm:$0xff] %v5337_v51  ;;  %v5341_v17 = vpop.permute.xlu2 %892 }
 0x172   : > { %8935 = vst [vmem:[#allocation52_spill] sm:$0xff] %v5339_v16  ;;  %v1169_v16 = vmul.f32 0.0, %v1168_v32 }
 0x173   : > { %8936 = vst [vmem:[#allocation53_spill] sm:$0xff] %v5341_v17  ;;  %v1170_v17 = vmul.f32 %v1168_v32, %v5259_v49  ;;  %v1227_v32 = vmul.f32 0.0, %v1224_v0 }
 0x176   : > { %1153 = vrot.lane.b32.xlu1 %v1143_v47, %s8790_s10  ;;  %1151 = vrot.lane.b32.xlu0 %v1142_v29, %s8790_s10  ;;  %v1196_v47 = vstv %s4349_s27  ;;  %s279_s27 = sld [smem:[#allocation7]] }
 0x177   : > { %1155 = vrot.lane.b32.xlu2 %v1144_v22, %s8790_s10  ;;  %s4329_s10 = sld [smem:[#allocation7 + $0x80]] }
 0x178   : > { %v5348_v36 = vpop.permute.xlu1 %846  ;;  %v5350_v37 = vpop.permute.xlu0 %844 }
 0x179   : > { %8937 = vst [vmem:[#allocation54_spill] sm:$0xff] %v5348_v36  ;;  %v5352_v51 = vpop.permute.xlu2 %918  ;;  %v1197_v36 = vmul.f32 0.0, %v1196_v47 }
 0x17a   : > { %8938 = vst [vmem:[#allocation55_spill] sm:$0xff] %v5352_v51  ;;  %v1198_v51 = vmul.f32 %v1196_v47, %v5259_v49 }
 0x17e   : > { %1179 = vrot.lane.b32.xlu1 %v1170_v17, %s8939_s30  ;;  %1177 = vrot.lane.b32.xlu0 %v1169_v16, %s8939_s30 }
 0x17f   : > { %1181 = vrot.lane.b32.xlu2 %v1169_v16, %s8939_s30 }
 0x180   : > { %v5358_v58 = vpop.permute.xlu1 %868  ;;  %v5360_v29 = vpop.permute.xlu0 %866 }
 0x181   : > { %8940 = vst [vmem:[#allocation56_spill] sm:$0xff] %v5358_v58  ;;  %v5362_v22 = vpop.permute.xlu2 %944 }
 0x182   : > { %8941 = vst [vmem:[#allocation57_spill] sm:$0xff] %v5362_v22  ;;  %v1200_v22 = vmul.f32 %v1196_v47, %v5276_v56  ;;  %v1228_v47 = vmul.f32 %v1224_v0, %v5276_v56 }
 0x186   : > { %1205 = vrot.lane.b32.xlu1 %v1197_v36, %s8866_s28  ;;  %1183 = vrot.lane.b32.xlu0 %v1172_v9, %s8939_s30 }
 0x187   : > { %1207 = vrot.lane.b32.xlu2 %v1198_v51, %s8866_s28 }
 0x188   : > { %v5369_v17 = vpop.permute.xlu1 %890  ;;  %v5371_v16 = vpop.permute.xlu0 %888 }
 0x189   : > { %8942 = vst [vmem:[#allocation58_spill] sm:$0xff] %v5369_v17  ;;  %v5373_v58 = vpop.permute.xlu2 %970  ;;  %v284_v17 = vstv %s279_s27  ;;  %s5551_s27 = sld [smem:[#allocation8 + $0x380]] }
 0x18a   : > { %8943 = vst [vmem:[#allocation59_spill] sm:$0xff] %v5371_v16  ;;  %v287_v41 = vmul.f32 0.0, %v284_v17 }
 0x18b   : > { %8944 = vst [vmem:[#allocation60_spill] sm:$0xff] %v5373_v58  ;;  %v1226_v58 = vmul.f32 %v1224_v0, %v5259_v49  ;;  %v288_v0 = vmul.f32 %v284_v17, %v4955_v4  ;;  %v337_v4 = vsel %vm336_vm2, %v5034_v45, %v5042_v50  ;;  %v395_v45 = vsel %vm394_vm4, %v5106_v25, %v5104_v24 }
 0x18c   : > { %v309_v25 = vsel %vm307_vm1, %v5058_v60, %v5070_v2  ;;  %v338_v60 = vsel %vm336_vm2, %v5084_v12, %v5082_v11 }
 0x18e   : > { %1211 = vrot.lane.b32.xlu1 %v1200_v22, %s8866_s28  ;;  %1209 = vrot.lane.b32.xlu0 %v1197_v36, %s8866_s28  ;;  %v308_v36 = vsel %vm307_vm1, %v5060_v61, %v5072_v3  ;;  %v5390_v22 = vstv %s4329_s10  ;;  %s5538_s10 = sld [smem:[#allocation8 + $0x300]] }
 0x18f   : > { %1233 = vrot.lane.b32.xlu2 %v1227_v32, %s8864_s7  ;;  %8947 = vst [vmem:[#allocation63_spill] sm:$0xff] %v5390_v22  ;;  %v314_v63 = vadd.f32 %v308_v36, %v287_v41  ;;  %v5401_v61 = vmul.f32 0.0, %v5390_v22  ;;  %v286_v36 = vmul.f32 %v284_v17, %v4961_v6  ;;  %v766_v6 = vsel %vm365_vm3, %v5254_v27, %v5308_v48  ;;  %v5431_v17 = vld [vmem:[#allocation2 + $0x40] sm:$0xff] }
 0x190   : > { %v5379_v9 = vpop.permute.xlu1 %916  ;;  %v5381_v51 = vpop.permute.xlu0 %914  ;;  %v424_v27 = vsel %vm423_vm5, %v5115_v30, %v5086_v13  ;;  %v453_v30 = vsel %vm452_vm6, %v5098_v20, %v5138_v46  ;;  %v367_v20 = vsel %vm365_vm3, %v5094_v18, %v5062_v62 }
 0x191   : > { %8945 = vst [vmem:[#allocation61_spill] sm:$0xff] %v5379_v9  ;;  %v5383_v16 = vpop.permute.xlu2 %976  ;;  %v1252_v9 = vstv %s4351_s21  ;;  %s5483_s21 = sld [smem:[#allocation7 + $0x10a]] }
 0x192   : > { %8946 = vst [vmem:[#allocation62_spill] sm:$0xff] %v5383_v16 }
 0x196   : > { %1237 = vrot.lane.b32.xlu1 %v1227_v32, %s8864_s7  ;;  %1235 = vrot.lane.b32.xlu0 %v1226_v58, %s8864_s7  ;;  %v710_v58 = vsel %vm307_vm1, %v5268_v1, %v5266_v8  ;;  %v1254_v32 = vmul.f32 %v1252_v9, %v5276_v56  ;;  %v738_v1 = vsel %vm336_vm2, %v5282_v42, %v5242_v28 }
 0x197   : > { %1239 = vrot.lane.b32.xlu2 %v1228_v47, %s8864_s7  ;;  %v1253_v47 = vmul.f32 %v1252_v9, %v5259_v49  ;;  %v317_v9 = vadd.f32 %v5070_v2, %v288_v0  ;;  %v343_v8 = vadd.f32 %v337_v4, %v314_v63  ;;  %v716_v22 = vadd.f32 %v710_v58, %v5401_v61 }
 0x198   : > { %v5395_v16 = vpop.permute.xlu1 %942  ;;  %v5397_v23 = vpop.permute.xlu0 %920  ;;  %v315_v63 = vadd.f32 %v5072_v3, %v286_v36  ;;  %v316_v4 = vadd.f32 %v309_v25, %v287_v41 }
 0x199   : > { %8948 = vst [vmem:[#allocation64_spill] sm:$0xff] %v5395_v16  ;;  %v5403_v43 = vpop.permute.xlu2 %1002  ;;  %v1272_v16 = vstv %s4352_s23  ;;  %v744_v42 = vadd.f32 %v738_v1, %v716_v22  ;;  %s5433_s23 = sld [smem:[#allocation7 + $0x109]] }
 0x19a   : > { %8949 = vst [vmem:[#allocation65_spill] sm:$0xff] %v5397_v23  ;;  %v1273_v23 = vmul.f32 %v1272_v16, %v5259_v49  ;;  %v1275_v58 = vmul.f32 %v1272_v16, %v5276_v56  ;;  %v344_v1 = vadd.f32 %v5042_v50, %v315_v63 }
 0x19b   : > { %8950 = vst [vmem:[#allocation66_spill] sm:$0xff] %v5403_v43  ;;  %v366_v43 = vsel %vm365_vm3, %v5050_v55, %v5096_v19  ;;  %v772_v3 = vadd.f32 %v766_v6, %v744_v42 }
 0x19c   : > { %v372_v55 = vadd.f32 %v366_v43, %v343_v8  ;;  %v794_v43 = vsel %vm394_vm4, %v5318_v14, %v5316_v35  ;;  %v822_v14 = vsel %vm423_vm5, %v5327_v34, %v5298_v15  ;;  %v850_v34 = vsel %vm452_vm6, %v5310_v54, %v5350_v37 }
 0x19d   : > { %v800_v12 = vadd.f32 %v794_v43, %v772_v3 }
 0x19e   : > { %1259 = vrot.lane.b32.xlu1 %v1254_v32, %s8862_s11  ;;  %1257 = vrot.lane.b32.xlu0 %v1253_v47, %s8862_s11  ;;  %v401_v2 = vadd.f32 %v395_v45, %v372_v55  ;;  %v1274_v32 = vmul.f32 %v1272_v16, %v5431_v17  ;;  %v5464_v47 = vld [vmem:[#allocation2 + $0x58] sm:$0xff]  ;;  %v373_v55 = vadd.f32 %v5096_v19, %v344_v1 }
 0x19f   : > { %1281 = vrot.lane.b32.xlu2 %v1273_v23, %s8860_s1  ;;  %v346_v23 = vadd.f32 %v5082_v11, %v317_v9  ;;  %v1276_v36 = vmul.f32 %v1272_v16, %v5464_v47  ;;  %v345_v9 = vadd.f32 %v338_v60, %v316_v4  ;;  %v828_v6 = vadd.f32 %v822_v14, %v800_v12  ;;  %v8951_v1 = vld [vmem:[#allocation38_spill] sm:$0xff] }
 0x1a0   : > { %v5446_v8 = vpop.permute.xlu1 %948  ;;  %v5448_v22 = vpop.permute.xlu0 %946  ;;  %v430_v11 = vadd.f32 %v424_v27, %v401_v2  ;;  %v396_v16 = vsel %vm394_vm4, %v5074_v5, %v5117_v31  ;;  %v1300_v54 = vstv %s5433_s23  ;;  %v425_v5 = vsel %vm423_vm5, %v5127_v39, %v5125_v38  ;;  %s5562_s23 = sld [smem:[#allocation8 + $0x301]] }
 0x1a1   : > { %v5454_v0 = vpop.permute.xlu2 %1028  ;;  %v375_v41 = vadd.f32 %v5062_v62, %v346_v23  ;;  %v374_v50 = vadd.f32 %v367_v20, %v345_v9  ;;  %v856_v42 = vadd.f32 %v850_v34, %v828_v6  ;;  %v402_v62 = vadd.f32 %v5104_v24, %v373_v55  ;;  %v4621_v55 = vld [vmem:[#allocation2 + $0x8] sm:$0xff] }
 0x1a2   : > { %v459_v45 = vadd.f32 %v453_v30, %v430_v11  ;;  %v454_v24 = vsel %vm452_vm6, %v5136_v44, %v5108_v26  ;;  %v1301_v2 = vmul.f32 %v1300_v54, %v5259_v49  ;;  %v1303_v30 = vmul.f32 %v1300_v54, %v5276_v56 }
 0x1a3   : > { %v404_v19 = vadd.f32 %v5117_v31, %v375_v41  ;;  %v403_v27 = vadd.f32 %v396_v16, %v374_v50  ;;  %v872_v43 = vadd.f32 %v5360_v29, %v856_v42  ;;  %v1302_v31 = vmul.f32 %v1300_v54, %v5431_v17  ;;  %v8952_v41 = vld [vmem:[#allocation21_spill] sm:$0xff]  ;;  %v8954_v50 = vld [vmem:[#allocation64_spill] sm:$0xff]  ;;  %v4622_v42 = vld [vmem:[#allocation2 + $0x20] sm:$0xff] }
 0x1a4   : > { %v475_v18 = vadd.f32 %v5148_v53, %v459_v45  ;;  %v431_v14 = vadd.f32 %v5086_v13, %v402_v62  ;;  %v711_v34 = vsel %vm307_vm1, %v8951_v1, %v5284_v7  ;;  %v8966_v1 = vld [vmem:[#allocation50_spill] sm:$0xff] }
 0x1a5   : > { %v433_v60 = vadd.f32 %v5125_v38, %v404_v19  ;;  %v432_v39 = vadd.f32 %v425_v5, %v403_v27  ;;  %v8955_v19 = vld [vmem:[#allocation46_spill] sm:$0xff]  ;;  %v8956_v5 = vld [vmem:[#allocation47_spill] sm:$0xff] }
 0x1a6   : > { %1285 = vrot.lane.b32.xlu1 %v1275_v58, %s8860_s1  ;;  %1283 = vrot.lane.b32.xlu0 %v1274_v32, %s8860_s1  ;;  %v508_v3 = vadd.f32 %v5119_v33, %v475_v18  ;;  %v900_v32 = vadd.f32 %v5331_v57, %v872_v43  ;;  %v460_v4 = vadd.f32 %v5138_v46, %v431_v14  ;;  %v8959_v14 = vld [vmem:[#allocation25_spill] sm:$0xff] }
 0x1a7   : > { %1287 = vrot.lane.b32.xlu2 %v1276_v36, %s8860_s1  ;;  %v461_v58 = vadd.f32 %v454_v24, %v432_v39  ;;  %v462_v44 = vadd.f32 %v5108_v26, %v433_v60  ;;  %v1328_v36 = vstv %s5483_s21  ;;  %v503_v46 = vsel %vm501_vm7, %v5157_v59, %v5129_v40  ;;  %v8957_v60 = vld [vmem:[#allocation22_spill] sm:$0xff]  ;;  %s5567_s21 = sld [smem:[#allocation8 + $0x381]] }
 0x1a8   : > { %v5491_v25 = vpop.permute.xlu1 %974  ;;  %v5493_v63 = vpop.permute.xlu0 %972  ;;  %v537_v38 = vadd.f32 %v5169_v10, %v508_v3  ;;  %v928_v12 = vadd.f32 %v5381_v51, %v900_v32  ;;  %v476_v26 = vadd.f32 %v5148_v53, %v460_v4  ;;  %v8953_v53 = vld [vmem:[#allocation63_spill] sm:$0xff]  ;;  %v1329_v27 = vmul.f32 %v1328_v36, %v5259_v49  ;;  %v8962_v32 = vld [vmem:[#allocation48_spill] sm:$0xff] }
 0x1a9   : > { %v5496_v23 = vpop.permute.xlu2 %1054  ;;  %v477_v11 = vadd.f32 %v5146_v52, %v461_v58  ;;  %v478_v20 = vadd.f32 %v5146_v52, %v462_v44  ;;  %v502_v52 = vsel %vm501_vm7, %v5119_v33, %v8952_v41  ;;  %v689_v16 = vmul.f32 %v4621_v55, %v8953_v53  ;;  %v8958_v3 = vld [vmem:[#allocation23_spill] sm:$0xff]  ;;  %v8968_v55 = vld [vmem:[#allocation36_spill] sm:$0xff] }
 0x1aa   : > { %v566_v13 = vadd.f32 %v5178_v21, %v537_v38  ;;  %v956_v18 = vadd.f32 %v8954_v50, %v928_v12  ;;  %v691_v62 = vmul.f32 %v4622_v42, %v8953_v53  ;;  %v1304_v33 = vmul.f32 %v1300_v54, %v5464_v47  ;;  %v8960_v58 = vld [vmem:[#allocation19_spill] sm:$0xff]  ;;  %v8961_v38 = vld [vmem:[#allocation44_spill] sm:$0xff] }
 0x1ab   : > { %v510_v6 = vadd.f32 %v5157_v59, %v477_v11  ;;  %v739_v59 = vsel %vm336_vm2, %v8956_v5, %v8955_v19  ;;  %v511_v43 = vadd.f32 %v503_v46, %v478_v20  ;;  %v509_v39 = vadd.f32 %v502_v52, %v476_v26  ;;  %v8964_v11 = vld [vmem:[#allocation43_spill] sm:$0xff]  ;;  %v8965_v20 = vld [vmem:[#allocation60_spill] sm:$0xff] }
 0x1ac   : > { %v595_v24 = vadd.f32 %v8957_v60, %v566_v13  ;;  %v532_v54 = vsel %vm530_vm8, %v8960_v58, %v8959_v14  ;;  %v767_v44 = vsel %vm365_vm3, %v8962_v32, %v8961_v38  ;;  %v717_v13 = vadd.f32 %v8964_v11, %v689_v16  ;;  %v8970_v5 = vld [vmem:[#allocation51_spill] sm:$0xff]  ;;  %v8975_v14 = vld [vmem:[#allocation54_spill] sm:$0xff] }
 0x1ad   : > { %v984_v26 = vadd.f32 %v8965_v20, %v956_v18  ;;  %v719_v46 = vadd.f32 %v5284_v7, %v691_v62  ;;  %v540_v42 = vadd.f32 %v532_v54, %v511_v43  ;;  %v1332_v54 = vmul.f32 %v1328_v36, %v5464_v47 }
 0x1ae   : > { %1311 = vrot.lane.b32.xlu1 %v1302_v31, %s8850_s29  ;;  %1309 = vrot.lane.b32.xlu0 %v1301_v2, %s8850_s29  ;;  %v718_v31 = vadd.f32 %v711_v34, %v5401_v61  ;;  %v1330_v2 = vmul.f32 %v1328_v36, %v5431_v17  ;;  %v8963_v61 = vld [vmem:[#allocation34_spill] sm:$0xff]  ;;  %v8967_v34 = vld [vmem:[#allocation45_spill] sm:$0xff]  ;;  %v1331_v32 = vmul.f32 %v1328_v36, %v5276_v56 }
 0x1af   : > { %1313 = vrot.lane.b32.xlu2 %v1303_v30, %s8850_s29  ;;  %v531_v30 = vsel %vm530_vm8, %v5169_v10, %v8958_v3  ;;  %v624_v4 = vadd.f32 %v8963_v61, %v595_v24  ;;  %v539_v10 = vadd.f32 %v8960_v58, %v510_v6  ;;  %v795_v41 = vsel %vm394_vm4, %v8967_v34, %v8966_v1  ;;  %v8969_v6 = vld [vmem:[#allocation20_spill] sm:$0xff] }
 0x1b0   : > { %v5526_v9 = vpop.permute.xlu1 %1000  ;;  %v5528_v45 = vpop.permute.xlu0 %998  ;;  %v746_v12 = vadd.f32 %v739_v59, %v718_v31  ;;  %v538_v52 = vadd.f32 %v531_v30, %v509_v39  ;;  %v560_v7 = vsel %vm559_vm9, %v5178_v21, %v8969_v6  ;;  %v747_v62 = vadd.f32 %v8955_v19, %v719_v46  ;;  %v8971_v59 = vld [vmem:[#allocation52_spill] sm:$0xff]  ;;  %v8972_v31 = vld [vmem:[#allocation27_spill] sm:$0xff]  ;;  %v8974_v30 = vld [vmem:[#allocation49_spill] sm:$0xff] }
 0x1b1   : > { %v5536_v40 = vpop.permute.xlu2 %1060  ;;  %v653_v53 = vadd.f32 %v8968_v55, %v624_v4  ;;  %v1012_v18 = vadd.f32 %v5528_v45, %v984_v26  ;;  %v8973_v39 = vld [vmem:[#allocation28_spill] sm:$0xff]  ;;  %v745_v3 = vadd.f32 %v5242_v28, %v717_v13  ;;  %v851_v58 = vsel %vm452_vm6, %v8975_v14, %v8974_v30 }
 0x1b2   : > { %v774_v16 = vadd.f32 %v767_v44, %v746_v12  ;;  %v1356_v44 = vstv %s5546_s20  ;;  %v8976_v4 = vld [vmem:[#allocation32_spill] sm:$0xff]  ;;  %v775_v26 = vadd.f32 %v8961_v38, %v747_v62  ;;  %v5613_v34 = vstv %s5538_s10  ;;  %s5633_s10 = sld [smem:[#allocation7 + $0x10c]] }
 0x1b3   : > { %v5604_v11 = vadd.f32 %v8976_v4, %v653_v53  ;;  %v773_v28 = vadd.f32 %v5308_v48, %v745_v3  ;;  %v1357_v12 = vmul.f32 %v1356_v44, %v5259_v49  ;;  %v5623_v53 = vstv %s5567_s21  ;;  %s5689_s20 = sld [smem:[#allocation7 + $0x10d]] }
 0x1b4   : > { %v802_v21 = vadd.f32 %v795_v41, %v774_v16  ;;  %v5616_v41 = vstv %s5551_s27  ;;  %v567_v48 = vadd.f32 %v560_v7, %v538_v52  ;;  %v568_v6 = vadd.f32 %v8973_v39, %v539_v10  ;;  %s4358_s27 = sld [smem:[#allocation7 + $0x10e]] }
 0x1b5   : > { %8977 = vst [vmem:[#allocation38_spill] sm:$0xff] %v5604_v11  ;;  %v801_v36 = vadd.f32 %v5316_v35, %v773_v28  ;;  %v803_v38 = vadd.f32 %v8966_v1, %v775_v26  ;;  %v3986_v10 = vmul.f32 %v5613_v34, %v5604_v11  ;;  %v1359_v28 = vmul.f32 %v1356_v44, %v5276_v56  ;;  %s4361_s21 = sld [smem:[#allocation7 + $0x182]] }
 0x1b6   : > { %1337 = vrot.lane.b32.xlu1 %v1329_v27, %s8838_s26  ;;  %1315 = vrot.lane.b32.xlu0 %v1304_v33, %s8850_s29  ;;  %v823_v27 = vsel %vm423_vm5, %v8971_v59, %v8970_v5  ;;  %v8979_v59 = vld [vmem:[#allocation24_spill] sm:$0xff] }
 0x1b7   : > { %1339 = vrot.lane.b32.xlu2 %v1330_v2, %s8838_s26  ;;  %v561_v2 = vsel %vm559_vm9, %v8973_v39, %v8972_v31  ;;  %v830_v13 = vadd.f32 %v823_v27, %v802_v21  ;;  %v8980_v27 = vld [vmem:[#allocation30_spill] sm:$0xff]  ;;  %v8981_v31 = vld [vmem:[#allocation56_spill] sm:$0xff]  ;;  %v831_v1 = vadd.f32 %v8970_v5, %v803_v38  ;;  %v4081_v39 = vmul.f32 %v5616_v41, %v5604_v11 }
 0x1b8   : > { %v5586_v33 = vpop.permute.xlu1 %1026  ;;  %v5588_v24 = vpop.permute.xlu0 %1004  ;;  %v569_v62 = vadd.f32 %v561_v2, %v540_v42  ;;  %v590_v35 = vsel %vm588_vm10, %v8980_v27, %v8979_v59  ;;  %v597_v21 = vadd.f32 %v8980_v27, %v568_v6  ;;  %v829_v5 = vadd.f32 %v5298_v15, %v801_v36  ;;  %v8984_v36 = vld [vmem:[#allocation59_spill] sm:$0xff]  ;;  %v8985_v27 = vld [vmem:[#allocation33_spill] sm:$0xff] }
 0x1b9   : > { %v1040_v43 = vadd.f32 %v5586_v33, %v1012_v18  ;;  %v5595_v19 = vpop.permute.xlu2 %1097  ;;  %v858_v16 = vadd.f32 %v851_v58, %v830_v13  ;;  %v5620_v18 = vstv %s5562_s23  ;;  %v8983_v58 = vld [vmem:[#allocation58_spill] sm:$0xff]  ;;  %v1358_v13 = vmul.f32 %v1356_v44, %v5431_v17  ;;  %s4360_s23 = sld [smem:[#allocation7 + $0x181]] }
 0x1ba   : > { %v1360_v6 = vmul.f32 %v1356_v44, %v5464_v47  ;;  %v859_v15 = vadd.f32 %v8974_v30, %v831_v1  ;;  %v894_v59 = vsel %vm501_vm7, %v5331_v57, %v8984_v36  ;;  %v8987_v44 = vld [vmem:[#allocation55_spill] sm:$0xff]  ;;  %v8989_v1 = vld [vmem:[#allocation61_spill] sm:$0xff] }
 0x1bb   : > { %v5610_v46 = vadd.f32 %v5496_v23, %v1040_v43  ;;  %v874_v3 = vadd.f32 %v8981_v31, %v858_v16  ;;  %v8982_v43 = vld [vmem:[#allocation31_spill] sm:$0xff]  ;;  %v857_v16 = vadd.f32 %v5350_v37, %v829_v5  ;;  %v922_v57 = vsel %vm530_vm8, %v5381_v51, %v8989_v1  ;;  %v8992_v5 = vld [vmem:[#allocation57_spill] sm:$0xff] }
 0x1bc   : > { %v589_v14 = vsel %vm588_vm10, %v8957_v60, %v8982_v43  ;;  %v598_v60 = vadd.f32 %v590_v35, %v569_v62  ;;  %v875_v30 = vadd.f32 %v8981_v31, %v859_v15  ;;  %v1384_v43 = vstv %s5633_s10  ;;  %s9013_s10 = smov 127  }
 0x1bd   : > { %8978 = vst [vmem:[#allocation21_spill] sm:$0xff] %v5610_v46  ;;  %v3992_v42 = vmul.f32 %v5620_v18, %v5610_v46  ;;  %v4087_v2 = vmul.f32 %v5623_v53, %v5610_v46  ;;  %v596_v38 = vadd.f32 %v589_v14, %v567_v48  ;;  %v8988_v48 = vld [vmem:[#allocation26_spill] sm:$0xff] }
 0x1be   : > { %1343 = vrot.lane.b32.xlu1 %v1332_v54, %s8838_s26  ;;  %1341 = vrot.lane.b32.xlu0 %v1331_v32, %s8838_s26  ;;  %v902_v54 = vadd.f32 %v8983_v58, %v874_v3  ;;  %v618_v3 = vsel %vm617_vm11, %v8963_v61, %v8985_v27  ;;  %v626_v35 = vadd.f32 %v8988_v48, %v597_v21  ;;  %v8990_v61 = vld [vmem:[#allocation65_spill] sm:$0xff] }
 0x1bf   : > { %1365 = vrot.lane.b32.xlu2 %v1357_v12, %s8836_s4  ;;  %v5659_v12 = vadd.f32 %v3992_v42, %v3986_v10  ;;  %v5661_v26 = vadd.f32 %v4087_v2, %v4081_v39  ;;  %v873_v10 = vadd.f32 %v5360_v29, %v857_v16  ;;  %v8986_v42 = vld [vmem:[#allocation53_spill] sm:$0xff]  ;;  %v923_v39 = vsel %vm530_vm8, %v8987_v44, %v8990_v61 }
 0x1c0   : > { %v5639_v52 = vpop.permute.xlu1 %1032  ;;  %v5641_v7 = vpop.permute.xlu0 %1030  ;;  %v895_v37 = vsel %vm501_vm7, %v8983_v58, %v8986_v42  ;;  %v930_v62 = vadd.f32 %v8987_v44, %v902_v54  ;;  %v625_v31 = vadd.f32 %v618_v3, %v596_v38  ;;  %v8991_v21 = vld [vmem:[#allocation29_spill] sm:$0xff]  ;;  %v950_v58 = vsel %vm559_vm9, %v8954_v50, %v8992_v5  ;;  %v8994_v3 = vld [vmem:[#allocation39_spill] sm:$0xff]  ;;  %v8996_v44 = vld [vmem:[#allocation62_spill] sm:$0xff] }
 0x1c1   : > { %v5655_v32 = vpop.permute.xlu2 %1123  ;;  %v901_v29 = vadd.f32 %v894_v59, %v873_v10  ;;  %v647_v51 = vsel %vm646_vm12, %v8968_v55, %v8991_v21  ;;  %v903_v14 = vadd.f32 %v895_v37, %v875_v30  ;;  %v978_v50 = vsel %vm588_vm10, %v8965_v20, %v5493_v63  ;;  %v8995_v10 = vld [vmem:[#allocation40_spill] sm:$0xff] }
 0x1c2   : > { %v958_v2 = vadd.f32 %v5448_v22, %v930_v62  ;;  %v1386_v59 = vmul.f32 %v1384_v43, %v5431_v17  ;;  %v1385_v27 = vmul.f32 %v1384_v43, %v5259_v49  ;;  %v648_v42 = vsel %vm646_vm12, %v8995_v10, %v8994_v3 }
 0x1c3   : > { %v929_v15 = vadd.f32 %v922_v57, %v901_v29  ;;  %v931_v55 = vadd.f32 %v923_v39, %v903_v14  ;;  %v654_v62 = vadd.f32 %v647_v51, %v625_v31  ;;  %v1006_v63 = vsel %vm617_vm11, %v5528_v45, %v5526_v9  ;;  %v8997_v57 = vld [vmem:[#allocation66_spill] sm:$0xff]  ;;  %v8999_v31 = vld [vmem:[#allocation41_spill] sm:$0xff] }
 0x1c4   : > { %v986_v38 = vadd.f32 %v5491_v25, %v958_v2  ;;  %v655_v20 = vadd.f32 %v8995_v10, %v626_v35  ;;  %v1007_v61 = vsel %vm617_vm11, %v8997_v57, %v5588_v24  ;;  %v1035_v45 = vsel %vm646_vm12, %v5641_v7, %v5639_v52  ;;  %v8998_v24 = vld [vmem:[#allocation35_spill] sm:$0xff]  ;;  %v9000_v51 = vld [vmem:[#allocation42_spill] sm:$0xff] }
 0x1c5   : > { %v957_v37 = vadd.f32 %v950_v58, %v929_v15  ;;  %v1412_v2 = vstv %s5689_s20  ;;  %v677_v21 = vsel %vm675_vm13, %v8999_v31, %v8998_v24  ;;  %v1474_v24 = vstv %s4360_s23  ;;  %s4362_s20 = sld [smem:[#allocation7 + $0x183]] }
 0x1c6   : > { %1369 = vrot.lane.b32.xlu1 %v1359_v28, %s8836_s4  ;;  %1367 = vrot.lane.b32.xlu0 %v1358_v13, %s8836_s4  ;;  %v8993_v13 = vld [vmem:[#allocation37_spill] sm:$0xff]  ;;  %v1014_v29 = vadd.f32 %v8997_v57, %v986_v38  ;;  %v1440_v57 = vstv %s4358_s27  ;;  %s9014_s27 = smov 126   ;;  %s4363_s23 = sld [smem:[#allocation7 + $0x184]] }
 0x1c7   : > { %1371 = vrot.lane.b32.xlu2 %v1360_v6, %s8836_s4  ;;  %v619_v16 = vsel %vm617_vm11, %v8988_v48, %v8993_v13  ;;  %v951_v6 = vsel %vm559_vm9, %v5448_v22, %v5446_v8  ;;  %v979_v8 = vsel %vm588_vm10, %v5491_v25, %v8996_v44  ;;  %v1387_v22 = vmul.f32 %v1384_v43, %v5276_v56 }
 0x1c8   : > { %v1059_v54 = vpop.permute.xlu1 %1058  ;;  %v1057_v28 = vpop.permute.xlu0 %1056  ;;  %v627_v48 = vadd.f32 %v619_v16, %v598_v60  ;;  %v959_v30 = vadd.f32 %v951_v6, %v931_v55  ;;  %v985_v1 = vadd.f32 %v978_v50, %v957_v37  ;;  %v1034_v60 = vsel %vm646_vm12, %v5586_v33, %v5454_v0 }
 0x1c9   : > { %v5705_v36 = vpop.permute.xlu2 %1149  ;;  %v1042_v35 = vadd.f32 %v5641_v7, %v1014_v29  ;;  %v676_v0 = vsel %vm675_vm13, %v8976_v4, %v9000_v51  ;;  %v1062_v14 = vsel %vm675_vm13, %v5496_v23, %v1057_v28  ;;  %v5751_v7 = vadd.f32 %v8999_v31, %v655_v20 }
 0x1ca   : > { %v656_v25 = vadd.f32 %v648_v42, %v627_v48  ;;  %v987_v39 = vadd.f32 %v979_v8, %v959_v30  ;;  %v1013_v9 = vadd.f32 %v1006_v63, %v985_v1  ;;  %v1063_v13 = vsel %vm675_vm13, %v1059_v54, %v5536_v40 }
 0x1cb   : > { %9001 = vst [vmem:[#allocation63_spill] sm:$0xff] %v5751_v7  ;;  %v5755_v16 = vadd.f32 %v1059_v54, %v1042_v35  ;;  %v1413_v6 = vmul.f32 %v1412_v2, %v5259_v49  ;;  %v1388_v23 = vmul.f32 %v1384_v43, %v5464_v47  ;;  %v5763_v38 = vadd.f32 %v676_v0, %v654_v62 }
 0x1cc   : > { %v1015_v33 = vadd.f32 %v1007_v61, %v987_v39  ;;  %v1041_v58 = vadd.f32 %v1034_v60, %v1013_v9  ;;  %v5761_v28 = vadd.f32 %v677_v21, %v656_v25  ;;  %v1414_v50 = vmul.f32 %v1412_v2, %v5431_v17 }
 0x1cd   : > { %9002 = vst [vmem:[#allocation64_spill] sm:$0xff] %v5755_v16  ;;  %v3988_v40 = vmul.f32 %v5613_v34, %v5751_v7  ;;  %v3994_v54 = vmul.f32 %v5620_v18, %v5755_v16  ;;  %v4083_v63 = vmul.f32 %v5616_v41, %v5751_v7  ;;  %v1416_v20 = vmul.f32 %v1412_v2, %v5464_v47 }
 0x1ce   : > { %1395 = vrot.lane.b32.xlu1 %v1386_v59, %s8826_s19  ;;  %1393 = vrot.lane.b32.xlu0 %v1385_v27, %s8826_s19  ;;  %v1043_v4 = vadd.f32 %v1035_v45, %v1015_v33  ;;  %9003 = vst [vmem:[#allocation46_spill] sm:$0xff] %v5761_v28  ;;  %v5765_v55 = vadd.f32 %v1062_v14, %v1041_v58  ;;  %v5840_v33 = vld [vmem:[#allocation2 + $0x18] sm:$0xff]  ;;  %v1502_v58 = vstv %s4361_s21  ;;  %s9015_s21 = smov 125  }
 0x1cf   : > { %1397 = vrot.lane.b32.xlu2 %v1387_v22, %s8826_s19  ;;  %9004 = vst [vmem:[#allocation47_spill] sm:$0xff] %v5763_v38  ;;  %v5777_v43 = vadd.f32 %v3994_v54, %v3988_v40  ;;  %v3987_v27 = vmul.f32 %v5613_v34, %v5763_v38  ;;  %v3989_v10 = vmul.f32 %v5613_v34, %v5761_v28 }
 0x1d0   : > { %v5746_v5 = vpop.permute.xlu1 %1095  ;;  %v5748_v52 = vpop.permute.xlu0 %1093  ;;  %9005 = vst [vmem:[#allocation22_spill] sm:$0xff] %v5765_v55  ;;  %v5768_v59 = vadd.f32 %v1063_v13, %v1043_v4  ;;  %v3993_v3 = vmul.f32 %v5620_v18, %v5765_v55  ;;  %v4088_v8 = vmul.f32 %v5623_v53, %v5765_v55  ;;  %v4089_v22 = vmul.f32 %v5623_v53, %v5755_v16 }
 0x1d1   : > { %v5757_v15 = vpop.permute.xlu2 %1155  ;;  %v4082_v34 = vmul.f32 %v5616_v41, %v5763_v38  ;;  %v1415_v1 = vmul.f32 %v1412_v2, %v5276_v56  ;;  %v1443_v45 = vmul.f32 %v1440_v57, %v5276_v56  ;;  %v1442_v35 = vmul.f32 %v1440_v57, %v5431_v17  ;;  %9012 = vst [vmem:[#allocation43_spill] sm:$0xff] %v5840_v33 }
 0x1d2   : > { %9006 = vst [vmem:[#allocation23_spill] sm:$0xff] %v5768_v59  ;;  %v3995_v44 = vmul.f32 %v5620_v18, %v5768_v59  ;;  %v4090_v62 = vmul.f32 %v5623_v53, %v5768_v59  ;;  %v5799_v30 = vadd.f32 %v3993_v3, %v3987_v27  ;;  %v4084_v18 = vmul.f32 %v5616_v41, %v5761_v28 }
 0x1d3   : > { %v1441_v53 = vmul.f32 %v1440_v57, %v5259_v49  ;;  %v5812_v61 = vadd.f32 %v4088_v8, %v4082_v34  ;;  %v5814_v25 = vadd.f32 %v4089_v22, %v4083_v63  ;;  %v1444_v2 = vmul.f32 %v1440_v57, %v5464_v47 }
 0x1d4   : > { %9007 = vst [vmem:[#allocation25_spill] sm:$0xff] %v5799_v30  ;;  %v5809_v29 = vadd.f32 %v3995_v44, %v3989_v10  ;;  %v5816_v39 = vadd.f32 %v4090_v62, %v4084_v18  ;;  %v1476_v0 = vmul.f32 %v1474_v24, %v5259_v49  ;;  %v1475_v14 = vmul.f32 %v5840_v33, %v1474_v24 }
 0x1d5   : > { %9009 = vst [vmem:[#allocation44_spill] sm:$0xff] %v5812_v61  ;;  %v1504_v40 = vmul.f32 %v1502_v58, %v5259_v49  ;;  %v1506_v10 = vmul.f32 %v1502_v58, %v5276_v56  ;;  %v1530_v44 = vstv %s4362_s20  ;;  %s4364_s20 = sld [smem:[#allocation7 + $0x185]] }
 0x1d6   : > { %1421 = vrot.lane.b32.xlu1 %v1413_v6, %s8824_s6  ;;  %1399 = vrot.lane.b32.xlu0 %v1388_v23, %s8826_s19  ;;  %9008 = vst [vmem:[#allocation19_spill] sm:$0xff] %v5809_v29  ;;  %v1503_v23 = vmul.f32 %v5840_v33, %v1502_v58  ;;  %v1533_v8 = vmul.f32 %v5840_v33, %v1530_v44 }
 0x1d7   : > { %1423 = vrot.lane.b32.xlu2 %v1414_v50, %s8824_s6  ;;  %9010 = vst [vmem:[#allocation48_spill] sm:$0xff] %v5814_v25  ;;  %v1478_v50 = vmul.f32 %v1474_v24, %v5276_v56  ;;  %v1532_v63 = vmul.f32 %v1530_v44, %v5259_v49  ;;  %v1534_v18 = vmul.f32 %v1530_v44, %v5276_v56 }
 0x1d8   : > { %v5785_v42 = vpop.permute.xlu1 %1121  ;;  %v5787_v37 = vpop.permute.xlu0 %1099  ;;  %9011 = vst [vmem:[#allocation34_spill] sm:$0xff] %v5816_v39 }
 0x1d9   : > { %v5797_v48 = vpop.permute.xlu2 %1181  ;;  %v1129_v28 = vsel %vm336_vm2, %v5785_v42, %v5655_v32 }
 0x1de   : > { %1427 = vrot.lane.b32.xlu1 %v1416_v20, %s8824_s6  ;;  %1425 = vrot.lane.b32.xlu0 %v1415_v1, %s8824_s6  ;;  %v1558_v20 = vstv %s4363_s23  ;;  %s4365_s23 = sld [smem:[#allocation7 + $0x186]] }
 0x1df   : > { %1449 = vrot.lane.b32.xlu2 %v1441_v53, %s8804_s8 }
 0x1e0   : > { %v5821_v41 = vpop.permute.xlu1 %1127  ;;  %v5823_v60 = vpop.permute.xlu0 %1125 }
 0x1e1   : > { %v5825_v9 = vpop.permute.xlu2 %1207 }
 0x1e6   : > { %1453 = vrot.lane.b32.xlu1 %v1443_v45, %s8804_s8  ;;  %1451 = vrot.lane.b32.xlu0 %v1442_v35, %s8804_s8  ;;  %v1560_v45 = vmul.f32 %v1558_v20, %v5259_v49  ;;  %v1559_v35 = vmul.f32 %v5840_v33, %v1558_v20 }
 0x1e7   : > { %1455 = vrot.lane.b32.xlu2 %v1444_v2, %s8804_s8  ;;  %v1586_v2 = vstv %s4364_s20  ;;  %s4344_s20 = sld [smem:[#allocation7 + $0x100]] }
 0x1e8   : > { %v5833_v31 = vpop.permute.xlu1 %1153  ;;  %v5835_v21 = vpop.permute.xlu0 %1151  ;;  %v1587_v58 = vmul.f32 %v5840_v33, %v1586_v2  ;;  %s4366_s8 = sld [smem:[#allocation7 + $0x187]] }
 0x1e9   : > { %v5837_v51 = vpop.permute.xlu2 %1233  ;;  %v1157_v7 = vsel %vm365_vm3, %v5705_v36, %v5835_v21 }
 0x1ee   : > { %1485 = vrot.lane.b32.xlu1 %v1476_v0, %s9013_s10  ;;  %1483 = vrot.lane.b32.xlu0 %v1475_v14, %s9013_s10 }
 0x1ef   : > { %1487 = vrot.lane.b32.xlu2 %v1475_v14, %s9013_s10 }
 0x1f0   : > { %v5846_v13 = vpop.permute.xlu1 %1179  ;;  %v5848_v4 = vpop.permute.xlu0 %1177 }
 0x1f1   : > { %v5850_v6 = vpop.permute.xlu2 %1239 }
 0x1f6   : > { %1511 = vrot.lane.b32.xlu1 %v1503_v23, %s9014_s27  ;;  %1489 = vrot.lane.b32.xlu0 %v1478_v50, %s9013_s10  ;;  %v1588_v50 = vmul.f32 %v1586_v2, %v5259_v49 }
 0x1f7   : > { %1513 = vrot.lane.b32.xlu2 %v1504_v40, %s9014_s27 }
 0x1f8   : > { %v5858_v54 = vpop.permute.xlu1 %1205  ;;  %v5860_v27 = vpop.permute.xlu0 %1183 }
 0x1f9   : > { %v5862_v3 = vpop.permute.xlu2 %1281  ;;  %v1213_v36 = vsel %vm423_vm5, %v5858_v54, %v5825_v9 }
 0x1fe   : > { %1517 = vrot.lane.b32.xlu1 %v1506_v10, %s9014_s27  ;;  %1515 = vrot.lane.b32.xlu0 %v1503_v23, %s9014_s27  ;;  %v1562_v23 = vmul.f32 %v1558_v20, %v5276_v56 }
 0x1ff   : > { %1539 = vrot.lane.b32.xlu2 %v1533_v8, %s9015_s21 }
 0x200   : > { %v5869_v22 = vpop.permute.xlu1 %1211  ;;  %v5871_v62 = vpop.permute.xlu0 %1209 }
 0x201   : > { %v5873_v34 = vpop.permute.xlu2 %1287 }
 0x206   : > { %1543 = vrot.lane.b32.xlu1 %v1533_v8, %s9015_s21  ;;  %1541 = vrot.lane.b32.xlu0 %v1532_v63, %s9015_s21  ;;  %v1590_v8 = vmul.f32 %v1586_v2, %v5276_v56  ;;  %v1614_v63 = vstv %s4365_s23  ;;  %s4367_s23 = sld [smem:[#allocation7 + $0x188]] }
 0x207   : > { %1545 = vrot.lane.b32.xlu2 %v1534_v18, %s9015_s21  ;;  %v1617_v18 = vmul.f32 %v5840_v33, %v1614_v63 }
 0x208   : > { %v5880_v1 = vpop.permute.xlu1 %1237  ;;  %v5882_v57 = vpop.permute.xlu0 %1235 }
 0x209   : > { %v5884_v53 = vpop.permute.xlu2 %1313 }
 0x20c   : > { %v1658_v46 = vstv %s4367_s23  ;;  %s4370_s23 = sld [smem:[#allocation7 + $0x18b]] }
 0x20e   : > { %1569 = vrot.lane.b32.xlu1 %v1560_v45, %s8939_s30  ;;  %1567 = vrot.lane.b32.xlu0 %v1559_v35, %s8939_s30 }
 0x20f   : > { %1571 = vrot.lane.b32.xlu2 %v1559_v35, %s8939_s30  ;;  %v5920_v35 = vld [vmem:[#allocation2 + $0x38] sm:$0xff] }
 0x210   : > { %v5891_v24 = vpop.permute.xlu1 %1259  ;;  %v5893_v0 = vpop.permute.xlu0 %1257  ;;  %v1616_v2 = vmul.f32 %v5920_v35, %v1614_v63 }
 0x211   : > { %v5895_v14 = vpop.permute.xlu2 %1339 }
 0x216   : > { %1595 = vrot.lane.b32.xlu1 %v1587_v58, %s8866_s28  ;;  %1573 = vrot.lane.b32.xlu0 %v1562_v23, %s8939_s30  ;;  %v1618_v23 = vmul.f32 %v1614_v63, %v5276_v56  ;;  %v1101_v56 = vsel %vm307_vm1, %v5748_v52, %v5746_v5  ;;  %v5937_v63 = vld [vmem:[#allocation2 + $0x50] sm:$0xff] }
 0x217   : > { %1597 = vrot.lane.b32.xlu2 %v1588_v50, %s8866_s28  ;;  %v1078_v50 = vstv %s4344_s20  ;;  %s4369_s20 = sld [smem:[#allocation7 + $0x18a]] }
 0x218   : > { %v5903_v40 = vpop.permute.xlu1 %1285  ;;  %v5905_v10 = vpop.permute.xlu0 %1283  ;;  %v1079_v55 = vmul.f32 %v5840_v33, %v1078_v50 }
 0x219   : > { %v5907_v44 = vpop.permute.xlu2 %1365 }
 0x21a   : > { %v1107_v38 = vadd.f32 %v1101_v56, %v1079_v55 }
 0x21c   : > { %v1135_v52 = vadd.f32 %v1129_v28, %v1107_v38  ;;  %v1661_v28 = vmul.f32 %v5937_v63, %v1658_v46  ;;  %v1660_v38 = vmul.f32 %v1658_v46, %v5431_v17 }
 0x21e   : > { %1601 = vrot.lane.b32.xlu1 %v1590_v8, %s8866_s28  ;;  %1599 = vrot.lane.b32.xlu0 %v1587_v58, %s8866_s28  ;;  %v1642_v58 = vstv %s4366_s8  ;;  %s4368_s8 = sld [smem:[#allocation7 + $0x189]]  ;;  %v1163_v56 = vadd.f32 %v1157_v7, %v1135_v52 }
 0x21f   : > { %1623 = vrot.lane.b32.xlu2 %v1617_v18, %s8864_s7 }
 0x220   : > { %v5914_v49 = vpop.permute.xlu1 %1311  ;;  %v5916_v20 = vpop.permute.xlu0 %1309 }
 0x221   : > { %v5918_v45 = vpop.permute.xlu2 %1371 }
 0x224   : > { %v1686_v52 = vstv %s4368_s8  ;;  %s6008_s8 = sld [smem:[#allocation8 + $0x302]] }
 0x226   : > { %1627 = vrot.lane.b32.xlu1 %v1617_v18, %s8864_s7  ;;  %1625 = vrot.lane.b32.xlu0 %v1616_v2, %s8864_s7  ;;  %v1644_v18 = vmul.f32 %v5937_v63, %v1642_v58  ;;  %v1643_v2 = vmul.f32 %v5920_v35, %v1642_v58  ;;  %v1185_v58 = vsel %vm394_vm4, %v5848_v4, %v5846_v13 }
 0x227   : > { %1629 = vrot.lane.b32.xlu2 %v1618_v23, %s8864_s7  ;;  %v1659_v23 = vmul.f32 %v5920_v35, %v1658_v46  ;;  %v1241_v4 = vsel %vm452_vm6, %v5837_v51, %v5882_v57  ;;  %v1688_v51 = vmul.f32 %v1686_v52, %v5431_v17 }
 0x228   : > { %v5927_v8 = vpop.permute.xlu1 %1337  ;;  %v5929_v59 = vpop.permute.xlu0 %1315 }
 0x229   : > { %v5932_v16 = vpop.permute.xlu2 %1397 }
 0x22e   : > { %1649 = vrot.lane.b32.xlu1 %v1644_v18, %s8862_s11  ;;  %1647 = vrot.lane.b32.xlu0 %v1643_v2, %s8862_s11  ;;  %v1191_v18 = vadd.f32 %v1185_v58, %v1163_v56  ;;  %v1662_v2 = vmul.f32 %v1658_v46, %v5464_v47  ;;  %v1687_v56 = vmul.f32 %v5920_v35, %v1686_v52 }
 0x22f   : > { %1667 = vrot.lane.b32.xlu2 %v1659_v23, %s8860_s1 }
 0x230   : > { %v5954_v11 = vpop.permute.xlu1 %1343  ;;  %v5956_v42 = vpop.permute.xlu0 %1341  ;;  %v1219_v23 = vadd.f32 %v1213_v36, %v1191_v18  ;;  %v1689_v36 = vmul.f32 %v5937_v63, %v1686_v52  ;;  %v1714_v18 = vstv %s4369_s20  ;;  %s4503_s20 = sld [smem:[#allocation8 + $0x382]] }
 0x231   : > { %v5958_v33 = vpop.permute.xlu2 %1423  ;;  %v1716_v61 = vmul.f32 %v1714_v18, %v5431_v17 }
 0x232   : > { %v1247_v7 = vadd.f32 %v1241_v4, %v1219_v23 }
 0x234   : > { %v1263_v46 = vadd.f32 %v5893_v0, %v1247_v7  ;;  %v1080_v7 = vmul.f32 %v5920_v35, %v1078_v50 }
 0x236   : > { %1671 = vrot.lane.b32.xlu1 %v1661_v28, %s8860_s1  ;;  %1669 = vrot.lane.b32.xlu0 %v1660_v38, %s8860_s1  ;;  %v1295_v28 = vadd.f32 %v5862_v3, %v1263_v46 }
 0x237   : > { %1673 = vrot.lane.b32.xlu2 %v1662_v2, %s8860_s1  ;;  %v1102_v2 = vsel %vm307_vm1, %v5595_v19, %v5787_v37  ;;  %v1690_v19 = vmul.f32 %v1686_v52, %v5464_v47 }
 0x238   : > { %v5972_v54 = vpop.permute.xlu1 %1369  ;;  %v5974_v39 = vpop.permute.xlu0 %1367  ;;  %v1323_v38 = vadd.f32 %v5916_v20, %v1295_v28  ;;  %v1715_v28 = vmul.f32 %v5920_v35, %v1714_v18  ;;  %v1109_v25 = vadd.f32 %v1102_v2, %v1079_v55  ;;  %v1186_v55 = vsel %vm394_vm4, %v5797_v48, %v5860_v27 }
 0x239   : > { %v5977_v58 = vpop.permute.xlu2 %1449 }
 0x23a   : > { %v1351_v46 = vadd.f32 %v5927_v8, %v1323_v38  ;;  %v1158_v38 = vsel %vm365_vm3, %v5833_v31, %v5757_v15 }
 0x23c   : > { %v1379_v30 = vadd.f32 %v5907_v44, %v1351_v46 }
 0x23e   : > { %1697 = vrot.lane.b32.xlu1 %v1688_v51, %s8850_s29  ;;  %1695 = vrot.lane.b32.xlu0 %v1687_v56, %s8850_s29  ;;  %v1082_v56 = vmul.f32 %v5937_v63, %v1078_v50  ;;  %v1108_v50 = vadd.f32 %v5746_v5, %v1080_v7 }
 0x23f   : > { %1699 = vrot.lane.b32.xlu2 %v1689_v36, %s8850_s29  ;;  %v1130_v36 = vsel %vm336_vm2, %v5823_v60, %v5821_v41 }
 0x240   : > { %v5990_v4 = vpop.permute.xlu1 %1395  ;;  %v5992_v23 = vpop.permute.xlu0 %1393  ;;  %v1137_v29 = vadd.f32 %v1130_v36, %v1109_v25  ;;  %v1110_v60 = vadd.f32 %v5787_v37, %v1082_v56  ;;  %v1214_v25 = vsel %vm423_vm5, %v5871_v62, %v5869_v22  ;;  %v1136_v48 = vadd.f32 %v5655_v32, %v1108_v50 }
 0x241   : > { %v5996_v51 = vpop.permute.xlu2 %1455  ;;  %v1407_v31 = vadd.f32 %v5992_v23, %v1379_v30  ;;  %v1242_v30 = vsel %vm452_vm6, %v5880_v1, %v5850_v6  ;;  %v1742_v62 = vstv %s4370_s23  ;;  %v6047_v1 = vstv %s4503_s20  ;;  %s4371_s23 = sld [smem:[#allocation7 + $0x18c]] }
 0x242   : > { %v1165_v52 = vadd.f32 %v1158_v38, %v1137_v29  ;;  %v1138_v5 = vadd.f32 %v5821_v41, %v1110_v60  ;;  %v1717_v41 = vmul.f32 %v5937_v63, %v1714_v18  ;;  %v1164_v56 = vadd.f32 %v5835_v21, %v1136_v48  ;;  %s4373_s20 = sld [smem:[#allocation7 + $0x18e]] }
 0x243   : > { %v6045_v60 = vstv %s6008_s8  ;;  %v1745_v48 = vmul.f32 %v5937_v63, %v1742_v62  ;;  %s6092_s8 = sld [smem:[#allocation7 + $0x18d]] }
 0x244   : > { %v1193_v7 = vadd.f32 %v1186_v55, %v1165_v52  ;;  %v1166_v32 = vadd.f32 %v5757_v15, %v1138_v5  ;;  %v1192_v38 = vadd.f32 %v5846_v13, %v1164_v56 }
 0x246   : > { %1723 = vrot.lane.b32.xlu1 %v1715_v28, %s8838_s26  ;;  %1701 = vrot.lane.b32.xlu0 %v1690_v19, %s8850_s29  ;;  %v1221_v36 = vadd.f32 %v1214_v25, %v1193_v7  ;;  %v1743_v28 = vmul.f32 %v5920_v35, %v1742_v62  ;;  %v1744_v7 = vmul.f32 %v1742_v62, %v5431_v17 }
 0x247   : > { %1725 = vrot.lane.b32.xlu2 %v1716_v61, %s8838_s26  ;;  %v1718_v61 = vmul.f32 %v1714_v18, %v5464_v47  ;;  %v1194_v18 = vadd.f32 %v5860_v27, %v1166_v32  ;;  %v1220_v27 = vadd.f32 %v5825_v9, %v1192_v38 }
 0x248   : > { %v6024_v37 = vpop.permute.xlu1 %1421  ;;  %v6026_v2 = vpop.permute.xlu0 %1399  ;;  %v1249_v50 = vadd.f32 %v1242_v30, %v1221_v36 }
 0x249   : > { %v1435_v29 = vadd.f32 %v6024_v37, %v1407_v31  ;;  %v6030_v46 = vpop.permute.xlu2 %1487  ;;  %v1222_v15 = vadd.f32 %v5869_v22, %v1194_v18  ;;  %v1248_v30 = vadd.f32 %v5882_v57, %v1220_v27  ;;  %v1402_v18 = vsel %vm617_vm11, %v5932_v16, %v6026_v2 }
 0x24a   : > { %v1265_v21 = vadd.f32 %v5891_v24, %v1249_v50 }
 0x24b   : > { %v6041_v19 = vadd.f32 %v5977_v58, %v1435_v29  ;;  %v1250_v9 = vadd.f32 %v5850_v6, %v1222_v15  ;;  %v1264_v56 = vadd.f32 %v5893_v0, %v1248_v30  ;;  %v1345_v0 = vsel %vm559_vm9, %v5927_v8, %v5895_v14  ;;  %v6110_v8 = vld [vmem:[%s4940_s22 + $0x20] sm:$0xff] }
 0x24c   : > { %v1297_v5 = vadd.f32 %v5903_v40, %v1265_v21  ;;  %275 = vst [vmem:[#allocation2 + $0x68] sm:$0xff] %v6110_v8 }
 0x24d   : > { %9016 = vst [vmem:[#allocation60_spill] sm:$0xff] %v6041_v19  ;;  %v4002_v52 = vmul.f32 %v6045_v60, %v6041_v19  ;;  %v4097_v31 = vmul.f32 %v6047_v1, %v6041_v19 }
 0x24e   : > { %1729 = vrot.lane.b32.xlu1 %v1718_v61, %s8838_s26  ;;  %1727 = vrot.lane.b32.xlu0 %v1717_v41, %s8838_s26  ;;  %v1746_v61 = vmul.f32 %v1742_v62, %v5464_v47  ;;  %v1289_v41 = vsel %vm501_vm7, %v5862_v3, %v5905_v10  ;;  %v1325_v36 = vadd.f32 %v5884_v53, %v1297_v5 }
 0x24f   : > { %1751 = vrot.lane.b32.xlu2 %v1743_v28, %s8836_s4  ;;  %v6066_v22 = vadd.f32 %v4002_v52, %v5659_v12  ;;  %v6069_v29 = vadd.f32 %v4097_v31, %v5661_v26  ;;  %v1290_v12 = vsel %vm501_vm7, %v5903_v40, %v5873_v34  ;;  %v1266_v26 = vadd.f32 %v5891_v24, %v1250_v9  ;;  %v6148_v9 = vld [vmem:[%s4940_s22 + $0x28] sm:$0xff] }
 0x250   : > { %v1428_v55 = vpop.permute.xlu1 %1427  ;;  %v1426_v13 = vpop.permute.xlu0 %1425  ;;  %v1317_v47 = vsel %vm530_vm8, %v5916_v20, %v5914_v49  ;;  %v1296_v6 = vadd.f32 %v1289_v41, %v1264_v56  ;;  %v1318_v3 = vsel %vm530_vm8, %v5884_v53, %v5929_v59  ;;  %v1353_v57 = vadd.f32 %v5956_v42, %v1325_v36  ;;  %276 = vst [vmem:[#allocation2 + $0x80] sm:$0xff] %v6148_v9 }
 0x251   : > { %v6061_v25 = vpop.permute.xlu2 %1513  ;;  %v1770_v34 = vstv %s4371_s23  ;;  %v1298_v24 = vadd.f32 %v1290_v12, %v1266_v26  ;;  %v1346_v59 = vsel %vm559_vm9, %v5956_v42, %v5954_v11  ;;  %v1373_v28 = vsel %vm588_vm10, %v5907_v44, %v5974_v39  ;;  %s4375_s23 = sld [smem:[#allocation7 + $0x201]] }
 0x252   : > { %v1324_v49 = vadd.f32 %v1317_v47, %v1296_v6  ;;  %v1381_v53 = vadd.f32 %v5972_v54, %v1353_v57  ;;  %v1772_v32 = vmul.f32 %v1770_v34, %v5431_v17  ;;  %v1771_v14 = vmul.f32 %v5920_v35, %v1770_v34 }
 0x253   : > { %v1326_v62 = vadd.f32 %v1318_v3, %v1298_v24  ;;  %v1374_v11 = vsel %vm588_vm10, %v5972_v54, %v5918_v45  ;;  %v1773_v42 = vmul.f32 %v5937_v63, %v1770_v34  ;;  %v1401_v39 = vsel %vm617_vm11, %v5992_v23, %v5990_v4 }
 0x254   : > { %v1352_v38 = vadd.f32 %v1345_v0, %v1324_v49  ;;  %v1409_v44 = vadd.f32 %v5932_v16, %v1381_v53  ;;  %v1429_v45 = vsel %vm646_vm12, %v6024_v37, %v5958_v33  ;;  %v1430_v15 = vsel %vm646_vm12, %v1426_v13, %v1428_v55  ;;  %v9022_v49 = vld [vmem:[#allocation19_spill] sm:$0xff]  ;;  %v9024_v53 = vld [vmem:[#allocation44_spill] sm:$0xff] }
 0x255   : > { %v1354_v50 = vadd.f32 %v1346_v59, %v1326_v62  ;;  %v1798_v23 = vstv %s6092_s8  ;;  %s9030_s8 = smov 114  }
 0x256   : > { %1755 = vrot.lane.b32.xlu1 %v1745_v48, %s8836_s4  ;;  %1753 = vrot.lane.b32.xlu0 %v1744_v7, %s8836_s4  ;;  %v1380_v17 = vadd.f32 %v1373_v28, %v1352_v38  ;;  %v1437_v4 = vadd.f32 %v1426_v13, %v1409_v44  ;;  %v1799_v5 = vmul.f32 %v5920_v35, %v1798_v23  ;;  %v4626_v48 = vld [vmem:[#allocation2 + $0x58] sm:$0xff]  ;;  %v9026_v28 = vld [vmem:[#allocation48_spill] sm:$0xff] }
 0x257   : > { %1757 = vrot.lane.b32.xlu2 %v1746_v61, %s8836_s4  ;;  %v1382_v21 = vadd.f32 %v1374_v11, %v1354_v50  ;;  %v1774_v7 = vmul.f32 %v4626_v48, %v1770_v34  ;;  %v9020_v34 = vld [vmem:[#allocation25_spill] sm:$0xff]  ;;  %v1802_v0 = vmul.f32 %v4626_v48, %v1798_v23  ;;  %v1865_v44 = vstv %s4375_s23  ;;  %s4377_s23 = sld [smem:[#allocation7 + $0x203]] }
 0x258   : > { %v1454_v40 = vpop.permute.xlu1 %1453  ;;  %v1452_v10 = vpop.permute.xlu0 %1451  ;;  %v1408_v54 = vadd.f32 %v1401_v39, %v1380_v17 }
 0x259   : > { %v6102_v20 = vpop.permute.xlu2 %1539  ;;  %v1410_v52 = vadd.f32 %v1402_v18, %v1382_v21  ;;  %v1457_v16 = vsel %vm675_vm13, %v5977_v58, %v1452_v10  ;;  %v1458_v37 = vsel %vm675_vm13, %v1454_v40, %v5996_v51  ;;  %v6140_v27 = vadd.f32 %v1454_v40, %v1437_v4  ;;  %v4627_v58 = vld [vmem:[#allocation2 + $0x40] sm:$0xff] }
 0x25a   : > { %v1436_v33 = vadd.f32 %v1429_v45, %v1408_v54  ;;  %v1800_v61 = vmul.f32 %v4627_v58, %v1798_v23  ;;  %v1801_v40 = vmul.f32 %v5937_v63, %v1798_v23  ;;  %v1826_v10 = vstv %s4373_s20  ;;  %s4376_s20 = sld [smem:[#allocation7 + $0x202]] }
 0x25b   : > { %9017 = vst [vmem:[#allocation50_spill] sm:$0xff] %v6140_v27  ;;  %v1438_v13 = vadd.f32 %v1430_v15, %v1410_v52  ;;  %v4004_v51 = vmul.f32 %v6045_v60, %v6140_v27  ;;  %v4099_v3 = vmul.f32 %v6047_v1, %v6140_v27  ;;  %v1827_v59 = vmul.f32 %v5920_v35, %v1826_v10  ;;  %v9031_v15 = vld [vmem:[#allocation43_spill] sm:$0xff]  ;;  %v6318_v27 = vld [vmem:[#allocation2 + $0x70] sm:$0xff] }
 0x25c   : > { %v6145_v30 = vadd.f32 %v1457_v16, %v1436_v33  ;;  %v1829_v50 = vmul.f32 %v5937_v63, %v1826_v10  ;;  %v1828_v39 = vmul.f32 %v4627_v58, %v1826_v10  ;;  %v1830_v17 = vmul.f32 %v4626_v48, %v1826_v10 }
 0x25d   : > { %v6150_v41 = vadd.f32 %v1458_v37, %v1438_v13  ;;  %v6159_v56 = vadd.f32 %v4004_v51, %v5777_v43  ;;  %v1867_v54 = vmul.f32 %v1865_v44, %v6110_v8  ;;  %v1866_v4 = vmul.f32 %v9031_v15, %v1865_v44 }
 0x25e   : > { %1781 = vrot.lane.b32.xlu1 %v1772_v32, %s8826_s19  ;;  %1779 = vrot.lane.b32.xlu0 %v1771_v14, %s8826_s19  ;;  %9018 = vst [vmem:[#allocation45_spill] sm:$0xff] %v6145_v30  ;;  %v4003_v12 = vmul.f32 %v6045_v60, %v6145_v30  ;;  %v4098_v6 = vmul.f32 %v6047_v1, %v6145_v30  ;;  %v1921_v51 = vstv %s4377_s23  ;;  %s4379_s23 = sld [smem:[#allocation7 + $0x205]] }
 0x25f   : > { %1783 = vrot.lane.b32.xlu2 %v1773_v42, %s8826_s19  ;;  %9019 = vst [vmem:[#allocation36_spill] sm:$0xff] %v6150_v41  ;;  %v4005_v47 = vmul.f32 %v6045_v60, %v6150_v41  ;;  %v4100_v43 = vmul.f32 %v6047_v1, %v6150_v41  ;;  %v6189_v32 = vadd.f32 %v4099_v3, %v9026_v28  ;;  %v9028_v1 = vld [vmem:[#allocation34_spill] sm:$0xff] }
 0x260   : > { %v6134_v2 = vpop.permute.xlu1 %1485  ;;  %v6136_v31 = vpop.permute.xlu0 %1483  ;;  %v6178_v24 = vadd.f32 %v4003_v12, %v9020_v34  ;;  %v6186_v62 = vadd.f32 %v4098_v6, %v9024_v53  ;;  %v1893_v23 = vstv %s4376_s20  ;;  %v1869_v13 = vmul.f32 %v1865_v44, %v6148_v9  ;;  %s4378_s20 = sld [smem:[#allocation7 + $0x204]] }
 0x261   : > { %v6142_v55 = vpop.permute.xlu2 %1545  ;;  %v6182_v60 = vadd.f32 %v4005_v47, %v9022_v49  ;;  %9027 = vst [vmem:[#allocation27_spill] sm:$0xff] %v6189_v32  ;;  %v6192_v14 = vadd.f32 %v4100_v43, %v9028_v1  ;;  %v1894_v37 = vmul.f32 %v9031_v15, %v1893_v23  ;;  %v1924_v12 = vmul.f32 %v9031_v15, %v1921_v51 }
 0x262   : > { %9021 = vst [vmem:[#allocation20_spill] sm:$0xff] %v6178_v24  ;;  %v1923_v43 = vmul.f32 %v1921_v51, %v6110_v8  ;;  %v1925_v34 = vmul.f32 %v1921_v51, %v6148_v9 }
 0x263   : > { %9023 = vst [vmem:[#allocation51_spill] sm:$0xff] %v6182_v60 }
 0x264   : > { %9025 = vst [vmem:[#allocation52_spill] sm:$0xff] %v6186_v62  ;;  %v1977_v28 = vstv %s4379_s23  ;;  %s4359_s23 = sld [smem:[#allocation7 + $0x180]] }
 0x265   : > { %9029 = vst [vmem:[#allocation28_spill] sm:$0xff] %v6192_v14 }
 0x266   : > { %1807 = vrot.lane.b32.xlu1 %v1799_v5, %s8824_s6  ;;  %1785 = vrot.lane.b32.xlu0 %v1774_v7, %s8826_s19  ;;  %v1895_v5 = vmul.f32 %v1893_v23, %v6110_v8  ;;  %s4382_s19 = sld [smem:[#allocation7 + $0x208]] }
 0x267   : > { %1809 = vrot.lane.b32.xlu2 %v1800_v61, %s8824_s6  ;;  %v1897_v61 = vmul.f32 %v1893_v23, %v6148_v9 }
 0x268   : > { %v6163_v36 = vpop.permute.xlu1 %1511  ;;  %v6165_v26 = vpop.permute.xlu0 %1489 }
 0x269   : > { %v6175_v57 = vpop.permute.xlu2 %1571 }
 0x26e   : > { %1813 = vrot.lane.b32.xlu1 %v1802_v0, %s8824_s6  ;;  %1811 = vrot.lane.b32.xlu0 %v1801_v40, %s8824_s6  ;;  %v1949_v0 = vstv %s4378_s20  ;;  %s4380_s20 = sld [smem:[#allocation7 + $0x206]] }
 0x26f   : > { %1835 = vrot.lane.b32.xlu2 %v1827_v59, %s9030_s8  ;;  %v1951_v59 = vmul.f32 %v1949_v0, %v6110_v8  ;;  %v1950_v53 = vmul.f32 %v9031_v15, %v1949_v0  ;;  %v1953_v44 = vmul.f32 %v1949_v0, %v6148_v9  ;;  %s4381_s6 = sld [smem:[#allocation7 + $0x207]] }
 0x270   : > { %v6197_v38 = vpop.permute.xlu1 %1517  ;;  %v6199_v11 = vpop.permute.xlu0 %1515 }
 0x271   : > { %v6201_v42 = vpop.permute.xlu2 %1597 }
 0x276   : > { %1839 = vrot.lane.b32.xlu1 %v1829_v50, %s9030_s8  ;;  %1837 = vrot.lane.b32.xlu0 %v1828_v39, %s9030_s8 }
 0x277   : > { %1841 = vrot.lane.b32.xlu2 %v1830_v17, %s9030_s8  ;;  %v1978_v17 = vmul.f32 %v9031_v15, %v1977_v28 }
 0x278   : > { %v6207_v18 = vpop.permute.xlu1 %1543  ;;  %v6209_v21 = vpop.permute.xlu0 %1541 }
 0x279   : > { %v6211_v45 = vpop.permute.xlu2 %1623 }
 0x27e   : > { %1876 = vrot.lane.b32.xlu1 %v1867_v54, %s9013_s10  ;;  %1874 = vrot.lane.b32.xlu0 %v1866_v4, %s9013_s10  ;;  %v1979_v54 = vmul.f32 %v1977_v28, %v6110_v8 }
 0x27f   : > { %1878 = vrot.lane.b32.xlu2 %v1866_v4, %s9013_s10 }
 0x280   : > { %v6218_v52 = vpop.permute.xlu1 %1569  ;;  %v6220_v16 = vpop.permute.xlu0 %1567 }
 0x281   : > { %v6222_v33 = vpop.permute.xlu2 %1629 }
 0x286   : > { %1902 = vrot.lane.b32.xlu1 %v1894_v37, %s9014_s27  ;;  %1880 = vrot.lane.b32.xlu0 %v1869_v13, %s9013_s10  ;;  %v1981_v13 = vmul.f32 %v1977_v28, %v6148_v9 }
 0x287   : > { %1904 = vrot.lane.b32.xlu2 %v1895_v5, %s9014_s27  ;;  %v2005_v5 = vstv %s4380_s20  ;;  %s4385_s20 = sld [smem:[#allocation7 + $0x20b]] }
 0x288   : > { %v6230_v48 = vpop.permute.xlu1 %1595  ;;  %v6232_v7 = vpop.permute.xlu0 %1573  ;;  %v2009_v0 = vmul.f32 %v2005_v5, %v6148_v9 }
 0x289   : > { %v6234_v58 = vpop.permute.xlu2 %1667 }
 0x28e   : > { %1908 = vrot.lane.b32.xlu1 %v1897_v61, %s9014_s27  ;;  %1906 = vrot.lane.b32.xlu0 %v1894_v37, %s9014_s27  ;;  %v2008_v61 = vmul.f32 %v9031_v15, %v2005_v5 }
 0x28f   : > { %1930 = vrot.lane.b32.xlu2 %v1924_v12, %s9015_s21 }
 0x290   : > { %v6241_v47 = vpop.permute.xlu1 %1601  ;;  %v6243_v6 = vpop.permute.xlu0 %1599 }
 0x291   : > { %v6245_v3 = vpop.permute.xlu2 %1673 }
 0x296   : > { %1934 = vrot.lane.b32.xlu1 %v1924_v12, %s9015_s21  ;;  %1932 = vrot.lane.b32.xlu0 %v1923_v43, %s9015_s21 }
 0x297   : > { %1936 = vrot.lane.b32.xlu2 %v1925_v34, %s9015_s21  ;;  %v2007_v34 = vmul.f32 %v2005_v5, %v6110_v8 }
 0x298   : > { %v6252_v40 = vpop.permute.xlu1 %1627  ;;  %v6254_v10 = vpop.permute.xlu0 %1625 }
 0x299   : > { %v6256_v49 = vpop.permute.xlu2 %1699  ;;  %v1631_v14 = vsel %vm452_vm6, %v6211_v45, %v6254_v10 }
 0x29e   : > { %1960 = vrot.lane.b32.xlu1 %v1951_v59, %s8939_s30  ;;  %1958 = vrot.lane.b32.xlu0 %v1950_v53, %s8939_s30  ;;  %v1468_v59 = vstv %s4359_s23  ;;  %s6380_s23 = sld [smem:[#allocation8 + $0x303]] }
 0x29f   : > { %1962 = vrot.lane.b32.xlu2 %v1950_v53, %s8939_s30  ;;  %v2033_v53 = vstv %s4381_s6  ;;  %s4383_s6 = sld [smem:[#allocation7 + $0x209]] }
 0x2a0   : > { %v6263_v1 = vpop.permute.xlu1 %1649  ;;  %v6265_v50 = vpop.permute.xlu0 %1647  ;;  %v2035_v5 = vmul.f32 %v2033_v53, %v6148_v9 }
 0x2a1   : > { %v6267_v39 = vpop.permute.xlu2 %1725 }
 0x2a6   : > { %1986 = vrot.lane.b32.xlu1 %v1978_v17, %s8866_s28  ;;  %1964 = vrot.lane.b32.xlu0 %v1953_v44, %s8939_s30  ;;  %v1469_v44 = vmul.f32 %v9031_v15, %v1468_v59  ;;  %v1547_v15 = vsel %vm365_vm3, %v6102_v20, %v6209_v21 }
 0x2a7   : > { %1988 = vrot.lane.b32.xlu2 %v1979_v54, %s8866_s28 }
 0x2a8   : > { %v6275_v4 = vpop.permute.xlu1 %1671  ;;  %v6277_v23 = vpop.permute.xlu0 %1669 }
 0x2a9   : > { %v6279_v37 = vpop.permute.xlu2 %1751 }
 0x2ae   : > { %1992 = vrot.lane.b32.xlu1 %v1981_v13, %s8866_s28  ;;  %1990 = vrot.lane.b32.xlu0 %v1978_v17, %s8866_s28  ;;  %v1491_v13 = vsel %vm307_vm1, %v6136_v31, %v6134_v2 }
 0x2af   : > { %2014 = vrot.lane.b32.xlu2 %v2008_v61, %s8864_s7  ;;  %v1497_v30 = vadd.f32 %v1491_v13, %v1469_v44 }
 0x2b0   : > { %v6286_v51 = vpop.permute.xlu1 %1697  ;;  %v6288_v12 = vpop.permute.xlu0 %1695 }
 0x2b1   : > { %v6290_v43 = vpop.permute.xlu2 %1757 }
 0x2b6   : > { %2018 = vrot.lane.b32.xlu1 %v2008_v61, %s8864_s7  ;;  %2016 = vrot.lane.b32.xlu0 %v2007_v34, %s8864_s7  ;;  %v2034_v61 = vmul.f32 %v2033_v53, %v6110_v8  ;;  %v2053_v34 = vstv %s4382_s19  ;;  %v1575_v53 = vsel %vm394_vm4, %v6220_v16, %v6218_v52  ;;  %s4384_s19 = sld [smem:[#allocation7 + $0x20a]] }
 0x2b7   : > { %2020 = vrot.lane.b32.xlu2 %v2009_v0, %s8864_s7  ;;  %v2054_v41 = vmul.f32 %v2053_v34, %v6110_v8  ;;  %v1519_v0 = vsel %vm336_vm2, %v6163_v36, %v6061_v25 }
 0x2b8   : > { %v6297_v28 = vpop.permute.xlu1 %1723  ;;  %v6299_v17 = vpop.permute.xlu0 %1701  ;;  %v1525_v31 = vadd.f32 %v1519_v0, %v1497_v30  ;;  %v1603_v30 = vsel %vm423_vm5, %v6230_v48, %v6201_v42  ;;  %v2081_v48 = vstv %s4383_s6  ;;  %s4504_s6 = sld [smem:[#allocation8 + $0x383]] }
 0x2b9   : > { %v6302_v54 = vpop.permute.xlu2 %1783  ;;  %v2083_v45 = vmul.f32 %v2081_v48, %v6318_v27 }
 0x2ba   : > { %v1553_v19 = vadd.f32 %v1547_v15, %v1525_v31 }
 0x2bc   : > { %v1581_v0 = vadd.f32 %v1575_v53, %v1553_v19  ;;  %v2082_v53 = vmul.f32 %v2081_v48, %v6110_v8 }
 0x2be   : > { %2040 = vrot.lane.b32.xlu1 %v2035_v5, %s8862_s11  ;;  %2038 = vrot.lane.b32.xlu0 %v2034_v61, %s8862_s11  ;;  %v2056_v5 = vmul.f32 %v2053_v34, %v6148_v9  ;;  %v2055_v61 = vmul.f32 %v2053_v34, %v6318_v27  ;;  %v1609_v15 = vadd.f32 %v1603_v30, %v1581_v0 }
 0x2bf   : > { %2062 = vrot.lane.b32.xlu2 %v2054_v41, %s8860_s1  ;;  %v6335_v41 = vld [vmem:[#allocation2 + $0x88] sm:$0xff]  ;;  %v2084_v30 = vmul.f32 %v2081_v48, %v6148_v9  ;;  %v1492_v0 = vsel %vm307_vm1, %v6030_v46, %v6165_v26 }
 0x2c0   : > { %v6324_v36 = vpop.permute.xlu1 %1729  ;;  %v6326_v13 = vpop.permute.xlu0 %1727  ;;  %v2057_v16 = vmul.f32 %v2053_v34, %v6335_v41  ;;  %v1637_v31 = vadd.f32 %v1631_v14, %v1609_v15  ;;  %v2085_v46 = vmul.f32 %v2081_v48, %v6335_v41  ;;  %v1499_v60 = vadd.f32 %v1492_v0, %v1469_v44 }
 0x2c1   : > { %v6328_v20 = vpop.permute.xlu2 %1809  ;;  %v1576_v44 = vsel %vm394_vm4, %v6175_v57, %v6232_v7 }
 0x2c2   : > { %v1653_v19 = vadd.f32 %v6265_v50, %v1637_v31  ;;  %v1470_v31 = vmul.f32 %v5920_v35, %v1468_v59  ;;  %v1548_v35 = vsel %vm365_vm3, %v6207_v18, %v6142_v55 }
 0x2c4   : > { %v1681_v14 = vadd.f32 %v6234_v58, %v1653_v19 }
 0x2c6   : > { %2066 = vrot.lane.b32.xlu1 %v2056_v5, %s8860_s1  ;;  %2064 = vrot.lane.b32.xlu0 %v2055_v61, %s8860_s1  ;;  %v1709_v5 = vadd.f32 %v6288_v12, %v1681_v14  ;;  %v2109_v61 = vstv %s4384_s19  ;;  %s4386_s19 = sld [smem:[#allocation7 + $0x20c]] }
 0x2c7   : > { %2068 = vrot.lane.b32.xlu2 %v2057_v16, %s8860_s1  ;;  %v2110_v14 = vmul.f32 %v2109_v61, %v6110_v8  ;;  %v2111_v24 = vmul.f32 %v2109_v61, %v6318_v27 }
 0x2c8   : > { %v6344_v32 = vpop.permute.xlu1 %1755  ;;  %v6346_v62 = vpop.permute.xlu0 %1753  ;;  %v1737_v19 = vadd.f32 %v6297_v28, %v1709_v5 }
 0x2c9   : > { %v6349_v34 = vpop.permute.xlu2 %1835 }
 0x2ca   : > { %v1765_v5 = vadd.f32 %v6279_v37, %v1737_v19 }
 0x2ce   : > { %2092 = vrot.lane.b32.xlu1 %v2083_v45, %s8850_s29  ;;  %2090 = vrot.lane.b32.xlu0 %v2082_v53, %s8850_s29  ;;  %v1472_v53 = vmul.f32 %v5937_v63, %v1468_v59  ;;  %v1498_v63 = vadd.f32 %v6134_v2, %v1470_v31 }
 0x2cf   : > { %2094 = vrot.lane.b32.xlu2 %v2084_v30, %s8850_s29  ;;  %v1520_v30 = vsel %vm336_vm2, %v6199_v11, %v6197_v38 }
 0x2d0   : > { %v6362_v16 = vpop.permute.xlu1 %1781  ;;  %v6364_v15 = vpop.permute.xlu0 %1779  ;;  %v1527_v59 = vadd.f32 %v1520_v30, %v1499_v60  ;;  %v1500_v11 = vadd.f32 %v6165_v26, %v1472_v53  ;;  %v1604_v60 = vsel %vm423_vm5, %v6243_v6, %v6241_v47  ;;  %v1526_v57 = vadd.f32 %v6061_v25, %v1498_v63 }
 0x2d1   : > { %v6368_v45 = vpop.permute.xlu2 %1841  ;;  %v1793_v18 = vadd.f32 %v6364_v15, %v1765_v5  ;;  %v2112_v6 = vmul.f32 %v2109_v61, %v6148_v9  ;;  %v2137_v30 = vstv %s4385_s20  ;;  %s4387_s20 = sld [smem:[#allocation7 + $0x20d]] }
 0x2d2   : > { %v1555_v48 = vadd.f32 %v1548_v35, %v1527_v59  ;;  %v1528_v2 = vadd.f32 %v6197_v38, %v1500_v11  ;;  %v2113_v38 = vmul.f32 %v2109_v61, %v6335_v41  ;;  %v2138_v35 = vmul.f32 %v2137_v30, %v6110_v8 }
 0x2d3   : > { %v6417_v11 = vstv %s6380_s23  ;;  %s9033_s23 = smov 116  }
 0x2d4   : > { %v1583_v31 = vadd.f32 %v1576_v44, %v1555_v48  ;;  %v1556_v25 = vadd.f32 %v6142_v55, %v1528_v2 }
 0x2d6   : > { %2118 = vrot.lane.b32.xlu1 %v2110_v14, %s8838_s26  ;;  %2096 = vrot.lane.b32.xlu0 %v2085_v46, %s8850_s29  ;;  %v1554_v14 = vadd.f32 %v6209_v21, %v1526_v57  ;;  %v1611_v46 = vadd.f32 %v1604_v60, %v1583_v31  ;;  %v1584_v61 = vadd.f32 %v6232_v7, %v1556_v25 }
 0x2d7   : > { %2120 = vrot.lane.b32.xlu2 %v2111_v24, %s8838_s26  ;;  %v1632_v24 = vsel %vm452_vm6, %v6252_v40, %v6222_v33  ;;  %v6419_v40 = vstv %s4504_s6  ;;  %v2140_v57 = vmul.f32 %v2137_v30, %v6148_v9  ;;  %v2139_v31 = vmul.f32 %v2137_v30, %v6318_v27  ;;  %s4388_s6 = sld [smem:[#allocation7 + $0x20e]] }
 0x2d8   : > { %v6396_v26 = vpop.permute.xlu1 %1807  ;;  %v6398_v0 = vpop.permute.xlu0 %1785  ;;  %v1582_v59 = vadd.f32 %v6218_v52, %v1554_v14  ;;  %v1639_v5 = vadd.f32 %v1632_v24, %v1611_v46  ;;  %v1612_v55 = vadd.f32 %v6241_v47, %v1584_v61  ;;  %v1759_v25 = vsel %vm588_vm10, %v6279_v37, %v6346_v62 }
 0x2d9   : > { %v1821_v19 = vadd.f32 %v6396_v26, %v1793_v18  ;;  %v6402_v53 = vpop.permute.xlu2 %1878  ;;  %v1787_v61 = vsel %vm617_vm11, %v6364_v15, %v6362_v16  ;;  %v1788_v62 = vsel %vm617_vm11, %v6302_v54, %v6398_v0  ;;  %v2193_v15 = vstv %s4387_s20  ;;  %s4390_s20 = sld [smem:[#allocation7 + $0x281]] }
 0x2da   : > { %v1655_v21 = vadd.f32 %v6263_v1, %v1639_v5  ;;  %v1610_v7 = vadd.f32 %v6201_v42, %v1582_v59  ;;  %v1640_v42 = vadd.f32 %v6222_v33, %v1612_v55  ;;  %v1760_v5 = vsel %vm588_vm10, %v6344_v32, %v6290_v43 }
 0x2db   : > { %v6413_v63 = vadd.f32 %v6349_v34, %v1821_v19 }
 0x2dc   : > { %v1683_v2 = vadd.f32 %v6275_v4, %v1655_v21  ;;  %v1638_v24 = vadd.f32 %v6254_v10, %v1610_v7  ;;  %v1703_v10 = vsel %vm530_vm8, %v6288_v12, %v6286_v51 }
 0x2dd   : > { %9032 = vst [vmem:[#allocation49_spill] sm:$0xff] %v6413_v63  ;;  %v4012_v48 = vmul.f32 %v6417_v11, %v6413_v63  ;;  %v4107_v18 = vmul.f32 %v6419_v40, %v6413_v63 }
 0x2de   : > { %2124 = vrot.lane.b32.xlu1 %v2113_v38, %s8838_s26  ;;  %2122 = vrot.lane.b32.xlu0 %v2112_v6, %s8838_s26  ;;  %v2141_v38 = vmul.f32 %v2137_v30, %v6335_v41  ;;  %v1675_v6 = vsel %vm501_vm7, %v6234_v58, %v6277_v23  ;;  %v1654_v14 = vadd.f32 %v6265_v50, %v1638_v24  ;;  %s4397_s26 = sld [smem:[#allocation7 + $0x288]] }
 0x2df   : > { %2146 = vrot.lane.b32.xlu2 %v2138_v35, %s8836_s4  ;;  %v6438_v47 = vadd.f32 %v4012_v48, %v6066_v22  ;;  %v6441_v19 = vadd.f32 %v4107_v18, %v6069_v29  ;;  %v1676_v22 = vsel %vm501_vm7, %v6275_v4, %v6245_v3  ;;  %v1711_v46 = vadd.f32 %v6256_v49, %v1683_v2 }
 0x2e0   : > { %v1814_v44 = vpop.permute.xlu1 %1813  ;;  %v1812_v52 = vpop.permute.xlu0 %1811  ;;  %v1656_v29 = vadd.f32 %v6263_v1, %v1640_v42  ;;  %v1682_v33 = vadd.f32 %v1675_v6, %v1654_v14  ;;  %v1704_v58 = vsel %vm530_vm8, %v6256_v49, %v6299_v17  ;;  %v2165_v3 = vstv %s4386_s19  ;;  %s9037_s19 = smov 115  }
 0x2e1   : > { %v6433_v60 = vpop.permute.xlu2 %1904  ;;  %v1739_v50 = vadd.f32 %v6326_v13, %v1711_v46  ;;  %v1731_v4 = vsel %vm559_vm9, %v6297_v28, %v6267_v39  ;;  %v1732_v30 = vsel %vm559_vm9, %v6326_v13, %v6324_v36  ;;  %v2167_v59 = vmul.f32 %v2165_v3, %v6318_v27 }
 0x2e2   : > { %v1684_v1 = vadd.f32 %v1676_v22, %v1656_v29  ;;  %v1710_v12 = vadd.f32 %v1703_v10, %v1682_v33  ;;  %v2166_v39 = vmul.f32 %v2165_v3, %v6110_v8  ;;  %v2168_v36 = vmul.f32 %v2165_v3, %v6148_v9 }
 0x2e3   : > { %v1767_v49 = vadd.f32 %v6344_v32, %v1739_v50  ;;  %v1815_v48 = vsel %vm646_vm12, %v6396_v26, %v6328_v20  ;;  %v1816_v43 = vsel %vm646_vm12, %v1812_v52, %v1814_v44 }
 0x2e4   : > { %v1712_v35 = vadd.f32 %v1704_v58, %v1684_v1  ;;  %v1738_v28 = vadd.f32 %v1731_v4, %v1710_v12  ;;  %v9038_v58 = vld [vmem:[#allocation20_spill] sm:$0xff]  ;;  %v2196_v1 = vmul.f32 %v2193_v15, %v6148_v9  ;;  %v2221_v4 = vstv %s4388_s6  ;;  %s4391_s6 = sld [smem:[#allocation7 + $0x282]] }
 0x2e5   : > { %v1795_v55 = vadd.f32 %v6302_v54, %v1767_v49  ;;  %v9042_v12 = vld [vmem:[#allocation52_spill] sm:$0xff]  ;;  %v9044_v49 = vld [vmem:[#allocation27_spill] sm:$0xff] }
 0x2e6   : > { %2150 = vrot.lane.b32.xlu1 %v2140_v57, %s8836_s4  ;;  %2148 = vrot.lane.b32.xlu0 %v2139_v31, %s8836_s4  ;;  %v1740_v13 = vadd.f32 %v1732_v30, %v1712_v35  ;;  %v1766_v21 = vadd.f32 %v1759_v25, %v1738_v28  ;;  %v2169_v31 = vmul.f32 %v2165_v3, %v6335_v41  ;;  %v9046_v35 = vld [vmem:[#allocation28_spill] sm:$0xff] }
 0x2e7   : > { %2152 = vrot.lane.b32.xlu2 %v2141_v38, %s8836_s4  ;;  %v1823_v16 = vadd.f32 %v1812_v52, %v1795_v55  ;;  %v2194_v52 = vmul.f32 %v2193_v15, %v6110_v8  ;;  %v2197_v3 = vmul.f32 %v2193_v15, %v6335_v41  ;;  %s4396_s4 = sld [smem:[#allocation7 + $0x287]] }
 0x2e8   : > { %v1840_v23 = vpop.permute.xlu1 %1839  ;;  %v1838_v51 = vpop.permute.xlu0 %1837  ;;  %v1768_v37 = vadd.f32 %v1760_v5, %v1740_v13  ;;  %v1794_v32 = vadd.f32 %v1787_v61, %v1766_v21  ;;  %v2224_v5 = vmul.f32 %v2221_v4, %v6148_v9  ;;  %v2225_v13 = vmul.f32 %v2221_v4, %v6335_v41 }
 0x2e9   : > { %v6472_v17 = vpop.permute.xlu2 %1930  ;;  %v1843_v54 = vsel %vm675_vm13, %v6349_v34, %v1838_v51  ;;  %v1844_v26 = vsel %vm675_vm13, %v1840_v23, %v6368_v45  ;;  %v6505_v2 = vadd.f32 %v1840_v23, %v1823_v16  ;;  %v2195_v34 = vmul.f32 %v2193_v15, %v6318_v27 }
 0x2ea   : > { %v1796_v18 = vadd.f32 %v1788_v62, %v1768_v37  ;;  %v1822_v20 = vadd.f32 %v1815_v48, %v1794_v32  ;;  %v2222_v51 = vmul.f32 %v2221_v4, %v6110_v8  ;;  %v2255_v61 = vstv %s4390_s20  ;;  %v6580_v48 = vld [vmem:[#allocation2 + $0x18] sm:$0xff]  ;;  %s4392_s20 = sld [smem:[#allocation7 + $0x283]] }
 0x2eb   : > { %9034 = vst [vmem:[#allocation54_spill] sm:$0xff] %v6505_v2  ;;  %v4014_v42 = vmul.f32 %v6417_v11, %v6505_v2  ;;  %v4109_v10 = vmul.f32 %v6419_v40, %v6505_v2  ;;  %v2257_v37 = vmul.f32 %v2255_v61, %v6110_v8  ;;  %v2256_v32 = vmul.f32 %v6580_v48, %v2255_v61 }
 0x2ec   : > { %v1824_v44 = vadd.f32 %v1816_v43, %v1796_v18  ;;  %v6511_v24 = vadd.f32 %v1843_v54, %v1822_v20  ;;  %9048 = vst [vmem:[#allocation33_spill] sm:$0xff] %v6580_v48  ;;  %v2283_v43 = vstv %s4391_s6  ;;  %v2259_v20 = vmul.f32 %v2255_v61, %v6148_v9  ;;  %s4393_s6 = sld [smem:[#allocation7 + $0x284]] }
 0x2ed   : > { %v6522_v45 = vadd.f32 %v4014_v42, %v6159_v56  ;;  %v2284_v54 = vmul.f32 %v6580_v48, %v2283_v43 }
 0x2ee   : > { %2176 = vrot.lane.b32.xlu1 %v2167_v59, %s9033_s23  ;;  %2174 = vrot.lane.b32.xlu0 %v2166_v39, %s9033_s23  ;;  %9035 = vst [vmem:[#allocation32_spill] sm:$0xff] %v6511_v24  ;;  %v6514_v38 = vadd.f32 %v1844_v26, %v1824_v44  ;;  %v4013_v6 = vmul.f32 %v6417_v11, %v6511_v24 }
 0x2ef   : > { %2178 = vrot.lane.b32.xlu2 %v2168_v36, %s9033_s23  ;;  %v4108_v29 = vmul.f32 %v6419_v40, %v6511_v24  ;;  %v2223_v36 = vmul.f32 %v2221_v4, %v6318_v27  ;;  %v2285_v26 = vmul.f32 %v2283_v43, %v6110_v8 }
 0x2f0   : > { %v6499_v0 = vpop.permute.xlu1 %1876  ;;  %v6501_v7 = vpop.permute.xlu0 %1874  ;;  %9036 = vst [vmem:[#allocation24_spill] sm:$0xff] %v6514_v38  ;;  %v4015_v46 = vmul.f32 %v6417_v11, %v6514_v38  ;;  %v4110_v56 = vmul.f32 %v6419_v40, %v6514_v38  ;;  %v6541_v50 = vadd.f32 %v4013_v6, %v9038_v58  ;;  %v9040_v11 = vld [vmem:[#allocation51_spill] sm:$0xff]  ;;  %v6553_v40 = vadd.f32 %v4109_v10, %v9044_v49 }
 0x2f1   : > { %v6507_v57 = vpop.permute.xlu2 %1936  ;;  %v6550_v30 = vadd.f32 %v4108_v29, %v9042_v12  ;;  %v2311_v42 = vstv %s4392_s20  ;;  %s4394_s20 = sld [smem:[#allocation7 + $0x285]] }
 0x2f2   : > { %9039 = vst [vmem:[#allocation30_spill] sm:$0xff] %v6541_v50  ;;  %v6546_v23 = vadd.f32 %v4015_v46, %v9040_v11  ;;  %v6556_v25 = vadd.f32 %v4110_v56, %v9046_v35  ;;  %v2314_v6 = vmul.f32 %v6580_v48, %v2311_v42  ;;  %v2313_v56 = vmul.f32 %v2311_v42, %v6110_v8 }
 0x2f3   : > { %9043 = vst [vmem:[#allocation31_spill] sm:$0xff] %v6550_v30  ;;  %v2315_v58 = vmul.f32 %v2311_v42, %v6148_v9 }
 0x2f4   : > { %9041 = vst [vmem:[#allocation56_spill] sm:$0xff] %v6546_v23 }
 0x2f5   : > { %9045 = vst [vmem:[#allocation58_spill] sm:$0xff] %v6553_v40 }
 0x2f6   : > { %2202 = vrot.lane.b32.xlu1 %v2194_v52, %s9037_s19  ;;  %2180 = vrot.lane.b32.xlu0 %v2169_v31, %s9033_s23  ;;  %9047 = vst [vmem:[#allocation59_spill] sm:$0xff] %v6556_v25 }
 0x2f7   : > { %2204 = vrot.lane.b32.xlu2 %v2195_v34, %s9037_s19  ;;  %v2287_v34 = vmul.f32 %v2283_v43, %v6148_v9  ;;  %v2367_v49 = vstv %s4394_s20  ;;  %s4374_s20 = sld [smem:[#allocation7 + $0x200]] }
 0x2f8   : > { %v6526_v14 = vpop.permute.xlu1 %1902  ;;  %v6528_v22 = vpop.permute.xlu0 %1880 }
 0x2f9   : > { %v6538_v33 = vpop.permute.xlu2 %1962 }
 0x2fe   : > { %2208 = vrot.lane.b32.xlu1 %v2197_v3, %s9037_s19  ;;  %2206 = vrot.lane.b32.xlu0 %v2196_v1, %s9037_s19  ;;  %v2339_v3 = vstv %s4393_s6  ;;  %s4395_s6 = sld [smem:[#allocation7 + $0x286]] }
 0x2ff   : > { %2230 = vrot.lane.b32.xlu2 %v2222_v51, %s9030_s8  ;;  %v2341_v51 = vmul.f32 %v2339_v3, %v6110_v8  ;;  %v2340_v12 = vmul.f32 %v6580_v48, %v2339_v3  ;;  %v2343_v61 = vmul.f32 %v2339_v3, %v6148_v9 }
 0x300   : > { %v6561_v59 = vpop.permute.xlu1 %1908  ;;  %v6563_v39 = vpop.permute.xlu0 %1906 }
 0x301   : > { %v6565_v28 = vpop.permute.xlu2 %1988 }
 0x306   : > { %2234 = vrot.lane.b32.xlu1 %v2224_v5, %s9030_s8  ;;  %2232 = vrot.lane.b32.xlu0 %v2223_v36, %s9030_s8 }
 0x307   : > { %2236 = vrot.lane.b32.xlu2 %v2225_v13, %s9030_s8  ;;  %v2368_v13 = vmul.f32 %v6580_v48, %v2367_v49 }
 0x308   : > { %v6573_v21 = vpop.permute.xlu1 %1934  ;;  %v6575_v55 = vpop.permute.xlu0 %1932 }
 0x309   : > { %v6577_v62 = vpop.permute.xlu2 %2014  ;;  %v1938_v2 = vsel %vm365_vm3, %v6472_v17, %v6575_v55 }
 0x30e   : > { %2266 = vrot.lane.b32.xlu1 %v2257_v37, %s9013_s10  ;;  %2264 = vrot.lane.b32.xlu0 %v2256_v32, %s9013_s10  ;;  %v2369_v37 = vmul.f32 %v2367_v49, %v6110_v8 }
 0x30f   : > { %2268 = vrot.lane.b32.xlu2 %v2256_v32, %s9013_s10 }
 0x310   : > { %v6586_v16 = vpop.permute.xlu1 %1960  ;;  %v6588_v15 = vpop.permute.xlu0 %1958 }
 0x311   : > { %v6590_v18 = vpop.permute.xlu2 %2020 }
 0x316   : > { %2292 = vrot.lane.b32.xlu1 %v2284_v54, %s9014_s27  ;;  %2270 = vrot.lane.b32.xlu0 %v2259_v20, %s9013_s10  ;;  %v2371_v20 = vmul.f32 %v2367_v49, %v6148_v9 }
 0x317   : > { %2294 = vrot.lane.b32.xlu2 %v2285_v26, %s9014_s27  ;;  %v2395_v26 = vstv %s4395_s6  ;;  %s4400_s6 = sld [smem:[#allocation7 + $0x28b]] }
 0x318   : > { %v6598_v44 = vpop.permute.xlu1 %1986  ;;  %v6600_v52 = vpop.permute.xlu0 %1964  ;;  %v2399_v3 = vmul.f32 %v2395_v26, %v6148_v9 }
 0x319   : > { %v6602_v31 = vpop.permute.xlu2 %2062  ;;  %v1994_v17 = vsel %vm423_vm5, %v6598_v44, %v6565_v28 }
 0x31e   : > { %2298 = vrot.lane.b32.xlu1 %v2287_v34, %s9014_s27  ;;  %2296 = vrot.lane.b32.xlu0 %v2284_v54, %s9014_s27  ;;  %v2398_v34 = vmul.f32 %v6580_v48, %v2395_v26 }
 0x31f   : > { %2320 = vrot.lane.b32.xlu2 %v2314_v6, %s9015_s21 }
 0x320   : > { %v6609_v46 = vpop.permute.xlu1 %1992  ;;  %v6611_v29 = vpop.permute.xlu0 %1990 }
 0x321   : > { %v6613_v10 = vpop.permute.xlu2 %2068 }
 0x326   : > { %2324 = vrot.lane.b32.xlu1 %v2314_v6, %s9015_s21  ;;  %2322 = vrot.lane.b32.xlu0 %v2313_v56, %s9015_s21 }
 0x327   : > { %2326 = vrot.lane.b32.xlu2 %v2315_v58, %s9015_s21  ;;  %v2397_v58 = vmul.f32 %v2395_v26, %v6110_v8 }
 0x328   : > { %v6620_v1 = vpop.permute.xlu1 %2018  ;;  %v6622_v4 = vpop.permute.xlu0 %2016 }
 0x329   : > { %v6624_v11 = vpop.permute.xlu2 %2094 }
 0x32e   : > { %2350 = vrot.lane.b32.xlu1 %v2341_v51, %s8939_s30  ;;  %2348 = vrot.lane.b32.xlu0 %v2340_v12, %s8939_s30  ;;  %v1859_v51 = vstv %s4374_s20  ;;  %s6744_s20 = sld [smem:[#allocation8 + $0x304]] }
 0x32f   : > { %2352 = vrot.lane.b32.xlu2 %v2340_v12, %s8939_s30  ;;  %v2423_v12 = vstv %s4396_s4  ;;  %s4398_s4 = sld [smem:[#allocation7 + $0x289]] }
 0x330   : > { %v6631_v35 = vpop.permute.xlu1 %2040  ;;  %v6633_v5 = vpop.permute.xlu0 %2038  ;;  %v2425_v26 = vmul.f32 %v2423_v12, %v6148_v9 }
 0x331   : > { %v6635_v36 = vpop.permute.xlu2 %2120 }
 0x336   : > { %2376 = vrot.lane.b32.xlu1 %v2368_v13, %s8866_s28  ;;  %2354 = vrot.lane.b32.xlu0 %v2343_v61, %s8939_s30  ;;  %v1860_v61 = vmul.f32 %v6580_v48, %v1859_v51 }
 0x337   : > { %2378 = vrot.lane.b32.xlu2 %v2369_v37, %s8866_s28 }
 0x338   : > { %v6643_v32 = vpop.permute.xlu1 %2066  ;;  %v6645_v43 = vpop.permute.xlu0 %2064 }
 0x339   : > { %v6647_v54 = vpop.permute.xlu2 %2146 }
 0x33e   : > { %2382 = vrot.lane.b32.xlu1 %v2371_v20, %s8866_s28  ;;  %2380 = vrot.lane.b32.xlu0 %v2368_v13, %s8866_s28  ;;  %v1882_v20 = vsel %vm307_vm1, %v6501_v7, %v6499_v0 }
 0x33f   : > { %2404 = vrot.lane.b32.xlu2 %v2398_v34, %s8864_s7  ;;  %v1888_v24 = vadd.f32 %v1882_v20, %v1860_v61 }
 0x340   : > { %v6654_v42 = vpop.permute.xlu1 %2092  ;;  %v6656_v6 = vpop.permute.xlu0 %2090 }
 0x341   : > { %v6658_v56 = vpop.permute.xlu2 %2152 }
 0x346   : > { %2408 = vrot.lane.b32.xlu1 %v2398_v34, %s8864_s7  ;;  %2406 = vrot.lane.b32.xlu0 %v2397_v58, %s8864_s7  ;;  %v2424_v34 = vmul.f32 %v2423_v12, %v6110_v8  ;;  %v2439_v58 = vstv %s4397_s26  ;;  %v1966_v12 = vsel %vm394_vm4, %v6588_v15, %v6586_v16  ;;  %v2022_v15 = vsel %vm452_vm6, %v6577_v62, %v6622_v4  ;;  %s4399_s26 = sld [smem:[#allocation7 + $0x28a]] }
 0x347   : > { %2410 = vrot.lane.b32.xlu2 %v2399_v3, %s8864_s7  ;;  %v2440_v38 = vmul.f32 %v2439_v58, %v6110_v8  ;;  %v1910_v3 = vsel %vm336_vm2, %v6526_v14, %v6433_v60 }
 0x348   : > { %v6665_v49 = vpop.permute.xlu1 %2118  ;;  %v6667_v13 = vpop.permute.xlu0 %2096  ;;  %v1916_v7 = vadd.f32 %v1910_v3, %v1888_v24  ;;  %v2442_v24 = vmul.f32 %v2439_v58, %v6148_v9 }
 0x349   : > { %v6670_v37 = vpop.permute.xlu2 %2178 }
 0x34a   : > { %v1944_v20 = vadd.f32 %v1938_v2, %v1916_v7  ;;  %v2467_v7 = vstv %s4398_s4  ;;  %s4505_s4 = sld [smem:[#allocation8 + $0x384]] }
 0x34b   : > { %v2469_v62 = vmul.f32 %v2467_v7, %v6318_v27 }
 0x34e   : > { %2430 = vrot.lane.b32.xlu1 %v2425_v26, %s8862_s11  ;;  %2428 = vrot.lane.b32.xlu0 %v2424_v34, %s8862_s11  ;;  %v2441_v26 = vmul.f32 %v2439_v58, %v6318_v27  ;;  %v2443_v34 = vmul.f32 %v2439_v58, %v6335_v41 }
 0x34f   : > { %2448 = vrot.lane.b32.xlu2 %v2440_v38, %s8860_s1  ;;  %v1972_v38 = vadd.f32 %v1966_v12, %v1944_v20  ;;  %v2468_v20 = vmul.f32 %v2467_v7, %v6110_v8 }
 0x350   : > { %v6690_v63 = vpop.permute.xlu1 %2124  ;;  %v6692_v14 = vpop.permute.xlu0 %2122 }
 0x351   : > { %v6694_v48 = vpop.permute.xlu2 %2204  ;;  %v2000_v3 = vadd.f32 %v1994_v17, %v1972_v38  ;;  %v2470_v17 = vmul.f32 %v2467_v7, %v6148_v9  ;;  %v2495_v38 = vstv %s4399_s26  ;;  %s9049_s26 = smov 118  }
 0x352   : > { %v2497_v30 = vmul.f32 %v2495_v38, %v6318_v27 }
 0x353   : > { %v2028_v2 = vadd.f32 %v2022_v15, %v2000_v3 }
 0x355   : > { %v2044_v58 = vadd.f32 %v6633_v5, %v2028_v2  ;;  %v1861_v2 = vmul.f32 %v1859_v51, %v6110_v8 }
 0x356   : > { %2452 = vrot.lane.b32.xlu1 %v2442_v24, %s8860_s1  ;;  %2450 = vrot.lane.b32.xlu0 %v2441_v26, %s8860_s1 }
 0x357   : > { %2454 = vrot.lane.b32.xlu2 %v2443_v34, %s8860_s1  ;;  %v2076_v24 = vadd.f32 %v6602_v31, %v2044_v58  ;;  %v1883_v34 = vsel %vm307_vm1, %v6402_v53, %v6528_v22  ;;  %v2471_v53 = vmul.f32 %v2467_v7, %v6335_v41 }
 0x358   : > { %v6708_v44 = vpop.permute.xlu1 %2150  ;;  %v6710_v25 = vpop.permute.xlu0 %2148  ;;  %v1890_v40 = vadd.f32 %v1883_v34, %v1860_v61 }
 0x359   : > { %v6713_v12 = vpop.permute.xlu2 %2230  ;;  %v2104_v26 = vadd.f32 %v6656_v6, %v2076_v24  ;;  %v2496_v24 = vmul.f32 %v2495_v38, %v6110_v8 }
 0x35b   : > { %v2132_v58 = vadd.f32 %v6665_v49, %v2104_v26  ;;  %v1939_v26 = vsel %vm365_vm3, %v6573_v21, %v6507_v57 }
 0x35d   : > { %v2160_v50 = vadd.f32 %v6647_v54, %v2132_v58 }
 0x35e   : > { %2478 = vrot.lane.b32.xlu1 %v2469_v62, %s8850_s29  ;;  %2476 = vrot.lane.b32.xlu0 %v2468_v20, %s8850_s29  ;;  %v1863_v20 = vmul.f32 %v1859_v51, %v6148_v9  ;;  %v1889_v51 = vadd.f32 %v6499_v0, %v1861_v2 }
 0x35f   : > { %2480 = vrot.lane.b32.xlu2 %v2470_v17, %s8850_s29  ;;  %v1911_v17 = vsel %vm336_vm2, %v6563_v39, %v6561_v59  ;;  %v1967_v39 = vsel %vm394_vm4, %v6538_v33, %v6600_v52 }
 0x360   : > { %v6726_v15 = vpop.permute.xlu1 %2176  ;;  %v6728_v3 = vpop.permute.xlu0 %2174  ;;  %v1918_v23 = vadd.f32 %v1911_v17, %v1890_v40  ;;  %v1891_v8 = vadd.f32 %v6528_v22, %v1863_v20  ;;  %v1995_v40 = vsel %vm423_vm5, %v6611_v29, %v6609_v46  ;;  %v1917_v33 = vadd.f32 %v6433_v60, %v1889_v51  ;;  %v6774_v17 = vld [vmem:[#allocation2 + $0x68] sm:$0xff] }
 0x361   : > { %v6732_v62 = vpop.permute.xlu2 %2236  ;;  %v2188_v21 = vadd.f32 %v6728_v3, %v2160_v50  ;;  %v2023_v50 = vsel %vm452_vm6, %v6620_v1, %v6590_v18  ;;  %v2523_v29 = vstv %s4400_s6  ;;  %v6783_v51 = vstv %s6744_s20  ;;  %s4401_s6 = sld [smem:[#allocation7 + $0x28c]] }
 0x362   : > { %v1946_v61 = vadd.f32 %v1939_v26, %v1918_v23  ;;  %v1919_v0 = vadd.f32 %v6561_v59, %v1891_v8  ;;  %v2498_v59 = vmul.f32 %v2495_v38, %v6148_v9  ;;  %v1945_v58 = vadd.f32 %v6575_v55, %v1917_v33  ;;  %s6832_s20 = sld [smem:[#allocation7 + $0x28d]] }
 0x363   : > { %v2524_v60 = vmul.f32 %v6774_v17, %v2523_v29  ;;  %v6785_v8 = vstv %s4505_s4  ;;  %s4403_s4 = sld [smem:[#allocation7 + $0x28e]] }
 0x364   : > { %v1974_v34 = vadd.f32 %v1967_v39, %v1946_v61  ;;  %v1973_v26 = vadd.f32 %v6586_v16, %v1945_v58 }
 0x366   : > { %2504 = vrot.lane.b32.xlu1 %v2496_v24, %s9049_s26  ;;  %2482 = vrot.lane.b32.xlu0 %v2471_v53, %s8850_s29  ;;  %v2002_v20 = vadd.f32 %v1995_v40, %v1974_v34  ;;  %v1947_v24 = vadd.f32 %v6507_v57, %v1919_v0  ;;  %s9051_s29 = smov 117   ;;  %v6801_v40 = vld [vmem:[#allocation2 + $0x80] sm:$0xff] }
 0x367   : > { %2506 = vrot.lane.b32.xlu2 %v2497_v30, %s9049_s26  ;;  %v2499_v30 = vmul.f32 %v2495_v38, %v6335_v41  ;;  %v2526_v33 = vmul.f32 %v6801_v40, %v2523_v29 }
 0x368   : > { %v6760_v22 = vpop.permute.xlu1 %2202  ;;  %v6762_v7 = vpop.permute.xlu0 %2180  ;;  %v2030_v1 = vadd.f32 %v2023_v50, %v2002_v20  ;;  %v1975_v9 = vadd.f32 %v6600_v52, %v1947_v24  ;;  %v2001_v52 = vadd.f32 %v6565_v28, %v1973_v26  ;;  %v2527_v28 = vmul.f32 %v2523_v29, %v6335_v41 }
 0x369   : > { %v2216_v23 = vadd.f32 %v6760_v22, %v2188_v21  ;;  %v6766_v2 = vpop.permute.xlu2 %2268  ;;  %v2154_v24 = vsel %vm588_vm10, %v6647_v54, %v6710_v25  ;;  %v2182_v25 = vsel %vm617_vm11, %v6728_v3, %v6726_v15  ;;  %v2579_v3 = vstv %s6832_s20  ;;  %s4407_s20 = sld [smem:[#allocation7 + $0x303]] }
 0x36a   : > { %v2046_v55 = vadd.f32 %v6631_v35, %v2030_v1  ;;  %v2003_v57 = vadd.f32 %v6609_v46, %v1975_v9  ;;  %v2525_v46 = vmul.f32 %v2523_v29, %v6318_v27  ;;  %v2029_v50 = vadd.f32 %v6622_v4, %v2001_v52 }
 0x36b   : > { %v6779_v53 = vadd.f32 %v6713_v12, %v2216_v23  ;;  %v2098_v4 = vsel %vm530_vm8, %v6656_v6, %v6654_v42 }
 0x36c   : > { %v2078_v21 = vadd.f32 %v6643_v32, %v2046_v55  ;;  %v2045_v58 = vadd.f32 %v6633_v5, %v2029_v50 }
 0x36d   : > { %9050 = vst [vmem:[#allocation53_spill] sm:$0xff] %v6779_v53  ;;  %v4022_v39 = vmul.f32 %v6783_v51, %v6779_v53  ;;  %v4117_v61 = vmul.f32 %v6785_v8, %v6779_v53 }
 0x36e   : > { %2510 = vrot.lane.b32.xlu1 %v2499_v30, %s9049_s26  ;;  %2508 = vrot.lane.b32.xlu0 %v2498_v59, %s9049_s26  ;;  %v2031_v30 = vadd.f32 %v6590_v18, %v2003_v57  ;;  %v2070_v59 = vsel %vm501_vm7, %v6602_v31, %v6645_v43  ;;  %v2106_v20 = vadd.f32 %v6624_v11, %v2078_v21 }
 0x36f   : > { %2532 = vrot.lane.b32.xlu2 %v2524_v60, %s9051_s29  ;;  %v6806_v34 = vadd.f32 %v4022_v39, %v6438_v47  ;;  %v6809_v23 = vadd.f32 %v4117_v61, %v6441_v19  ;;  %v2071_v47 = vsel %vm501_vm7, %v6643_v32, %v6613_v10  ;;  %v2077_v18 = vadd.f32 %v2070_v59, %v2045_v58 }
 0x370   : > { %v2209_v38 = vpop.permute.xlu1 %2208  ;;  %v2207_v16 = vpop.permute.xlu0 %2206  ;;  %v2047_v19 = vadd.f32 %v6631_v35, %v2031_v30  ;;  %v2099_v31 = vsel %vm530_vm8, %v6624_v11, %v6667_v13  ;;  %v2134_v5 = vadd.f32 %v6692_v14, %v2106_v20  ;;  %v2551_v10 = vstv %s4401_s6  ;;  %v6890_v30 = vld [vmem:[%s4940_s22 + $0x38] sm:$0xff]  ;;  %s4406_s6 = sld [smem:[#allocation7 + $0x302]] }
 0x371   : > { %v6799_v0 = vpop.permute.xlu2 %2294  ;;  %v2126_v32 = vsel %vm559_vm9, %v6665_v49, %v6635_v36  ;;  %v2105_v6 = vadd.f32 %v2098_v4, %v2077_v18  ;;  %v2127_v11 = vsel %vm559_vm9, %v6692_v14, %v6690_v63  ;;  %v2553_v26 = vmul.f32 %v2551_v10, %v6318_v27  ;;  %v6850_v49 = vld [vmem:[%s4940_s22 + $0x30] sm:$0xff]  ;;  %278 = vst [vmem:[#allocation2 + $0xb0] sm:$0xff] %v6890_v30  ;;  %s4405_s22 = sld [smem:[#allocation7 + $0x301]] }
 0x372   : > { %v2079_v35 = vadd.f32 %v2071_v47, %v2047_v19  ;;  %v2162_v13 = vadd.f32 %v6708_v44, %v2134_v5  ;;  %v2552_v36 = vmul.f32 %v6774_v17, %v2551_v10  ;;  %v2155_v63 = vsel %vm588_vm10, %v6708_v44, %v6658_v56  ;;  %277 = vst [vmem:[#allocation2 + $0x98] sm:$0xff] %v6850_v49 }
 0x373   : > { %v2133_v1 = vadd.f32 %v2126_v32, %v2105_v6  ;;  %v2554_v14 = vmul.f32 %v6801_v40, %v2551_v10  ;;  %v2183_v57 = vsel %vm617_vm11, %v6670_v37, %v6762_v7  ;;  %v2210_v56 = vsel %vm646_vm12, %v6760_v22, %v6694_v48 }
 0x374   : > { %v2107_v60 = vadd.f32 %v2099_v31, %v2079_v35  ;;  %v2190_v55 = vadd.f32 %v6670_v37, %v2162_v13  ;;  %v2211_v61 = vsel %vm646_vm12, %v2207_v16, %v2209_v38  ;;  %v2555_v50 = vmul.f32 %v2551_v10, %v6335_v41  ;;  %v9055_v10 = vld [vmem:[#allocation30_spill] sm:$0xff]  ;;  %v9057_v13 = vld [vmem:[#allocation31_spill] sm:$0xff] }
 0x375   : > { %v2161_v54 = vadd.f32 %v2154_v24, %v2133_v1  ;;  %v2583_v32 = vmul.f32 %v2579_v3, %v6335_v41  ;;  %v9058_v24 = vld [vmem:[#allocation58_spill] sm:$0xff] }
 0x376   : > { %2536 = vrot.lane.b32.xlu1 %v2526_v33, %s9051_s29  ;;  %2534 = vrot.lane.b32.xlu0 %v2525_v46, %s9051_s29  ;;  %v2135_v9 = vadd.f32 %v2127_v11, %v2107_v60  ;;  %v2218_v15 = vadd.f32 %v2207_v16, %v2190_v55  ;;  %v2580_v46 = vmul.f32 %v6774_v17, %v2579_v3 }
 0x377   : > { %2538 = vrot.lane.b32.xlu2 %v2527_v28, %s9051_s29  ;;  %v2189_v44 = vadd.f32 %v2182_v25, %v2161_v54  ;;  %v2646_v55 = vstv %s4405_s22  ;;  %s4409_s22 = sld [smem:[#allocation7 + $0x305]] }
 0x378   : > { %v2235_v43 = vpop.permute.xlu1 %2234  ;;  %v2233_v42 = vpop.permute.xlu0 %2232  ;;  %v2163_v39 = vadd.f32 %v2155_v63, %v2135_v9 }
 0x379   : > { %v6842_v29 = vpop.permute.xlu2 %2320  ;;  %v2238_v37 = vsel %vm675_vm13, %v6713_v12, %v2233_v42  ;;  %v2217_v48 = vadd.f32 %v2210_v56, %v2189_v44  ;;  %v2239_v22 = vsel %vm675_vm13, %v2235_v43, %v6732_v62  ;;  %v6880_v33 = vadd.f32 %v2235_v43, %v2218_v15 }
 0x37a   : > { %v2191_v52 = vadd.f32 %v2183_v57, %v2163_v39  ;;  %v2581_v12 = vmul.f32 %v2579_v3, %v6318_v27  ;;  %v2582_v43 = vmul.f32 %v6801_v40, %v2579_v3  ;;  %v2607_v42 = vstv %s4403_s4  ;;  %s4408_s4 = sld [smem:[#allocation7 + $0x304]] }
 0x37b   : > { %9052 = vst [vmem:[#allocation55_spill] sm:$0xff] %v6880_v33  ;;  %v6886_v28 = vadd.f32 %v2238_v37, %v2217_v48  ;;  %v4024_v62 = vmul.f32 %v6783_v51, %v6880_v33  ;;  %v4119_v31 = vmul.f32 %v6785_v8, %v6880_v33  ;;  %v2608_v11 = vmul.f32 %v6774_v17, %v2607_v42  ;;  %v7063_v33 = vld [vmem:[#allocation2 + $0xa0] sm:$0xff] }
 0x37c   : > { %v2219_v16 = vadd.f32 %v2211_v61, %v2191_v52  ;;  %v2610_v9 = vmul.f32 %v6801_v40, %v2607_v42  ;;  %v2609_v25 = vmul.f32 %v2607_v42, %v6318_v27  ;;  %v2611_v54 = vmul.f32 %v2607_v42, %v6335_v41  ;;  %v9062_v61 = vld [vmem:[#allocation33_spill] sm:$0xff] }
 0x37d   : > { %9053 = vst [vmem:[#allocation26_spill] sm:$0xff] %v6886_v28  ;;  %v6901_v58 = vadd.f32 %v4024_v62, %v6522_v45  ;;  %v4023_v47 = vmul.f32 %v6783_v51, %v6886_v28  ;;  %v4118_v18 = vmul.f32 %v6785_v8, %v6886_v28  ;;  %v2648_v44 = vmul.f32 %v2646_v55, %v6850_v49 }
 0x37e   : > { %2562 = vrot.lane.b32.xlu1 %v2553_v26, %s9033_s23  ;;  %2560 = vrot.lane.b32.xlu0 %v2552_v36, %s9033_s23  ;;  %v6892_v59 = vadd.f32 %v2239_v22, %v2219_v16  ;;  %v9060_v26 = vld [vmem:[#allocation59_spill] sm:$0xff]  ;;  %v2647_v27 = vmul.f32 %v9062_v61, %v2646_v55  ;;  %v2674_v41 = vstv %s4406_s6  ;;  %v2650_v48 = vmul.f32 %v2646_v55, %v6890_v30  ;;  %s4410_s6 = sld [smem:[#allocation7 + $0x306]] }
 0x37f   : > { %2564 = vrot.lane.b32.xlu2 %v2554_v14, %s9033_s23  ;;  %v6920_v35 = vadd.f32 %v4023_v47, %v9055_v10  ;;  %v6929_v60 = vadd.f32 %v4118_v18, %v9057_v13  ;;  %v2675_v37 = vmul.f32 %v9062_v61, %v2674_v41  ;;  %v2676_v22 = vmul.f32 %v2674_v41, %v6850_v49 }
 0x380   : > { %v6874_v7 = vpop.permute.xlu1 %2266  ;;  %v6876_v21 = vpop.permute.xlu0 %2264  ;;  %9054 = vst [vmem:[#allocation61_spill] sm:$0xff] %v6892_v59  ;;  %v4025_v4 = vmul.f32 %v6783_v51, %v6892_v59  ;;  %v4120_v45 = vmul.f32 %v6785_v8, %v6892_v59  ;;  %v9056_v51 = vld [vmem:[#allocation56_spill] sm:$0xff]  ;;  %v6932_v8 = vadd.f32 %v4119_v31, %v9058_v24  ;;  %v2702_v62 = vstv %s4407_s20  ;;  %s4389_s20 = sld [smem:[#allocation7 + $0x280]] }
 0x381   : > { %v6882_v38 = vpop.permute.xlu2 %2326  ;;  %v2705_v47 = vmul.f32 %v9062_v61, %v2702_v62  ;;  %v2706_v10 = vmul.f32 %v2702_v62, %v6890_v30  ;;  %v2758_v24 = vstv %s4409_s22  ;;  %s4412_s22 = sld [smem:[#allocation7 + $0x308]] }
 0x382   : > { %v6925_v6 = vadd.f32 %v4025_v4, %v9056_v51  ;;  %9059 = vst [vmem:[#allocation65_spill] sm:$0xff] %v6932_v8  ;;  %v6935_v36 = vadd.f32 %v4120_v45, %v9060_v26  ;;  %v2704_v45 = vmul.f32 %v2702_v62, %v6850_v49 }
 0x384   : > { %9061 = vst [vmem:[#allocation29_spill] sm:$0xff] %v6935_v36 }
 0x386   : > { %2588 = vrot.lane.b32.xlu1 %v2580_v46, %s9037_s19  ;;  %2566 = vrot.lane.b32.xlu0 %v2555_v50, %s9033_s23 }
 0x387   : > { %2590 = vrot.lane.b32.xlu2 %v2581_v12, %s9037_s19  ;;  %v2678_v12 = vmul.f32 %v2674_v41, %v6890_v30 }
 0x388   : > { %v6905_v20 = vpop.permute.xlu1 %2292  ;;  %v6907_v19 = vpop.permute.xlu0 %2270 }
 0x389   : > { %v6917_v5 = vpop.permute.xlu2 %2352 }
 0x38e   : > { %2594 = vrot.lane.b32.xlu1 %v2583_v32, %s9037_s19  ;;  %2592 = vrot.lane.b32.xlu0 %v2582_v43, %s9037_s19  ;;  %v2730_v32 = vstv %s4408_s4  ;;  %s4411_s4 = sld [smem:[#allocation7 + $0x307]] }
 0x38f   : > { %2616 = vrot.lane.b32.xlu2 %v2608_v11, %s9030_s8  ;;  %v2732_v11 = vmul.f32 %v2730_v32, %v6850_v49  ;;  %v2731_v13 = vmul.f32 %v9062_v61, %v2730_v32  ;;  %v2734_v55 = vmul.f32 %v2730_v32, %v6890_v30 }
 0x390   : > { %v6940_v1 = vpop.permute.xlu1 %2298  ;;  %v6942_v63 = vpop.permute.xlu0 %2296 }
 0x391   : > { %v6944_v14 = vpop.permute.xlu2 %2378 }
 0x396   : > { %2620 = vrot.lane.b32.xlu1 %v2610_v9, %s9030_s8  ;;  %2618 = vrot.lane.b32.xlu0 %v2609_v25, %s9030_s8 }
 0x397   : > { %2622 = vrot.lane.b32.xlu2 %v2611_v54, %s9030_s8  ;;  %v2759_v54 = vmul.f32 %v9062_v61, %v2758_v24 }
 0x398   : > { %v6952_v57 = vpop.permute.xlu1 %2324  ;;  %v6954_v39 = vpop.permute.xlu0 %2322 }
 0x399   : > { %v6956_v56 = vpop.permute.xlu2 %2404 }
 0x39e   : > { %2657 = vrot.lane.b32.xlu1 %v2648_v44, %s9013_s10  ;;  %2655 = vrot.lane.b32.xlu0 %v2647_v27, %s9013_s10  ;;  %v2760_v44 = vmul.f32 %v2758_v24, %v6850_v49 }
 0x39f   : > { %2659 = vrot.lane.b32.xlu2 %v2647_v27, %s9013_s10 }
 0x3a0   : > { %v6963_v15 = vpop.permute.xlu1 %2350  ;;  %v6965_v3 = vpop.permute.xlu0 %2348 }
 0x3a1   : > { %v6967_v52 = vpop.permute.xlu2 %2410 }
 0x3a6   : > { %2683 = vrot.lane.b32.xlu1 %v2675_v37, %s9014_s27  ;;  %2661 = vrot.lane.b32.xlu0 %v2650_v48, %s9013_s10  ;;  %v2762_v48 = vmul.f32 %v2758_v24, %v6890_v30 }
 0x3a7   : > { %2685 = vrot.lane.b32.xlu2 %v2676_v22, %s9014_s27  ;;  %v2786_v22 = vstv %s4410_s6  ;;  %s4413_s6 = sld [smem:[#allocation7 + $0x309]] }
 0x3a8   : > { %v6975_v16 = vpop.permute.xlu1 %2376  ;;  %v6977_v46 = vpop.permute.xlu0 %2354  ;;  %v2790_v32 = vmul.f32 %v2786_v22, %v6890_v30 }
 0x3a9   : > { %v6979_v50 = vpop.permute.xlu2 %2448 }
 0x3ae   : > { %2689 = vrot.lane.b32.xlu1 %v2678_v12, %s9014_s27  ;;  %2687 = vrot.lane.b32.xlu0 %v2675_v37, %s9014_s27  ;;  %v2789_v12 = vmul.f32 %v9062_v61, %v2786_v22 }
 0x3af   : > { %2711 = vrot.lane.b32.xlu2 %v2705_v47, %s9015_s21 }
 0x3b0   : > { %v6986_v4 = vpop.permute.xlu1 %2382  ;;  %v6988_v18 = vpop.permute.xlu0 %2380 }
 0x3b1   : > { %v6990_v31 = vpop.permute.xlu2 %2454 }
 0x3b6   : > { %2715 = vrot.lane.b32.xlu1 %v2705_v47, %s9015_s21  ;;  %2713 = vrot.lane.b32.xlu0 %v2704_v45, %s9015_s21 }
 0x3b7   : > { %2717 = vrot.lane.b32.xlu2 %v2706_v10, %s9015_s21  ;;  %v2788_v10 = vmul.f32 %v2786_v22, %v6850_v49 }
 0x3b8   : > { %v6997_v43 = vpop.permute.xlu1 %2408  ;;  %v6999_v42 = vpop.permute.xlu0 %2406 }
 0x3b9   : > { %v7001_v51 = vpop.permute.xlu2 %2480  ;;  %v2412_v36 = vsel %vm452_vm6, %v6956_v56, %v6999_v42 }
 0x3be   : > { %2741 = vrot.lane.b32.xlu1 %v2732_v11, %s8939_s30  ;;  %2739 = vrot.lane.b32.xlu0 %v2731_v13, %s8939_s30  ;;  %v2249_v11 = vstv %s4389_s20  ;;  %s4414_s20 = sld [smem:[#allocation7 + $0x30a]] }
 0x3bf   : > { %2743 = vrot.lane.b32.xlu2 %v2731_v13, %s8939_s30  ;;  %v2814_v13 = vstv %s4411_s4  ;;  %v2251_v8 = vmul.f32 %v6774_v17, %v2249_v11  ;;  %v2301_v17 = vsel %vm336_vm2, %v6942_v63, %v6940_v1  ;;  %s9063_s4 = smov 119  }
 0x3c0   : > { %v7008_v26 = vpop.permute.xlu1 %2430  ;;  %v7010_v9 = vpop.permute.xlu0 %2428  ;;  %v2816_v22 = vmul.f32 %v2814_v13, %v6890_v30 }
 0x3c1   : > { %v7012_v25 = vpop.permute.xlu2 %2506 }
 0x3c6   : > { %2767 = vrot.lane.b32.xlu1 %v2759_v54, %s8866_s28  ;;  %2745 = vrot.lane.b32.xlu0 %v2734_v55, %s8939_s30  ;;  %v2250_v55 = vmul.f32 %v9062_v61, %v2249_v11  ;;  %v2328_v61 = vsel %vm365_vm3, %v6842_v29, %v6954_v39 }
 0x3c7   : > { %2769 = vrot.lane.b32.xlu2 %v2760_v44, %s8866_s28 }
 0x3c8   : > { %v7020_v27 = vpop.permute.xlu1 %2452  ;;  %v7022_v41 = vpop.permute.xlu0 %2450 }
 0x3c9   : > { %v7024_v37 = vpop.permute.xlu2 %2532 }
 0x3ce   : > { %2773 = vrot.lane.b32.xlu1 %v2762_v48, %s8866_s28  ;;  %2771 = vrot.lane.b32.xlu0 %v2759_v54, %s8866_s28  ;;  %v2272_v48 = vsel %vm307_vm1, %v6876_v21, %v6874_v7  ;;  %s4481_s28 = sld [smem:[#allocation8 + $0x280]] }
 0x3cf   : > { %2795 = vrot.lane.b32.xlu2 %v2789_v12, %s8864_s7  ;;  %v2278_v28 = vadd.f32 %v2272_v48, %v2250_v55 }
 0x3d0   : > { %v7031_v62 = vpop.permute.xlu1 %2478  ;;  %v7033_v47 = vpop.permute.xlu0 %2476 }
 0x3d1   : > { %v7035_v45 = vpop.permute.xlu2 %2538 }
 0x3d6   : > { %2799 = vrot.lane.b32.xlu1 %v2789_v12, %s8864_s7  ;;  %2797 = vrot.lane.b32.xlu0 %v2788_v10, %s8864_s7  ;;  %v2815_v12 = vmul.f32 %v2814_v13, %v6850_v49  ;;  %v2834_v10 = vstv %s4412_s22  ;;  %v2356_v13 = vsel %vm394_vm4, %v6965_v3, %v6963_v15  ;;  %s4415_s22 = sld [smem:[#allocation7 + $0x30b]] }
 0x3d7   : > { %2801 = vrot.lane.b32.xlu2 %v2790_v32, %s8864_s7  ;;  %v2835_v59 = vmul.f32 %v2834_v10, %v6850_v49  ;;  %v2300_v32 = vsel %vm336_vm2, %v6905_v20, %v6799_v0  ;;  %s4471_s7 = sld [smem:[#allocation8 + $0x200]] }
 0x3d8   : > { %v7042_v24 = vpop.permute.xlu1 %2504  ;;  %v7044_v54 = vpop.permute.xlu0 %2482  ;;  %v2306_v21 = vadd.f32 %v2300_v32, %v2278_v28  ;;  %v2384_v28 = vsel %vm423_vm5, %v6975_v16, %v6944_v14  ;;  %v2273_v16 = vsel %vm307_vm1, %v6766_v2, %v6907_v19  ;;  %v2279_v2 = vadd.f32 %v6874_v7, %v2251_v8 }
 0x3d9   : > { %v7047_v44 = vpop.permute.xlu2 %2564 }
 0x3da   : > { %v2334_v53 = vadd.f32 %v2328_v61, %v2306_v21  ;;  %v2253_v61 = vmul.f32 %v6801_v40, %v2249_v11  ;;  %v2307_v8 = vadd.f32 %v6799_v0, %v2279_v2 }
 0x3dc   : > { %v2362_v32 = vadd.f32 %v2356_v13, %v2334_v53  ;;  %v2862_v13 = vstv %s4413_s6  ;;  %v2281_v40 = vadd.f32 %v6907_v19, %v2253_v61  ;;  %v2329_v19 = vsel %vm365_vm3, %v6952_v57, %v6882_v38  ;;  %s7143_s6 = sld [smem:[#allocation8 + $0x305]] }
 0x3dd   : > { %v2357_v61 = vsel %vm394_vm4, %v6917_v5, %v6977_v46  ;;  %v2385_v57 = vsel %vm423_vm5, %v6988_v18, %v6986_v4  ;;  %v2335_v5 = vadd.f32 %v6954_v39, %v2307_v8  ;;  %v2457_v8 = vsel %vm501_vm7, %v7020_v27, %v6990_v31 }
 0x3de   : > { %2821 = vrot.lane.b32.xlu1 %v2816_v22, %s8862_s11  ;;  %2819 = vrot.lane.b32.xlu0 %v2815_v12, %s8862_s11  ;;  %v2837_v22 = vmul.f32 %v2834_v10, %v6890_v30  ;;  %v2836_v12 = vmul.f32 %v2834_v10, %v7063_v33  ;;  %v2390_v21 = vadd.f32 %v2384_v28, %v2362_v32  ;;  %s4420_s11 = sld [smem:[#allocation7 + $0x381]] }
 0x3df   : > { %2843 = vrot.lane.b32.xlu2 %v2835_v59, %s8860_s1  ;;  %v7080_v59 = vld [vmem:[#allocation2 + $0xb8] sm:$0xff]  ;;  %v2309_v32 = vadd.f32 %v6940_v1, %v2281_v40  ;;  %v2363_v2 = vadd.f32 %v6963_v15, %v2335_v5  ;;  %v2484_v31 = vsel %vm530_vm8, %v7033_v47, %v7031_v62 }
 0x3e0   : > { %v7069_v20 = vpop.permute.xlu1 %2510  ;;  %v7071_v48 = vpop.permute.xlu0 %2508  ;;  %v2838_v3 = vmul.f32 %v2834_v10, %v7080_v59  ;;  %v2418_v53 = vadd.f32 %v2412_v36, %v2390_v21  ;;  %v2280_v36 = vadd.f32 %v2273_v16, %v2250_v55  ;;  %v2890_v16 = vstv %s4414_s20  ;;  %s7146_s20 = sld [smem:[#allocation8 + $0x385]] }
 0x3e1   : > { %v7073_v29 = vpop.permute.xlu2 %2590  ;;  %v2337_v1 = vadd.f32 %v6882_v38, %v2309_v32  ;;  %v2413_v38 = vsel %vm452_vm6, %v6997_v43, %v6967_v52  ;;  %v2891_v39 = vmul.f32 %v2890_v16, %v6850_v49  ;;  %v2513_v62 = vsel %vm559_vm9, %v7071_v48, %v7069_v20 }
 0x3e2   : > { %v2434_v11 = vadd.f32 %v7010_v9, %v2418_v53  ;;  %v2308_v63 = vadd.f32 %v2301_v17, %v2280_v36 }
 0x3e3   : > { %v2365_v17 = vadd.f32 %v6977_v46, %v2337_v1  ;;  %v2892_v46 = vmul.f32 %v2890_v16, %v7063_v33 }
 0x3e4   : > { %v2462_v7 = vadd.f32 %v6979_v50, %v2434_v11  ;;  %v2336_v55 = vadd.f32 %v2329_v19, %v2308_v63  ;;  %v2391_v19 = vadd.f32 %v6944_v14, %v2363_v2 }
 0x3e6   : > { %2847 = vrot.lane.b32.xlu1 %v2837_v22, %s8860_s1  ;;  %2845 = vrot.lane.b32.xlu0 %v2836_v12, %s8860_s1  ;;  %v2864_v22 = vmul.f32 %v2862_v13, %v7063_v33  ;;  %v2863_v12 = vmul.f32 %v2862_v13, %v6850_v49  ;;  %v2490_v21 = vadd.f32 %v7033_v47, %v2462_v7  ;;  %v7187_v47 = vstv %s7143_s6  ;;  %s4404_s6 = sld [smem:[#allocation7 + $0x300]] }
 0x3e7   : > { %2849 = vrot.lane.b32.xlu2 %v2838_v3, %s8860_s1  ;;  %v2865_v3 = vmul.f32 %v2862_v13, %v6890_v30  ;;  %v2364_v53 = vadd.f32 %v2357_v61, %v2336_v55  ;;  %s7308_s1 = sld [smem:[#allocation8 + $0x100]] }
 0x3e8   : > { %v7094_v10 = vpop.permute.xlu1 %2536  ;;  %v7096_v56 = vpop.permute.xlu0 %2534  ;;  %v2518_v18 = vadd.f32 %v7042_v24, %v2490_v21  ;;  %v2893_v21 = vmul.f32 %v2890_v16, %v6890_v30 }
 0x3e9   : > { %v7103_v28 = vpop.permute.xlu2 %2616  ;;  %v2392_v36 = vadd.f32 %v2385_v57, %v2364_v53  ;;  %v2894_v57 = vmul.f32 %v2890_v16, %v7080_v59  ;;  %v2512_v16 = vsel %vm559_vm9, %v7042_v24, %v7012_v25 }
 0x3ea   : > { %v2546_v43 = vadd.f32 %v7024_v37, %v2518_v18 }
 0x3eb   : > { %v2420_v32 = vadd.f32 %v2413_v38, %v2392_v36 }
 0x3ed   : > { %v2436_v15 = vadd.f32 %v7008_v26, %v2420_v32 }
 0x3ee   : > { %2873 = vrot.lane.b32.xlu1 %v2864_v22, %s9063_s4  ;;  %2871 = vrot.lane.b32.xlu0 %v2863_v12, %s9063_s4  ;;  %v2866_v22 = vmul.f32 %v2862_v13, %v7080_v59  ;;  %v2393_v12 = vadd.f32 %v6986_v4, %v2365_v17 }
 0x3ef   : > { %2875 = vrot.lane.b32.xlu2 %v2865_v3, %s9063_s4  ;;  %v2419_v3 = vadd.f32 %v6999_v42, %v2391_v19  ;;  %v2464_v63 = vadd.f32 %v7020_v27, %v2436_v15 }
 0x3f0   : > { %v7127_v0 = vpop.permute.xlu1 %2562  ;;  %v7129_v40 = vpop.permute.xlu0 %2560  ;;  %v2421_v13 = vadd.f32 %v6967_v52, %v2393_v12  ;;  %v2456_v52 = vsel %vm501_vm7, %v6979_v50, %v7022_v41  ;;  %v2485_v50 = vsel %vm530_vm8, %v7001_v51, %v7044_v54  ;;  %v7190_v54 = vstv %s7146_s20  ;;  %s4417_s20 = sld [smem:[#allocation7 + $0x30d]] }
 0x3f1   : > { %v7136_v11 = vpop.permute.xlu2 %2622  ;;  %v2574_v4 = vadd.f32 %v7129_v40, %v2546_v43  ;;  %v2435_v42 = vadd.f32 %v7010_v9, %v2419_v3  ;;  %v2492_v53 = vadd.f32 %v7001_v51, %v2464_v63 }
 0x3f2   : > { %v2437_v14 = vadd.f32 %v7008_v26, %v2421_v13  ;;  %v2918_v26 = vstv %s4415_s22  ;;  %s4416_s22 = sld [smem:[#allocation7 + $0x30c]] }
 0x3f3   : > { %v2919_v27 = vmul.f32 %v2918_v26, %v6850_v49  ;;  %v2463_v5 = vadd.f32 %v2456_v52, %v2435_v42  ;;  %v2520_v51 = vadd.f32 %v7071_v48, %v2492_v53  ;;  %v2540_v48 = vsel %vm588_vm10, %v7024_v37, %v7096_v56 }
 0x3f4   : > { %v2465_v41 = vadd.f32 %v2457_v8, %v2437_v14  ;;  %v2921_v32 = vmul.f32 %v2918_v26, %v6890_v30  ;;  %v2920_v43 = vmul.f32 %v2918_v26, %v7063_v33 }
 0x3f5   : > { %v2491_v17 = vadd.f32 %v2484_v31, %v2463_v5  ;;  %v2640_v31 = vstv %s4404_s6  ;;  %s7295_s6 = sld [smem:[#allocation8]] }
 0x3f6   : > { %2899 = vrot.lane.b32.xlu1 %v2891_v39, %s9049_s26  ;;  %2877 = vrot.lane.b32.xlu0 %v2866_v22, %s9063_s4  ;;  %v2493_v38 = vadd.f32 %v2485_v50, %v2465_v41  ;;  %v2541_v39 = vsel %vm588_vm10, %v7094_v10, %v7035_v45  ;;  %v2548_v22 = vadd.f32 %v7094_v10, %v2520_v51 }
 0x3f7   : > { %2901 = vrot.lane.b32.xlu2 %v2892_v46, %s9049_s26  ;;  %v2519_v25 = vadd.f32 %v2512_v16, %v2491_v17  ;;  %v2568_v45 = vsel %vm617_vm11, %v7129_v40, %v7127_v0  ;;  %v2922_v10 = vmul.f32 %v2918_v26, %v7080_v59  ;;  %v7254_v17 = vld [vmem:[#allocation2 + $0x18] sm:$0xff] }
 0x3f8   : > { %v2589_v61 = vpop.permute.xlu1 %2588  ;;  %v2567_v7 = vpop.permute.xlu0 %2566  ;;  %v2521_v24 = vadd.f32 %v2513_v62, %v2493_v38  ;;  %v2946_v40 = vstv %s4416_s22  ;;  %s4418_s22 = sld [smem:[#allocation7 + $0x30e]]  ;;  %v2641_v38 = vmul.f32 %v7254_v17, %v2640_v31 }
 0x3f9   : > { %v2602_v55 = vadd.f32 %v2589_v61, %v2574_v4  ;;  %v7164_v1 = vpop.permute.xlu2 %2659  ;;  %v2569_v37 = vsel %vm617_vm11, %v7047_v44, %v2567_v7  ;;  %v2547_v13 = vadd.f32 %v2540_v48, %v2519_v25  ;;  %v2576_v4 = vadd.f32 %v7047_v44, %v2548_v22 }
 0x3fa   : > { %v2549_v56 = vadd.f32 %v2541_v39, %v2521_v24  ;;  %v2949_v26 = vmul.f32 %v2946_v40, %v6890_v30  ;;  %v2950_v62 = vmul.f32 %v2946_v40, %v7080_v59 }
 0x3fb   : > { %v7178_v9 = vadd.f32 %v7103_v28, %v2602_v55  ;;  %v2575_v3 = vadd.f32 %v2568_v45, %v2547_v13 }
 0x3fd   : > { %9064 = vst [vmem:[#allocation57_spill] sm:$0xff] %v7178_v9  ;;  %v4032_v20 = vmul.f32 %v7187_v47, %v7178_v9  ;;  %v4127_v36 = vmul.f32 %v7190_v54, %v7178_v9 }
 0x3fe   : > { %2905 = vrot.lane.b32.xlu1 %v2894_v57, %s9049_s26  ;;  %2903 = vrot.lane.b32.xlu0 %v2893_v21, %s9049_s26  ;;  %v2948_v57 = vmul.f32 %v2946_v40, %v7063_v33  ;;  %v2947_v21 = vmul.f32 %v2946_v40, %v6850_v49 }
 0x3ff   : > { %2927 = vrot.lane.b32.xlu2 %v2919_v27, %s9051_s29  ;;  %v7213_v19 = vadd.f32 %v4032_v20, %v6806_v34  ;;  %v7216_v15 = vadd.f32 %v4127_v36, %v6809_v23  ;;  %v2596_v34 = vsel %vm646_vm12, %v2589_v61, %v7073_v29  ;;  %v2577_v23 = vadd.f32 %v2569_v37, %v2549_v56 }
 0x400   : > { %v2595_v18 = vpop.permute.xlu1 %2594  ;;  %v2593_v2 = vpop.permute.xlu0 %2592  ;;  %v2603_v63 = vadd.f32 %v2596_v34, %v2575_v3 }
 0x401   : > { %v2597_v12 = vsel %vm646_vm12, %v2593_v2, %v2595_v18  ;;  %v7208_v46 = vpop.permute.xlu2 %2685  ;;  %9065 = vst [vmem:[#allocation37_spill] sm:$0xff] %v7213_v19  ;;  %v2604_v0 = vadd.f32 %v2593_v2, %v2576_v4  ;;  %v2644_v2 = vmul.f32 %v2640_v31, %v6890_v30  ;;  %v3002_v4 = vstv %s4418_s22  ;;  %s7312_s22 = sld [smem:[#allocation8 + $0x180]]  ;;  %v9084_v19 = vld [vmem:[#allocation22_spill] sm:$0xff] }
 0x402   : > { %9066 = vst [vmem:[#allocation39_spill] sm:$0xff] %v7216_v15  ;;  %v2605_v7 = vadd.f32 %v2597_v12, %v2577_v23  ;;  %v9076_v23 = vld [vmem:[#allocation29_spill] sm:$0xff]  ;;  %v9083_v15 = vld [vmem:[#allocation64_spill] sm:$0xff] }
 0x406   : > { %2931 = vrot.lane.b32.xlu1 %v2921_v32, %s9051_s29  ;;  %2929 = vrot.lane.b32.xlu0 %v2920_v43, %s9051_s29 }
 0x407   : > { %2933 = vrot.lane.b32.xlu2 %v2922_v10, %s9051_s29 }
 0x408   : > { %v2621_v14 = vpop.permute.xlu1 %2620  ;;  %v2619_v8 = vpop.permute.xlu0 %2618 }
 0x409   : > { %v2625_v44 = vsel %vm675_vm13, %v2621_v14, %v7136_v11  ;;  %v7232_v52 = vadd.f32 %v2621_v14, %v2604_v0  ;;  %v2624_v29 = vsel %vm675_vm13, %v7103_v28, %v2619_v8  ;;  %v7236_v61 = vpop.permute.xlu2 %2711  ;;  %v2642_v11 = vmul.f32 %v2640_v31, %v6850_v49 }
 0x40a   : > { %v7238_v55 = vadd.f32 %v2625_v44, %v2605_v7  ;;  %v7240_v42 = vadd.f32 %v2624_v29, %v2603_v63  ;;  %v2974_v28 = vstv %s4417_s20  ;;  %s7306_s20 = sld [smem:[#allocation8 + $0x80]]  ;;  %v3005_v44 = vmul.f32 %v3002_v4, %v6890_v30 }
 0x40b   : > { %9067 = vst [vmem:[#allocation40_spill] sm:$0xff] %v7232_v52  ;;  %v2975_v16 = vmul.f32 %v2974_v28, %v6850_v49  ;;  %v2976_v25 = vmul.f32 %v2974_v28, %v7063_v33  ;;  %v4034_v24 = vmul.f32 %v7187_v47, %v7232_v52  ;;  %v4129_v32 = vmul.f32 %v7190_v54, %v7232_v52 }
 0x40c   : > { %9068 = vst [vmem:[#allocation62_spill] sm:$0xff] %v7238_v55  ;;  %v4033_v36 = vmul.f32 %v7187_v47, %v7240_v42  ;;  %v4035_v48 = vmul.f32 %v7187_v47, %v7238_v55  ;;  %v4128_v12 = vmul.f32 %v7190_v54, %v7240_v42  ;;  %v4130_v43 = vmul.f32 %v7190_v54, %v7238_v55 }
 0x40d   : > { %9069 = vst [vmem:[#allocation66_spill] sm:$0xff] %v7240_v42  ;;  %v7268_v20 = vadd.f32 %v4034_v24, %v6901_v58  ;;  %v2978_v37 = vmul.f32 %v2974_v28, %v7080_v59  ;;  %v2977_v13 = vmul.f32 %v2974_v28, %v6890_v30  ;;  %v3003_v54 = vmul.f32 %v3002_v4, %v6850_v49 }
 0x40e   : > { %2957 = vrot.lane.b32.xlu1 %v2948_v57, %s9033_s23  ;;  %2955 = vrot.lane.b32.xlu0 %v2947_v21, %s9033_s23  ;;  %v7288_v47 = vadd.f32 %v4033_v36, %v6920_v35  ;;  %v7292_v34 = vadd.f32 %v4035_v48, %v6925_v6  ;;  %v7304_v35 = vadd.f32 %v4130_v43, %v9076_v23  ;;  %v3605_v28 = vstv %s7308_s1  ;;  %v9078_v36 = vld [vmem:[#allocation38_spill] sm:$0xff]  ;;  %v9079_v48 = vld [vmem:[#allocation63_spill] sm:$0xff]  ;;  %s7607_s1 = sld [smem:[#allocation7 + $0x385]] }
 0x40f   : > { %2959 = vrot.lane.b32.xlu2 %v2949_v26, %s9033_s23  ;;  %9070 = vst [vmem:[#allocation35_spill] sm:$0xff] %v7268_v20  ;;  %v3004_v29 = vmul.f32 %v3002_v4, %v7063_v33  ;;  %v3006_v21 = vmul.f32 %v3002_v4, %v7080_v59  ;;  %v3036_v33 = vstv %s4420_s11  ;;  %v3416_v26 = vstv %s7295_s6  ;;  %s7350_s11 = sld [smem:[#allocation8 + $0x281]] }
 0x410   : > { %v2658_v50 = vpop.permute.xlu1 %2657  ;;  %v2656_v27 = vpop.permute.xlu0 %2655  ;;  %9071 = vst [vmem:[#allocation41_spill] sm:$0xff] %v7288_v47  ;;  %v7370_v43 = vmul.f32 %v3605_v28, %v9079_v48  ;;  %v3516_v23 = vstv %s7326_s2  ;;  %s7467_s2 = sld [smem:[#allocation8 + $0x2]] }
 0x411   : > { %v2670_v41 = vadd.f32 %v2658_v50, %v2642_v11  ;;  %v2663_v5 = vsel %vm307_vm1, %v2656_v27, %v2658_v50  ;;  %v7250_v53 = vpop.permute.xlu2 %2717  ;;  %9072 = vst [vmem:[#allocation42_spill] sm:$0xff] %v7292_v34  ;;  %v3510_v11 = vstv %s7306_s20  ;;  %v3700_v50 = vstv %s7312_s22  ;;  %s7674_s6 = sld [smem:[#allocation8 + $0x183]] }
 0x412   : > { %v2669_v18 = vadd.f32 %v2663_v5, %v2641_v38  ;;  %9077 = vst [vmem:[#allocation44_spill] sm:$0xff] %v7304_v35  ;;  %v3795_v27 = vstv %s4471_s7  ;;  %s7530_s7 = sld [smem:[#allocation7 + $0x384]] }
 0x413   : > { %v7258_v51 = vadd.f32 %v7208_v46, %v2670_v41  ;;  %s7687_s20 = sld [smem:[#allocation8 + $0x203]] }
 0x414   : > { %s7696_s22 = sld [smem:[#allocation8 + $0x283]] }
 0x416   : > { %2983 = vrot.lane.b32.xlu1 %v2975_v16, %s9037_s19  ;;  %2961 = vrot.lane.b32.xlu0 %v2950_v62, %s9033_s23 }
 0x417   : > { %2985 = vrot.lane.b32.xlu2 %v2976_v25, %s9037_s19 }
 0x418   : > { %v2684_v39 = vpop.permute.xlu1 %2683  ;;  %v2662_v22 = vpop.permute.xlu0 %2661 }
 0x419   : > { %v2691_v58 = vsel %vm336_vm2, %v2684_v39, %v7208_v46  ;;  %v2664_v45 = vsel %vm307_vm1, %v7164_v1, %v2662_v22  ;;  %v7285_v10 = vpop.permute.xlu2 %2743  ;;  %v7298_v1 = vadd.f32 %v4128_v12, %v6929_v60  ;;  %v9074_v46 = vld [vmem:[#allocation65_spill] sm:$0xff]  ;;  %v2672_v6 = vadd.f32 %v2662_v22, %v2644_v2 }
 0x41a   : > { %v2697_v56 = vadd.f32 %v2691_v58, %v2669_v18  ;;  %v7301_v3 = vadd.f32 %v4129_v32, %v9074_v46  ;;  %v2671_v60 = vadd.f32 %v2664_v45, %v2641_v38  ;;  %v3890_v38 = vstv %s4481_s28  ;;  %s7517_s28 = sld [smem:[#allocation8 + $0x282]] }
 0x41b   : > { %9073 = vst [vmem:[#allocation25_spill] sm:$0xff] %v7298_v1  ;;  %v3038_v18 = vmul.f32 %v3036_v33, %v6850_v49  ;;  %v3037_v2 = vmul.f32 %v7254_v17, %v3036_v33  ;;  %v3701_v39 = vmul.f32 %v3700_v50, %v9078_v36  ;;  %v7361_v22 = vmul.f32 %v3795_v27, %v9078_v36 }
 0x41c   : > { %9075 = vst [vmem:[#allocation19_spill] sm:$0xff] %v7301_v3  ;;  %v7364_v12 = vmul.f32 %v3416_v26, %v9079_v48  ;;  %v7367_v32 = vmul.f32 %v3510_v11, %v9079_v48  ;;  %v7373_v58 = vmul.f32 %v3890_v38, %v9078_v36  ;;  %v3422_v45 = vstv %s7324_s0  ;;  %s7415_s0 = sld [smem:[#allocation7 + $0x383]] }
 0x41d   : > { %v3064_v46 = vstv %s7334_s5  ;;  %v7456_v34 = vmul.f32 %v3890_v38, %v9079_v48  ;;  %s7503_s5 = sld [smem:[#allocation8 + $0x202]] }
 0x41e   : > { %2989 = vrot.lane.b32.xlu1 %v2978_v37, %s9037_s19  ;;  %2987 = vrot.lane.b32.xlu0 %v2977_v13, %s9037_s19  ;;  %v9080_v37 = vld [vmem:[#allocation47_spill] sm:$0xff]  ;;  %v9081_v13 = vld [vmem:[#allocation46_spill] sm:$0xff] }
 0x41f   : > { %3011 = vrot.lane.b32.xlu2 %v3003_v54, %s9030_s8  ;;  %v7382_v4 = vmul.f32 %v3416_v26, %v9081_v13  ;;  %v7385_v54 = vmul.f32 %v3510_v11, %v9080_v37  ;;  %v7444_v35 = vmul.f32 %v3890_v38, %v9080_v37  ;;  %v7447_v3 = vmul.f32 %v3890_v38, %v9081_v13 }
 0x420   : > { %v2690_v0 = vpop.permute.xlu1 %2689  ;;  %v2688_v40 = vpop.permute.xlu0 %2687  ;;  %v3424_v38 = vmul.f32 %v3422_v45, %v9084_v19 }
 0x421   : > { %v2700_v63 = vadd.f32 %v2690_v0, %v2672_v6  ;;  %v2692_v7 = vsel %vm336_vm2, %v2688_v40, %v2690_v0  ;;  %v7316_v14 = vpop.permute.xlu2 %2769  ;;  %v7391_v6 = vmul.f32 %v3510_v11, %v9081_v13 }
 0x422   : > { %v2699_v8 = vadd.f32 %v2692_v7, %v2671_v60  ;;  %v7394_v60 = vmul.f32 %v3605_v28, %v9080_v37  ;;  %v7398_v7 = vmul.f32 %v3605_v28, %v9081_v13 }
 0x423   : > { %v7321_v57 = vadd.f32 %v7250_v53, %v2700_v63  ;;  %v3611_v63 = vstv %s7328_s9  ;;  %s7493_s9 = sld [smem:[#allocation8 + $0x182]] }
 0x426   : > { %3015 = vrot.lane.b32.xlu1 %v3005_v44, %s9030_s8  ;;  %3013 = vrot.lane.b32.xlu0 %v3004_v29, %s9030_s8  ;;  %v7404_v44 = vstv %s7341_s14  ;;  %s7481_s14 = sld [smem:[#allocation8 + $0x82]] }
 0x427   : > { %3017 = vrot.lane.b32.xlu2 %v3006_v21, %s9030_s8 }
 0x428   : > { %v2716_v31 = vpop.permute.xlu1 %2715  ;;  %v2714_v59 = vpop.permute.xlu0 %2713 }
 0x429   : > { %v2720_v41 = vsel %vm365_vm3, %v2716_v31, %v7250_v53  ;;  %v2719_v5 = vsel %vm365_vm3, %v7236_v61, %v2714_v59  ;;  %v2726_v16 = vadd.f32 %v2714_v59, %v7258_v51  ;;  %v7348_v62 = vpop.permute.xlu2 %2795  ;;  %v3417_v53 = vmul.f32 %v3416_v26, %v9078_v36  ;;  %v9082_v31 = vld [vmem:[#allocation21_spill] sm:$0xff] }
 0x42a   : > { %v7352_v25 = vadd.f32 %v2720_v41, %v2699_v8  ;;  %v2725_v24 = vadd.f32 %v2719_v5, %v2697_v56  ;;  %v3511_v61 = vmul.f32 %v3510_v11, %v9078_v36  ;;  %v3606_v51 = vmul.f32 %v3605_v28, %v9078_v36 }
 0x42b   : > { %v7379_v56 = vmul.f32 %v3416_v26, %v9080_v37  ;;  %v7401_v8 = vstv %s7332_s16  ;;  %v3423_v59 = vmul.f32 %v3422_v45, %v9082_v31  ;;  %v7411_v11 = vstv %s7350_s11  ;;  %s7488_s16 = sld [smem:[#allocation8 + $0x102]] }
 0x42c   : > { %v3065_v5 = vmul.f32 %v7254_v17, %v3064_v46  ;;  %v3517_v28 = vmul.f32 %v3516_v23, %v9082_v31  ;;  %v3612_v36 = vmul.f32 %v3611_v63, %v9082_v31  ;;  %v3897_v1 = vmul.f32 %v7411_v11, %v9082_v31  ;;  %s7705_s11 = sld [smem:[#allocation7 + $0x386]] }
 0x42e   : > { %3047 = vrot.lane.b32.xlu1 %v3038_v18, %s9013_s10  ;;  %3045 = vrot.lane.b32.xlu0 %v3037_v2, %s9013_s10  ;;  %v3040_v18 = vmul.f32 %v3036_v33, %v6890_v30  ;;  %v7432_v33 = vmul.f32 %v3700_v50, %v9081_v13 }
 0x42f   : > { %3049 = vrot.lane.b32.xlu2 %v3037_v2, %s9013_s10 }
 0x430   : > { %v2742_v0 = vpop.permute.xlu1 %2741  ;;  %v2740_v40 = vpop.permute.xlu0 %2739 }
 0x431   : > { %v2754_v29 = vadd.f32 %v2742_v0, %v2726_v16  ;;  %v2747_v21 = vsel %vm394_vm4, %v2740_v40, %v2742_v0  ;;  %v7407_v26 = vpop.permute.xlu2 %2801  ;;  %v3066_v16 = vmul.f32 %v3064_v46, %v6850_v49  ;;  %v3707_v0 = vmul.f32 %v7401_v8, %v9082_v31 }
 0x432   : > { %v2753_v41 = vadd.f32 %v2747_v21, %v2725_v24  ;;  %v7426_v24 = vmul.f32 %v3700_v50, %v9079_v48  ;;  %v7429_v40 = vmul.f32 %v3700_v50, %v9080_v37  ;;  %v7435_v21 = vmul.f32 %v3795_v27, %v9080_v37 }
 0x433   : > { %v7419_v2 = vadd.f32 %v7316_v14, %v2754_v29  ;;  %v7438_v29 = vmul.f32 %v3795_v27, %v9079_v48  ;;  %v7441_v49 = vmul.f32 %v3795_v27, %v9081_v13  ;;  %v3802_v50 = vmul.f32 %v7404_v44, %v9082_v31  ;;  %v9085_v48 = vld [vmem:[#allocation23_spill] sm:$0xff] }
 0x434   : > { %v7459_v27 = vadd.f32 %v3423_v59, %v3417_v53  ;;  %v7461_v37 = vadd.f32 %v3517_v28, %v3511_v61  ;;  %v7463_v13 = vadd.f32 %v3612_v36, %v3606_v51  ;;  %v7465_v47 = vadd.f32 %v3707_v0, %v3701_v39 }
 0x435   : > { %v3425_v31 = vmul.f32 %v3422_v45, %v9083_v15  ;;  %v3426_v55 = vmul.f32 %v3422_v45, %v9085_v48  ;;  %v3519_v53 = vmul.f32 %v3516_v23, %v9083_v15  ;;  %v3518_v28 = vmul.f32 %v3516_v23, %v9084_v19 }
 0x436   : > { %3073 = vrot.lane.b32.xlu1 %v3065_v5, %s9014_s27  ;;  %3051 = vrot.lane.b32.xlu0 %v3040_v18, %s9013_s10  ;;  %v3068_v36 = vmul.f32 %v3064_v46, %v6890_v30  ;;  %v3092_v0 = vstv %s7415_s0  ;;  %v3708_v46 = vmul.f32 %v7401_v8, %v9084_v19  ;;  %s7631_s10 = sld [smem:[#allocation8 + $0x3]]  ;;  %s9090_s0 = smov 123  }
 0x437   : > { %3075 = vrot.lane.b32.xlu2 %v3066_v16, %s9014_s27 }
 0x438   : > { %v2768_v18 = vpop.permute.xlu1 %2767  ;;  %v2746_v20 = vpop.permute.xlu0 %2745 }
 0x439   : > { %v2775_v61 = vsel %vm423_vm5, %v2768_v18, %v7316_v14  ;;  %v2748_v51 = vsel %vm394_vm4, %v7285_v10, %v2746_v20  ;;  %v2756_v39 = vadd.f32 %v2746_v20, %v7321_v57  ;;  %v7478_v59 = vpop.permute.xlu2 %2843  ;;  %v3520_v14 = vmul.f32 %v3516_v23, %v9085_v48 }
 0x43a   : > { %v7483_v16 = vadd.f32 %v2775_v61, %v2753_v41  ;;  %v2755_v45 = vadd.f32 %v2748_v51, %v7352_v25  ;;  %v3613_v10 = vmul.f32 %v3611_v63, %v9084_v19  ;;  %v3614_v20 = vmul.f32 %v3611_v63, %v9083_v15 }
 0x43b   : > { %v7496_v57 = vadd.f32 %v3802_v50, %v7361_v22  ;;  %v3615_v41 = vmul.f32 %v3611_v63, %v9085_v48  ;;  %v3709_v25 = vmul.f32 %v7401_v8, %v9083_v15  ;;  %v7506_v23 = vadd.f32 %v3897_v1, %v7373_v58 }
 0x43c   : > { %v3095_v18 = vmul.f32 %v7254_v17, %v3092_v0  ;;  %v7510_v61 = vadd.f32 %v3425_v31, %v7364_v12  ;;  %v7513_v22 = vadd.f32 %v3519_v53, %v7367_v32  ;;  %v3710_v63 = vmul.f32 %v7401_v8, %v9085_v48  ;;  %v7563_v53 = vld [vmem:[#allocation2 + $0x98] sm:$0xff] }
 0x43d   : > { %v7522_v1 = vadd.f32 %v3424_v38, %v7379_v56  ;;  %v7525_v58 = vadd.f32 %v3426_v55, %v7382_v4  ;;  %v7528_v12 = vadd.f32 %v3518_v28, %v7385_v54  ;;  %v7534_v32 = vadd.f32 %v3520_v14, %v7391_v6 }
 0x43e   : > { %3079 = vrot.lane.b32.xlu1 %v3068_v36, %s9014_s27  ;;  %3077 = vrot.lane.b32.xlu0 %v3065_v5, %s9014_s27  ;;  %v7537_v8 = vadd.f32 %v3613_v10, %v7394_v60  ;;  %v7540_v5 = vadd.f32 %v3614_v20, %v7370_v43  ;;  %v3803_v55 = vmul.f32 %v7404_v44, %v9084_v19  ;;  %v3432_v14 = vstv %s7467_s2  ;;  %s7642_s27 = sld [smem:[#allocation8 + $0x83]] }
 0x43f   : > { %3101 = vrot.lane.b32.xlu2 %v3095_v18, %s9015_s21  ;;  %v7545_v54 = vadd.f32 %v3615_v41, %v7398_v7  ;;  %v7548_v50 = vadd.f32 %v3709_v25, %v7426_v24  ;;  %v7551_v6 = vadd.f32 %v3708_v46, %v7429_v40  ;;  %v3804_v43 = vmul.f32 %v7404_v44, %v9083_v15  ;;  %s7785_s2 = sld [smem:[#allocation8 + $0x84]] }
 0x440   : > { %v2774_v56 = vpop.permute.xlu1 %2773  ;;  %v2772_v4 = vpop.permute.xlu0 %2771  ;;  %v7559_v7 = vadd.f32 %v3710_v63, %v7432_v33  ;;  %v3805_v24 = vmul.f32 %v7404_v44, %v9085_v48  ;;  %v3094_v51 = vmul.f32 %v7563_v53, %v3092_v0  ;;  %v3900_v28 = vmul.f32 %v7411_v11, %v9085_v48 }
 0x441   : > { %v2784_v60 = vadd.f32 %v2774_v56, %v2756_v39  ;;  %v2776_v31 = vsel %vm423_vm5, %v2772_v4, %v2774_v56  ;;  %v7556_v38 = vpop.permute.xlu2 %2849  ;;  %v3898_v39 = vmul.f32 %v7411_v11, %v9084_v19  ;;  %v3096_v33 = vmul.f32 %v3092_v0, %v6890_v30  ;;  %v9087_v56 = vld [vmem:[#allocation50_spill] sm:$0xff] }
 0x442   : > { %v2783_v40 = vadd.f32 %v2776_v31, %v2755_v45  ;;  %v7576_v44 = vadd.f32 %v3803_v55, %v7435_v21  ;;  %v3526_v45 = vstv %s7481_s14  ;;  %v3621_v10 = vstv %s7488_s16  ;;  %v9086_v21 = vld [vmem:[#allocation60_spill] sm:$0xff]  ;;  %s7799_s14 = sld [smem:[#allocation8 + $0x104]] }
 0x443   : > { %v7571_v36 = vadd.f32 %v7407_v26, %v2784_v60  ;;  %v7581_v20 = vstv %s7493_s9  ;;  %v7584_v41 = vadd.f32 %v3804_v43, %v7438_v29  ;;  %v7587_v19 = vstv %s7503_s5  ;;  %s7814_s16 = sld [smem:[#allocation8 + $0x184]]  ;;  %s9095_s5 = smov 122  }
 0x444   : > { %v7590_v48 = vstv %s7517_s28  ;;  %v7593_v25 = vadd.f32 %v3805_v24, %v7441_v49  ;;  %v3899_v30 = vmul.f32 %v7411_v11, %v9083_v15  ;;  %v3433_v0 = vmul.f32 %v3432_v14, %v9086_v21  ;;  %s7818_s9 = sld [smem:[#allocation7 + $0x387]] }
 0x445   : > { %v7601_v46 = vadd.f32 %v3898_v39, %v7444_v35  ;;  %v7604_v29 = vadd.f32 %v3900_v28, %v7447_v3  ;;  %v3120_v63 = vstv %s7530_s7  ;;  %v3527_v49 = vmul.f32 %v3526_v45, %v9086_v21  ;;  %v9088_v39 = vld [vmem:[#allocation45_spill] sm:$0xff]  ;;  %s7829_s28 = sld [smem:[#allocation8 + $0x204]] }
 0x446   : > { %3105 = vrot.lane.b32.xlu1 %v3095_v18, %s9015_s21  ;;  %3103 = vrot.lane.b32.xlu0 %v3094_v51, %s9015_s21  ;;  %v3622_v15 = vmul.f32 %v3621_v10, %v9086_v21  ;;  %v3717_v11 = vmul.f32 %v7581_v20, %v9086_v21  ;;  %v3435_v35 = vmul.f32 %v3432_v14, %v9087_v56  ;;  %s7842_s7 = sld [smem:[#allocation8 + $0x284]] }
 0x447   : > { %3107 = vrot.lane.b32.xlu2 %v3096_v33, %s9015_s21  ;;  %v3529_v4 = vmul.f32 %v3526_v45, %v9087_v56  ;;  %v3812_v3 = vmul.f32 %v7587_v19, %v9086_v21  ;;  %v3907_v43 = vmul.f32 %v7590_v48, %v9086_v21  ;;  %v3434_v28 = vmul.f32 %v3432_v14, %v9088_v39  ;;  %v9089_v21 = vld [vmem:[#allocation36_spill] sm:$0xff]  ;;  %s7656_s21 = sld [smem:[#allocation8 + $0x103]] }
 0x448   : > { %v2800_v18 = vpop.permute.xlu1 %2799  ;;  %v2798_v55 = vpop.permute.xlu0 %2797  ;;  %v3122_v52 = vmul.f32 %v7563_v53, %v3120_v63  ;;  %v3121_v9 = vmul.f32 %v7254_v17, %v3120_v63 }
 0x449   : > { %v2804_v60 = vsel %vm452_vm6, %v2800_v18, %v7407_v26  ;;  %v2803_v31 = vsel %vm452_vm6, %v7348_v62, %v2798_v55  ;;  %v2810_v24 = vadd.f32 %v2798_v55, %v7419_v2  ;;  %v7625_v51 = vpop.permute.xlu2 %2875  ;;  %v3436_v26 = vmul.f32 %v3432_v14, %v9089_v21 }
 0x44a   : > { %v2811_v33 = vadd.f32 %v2804_v60, %v2783_v40  ;;  %v2809_v42 = vadd.f32 %v2803_v31, %v7483_v16  ;;  %v3528_v18 = vmul.f32 %v3526_v45, %v9088_v39  ;;  %v3530_v62 = vmul.f32 %v3526_v45, %v9089_v21 }
 0x44b   : > { %v7637_v2 = vadd.f32 %v3899_v30, %v7456_v34  ;;  %v7640_v55 = vadd.f32 %v3433_v0, %v7459_v27  ;;  %v7645_v16 = vadd.f32 %v3527_v49, %v7461_v37  ;;  %v7648_v40 = vadd.f32 %v3622_v15, %v7463_v13 }
 0x44c   : > { %v7651_v14 = vadd.f32 %v3717_v11, %v7465_v47  ;;  %v7654_v45 = vadd.f32 %v3435_v35, %v7510_v61  ;;  %v3624_v34 = vmul.f32 %v3621_v10, %v9087_v56  ;;  %v7660_v27 = vadd.f32 %v3812_v3, %v7496_v57 }
 0x44d   : > { %v7663_v30 = vadd.f32 %v3907_v43, %v7506_v23  ;;  %v7668_v47 = vadd.f32 %v3434_v28, %v7522_v1  ;;  %v7671_v37 = vadd.f32 %v3529_v4, %v7513_v22  ;;  %v3623_v13 = vmul.f32 %v3621_v10, %v9088_v39  ;;  %v7702_v4 = vld [vmem:[#allocation2 + $0xb0] sm:$0xff] }
 0x44e   : > { %3131 = vrot.lane.b32.xlu1 %v3122_v52, %s8939_s30  ;;  %3129 = vrot.lane.b32.xlu0 %v3121_v9, %s8939_s30  ;;  %v3148_v61 = vstv %s7607_s1  ;;  %v7679_v57 = vadd.f32 %v3436_v26, %v7525_v58  ;;  %v7682_v52 = vadd.f32 %v3528_v18, %v7528_v12  ;;  %v7685_v23 = vadd.f32 %v3530_v62, %v7534_v32  ;;  %s7854_s1 = sld [smem:[#allocation7 + $0x388]] }
 0x44f   : > { %3133 = vrot.lane.b32.xlu2 %v3121_v9, %s8939_s30  ;;  %v3625_v0 = vmul.f32 %v3621_v10, %v9089_v21  ;;  %v3719_v49 = vmul.f32 %v7581_v20, %v9087_v56  ;;  %v3718_v9 = vmul.f32 %v7581_v20, %v9088_v39  ;;  %v3720_v58 = vmul.f32 %v7581_v20, %v9089_v21 }
 0x450   : > { %v2822_v22 = vpop.permute.xlu1 %2821  ;;  %v2820_v1 = vpop.permute.xlu0 %2819  ;;  %v3149_v10 = vmul.f32 %v7254_v17, %v3148_v61  ;;  %v3124_v3 = vmul.f32 %v7702_v4, %v3120_v63  ;;  %v3813_v20 = vmul.f32 %v7587_v19, %v9088_v39  ;;  %v3150_v43 = vmul.f32 %v7563_v53, %v3148_v61 }
 0x451   : > { %v2827_v12 = vadd.f32 %v2822_v22, %v2811_v33  ;;  %v2828_v32 = vadd.f32 %v2822_v22, %v7571_v36  ;;  %v2825_v15 = vadd.f32 %v2820_v1, %v2809_v42  ;;  %v2826_v11 = vadd.f32 %v2820_v1, %v2810_v24  ;;  %v7699_v35 = vpop.permute.xlu2 %2901  ;;  %v9091_v22 = vld [vmem:[#allocation49_spill] sm:$0xff] }
 0x452   : > { %v3814_v42 = vmul.f32 %v7587_v19, %v9087_v56  ;;  %v7716_v60 = vadd.f32 %v3623_v13, %v7537_v8  ;;  %v3815_v63 = vmul.f32 %v7587_v19, %v9089_v21  ;;  %v7721_v31 = vadd.f32 %v3625_v0, %v7545_v54 }
 0x453   : > { %v7712_v36 = vadd.f32 %v7478_v59, %v2825_v15  ;;  %v7724_v24 = vadd.f32 %v3624_v34, %v7540_v5  ;;  %v7727_v28 = vadd.f32 %v3719_v49, %v7548_v50  ;;  %v7730_v33 = vadd.f32 %v3718_v9, %v7551_v6 }
 0x454   : > { %v3442_v26 = vstv %s7631_s10  ;;  %v3536_v18 = vstv %s7642_s27  ;;  %v3631_v8 = vstv %s7656_s21  ;;  %v7736_v62 = vadd.f32 %v3720_v58, %v7559_v7  ;;  %s9097_s10 = smov 121   ;;  %s7973_s27 = sld [smem:[#allocation7 + $0x389]] }
 0x455   : > { %v7741_v54 = vstv %s7674_s6  ;;  %v7744_v5 = vadd.f32 %v3813_v20, %v7576_v44  ;;  %v7747_v50 = vadd.f32 %v3814_v42, %v7584_v41  ;;  %v3908_v6 = vmul.f32 %v7590_v48, %v9088_v39  ;;  %s9098_s21 = smov 120   ;;  %s7986_s6 = sld [smem:[#allocation8 + $0x5]] }
 0x456   : > { %3157 = vrot.lane.b32.xlu1 %v3149_v10, %s9090_s0  ;;  %3135 = vrot.lane.b32.xlu0 %v3124_v3, %s8939_s30  ;;  %v7753_v7 = vstv %s7687_s20  ;;  %v7756_v19 = vadd.f32 %v3815_v63, %v7593_v25  ;;  %v3910_v34 = vmul.f32 %v7590_v48, %v9089_v21  ;;  %v3909_v44 = vmul.f32 %v7590_v48, %v9087_v56  ;;  %s7780_s30 = sld [smem:[#allocation8 + $0x4]] }
 0x457   : > { %3159 = vrot.lane.b32.xlu2 %v3150_v43, %s9090_s0  ;;  %v3443_v1 = vmul.f32 %v3442_v26, %v9091_v22  ;;  %v3537_v39 = vmul.f32 %v3536_v18, %v9091_v22  ;;  %v3632_v0 = vmul.f32 %v3631_v8, %v9091_v22  ;;  %v7766_v49 = vstv %s7696_s22  ;;  %s8000_s20 = sld [smem:[#allocation8 + $0x85]] }
 0x458   : > { %v2848_v13 = vpop.permute.xlu1 %2847  ;;  %v2846_v41 = vpop.permute.xlu0 %2845  ;;  %v3727_v48 = vmul.f32 %v7741_v54, %v9091_v22  ;;  %v3152_v3 = vmul.f32 %v7702_v4, %v3148_v61  ;;  %v3176_v20 = vstv %s7705_s11  ;;  %v9092_v61 = vld [vmem:[#allocation54_spill] sm:$0xff]  ;;  %v3917_v43 = vmul.f32 %v7766_v49, %v9091_v22  ;;  %s8008_s22 = sld [smem:[#allocation8 + $0x105]] }
 0x459   : > { %v2852_v25 = vsel %vm501_vm7, %v2848_v13, %v7556_v38  ;;  %v2859_v9 = vadd.f32 %v2848_v13, %v2827_v12  ;;  %v2851_v21 = vsel %vm501_vm7, %v7478_v59, %v2846_v41  ;;  %v7772_v58 = vpop.permute.xlu2 %2927  ;;  %v3822_v59 = vmul.f32 %v7753_v7, %v9091_v22  ;;  %s8017_s11 = sld [smem:[#allocation8 + $0x185]] }
 0x45a   : > { %v7776_v56 = vadd.f32 %v2852_v25, %v2828_v32  ;;  %v2858_v15 = vadd.f32 %v2851_v21, %v2826_v11  ;;  %v7790_v38 = vadd.f32 %v3908_v6, %v7601_v46  ;;  %v7793_v12 = vadd.f32 %v3910_v34, %v7604_v29  ;;  %v9094_v34 = vld [vmem:[#allocation24_spill] sm:$0xff] }
 0x45b   : > { %v7783_v42 = vadd.f32 %v7625_v51, %v2859_v9  ;;  %v7796_v32 = vadd.f32 %v3443_v1, %v7640_v55  ;;  %v3445_v11 = vmul.f32 %v3442_v26, %v9092_v61  ;;  %v7804_v63 = vadd.f32 %v3909_v44, %v7637_v2  ;;  %v9093_v2 = vld [vmem:[#allocation32_spill] sm:$0xff] }
 0x45c   : > { %v3179_v13 = vmul.f32 %v7254_v17, %v3176_v20  ;;  %v7808_v46 = vadd.f32 %v3537_v39, %v7645_v16  ;;  %v3539_v29 = vmul.f32 %v3536_v18, %v9092_v61  ;;  %v7812_v55 = vadd.f32 %v3632_v0, %v7648_v40 }
 0x45d   : > { %v3444_v6 = vmul.f32 %v3442_v26, %v9093_v2  ;;  %v3446_v17 = vmul.f32 %v3442_v26, %v9094_v34  ;;  %v7823_v16 = vadd.f32 %v3727_v48, %v7651_v14  ;;  %v3538_v40 = vmul.f32 %v3536_v18, %v9093_v2 }
 0x45e   : > { %3163 = vrot.lane.b32.xlu1 %v3152_v3, %s9090_s0  ;;  %3161 = vrot.lane.b32.xlu0 %v3149_v10, %s9090_s0  ;;  %v3540_v44 = vmul.f32 %v3536_v18, %v9094_v34  ;;  %v3633_v41 = vmul.f32 %v3631_v8, %v9093_v2  ;;  %v7832_v10 = vadd.f32 %v3822_v59, %v7660_v27  ;;  %s8032_s0 = sld [smem:[#allocation8 + $0x205]] }
 0x45f   : > { %3185 = vrot.lane.b32.xlu2 %v3179_v13, %s9095_s5  ;;  %v7835_v26 = vadd.f32 %v3445_v11, %v7654_v45  ;;  %v3635_v14 = vmul.f32 %v3631_v8, %v9094_v34  ;;  %v3634_v39 = vmul.f32 %v3631_v8, %v9092_v61  ;;  %v7840_v0 = vadd.f32 %v3917_v43, %v7663_v30 }
 0x460   : > { %v2874_v22 = vpop.permute.xlu1 %2873  ;;  %v2872_v1 = vpop.permute.xlu0 %2871  ;;  %v7849_v9 = vadd.f32 %v3539_v29, %v7671_v37  ;;  %v3729_v45 = vmul.f32 %v7741_v54, %v9092_v61  ;;  %v3178_v30 = vmul.f32 %v7563_v53, %v3176_v20  ;;  %v7857_v21 = vadd.f32 %v3444_v6, %v7668_v47 }
 0x461   : > { %v2879_v18 = vsel %vm530_vm8, %v2872_v1, %v2874_v22  ;;  %v2885_v25 = vadd.f32 %v2872_v1, %v7712_v36  ;;  %v7846_v27 = vpop.permute.xlu2 %2933  ;;  %v7860_v36 = vadd.f32 %v3446_v17, %v7679_v57  ;;  %v3180_v48 = vmul.f32 %v7702_v4, %v3176_v20 }
 0x462   : > { %v2886_v8 = vadd.f32 %v2879_v18, %v2858_v15  ;;  %v7864_v37 = vadd.f32 %v3538_v40, %v7682_v52  ;;  %v7867_v3 = vadd.f32 %v3540_v44, %v7685_v23  ;;  %v7870_v15 = vadd.f32 %v3633_v41, %v7716_v60  ;;  %v9096_v44 = vld [vmem:[#allocation53_spill] sm:$0xff] }
 0x463   : > { %v7873_v59 = vadd.f32 %v3635_v14, %v7721_v31  ;;  %v7876_v47 = vadd.f32 %v3634_v39, %v7724_v24  ;;  %v3728_v57 = vmul.f32 %v7741_v54, %v9093_v2  ;;  %v3730_v52 = vmul.f32 %v7741_v54, %v9094_v34 }
 0x464   : > { %v3452_v20 = vstv %s7780_s30  ;;  %v7884_v23 = vstv %s7785_s2  ;;  %v7887_v60 = vadd.f32 %v3729_v45, %v7727_v28  ;;  %v3823_v31 = vmul.f32 %v7753_v7, %v9093_v2  ;;  %s8049_s30 = sld [smem:[#allocation8 + $0x285]] }
 0x465   : > { %v3204_v24 = vstv %s7818_s9  ;;  %v3824_v11 = vmul.f32 %v7753_v7, %v9092_v61  ;;  %v3825_v54 = vmul.f32 %v7753_v7, %v9094_v34  ;;  %v3918_v28 = vmul.f32 %v7766_v49, %v9093_v2  ;;  %s8062_s2 = sld [smem:[#allocation7 + $0x38a]] }
 0x466   : > { %3189 = vrot.lane.b32.xlu1 %v3179_v13, %s9095_s5  ;;  %3187 = vrot.lane.b32.xlu0 %v3178_v30, %s9095_s5  ;;  %v7902_v43 = vstv %s7799_s14  ;;  %v7905_v29 = vstv %s7814_s16  ;;  %v3920_v13 = vmul.f32 %v7766_v49, %v9094_v34  ;;  %v3919_v6 = vmul.f32 %v7766_v49, %v9092_v61  ;;  %s8105_s14 = sld [smem:[#allocation8 + $0x6]] }
 0x467   : > { %3191 = vrot.lane.b32.xlu2 %v3180_v48, %s9095_s5  ;;  %v3453_v7 = vmul.f32 %v3452_v20, %v9096_v44  ;;  %v3547_v2 = vmul.f32 %v7884_v23, %v9096_v44  ;;  %v7915_v41 = vstv %s7829_s28  ;;  %v7918_v22 = vstv %s7842_s7  ;;  %s8114_s16 = sld [smem:[#allocation8 + $0x86]] }
 0x468   : > { %v2900_v17 = vpop.permute.xlu1 %2899  ;;  %v2878_v40 = vpop.permute.xlu0 %2877  ;;  %v3206_v49 = vmul.f32 %v7702_v4, %v3204_v24  ;;  %v3205_v45 = vmul.f32 %v7563_v53, %v3204_v24  ;;  %v3220_v30 = vstv %s7854_s1  ;;  %v7950_v24 = vadd.f32 %v3824_v11, %v7747_v50  ;;  %s8128_s9 = sld [smem:[#allocation8 + $0x106]] }
 0x469   : > { %v2907_v1 = vsel %vm559_vm9, %v2900_v17, %v7699_v35  ;;  %v2913_v14 = vadd.f32 %v2900_v17, %v2885_v25  ;;  %v2880_v34 = vsel %vm530_vm8, %v7625_v51, %v2878_v40  ;;  %v7925_v61 = vpop.permute.xlu2 %2959  ;;  %v3221_v35 = vmul.f32 %v7563_v53, %v3220_v30  ;;  %s8143_s5 = sld [smem:[#allocation8 + $0x186]] }
 0x46a   : > { %v7927_v39 = vadd.f32 %v2907_v1, %v2886_v8  ;;  %v2888_v18 = vadd.f32 %v2880_v34, %v7776_v56  ;;  %v3642_v25 = vmul.f32 %v7902_v43, %v9096_v44  ;;  %v3737_v51 = vmul.f32 %v7905_v29, %v9096_v44  ;;  %v8005_v34 = vld [vmem:[#allocation2 + $0xa0] sm:$0xff]  ;;  %s8151_s28 = sld [smem:[#allocation8 + $0x206]] }
 0x46b   : > { %v7933_v48 = vadd.f32 %v7772_v58, %v2913_v14  ;;  %v7941_v17 = vadd.f32 %v3728_v57, %v7730_v33  ;;  %v7944_v8 = vadd.f32 %v3730_v52, %v7736_v62  ;;  %v7947_v56 = vadd.f32 %v3823_v31, %v7744_v5  ;;  %v9100_v31 = vld [vmem:[#allocation26_spill] sm:$0xff]  ;;  %s8161_s7 = sld [smem:[#allocation7 + $0x38b]] }
 0x46c   : > { %v7953_v40 = vadd.f32 %v3825_v54, %v7756_v19  ;;  %v7956_v1 = vadd.f32 %v3918_v28, %v7790_v38  ;;  %v7959_v14 = vadd.f32 %v3920_v13, %v7793_v12  ;;  %v7962_v33 = vadd.f32 %v3919_v6, %v7804_v63  ;;  %v9099_v19 = vld [vmem:[#allocation55_spill] sm:$0xff]  ;;  %v9101_v54 = vld [vmem:[#allocation61_spill] sm:$0xff]  ;;  %s8168_s1 = sld [smem:[#allocation8 + $0x286]] }
 0x46d   : > { %v7967_v62 = vadd.f32 %v3453_v7, %v7796_v32  ;;  %v3832_v5 = vmul.f32 %v7915_v41, %v9096_v44  ;;  %v3927_v50 = vmul.f32 %v7918_v22, %v9096_v44  ;;  %v3455_v38 = vmul.f32 %v3452_v20, %v9099_v19 }
 0x46e   : > { %3211 = vrot.lane.b32.xlu1 %v3206_v49, %s9097_s10  ;;  %3209 = vrot.lane.b32.xlu0 %v3205_v45, %s9097_s10  ;;  %v7978_v12 = vadd.f32 %v3547_v2, %v7808_v46  ;;  %v7981_v63 = vadd.f32 %v3642_v25, %v7812_v55  ;;  %v7984_v32 = vadd.f32 %v3737_v51, %v7823_v16  ;;  %v8012_v45 = vld [vmem:[#allocation2 + $0xb8] sm:$0xff]  ;;  %s8174_s10 = sld [smem:[#allocation8 + $0x306]] }
 0x46f   : > { %3229 = vrot.lane.b32.xlu2 %v3221_v35, %s9098_s21  ;;  %v3454_v11 = vmul.f32 %v3452_v20, %v9100_v31  ;;  %v3456_v28 = vmul.f32 %v3452_v20, %v9101_v54  ;;  %v3549_v13 = vmul.f32 %v7884_v23, %v9099_v19  ;;  %v3644_v46 = vmul.f32 %v7902_v43, %v9099_v19 }
 0x470   : > { %v2906_v57 = vpop.permute.xlu1 %2905  ;;  %v2904_v52 = vpop.permute.xlu0 %2903  ;;  %v3548_v44 = vmul.f32 %v7884_v23, %v9100_v31  ;;  %v3550_v20 = vmul.f32 %v7884_v23, %v9101_v54  ;;  %v3223_v2 = vmul.f32 %v7702_v4, %v3220_v30  ;;  %v3222_v49 = vmul.f32 %v8005_v34, %v3220_v30 }
 0x471   : > { %v2908_v55 = vsel %vm559_vm9, %v2904_v52, %v2906_v57  ;;  %v2915_v6 = vadd.f32 %v2904_v52, %v7783_v42  ;;  %v7996_v16 = vpop.permute.xlu2 %2985  ;;  %v3643_v42 = vmul.f32 %v7902_v43, %v9100_v31  ;;  %v3224_v35 = vmul.f32 %v8012_v45, %v3220_v30 }
 0x472   : > { %v2916_v7 = vadd.f32 %v2908_v55, %v2888_v18  ;;  %v3645_v25 = vmul.f32 %v7902_v43, %v9101_v54  ;;  %v3739_v23 = vmul.f32 %v7905_v29, %v9099_v19  ;;  %v8022_v18 = vadd.f32 %v3832_v5, %v7832_v10 }
 0x473   : > { %v8025_v51 = vadd.f32 %v3455_v38, %v7835_v26  ;;  %v8028_v57 = vadd.f32 %v3549_v13, %v7849_v9  ;;  %v3738_v30 = vmul.f32 %v7905_v29, %v9100_v31  ;;  %v8035_v43 = vadd.f32 %v3927_v50, %v7840_v0 }
 0x474   : > { %v8038_v52 = vadd.f32 %v3454_v11, %v7857_v21  ;;  %v8041_v10 = vadd.f32 %v3456_v28, %v7860_v36  ;;  %v8044_v26 = vadd.f32 %v3548_v44, %v7864_v37  ;;  %v8047_v9 = vadd.f32 %v3550_v20, %v7867_v3 }
 0x475   : > { %v8054_v0 = vadd.f32 %v3643_v42, %v7870_v15  ;;  %v8057_v21 = vadd.f32 %v3644_v46, %v7876_v47  ;;  %v3740_v36 = vmul.f32 %v7905_v29, %v9101_v54  ;;  %v3248_v37 = vstv %s7973_s27  ;;  %s8180_s27 = sld [smem:[#allocation8 + $0x386]] }
 0x476   : > { %3233 = vrot.lane.b32.xlu1 %v3223_v2, %s9098_s21  ;;  %3231 = vrot.lane.b32.xlu0 %v3222_v49, %s9098_s21  ;;  %v8066_v3 = vadd.f32 %v3645_v25, %v7873_v59  ;;  %v8069_v5 = vadd.f32 %v3739_v23, %v7887_v60  ;;  %v3833_v15 = vmul.f32 %v7915_v41, %v9100_v31  ;;  %v3462_v20 = vstv %s7986_s6  ;;  %v9102_v25 = vld [vmem:[#allocation57_spill] sm:$0xff]  ;;  %s8274_s6 = sld [smem:[#allocation7 + $0x38d]] }
 0x477   : > { %3235 = vrot.lane.b32.xlu2 %v3224_v35, %s9098_s21  ;;  %v8074_v38 = vadd.f32 %v3738_v30, %v7941_v17  ;;  %v3834_v29 = vmul.f32 %v7915_v41, %v9099_v19  ;;  %v3835_v11 = vmul.f32 %v7915_v41, %v9101_v54  ;;  %v3928_v59 = vmul.f32 %v7918_v22, %v9100_v31  ;;  %s8267_s21 = sld [smem:[#allocation7 + $0x380]] }
 0x478   : > { %v2932_v50 = vpop.permute.xlu1 %2931  ;;  %v2930_v47 = vpop.permute.xlu0 %2929  ;;  %v3930_v46 = vmul.f32 %v7918_v22, %v9101_v54  ;;  %v3250_v31 = vmul.f32 %v8005_v34, %v3248_v37  ;;  %v8100_v44 = vadd.f32 %v3740_v36, %v7944_v8  ;;  %v3929_v54 = vmul.f32 %v7918_v22, %v9099_v19 }
 0x479   : > { %v2936_v60 = vsel %vm588_vm10, %v2932_v50, %v7846_v27  ;;  %v2943_v28 = vadd.f32 %v2932_v50, %v2915_v6  ;;  %v2935_v13 = vsel %vm588_vm10, %v7772_v58, %v2930_v47  ;;  %v8086_v17 = vpop.permute.xlu2 %3011  ;;  %v3249_v27 = vmul.f32 %v7563_v53, %v3248_v37 }
 0x47a   : > { %v8090_v55 = vadd.f32 %v2936_v60, %v2916_v7  ;;  %v2942_v41 = vadd.f32 %v2935_v13, %v7927_v39  ;;  %v3251_v58 = vmul.f32 %v7702_v4, %v3248_v37  ;;  %v3556_v39 = vstv %s8000_s20  ;;  %s4478_s20 = sld [smem:[#allocation8 + $0x207]] }
 0x47b   : > { %v8096_v6 = vadd.f32 %v7925_v61, %v2943_v28  ;;  %v8109_v7 = vadd.f32 %v3833_v15, %v7947_v56  ;;  %v8112_v2 = vadd.f32 %v3834_v29, %v7950_v24  ;;  %v3651_v49 = vstv %s8008_s22  ;;  %s4488_s22 = sld [smem:[#allocation8 + $0x287]] }
 0x47c   : > { %v8118_v42 = vstv %s8017_s11  ;;  %v8121_v8 = vstv %s8032_s0  ;;  %v8124_v35 = vstv %s8049_s30  ;;  %v8131_v22 = vadd.f32 %v3835_v11, %v7953_v40  ;;  %s4498_s11 = sld [smem:[#allocation8 + $0x307]]  ;;  %s4809_s30 = smov 7  }
 0x47d   : > { %v8134_v56 = vadd.f32 %v3928_v59, %v7956_v1  ;;  %v8137_v24 = vadd.f32 %v3930_v46, %v7959_v14  ;;  %v3276_v19 = vstv %s8062_s2  ;;  %v3463_v23 = vmul.f32 %v3462_v20, %v9102_v25  ;;  %v9105_v59 = vld [vmem:[#allocation40_spill] sm:$0xff]  ;;  %s4508_s0 = sld [smem:[#allocation8 + $0x387]]  ;;  %s4314_s2 = sshll.u32 %s4936_s18, 7 }
 0x47e   : > { %3259 = vrot.lane.b32.xlu1 %v3250_v31, %s9063_s4  ;;  %3257 = vrot.lane.b32.xlu0 %v3249_v27, %s9063_s4  ;;  %v3557_v30 = vmul.f32 %v3556_v39, %v9102_v25  ;;  %v8146_v36 = vadd.f32 %v3929_v54, %v7962_v33  ;;  %v3652_v1 = vmul.f32 %v3651_v49, %v9102_v25  ;;  %v9106_v27 = vld [vmem:[#allocation66_spill] sm:$0xff] }
 0x47f   : > { %3261 = vrot.lane.b32.xlu2 %v3251_v58, %s9063_s4  ;;  %v3747_v14 = vmul.f32 %v8118_v42, %v9102_v25  ;;  %v3842_v50 = vmul.f32 %v8121_v8, %v9102_v25  ;;  %v3937_v47 = vmul.f32 %v8124_v35, %v9102_v25  ;;  %v3465_v60 = vmul.f32 %v3462_v20, %v9105_v59  ;;  %v9107_v25 = vld [vmem:[#allocation62_spill] sm:$0xff] }
 0x480   : > { %9103 = vst [vmem:[#allocation48_spill] sm:$0xff] %v8146_v36  ;;  %v2958_v40 = vpop.permute.xlu1 %2957  ;;  %v2956_v15 = vpop.permute.xlu0 %2955  ;;  %v3559_v28 = vmul.f32 %v3556_v39, %v9105_v59  ;;  %v3277_v46 = vmul.f32 %v7563_v53, %v3276_v19  ;;  %v3252_v31 = vmul.f32 %v8012_v45, %v3248_v37  ;;  %v3464_v58 = vmul.f32 %v3462_v20, %v9106_v27 }
 0x481   : > { %v2963_v29 = vsel %vm617_vm11, %v2956_v15, %v2958_v40  ;;  %v2969_v33 = vadd.f32 %v2956_v15, %v7933_v48  ;;  %v8159_v11 = vpop.permute.xlu2 %3017  ;;  %v3278_v54 = vmul.f32 %v8005_v34, %v3276_v19  ;;  %v3467_v48 = vadd.f32 %v3463_v23, %v7967_v62 }
 0x482   : > { %9104 = vst [vmem:[#allocation34_spill] sm:$0xff] %v8159_v11  ;;  %v2970_v13 = vadd.f32 %v2963_v29, %v2942_v41  ;;  %v3466_v40 = vmul.f32 %v3462_v20, %v9107_v25  ;;  %v3558_v15 = vmul.f32 %v3556_v39, %v9106_v27  ;;  %v3561_v41 = vadd.f32 %v3557_v30, %v7978_v12 }
 0x483   : > { %v3656_v29 = vadd.f32 %v3652_v1, %v7981_v63  ;;  %v3751_v37 = vadd.f32 %v3747_v14, %v7984_v32  ;;  %v3846_v11 = vadd.f32 %v3842_v50, %v8022_v18  ;;  %v8183_v36 = vadd.f32 %v3465_v60, %v8025_v51 }
 0x484   : > { %v8186_v62 = vadd.f32 %v3559_v28, %v8028_v57  ;;  %v8189_v20 = vmul.f32 %v3651_v49, %v9105_v59  ;;  %v3941_v12 = vadd.f32 %v3937_v47, %v8035_v43  ;;  %v8195_v63 = vadd.f32 %v3464_v58, %v8038_v52 }
 0x485   : > { %9108 = vst [vmem:[#allocation43_spill] sm:$0xff] %v8183_v36  ;;  %v8198_v32 = vmul.f32 %v3556_v39, %v9107_v25  ;;  %v8201_v18 = vmul.f32 %v3651_v49, %v9106_v27  ;;  %v8205_v51 = vadd.f32 %v3466_v40, %v8041_v10  ;;  %v8208_v57 = vadd.f32 %v3558_v15, %v8044_v26 }
 0x486   : > { %9109 = vst [vmem:[#allocation20_spill] sm:$0xff] %v8186_v62  ;;  %3285 = vrot.lane.b32.xlu1 %v3277_v46, %s9049_s26  ;;  %3263 = vrot.lane.b32.xlu0 %v3252_v31, %s9063_s4  ;;  %v8211_v43 = vmul.f32 %v3651_v49, %v9107_v25  ;;  %v8215_v52 = vmul.f32 %v8118_v42, %v9105_v59  ;;  %v8220_v1 = vstv %s8105_s14  ;;  %v8223_v26 = vstv %s8114_s16  ;;  %s8259_s4 = sld [smem:[#allocation7 + $0x38c]]  ;;  %s8697_s14 = scalar_lea.vmem [#allocation10], %s4314_s2 }
 0x487   : > { %9110 = vst [vmem:[#allocation51_spill] sm:$0xff] %v8195_v63  ;;  %3287 = vrot.lane.b32.xlu2 %v3278_v54, %s9049_s26  ;;  %v3280_v30 = vmul.f32 %v8012_v45, %v3276_v19  ;;  %v3279_v10 = vmul.f32 %v7702_v4, %v3276_v19  ;;  %v8232_v60 = vstv %s8128_s9  ;;  %v3304_v46 = vstv %s8161_s7  ;;  %s4517_s16 = sshll.u32 %s4780_s15, 7  ;;  %s4189_s7 = sshll.u32 %s8697_s14, 4  ;;  %s4190_s7 = int_to_ptr.vmem [resolvable:$true] %s4189_s7 }
 0x488   : > { %9111 = vst [vmem:[#allocation52_spill] sm:$0xff] %v8205_v51  ;;  %v2984_v39 = vpop.permute.xlu1 %2983  ;;  %v2962_v23 = vpop.permute.xlu0 %2961  ;;  %v8239_v31 = vstv %s8143_s5  ;;  %v8244_v54 = vstv %s8151_s28  ;;  %v8254_v40 = vstv %s8174_s10  ;;  %s4188_s28 = scalar_lea.hbm %s8771_s3, %s4517_s16  ;;  %s4175_s15 = scalar_lea.sflag [#allocation5], %s4936_s18 }
 0x489   : > { %9112 = vst [vmem:[#allocation27_spill] sm:$0xff] %v8208_v57  ;;  %v2991_v49 = vsel %vm646_vm12, %v2984_v39, %v7996_v16  ;;  %v2997_v14 = vadd.f32 %v2984_v39, %v2969_v33  ;;  %v2964_v50 = vsel %vm617_vm11, %v7925_v61, %v2962_v23  ;;  %v8229_v47 = vpop.permute.xlu2 %3049  ;;  %v3305_v16 = vmul.f32 %v7563_v53, %v3304_v46 }
 0x48a   : > { %9113 = vst [vmem:[#allocation28_spill] sm:$0xff] %v8229_v47  ;;  %v8234_v28 = vadd.f32 %v2991_v49, %v2970_v13  ;;  %v2972_v19 = vadd.f32 %v2964_v50, %v8090_v55  ;;  %v8247_v33 = vstv %s8168_s1  ;;  %v3748_v61 = vmul.f32 %v8118_v42, %v9106_v27  ;;  %s4191_s1 = sshll.u32 %s4188_s28, 4  ;;  %s4192_s1 = int_to_ptr.hbm [resolvable:$true] %s4191_s1 }
 0x48b   : > { %v3025_v58 = vadd.f32 %v8086_v17, %v2997_v14  ;;  %9114 = vst [vmem:[#allocation30_spill] sm:$0xff] %v8244_v54  ;;  %v3750_v13 = vmul.f32 %v8118_v42, %v9107_v25  ;;  %v8257_v55 = vstv %s8180_s27  ;;  %v3843_v42 = vmul.f32 %v8121_v8, %v9106_v27  ;;  %s4712_s10 = sshra.s32 %s4192_s1, 4  ;;  %s4713_s10 = int_to_ptr.hbm [resolvable:$true] %s4712_s10 }
 0x48c   : > { %9115 = vst [vmem:[#allocation56_spill] sm:$0xff] %v8247_v33  ;;  %s4714_s27 = scalar_lea.hbm %s4713_s10, 128  ;;  %p4719_p11 = scmp.lt.s32.totalorder %s4713_s10, %s8771_s3 }
 0x48d   : > { %v3473_v15 = vmul.f32 %v8220_v1, %v3025_v58  ;;  %v3567_v39 = vmul.f32 %v8223_v26, %v3025_v58  ;;  %v3662_v23 = vmul.f32 %v8232_v60, %v3025_v58  ;;  %v3757_v49 = vmul.f32 %v8239_v31, %v3025_v58  ;;  %p4715_p3 = scmp.ne.s32.totalorder %s4713_s10, %s4714_s27 }
 0x48e   : > { %3291 = vrot.lane.b32.xlu1 %v3280_v30, %s9049_s26  ;;  %3289 = vrot.lane.b32.xlu0 %v3279_v10, %s9049_s26  ;;  %v3852_v14 = vmul.f32 %v8244_v54, %v3025_v58  ;;  %v3947_v50 = vmul.f32 %v8247_v33, %v3025_v58  ;;  %v4042_v33 = vmul.f32 %v8254_v40, %v3025_v58  ;;  %s4468_s26 = sld [smem:[#allocation8 + $0x187]] }
 0x48f   : > { %3313 = vrot.lane.b32.xlu2 %v3305_v16, %s9051_s29  ;;  %v8276_v47 = vadd.f32 %v3473_v15, %v3467_v48  ;;  %v8278_v57 = vadd.f32 %v3567_v39, %v3561_v41  ;;  %v8280_v30 = vadd.f32 %v3662_v23, %v3656_v29  ;;  %v8282_v10 = vadd.f32 %v3757_v49, %v3751_v37  ;;  %v9116_v15 = vld [vmem:[#allocation37_spill] sm:$0xff]  ;;  %v9117_v23 = vld [vmem:[#allocation39_spill] sm:$0xff]  ;;  %p4716_p7 = pnand %p4715_p3, %p4884_p8 }
 0x490   : > { %v2990_v51 = vpop.permute.xlu1 %2989  ;;  %v2988_v63 = vpop.permute.xlu0 %2987  ;;  %v8284_v62 = vadd.f32 %v3852_v14, %v3846_v11  ;;  %v8286_v36 = vadd.f32 %v3947_v50, %v3941_v12  ;;  %v4137_v16 = vmul.f32 %v8257_v55, %v3025_v58  ;;  %v3307_v41 = vmul.f32 %v7702_v4, %v3304_v46 }
 0x491   : > { %v2992_v54 = vsel %vm646_vm12, %v2988_v63, %v2990_v51  ;;  %v2999_v48 = vadd.f32 %v2988_v63, %v8096_v6  ;;  %v8293_v29 = vpop.permute.xlu2 %3075  ;;  %v3844_v37 = vmul.f32 %v8121_v8, %v9105_v59  ;;  %v3306_v12 = vmul.f32 %v8005_v34, %v3304_v46  ;;  %p4717_p10 = pneg %p4716_p7 }
 0x492   : > { %v3000_v11 = vadd.f32 %v2992_v54, %v2972_v19  ;;  %v8299_v39 = vadd.f32 %v4042_v33, %v9116_v15  ;;  %v8302_v58 = vadd.f32 %v4137_v16, %v9117_v23  ;;  %v3308_v6 = vmul.f32 %v8012_v45, %v3304_v46 }
 0x493   : > { %v3845_v63 = vmul.f32 %v8121_v8, %v9107_v25  ;;  %v3938_v51 = vmul.f32 %v8124_v35, %v9106_v27  ;;  %v3940_v19 = vmul.f32 %v8124_v35, %v9107_v25  ;;  %v3564_v54 = vadd.f32 %v8198_v32, %v8047_v9 }
 0x494   : > { %v3657_v33 = vadd.f32 %v8201_v18, %v8054_v0  ;;  %v3658_v49 = vadd.f32 %v8189_v20, %v8057_v21  ;;  %v3939_v46 = vmul.f32 %v8124_v35, %v9105_v59  ;;  %v3332_v8 = vstv %s8259_s4  ;;  %v9118_v18 = vld [vmem:[#allocation48_spill] sm:$0xff] }
 0x495   : > { %v3659_v27 = vadd.f32 %v8211_v43, %v8066_v3  ;;  %v3753_v14 = vadd.f32 %v8215_v52, %v8069_v5  ;;  %v8325_v25 = vadd.f32 %v3748_v61, %v8074_v38  ;;  %v8330_v9 = vstv %s8267_s21  ;;  %v9119_v52 = vld [vmem:[#allocation34_spill] sm:$0xff] }
 0x496   : > { %3317 = vrot.lane.b32.xlu1 %v3307_v41, %s9051_s29  ;;  %3315 = vrot.lane.b32.xlu0 %v3306_v12, %s9051_s29  ;;  %v3754_v0 = vadd.f32 %v3750_v13, %v8100_v44  ;;  %v3847_v21 = vadd.f32 %v3843_v42, %v8109_v7  ;;  %v3848_v35 = vadd.f32 %v3844_v37, %v8112_v2  ;;  %v8336_v59 = vstv %s8274_s6  ;;  %v4636_v61 = vld [vmem:[#allocation2 + $0x18] sm:$0xff]  ;;  %s4718_s6 = scalar_lea.hbm %s8771_s3, 256 }
 0x497   : > { %3319 = vrot.lane.b32.xlu2 %v3308_v6, %s9051_s29  ;;  %v3849_v3 = vadd.f32 %v3845_v63, %v8131_v22  ;;  %v8341_v5 = vadd.f32 %v3938_v51, %v8134_v56  ;;  %v8344_v38 = vadd.f32 %v3940_v19, %v8137_v24  ;;  %v3334_v44 = vmul.f32 %v8005_v34, %v3332_v8  ;;  %v9120_v6 = vld [vmem:[#allocation43_spill] sm:$0xff]  ;;  %v9121_v51 = vld [vmem:[#allocation20_spill] sm:$0xff]  ;;  %s8425_s29 = sld [smem:[#allocation7 + $0x38e]]  ;;  %p4720_p12 = scmp.lt.s32.totalorder %s4718_s6, %s4714_s27 }
 0x498   : > { %v3016_v20 = vpop.permute.xlu1 %3015  ;;  %v3014_v32 = vpop.permute.xlu0 %3013  ;;  %v3333_v7 = vmul.f32 %v7563_v53, %v3332_v8  ;;  %v3032_v2 = vmul.f32 %v7563_v53, %v8330_v9  ;;  %v8351_v43 = vadd.f32 %v3939_v46, %v9118_v18  ;;  %v8360_v13 = vmul.f32 %v4636_v61, %v8330_v9 }
 0x499   : > { %v3020_v22 = vsel %vm675_vm13, %v3016_v20, %v9119_v52  ;;  %v8355_v56 = vadd.f32 %v3016_v20, %v2999_v48  ;;  %v3019_v24 = vsel %vm675_vm13, %v8086_v17, %v3014_v32  ;;  %v8362_v42 = vpop.permute.xlu2 %3101  ;;  %v3361_v41 = vmul.f32 %v7563_v53, %v8336_v59  ;;  %v9122_v32 = vld [vmem:[#allocation51_spill] sm:$0xff]  ;;  %p4721_p0 = por %p4720_p12, %p4719_p11 }
 0x49a   : > { %v8364_v50 = vadd.f32 %v3020_v22, %v3000_v11  ;;  %v3026_v16 = vadd.f32 %v3019_v24, %v8234_v28  ;;  %v3335_v37 = vmul.f32 %v7702_v4, %v3332_v8  ;;  %v9124_v22 = vld [vmem:[#allocation27_spill] sm:$0xff] }
 0x49b   : > { %v3475_v48 = vmul.f32 %v8220_v1, %v8355_v56  ;;  %v3569_v17 = vmul.f32 %v8223_v26, %v8355_v56  ;;  %v3664_v12 = vmul.f32 %v8232_v60, %v8355_v56  ;;  %v3759_v11 = vmul.f32 %v8239_v31, %v8355_v56  ;;  %p4722_p1 = pnand %p4721_p0, %p4717_p10 }
 0x49c   : > { %v3474_v15 = vmul.f32 %v8220_v1, %v3026_v16  ;;  %v3476_v28 = vmul.f32 %v8220_v1, %v8364_v50  ;;  %v3568_v53 = vmul.f32 %v8223_v26, %v3026_v16  ;;  %v3570_v23 = vmul.f32 %v8223_v26, %v8364_v50  ;;  %v9123_v26 = vld [vmem:[#allocation52_spill] sm:$0xff] }
 0x49d   : > { %v8385_v63 = vadd.f32 %v3475_v48, %v9120_v6  ;;  %v8388_v19 = vadd.f32 %v3569_v17, %v9121_v51  ;;  %v3663_v46 = vmul.f32 %v8232_v60, %v3026_v16  ;;  %v3665_v20 = vmul.f32 %v8232_v60, %v8364_v50  ;;  %v9126_v51 = vld [vmem:[#allocation56_spill] sm:$0xff] }
 0x49e   : > { %3343 = vrot.lane.b32.xlu1 %v3334_v44, %s9033_s23  ;;  %3341 = vrot.lane.b32.xlu0 %v3333_v7, %s9033_s23  ;;  %v3336_v1 = vmul.f32 %v8012_v45, %v3332_v8  ;;  %v8397_v18 = vadd.f32 %v3474_v15, %v9122_v32  ;;  %v8400_v52 = vadd.f32 %v3476_v28, %v9123_v26 }
 0x49f   : > { %3345 = vrot.lane.b32.xlu2 %v3335_v37, %s9033_s23  ;;  %v8404_v24 = vadd.f32 %v3568_v53, %v9124_v22  ;;  %v8406_v61 = vadd.f32 %v3570_v23, %v3564_v54  ;;  %v8408_v60 = vadd.f32 %v3663_v46, %v3657_v33  ;;  %v8410_v44 = vadd.f32 %v3665_v20, %v3659_v27  ;;  %v9125_v33 = vld [vmem:[#allocation30_spill] sm:$0xff] }
 0x4a0   : > { %v3048_v7 = vpop.permute.xlu1 %3047  ;;  %v3046_v48 = vpop.permute.xlu0 %3045  ;;  %v8412_v8 = vadd.f32 %v3664_v12, %v3658_v49  ;;  %v8414_v17 = vadd.f32 %v3759_v11, %v3753_v14  ;;  %v3758_v15 = vmul.f32 %v8239_v31, %v3026_v16  ;;  %v3760_v37 = vmul.f32 %v8239_v31, %v8364_v50 }
 0x4a1   : > { %v3060_v28 = vadd.f32 %v3048_v7, %v3032_v2  ;;  %v3053_v53 = vsel %vm307_vm1, %v3046_v48, %v3048_v7  ;;  %v8420_v54 = vpop.permute.xlu2 %3107  ;;  %v3853_v23 = vmul.f32 %v9125_v33, %v3026_v16  ;;  %v3854_v27 = vmul.f32 %v9125_v33, %v8355_v56  ;;  %v9129_v48 = vld [vmem:[#allocation35_spill] sm:$0xff] }
 0x4a2   : > { %v3362_v49 = vmul.f32 %v8005_v34, %v8336_v59  ;;  %v8430_v14 = vadd.f32 %v3758_v15, %v8325_v25  ;;  %v8432_v12 = vadd.f32 %v3760_v37, %v3754_v0  ;;  %v3855_v31 = vmul.f32 %v9125_v33, %v8364_v50  ;;  %v9131_v15 = vld [vmem:[#allocation41_spill] sm:$0xff] }
 0x4a3   : > { %v3088_v2 = vadd.f32 %v8293_v29, %v3060_v28  ;;  %v8437_v11 = vadd.f32 %v3853_v23, %v3847_v21  ;;  %v8439_v6 = vadd.f32 %v3854_v27, %v3848_v35  ;;  %v3948_v46 = vmul.f32 %v9126_v51, %v3026_v16 }
 0x4a4   : > { %v8442_v20 = vadd.f32 %v3855_v31, %v3849_v3  ;;  %v3950_v32 = vmul.f32 %v9126_v51, %v8364_v50  ;;  %v3949_v25 = vmul.f32 %v9126_v51, %v8355_v56  ;;  %v4044_v0 = vmul.f32 %v8254_v40, %v8355_v56 }
 0x4a5   : > { %v8451_v26 = vadd.f32 %v3948_v46, %v8341_v5  ;;  %v4043_v21 = vmul.f32 %v8254_v40, %v3026_v16  ;;  %v4045_v35 = vmul.f32 %v8254_v40, %v8364_v50  ;;  %v4138_v3 = vmul.f32 %v8257_v55, %v3026_v16  ;;  %v9133_v16 = vld [vmem:[#allocation42_spill] sm:$0xff] }
 0x4a6   : > { %3369 = vrot.lane.b32.xlu1 %v3361_v41, %s9037_s19  ;;  %3347 = vrot.lane.b32.xlu0 %v3336_v1, %s9033_s23  ;;  %v8460_v22 = vadd.f32 %v3950_v32, %v8344_v38  ;;  %v8463_v7 = vadd.f32 %v3949_v25, %v8351_v43  ;;  %v8466_v5 = vadd.f32 %v4044_v0, %v9129_v48  ;;  %v9135_v41 = vld [vmem:[#allocation25_spill] sm:$0xff]  ;;  %v9138_v32 = vld [vmem:[#allocation19_spill] sm:$0xff]  ;;  %v3388_v0 = vstv %s8425_s29  ;;  %s4448_s23 = sld [smem:[#allocation8 + $0x87]] }
 0x4a7   : > { %3371 = vrot.lane.b32.xlu2 %v3362_v49, %s9037_s19  ;;  %v8470_v40 = vadd.f32 %v4043_v21, %v9131_v15  ;;  %v8473_v37 = vadd.f32 %v4045_v35, %v9133_v16  ;;  %v8476_v1 = vadd.f32 %v4138_v3, %v9135_v41  ;;  %v4139_v38 = vmul.f32 %v8257_v55, %v8355_v56  ;;  %v9137_v49 = vld [vmem:[#allocation28_spill] sm:$0xff] }
 0x4a8   : > { %9127 = vst [vmem:[#allocation31_spill] sm:$0xff] %v8460_v22  ;;  %v3059_v43 = vadd.f32 %v3053_v53, %v8360_v13  ;;  %v3074_v28 = vpop.permute.xlu1 %3073  ;;  %v3052_v33 = vpop.permute.xlu0 %3051  ;;  %v4140_v23 = vmul.f32 %v8257_v55, %v8364_v50  ;;  %v3364_v51 = vmul.f32 %v8012_v45, %v8336_v59  ;;  %v3363_v53 = vmul.f32 %v7702_v4, %v8336_v59  ;;  %v9140_v21 = vld [vmem:[#allocation44_spill] sm:$0xff]  ;;  %v4637_v50 = vld [vmem:[#allocation2 + $0x98] sm:$0xff] }
 0x4a9   : > { %9128 = vst [vmem:[#allocation58_spill] sm:$0xff] %v8463_v7  ;;  %v3081_v27 = vsel %vm336_vm2, %v3074_v28, %v8293_v29  ;;  %v3054_v31 = vsel %vm307_vm1, %v9137_v49, %v3052_v33  ;;  %v3134_v46 = vpop.permute.xlu2 %3133  ;;  %v8490_v25 = vadd.f32 %v4139_v38, %v9138_v32  ;;  %v3034_v29 = vmul.f32 %v7702_v4, %v8330_v9 }
 0x4aa   : > { %9130 = vst [vmem:[#allocation59_spill] sm:$0xff] %v8466_v5  ;;  %v3087_v56 = vadd.f32 %v3081_v27, %v3059_v43  ;;  %v8496_v55 = vadd.f32 %v4140_v23, %v9140_v21  ;;  %v3389_v35 = vmul.f32 %v4637_v50, %v3388_v0  ;;  %v3061_v48 = vadd.f32 %v3054_v31, %v8360_v13 }
 0x4ab   : > { %9132 = vst [vmem:[#allocation33_spill] sm:$0xff] %v8470_v40  ;;  %v3062_v3 = vadd.f32 %v3052_v33, %v3034_v29  ;;  %v3391_v9 = vmul.f32 %v7702_v4, %v3388_v0  ;;  %v3390_v28 = vmul.f32 %v8005_v34, %v3388_v0  ;;  %v3392_v27 = vmul.f32 %v8012_v45, %v3388_v0 }
 0x4ac   : > { %9134 = vst [vmem:[#allocation65_spill] sm:$0xff] %v8473_v37 }
 0x4ad   : > { %9136 = vst [vmem:[#allocation29_spill] sm:$0xff] %v8476_v1 }
 0x4ae   : > { %9139 = vst [vmem:[#allocation38_spill] sm:$0xff] %v8490_v25  ;;  %3375 = vrot.lane.b32.xlu1 %v3364_v51, %s9037_s19  ;;  %3373 = vrot.lane.b32.xlu0 %v3363_v53, %s9037_s19  ;;  %s4458_s19 = sld [smem:[#allocation8 + $0x107]] }
 0x4af   : > { %9141 = vst [vmem:[#allocation63_spill] sm:$0xff] %v8496_v55  ;;  %3397 = vrot.lane.b32.xlu2 %v3389_v35, %s9030_s8 }
 0x4b0   : > { %v3080_v15 = vpop.permute.xlu1 %3079  ;;  %v3078_v59 = vpop.permute.xlu0 %3077 }
 0x4b1   : > { %v3090_v16 = vadd.f32 %v3080_v15, %v3062_v3  ;;  %v3082_v41 = vsel %vm336_vm2, %v3078_v59, %v3080_v15  ;;  %v3160_v38 = vpop.permute.xlu2 %3159 }
 0x4b2   : > { %v3089_v43 = vadd.f32 %v3082_v41, %v3061_v48 }
 0x4b3   : > { %v3118_v23 = vadd.f32 %v8420_v54, %v3090_v16 }
 0x4b6   : > { %3401 = vrot.lane.b32.xlu1 %v3391_v9, %s9030_s8  ;;  %3399 = vrot.lane.b32.xlu0 %v3390_v28, %s9030_s8 }
 0x4b7   : > { %3403 = vrot.lane.b32.xlu2 %v3392_v27, %s9030_s8  ;;  %s4440_s8 = sld [smem:[#allocation8 + $0x7]] }
 0x4b8   : > { %v3106_v13 = vpop.permute.xlu1 %3105  ;;  %v3104_v33 = vpop.permute.xlu0 %3103 }
 0x4b9   : > { %v3110_v49 = vsel %vm365_vm3, %v3106_v13, %v8420_v54  ;;  %v3109_v4 = vsel %vm365_vm3, %v8362_v42, %v3104_v33  ;;  %v3116_v31 = vadd.f32 %v3104_v33, %v3088_v2  ;;  %v3186_v34 = vpop.permute.xlu2 %3185 }
 0x4ba   : > { %v3117_v51 = vadd.f32 %v3110_v49, %v3089_v43  ;;  %v3115_v32 = vadd.f32 %v3109_v4, %v3087_v56 }
 0x4bd   : > { %v8541_v5 = vstv %s4440_s8 }
 0x4c0   : > { %v3132_v53 = vpop.permute.xlu1 %3131  ;;  %v3130_v45 = vpop.permute.xlu0 %3129 }
 0x4c1   : > { %v3144_v0 = vadd.f32 %v3132_v53, %v3116_v31  ;;  %v3137_v21 = vsel %vm394_vm4, %v3130_v45, %v3132_v53  ;;  %v3192_v29 = vpop.permute.xlu2 %3191 }
 0x4c2   : > { %v3143_v50 = vadd.f32 %v3137_v21, %v3115_v32 }
 0x4c3   : > { %v3172_v35 = vadd.f32 %v3160_v38, %v3144_v0 }
 0x4c8   : > { %v3158_v3 = vpop.permute.xlu1 %3157  ;;  %v3136_v48 = vpop.permute.xlu0 %3135 }
 0x4c9   : > { %v3165_v15 = vsel %vm423_vm5, %v3158_v3, %v3160_v38  ;;  %v3138_v54 = vsel %vm394_vm4, %v3134_v46, %v3136_v48  ;;  %v3146_v59 = vadd.f32 %v3136_v48, %v3118_v23  ;;  %v3230_v42 = vpop.permute.xlu2 %3229 }
 0x4ca   : > { %v3171_v2 = vadd.f32 %v3165_v15, %v3143_v50  ;;  %v3145_v16 = vadd.f32 %v3138_v54, %v3117_v51 }
 0x4d0   : > { %v3164_v41 = vpop.permute.xlu1 %3163  ;;  %v3162_v56 = vpop.permute.xlu0 %3161 }
 0x4d1   : > { %v3174_v43 = vadd.f32 %v3164_v41, %v3146_v59  ;;  %v3166_v9 = vsel %vm423_vm5, %v3162_v56, %v3164_v41  ;;  %v3236_v28 = vpop.permute.xlu2 %3235 }
 0x4d2   : > { %v3173_v27 = vadd.f32 %v3166_v9, %v3145_v16 }
 0x4d3   : > { %v3202_v13 = vadd.f32 %v3192_v29, %v3174_v43 }
 0x4d8   : > { %v3190_v33 = vpop.permute.xlu1 %3189  ;;  %v3188_v49 = vpop.permute.xlu0 %3187 }
 0x4d9   : > { %v3194_v4 = vsel %vm452_vm6, %v3190_v33, %v3192_v29  ;;  %v3200_v31 = vadd.f32 %v3188_v49, %v3172_v35  ;;  %v3262_v32 = vpop.permute.xlu2 %3261  ;;  %v3193_v56 = vsel %vm452_vm6, %v3186_v34, %v3188_v49 }
 0x4da   : > { %v3201_v38 = vadd.f32 %v3194_v4, %v3173_v27  ;;  %v3199_v43 = vadd.f32 %v3193_v56, %v3171_v2 }
 0x4e0   : > { %v3212_v46 = vpop.permute.xlu1 %3211  ;;  %v3210_v23 = vpop.permute.xlu0 %3209 }
 0x4e1   : > { %v3288_v53 = vpop.permute.xlu2 %3287  ;;  %v3216_v45 = vadd.f32 %v3210_v23, %v3200_v31  ;;  %v3215_v33 = vadd.f32 %v3210_v23, %v3199_v43  ;;  %v3217_v34 = vadd.f32 %v3212_v46, %v3201_v38 }
 0x4e3   : > { %v3243_v4 = vadd.f32 %v3230_v42, %v3215_v33 }
 0x4e8   : > { %v3234_v51 = vpop.permute.xlu1 %3233  ;;  %v3232_v0 = vpop.permute.xlu0 %3231 }
 0x4e9   : > { %v3237_v21 = vsel %vm501_vm7, %v3230_v42, %v3232_v0  ;;  %v8522_v3 = vpop.permute.xlu2 %3313  ;;  %v3245_v2 = vadd.f32 %v3234_v51, %v3217_v34  ;;  %v3238_v49 = vsel %vm501_vm7, %v3234_v51, %v3236_v28  ;;  %v3218_v42 = vadd.f32 %v3212_v46, %v3202_v13 }
 0x4ea   : > { %v3244_v50 = vadd.f32 %v3237_v21, %v3216_v45  ;;  %v8543_v34 = vstv %s4448_s23  ;;  %v8545_v28 = vstv %s4458_s19  ;;  %v8549_v13 = vstv %s4478_s20 }
 0x4eb   : > { %v3273_v25 = vadd.f32 %v3262_v32, %v3245_v2  ;;  %v8552_v51 = vstv %s4488_s22 }
 0x4f0   : > { %v3260_v48 = vpop.permute.xlu1 %3259  ;;  %v3258_v15 = vpop.permute.xlu0 %3257 }
 0x4f1   : > { %v8524_v16 = vpop.permute.xlu2 %3319  ;;  %v3271_v45 = vadd.f32 %v3258_v15, %v3243_v4  ;;  %v3265_v56 = vsel %vm530_vm8, %v3258_v15, %v3260_v48  ;;  %v3246_v4 = vadd.f32 %v3238_v49, %v3218_v42  ;;  %v8554_v48 = vstv %s4498_s11 }
 0x4f2   : > { %9142 = vst [vmem:[#allocation47_spill] sm:$0xff] %v8554_v48 }
 0x4f8   : > { %v3286_v54 = vpop.permute.xlu1 %3285  ;;  %v3264_v59 = vpop.permute.xlu0 %3263 }
 0x4f9   : > { %v8526_v41 = vpop.permute.xlu2 %3345  ;;  %v3299_v55 = vadd.f32 %v3286_v54, %v3271_v45  ;;  %v3272_v45 = vadd.f32 %v3265_v56, %v3244_v50  ;;  %v3266_v38 = vsel %vm530_vm8, %v3262_v32, %v3264_v59  ;;  %v8556_v50 = vstv %s4508_s0 }
 0x4fa   : > { %v3293_v32 = vsel %vm559_vm9, %v3286_v54, %v3288_v53  ;;  %v3274_v15 = vadd.f32 %v3266_v38, %v3246_v4 }
 0x4fb   : > { %v3327_v23 = vadd.f32 %v8522_v3, %v3299_v55  ;;  %v8547_v55 = vstv %s4468_s26 }
 0x500   : > { %v3292_v29 = vpop.permute.xlu1 %3291  ;;  %v3290_v35 = vpop.permute.xlu0 %3289 }
 0x501   : > { %v8533_v31 = vpop.permute.xlu2 %3371  ;;  %v3294_v59 = vsel %vm559_vm9, %v3290_v35, %v3292_v29  ;;  %v3301_v2 = vadd.f32 %v3290_v35, %v3273_v25 }
 0x508   : > { %v8529_v9 = vpop.permute.xlu1 %3317  ;;  %v8531_v27 = vpop.permute.xlu0 %3315 }
 0x509   : > { %v8538_v33 = vpop.permute.xlu2 %3397 }
 0x510   : > { %v3344_v0 = vpop.permute.xlu1 %3343  ;;  %v3342_v21 = vpop.permute.xlu0 %3341 }
 0x511   : > { %v3355_v43 = vadd.f32 %v3342_v21, %v3327_v23 }
 0x518   : > { %v3370_v1 = vpop.permute.xlu1 %3369  ;;  %v3348_v37 = vpop.permute.xlu0 %3347 }
 0x519   : > { %v3383_v40 = vadd.f32 %v3370_v1, %v3355_v43 }
 0x51b   : > { %v3411_v46 = vadd.f32 %v8538_v33, %v3383_v40 }
 0x51d   : > { %v3483_v49 = vmul.f32 %v8541_v5, %v3411_v46  ;;  %v3577_v23 = vmul.f32 %v8543_v34, %v3411_v46  ;;  %v3672_v42 = vmul.f32 %v8545_v28, %v3411_v46  ;;  %v3767_v40 = vmul.f32 %v8547_v55, %v3411_v46 }
 0x51e   : > { %v3862_v56 = vmul.f32 %v8549_v13, %v3411_v46  ;;  %v3957_v43 = vmul.f32 %v8552_v51, %v3411_v46  ;;  %v4052_v7 = vmul.f32 %v8554_v48, %v3411_v46  ;;  %v4147_v53 = vmul.f32 %v8556_v50, %v3411_v46 }
 0x51f   : > { %v3487_v54 = vadd.f32 %v3483_v49, %v8276_v47  ;;  %v8570_v25 = vadd.f32 %v3577_v23, %v8278_v57  ;;  %v8573_v29 = vadd.f32 %v3672_v42, %v8280_v30  ;;  %v8576_v35 = vadd.f32 %v3767_v40, %v8282_v10  ;;  %v3404_v23 = vpop.permute.xlu2 %3403 }
 0x520   : > { %v3376_v4 = vpop.permute.xlu1 %3375  ;;  %v3374_v38 = vpop.permute.xlu0 %3373  ;;  %v8579_v22 = vadd.f32 %v3862_v56, %v8284_v62  ;;  %v8582_v48 = vadd.f32 %v3957_v43, %v8286_v36  ;;  %v8585_v46 = vadd.f32 %v4052_v7, %v8299_v39  ;;  %v8588_v57 = vadd.f32 %v4147_v53, %v8302_v58 }
 0x521   : > { %v3322_v47 = vsel %vm588_vm10, %v8529_v9, %v8524_v16  ;;  %v3329_v30 = vadd.f32 %v8529_v9, %v3301_v2  ;;  %v3321_v62 = vsel %vm588_vm10, %v8522_v3, %v8531_v27  ;;  %3495 = vrot.lane.b32.xlu0 %v3487_v54, %s4809_s30  ;;  %v3300_v36 = vadd.f32 %v3293_v32, %v3272_v45 }
 0x522   : > { %v3302_v10 = vadd.f32 %v3294_v59, %v3274_v15  ;;  %v3349_v39 = vsel %vm617_vm11, %v3342_v21, %v3344_v0  ;;  %v3350_v58 = vsel %vm617_vm11, %v8526_v41, %v3348_v37  ;;  %v3377_v9 = vsel %vm646_vm12, %v3370_v1, %v8533_v31 }
 0x523   : > { %v3328_v49 = vadd.f32 %v3321_v62, %v3300_v36  ;;  %v3357_v16 = vadd.f32 %v8526_v41, %v3329_v30  ;;  %v3378_v2 = vsel %vm646_vm12, %v3374_v38, %v3376_v4 }
 0x524   : > { %v3330_v7 = vadd.f32 %v3322_v47, %v3302_v10 }
 0x525   : > { %v3356_v3 = vadd.f32 %v3349_v39, %v3328_v49  ;;  %v3385_v42 = vadd.f32 %v3374_v38, %v3357_v16 }
 0x526   : > { %v3358_v27 = vadd.f32 %v3350_v58, %v3330_v7 }
 0x527   : > { %v3384_v45 = vadd.f32 %v3377_v9, %v3356_v3  ;;  %v9144_v3 = vld [vmem:[#allocation58_spill] sm:$0xff] }
 0x528   : > { %v3386_v32 = vadd.f32 %v3378_v2, %v3358_v27  ;;  %v3402_v15 = vpop.permute.xlu1 %3401  ;;  %v3400_v0 = vpop.permute.xlu0 %3399  ;;  %v9143_v2 = vld [vmem:[#allocation31_spill] sm:$0xff] }
 0x529   : > { %v3413_v21 = vadd.f32 %v3402_v15, %v3385_v42  ;;  %v3406_v37 = vsel %vm675_vm13, %v3402_v15, %v3404_v23  ;;  %v3405_v59 = vsel %vm675_vm13, %v8538_v33, %v3400_v0  ;;  %v9145_v23 = vld [vmem:[#allocation47_spill] sm:$0xff]  ;;  %v9148_v15 = vld [vmem:[#allocation65_spill] sm:$0xff] }
 0x52a   : > { %v3414_v41 = vadd.f32 %v3406_v37, %v3386_v32  ;;  %v3412_v40 = vadd.f32 %v3405_v59, %v3384_v45  ;;  %v9146_v45 = vld [vmem:[#allocation59_spill] sm:$0xff]  ;;  %v9147_v32 = vld [vmem:[#allocation33_spill] sm:$0xff] }
 0x52b   : > { %v3485_v1 = vmul.f32 %v8541_v5, %v3413_v21  ;;  %v3579_v31 = vmul.f32 %v8543_v34, %v3413_v21  ;;  %v3674_v56 = vmul.f32 %v8545_v28, %v3413_v21  ;;  %v3769_v43 = vmul.f32 %v8547_v55, %v3413_v21  ;;  %v9149_v37 = vld [vmem:[#allocation29_spill] sm:$0xff] }
 0x52c   : > { %v3484_v53 = vmul.f32 %v8541_v5, %v3412_v40  ;;  %v3486_v54 = vmul.f32 %v8541_v5, %v3414_v41  ;;  %v3578_v4 = vmul.f32 %v8543_v34, %v3412_v40  ;;  %v3580_v38 = vmul.f32 %v8543_v34, %v3414_v41 }
 0x52d   : > { %v3489_v33 = vadd.f32 %v3485_v1, %v8385_v63  ;;  %v3583_v47 = vadd.f32 %v3579_v31, %v8388_v19  ;;  %v3673_v30 = vmul.f32 %v8545_v28, %v3412_v40  ;;  %v3675_v62 = vmul.f32 %v8545_v28, %v3414_v41  ;;  %v9150_v1 = vld [vmem:[#allocation38_spill] sm:$0xff] }
 0x52e   : > { %v3488_v36 = vadd.f32 %v3484_v53, %v8397_v18  ;;  %v3490_v10 = vadd.f32 %v3486_v54, %v8400_v52  ;;  %v3582_v39 = vadd.f32 %v3578_v4, %v8404_v24  ;;  %v3584_v5 = vadd.f32 %v3580_v38, %v8406_v61 }
 0x52f   : > { %3499 = vrot.lane.b32.xlu2 %v3489_v33, %s4809_s30  ;;  %v3677_v34 = vadd.f32 %v3673_v30, %v8408_v60  ;;  %v3679_v63 = vadd.f32 %v3675_v62, %v8410_v44  ;;  %v3678_v19 = vadd.f32 %v3674_v56, %v8412_v8  ;;  %v3773_v58 = vadd.f32 %v3769_v43, %v8414_v17  ;;  %v9151_v56 = vld [vmem:[#allocation63_spill] sm:$0xff] }
 0x530   : > { %3497 = vrot.lane.b32.xlu1 %v3488_v36, %s4809_s30  ;;  %3501 = vrot.lane.b32.xlu0 %v3490_v10, %s4809_s30  ;;  %v3768_v18 = vmul.f32 %v8547_v55, %v3412_v40  ;;  %v3770_v52 = vmul.f32 %v8547_v55, %v3414_v41  ;;  %v3863_v24 = vmul.f32 %v8549_v13, %v3412_v40 }
 0x531   : > { %v3864_v61 = vmul.f32 %v8549_v13, %v3413_v21  ;;  %v3865_v60 = vmul.f32 %v8549_v13, %v3414_v41  ;;  %v3958_v44 = vmul.f32 %v8552_v51, %v3412_v40  ;;  %v3960_v8 = vmul.f32 %v8552_v51, %v3414_v41 }
 0x532   : > { %v3772_v17 = vadd.f32 %v3768_v18, %v8430_v14  ;;  %v3774_v28 = vadd.f32 %v3770_v52, %v8432_v12  ;;  %v3867_v7 = vadd.f32 %v3863_v24, %v8437_v11  ;;  %v3959_v49 = vmul.f32 %v8552_v51, %v3413_v21 }
 0x533   : > { %v3868_v55 = vadd.f32 %v3864_v61, %v8439_v6  ;;  %v3869_v16 = vadd.f32 %v3865_v60, %v8442_v20  ;;  %v3962_v9 = vadd.f32 %v3958_v44, %v8451_v26  ;;  %v3964_v13 = vadd.f32 %v3960_v8, %v9143_v2 }
 0x534   : > { %v3963_v27 = vadd.f32 %v3959_v49, %v9144_v3  ;;  %v4054_v42 = vmul.f32 %v9145_v23, %v3413_v21  ;;  %v4053_v14 = vmul.f32 %v9145_v23, %v3412_v40  ;;  %v4055_v12 = vmul.f32 %v9145_v23, %v3414_v41 }
 0x535   : > { %v4148_v11 = vmul.f32 %v8556_v50, %v3412_v40  ;;  %v4149_v51 = vmul.f32 %v8556_v50, %v3413_v21  ;;  %v4150_v6 = vmul.f32 %v8556_v50, %v3414_v41 }
 0x536   : > { %v4058_v20 = vadd.f32 %v4054_v42, %v9146_v45  ;;  %v4057_v26 = vadd.f32 %v4053_v14, %v9147_v32  ;;  %v4059_v0 = vadd.f32 %v4055_v12, %v9148_v15 }
 0x537   : > { %3591 = vrot.lane.b32.xlu2 %v3582_v39, %s4809_s30  ;;  %v4152_v59 = vadd.f32 %v4148_v11, %v9149_v37  ;;  %v4153_v31 = vadd.f32 %v4149_v51, %v9150_v1  ;;  %v4154_v43 = vadd.f32 %v4150_v6, %v9151_v56 }
 0x538   : > { %3589 = vrot.lane.b32.xlu1 %v8570_v25, %s4809_s30  ;;  %3593 = vrot.lane.b32.xlu0 %v3583_v47, %s4809_s30 }
 0x53f   : > { %3684 = vrot.lane.b32.xlu2 %v8573_v29, %s4809_s30 }
 0x540   : > { %3595 = vrot.lane.b32.xlu1 %v3584_v5, %s4809_s30  ;;  %3686 = vrot.lane.b32.xlu0 %v3677_v34, %s4809_s30 }
 0x547   : > { %3690 = vrot.lane.b32.xlu2 %v3679_v63, %s4809_s30 }
 0x548   : > { %3688 = vrot.lane.b32.xlu1 %v3678_v19, %s4809_s30  ;;  %3779 = vrot.lane.b32.xlu0 %v8576_v35, %s4809_s30 }
 0x54f   : > { %3783 = vrot.lane.b32.xlu2 %v3773_v58, %s4809_s30 }
 0x550   : > { %3781 = vrot.lane.b32.xlu1 %v3772_v17, %s4809_s30  ;;  %3785 = vrot.lane.b32.xlu0 %v3774_v28, %s4809_s30 }
 0x557   : > { %3876 = vrot.lane.b32.xlu2 %v3867_v7, %s4809_s30 }
 0x558   : > { %3874 = vrot.lane.b32.xlu1 %v8579_v22, %s4809_s30  ;;  %3878 = vrot.lane.b32.xlu0 %v3868_v55, %s4809_s30 }
 0x55f   : > { %3969 = vrot.lane.b32.xlu2 %v8582_v48, %s4809_s30 }
 0x560   : > { %3880 = vrot.lane.b32.xlu1 %v3869_v16, %s4809_s30  ;;  %3971 = vrot.lane.b32.xlu0 %v3962_v9, %s4809_s30 }
 0x567   : > { %3975 = vrot.lane.b32.xlu2 %v3964_v13, %s4809_s30 }
 0x568   : > { %3973 = vrot.lane.b32.xlu1 %v3963_v27, %s4809_s30  ;;  %4064 = vrot.lane.b32.xlu0 %v8585_v46, %s4809_s30 }
 0x56f   : > { %4068 = vrot.lane.b32.xlu2 %v4058_v20, %s4809_s30 }
 0x570   : > { %4066 = vrot.lane.b32.xlu1 %v4057_v26, %s4809_s30  ;;  %4070 = vrot.lane.b32.xlu0 %v4059_v0, %s4809_s30 }
 0x577   : > { %4161 = vrot.lane.b32.xlu2 %v4152_v59, %s4809_s30 }
 0x578   : > { %4159 = vrot.lane.b32.xlu1 %v8588_v57, %s4809_s30  ;;  %4163 = vrot.lane.b32.xlu0 %v4153_v31, %s4809_s30 }
 0x580   : > { %4165 = vrot.lane.b32.xlu1 %v4154_v43, %s4809_s30 }
 0x589   : > { %v3500_v22 = vpop.permute.xlu2 %3499 }
 0x591   : > { %v3592_v48 = vpop.permute.xlu2 %3591 }
 0x593   : > { %v3496_v50 = vpop.permute.xlu0 %3495 }
 0x599   : > { %v3685_v35 = vpop.permute.xlu2 %3684 }
 0x5a1   : > { %v3691_v53 = vpop.permute.xlu2 %3690 }
 0x5a2   : > { %v3498_v25 = vpop.permute.xlu1 %3497  ;;  %v3502_v29 = vpop.permute.xlu0 %3501 }
 0x5a3   : > { %v3503_v46 = vsel %vm240_vm0, %v3496_v50, %v3498_v25  ;;  %v3504_v21 = vsel %vm240_vm0, %v3500_v22, %v3502_v29 }
 0x5a4   : > { %3507 = vst [vmem:[%s8697_s14] sm:$0xff] %v3503_v46 }
 0x5a5   : > { %3508 = vst [vmem:[%s8697_s14 + $0x8] sm:$0xff] %v3504_v21 }
 0x5a9   : > { %v3784_v47 = vpop.permute.xlu2 %3783 }
 0x5aa   : > { %v3590_v57 = vpop.permute.xlu1 %3589  ;;  %v3594_v41 = vpop.permute.xlu0 %3593 }
 0x5ab   : > { %v3597_v40 = vsel %vm240_vm0, %v3590_v57, %v3592_v48 }
 0x5ac   : > { %4449 = vst [vmem:[%s8697_s14 + $0x10] sm:$0xff] %v3597_v40 }
 0x5b1   : > { %v3877_v10 = vpop.permute.xlu2 %3876 }
 0x5b2   : > { %v3596_v54 = vpop.permute.xlu1 %3595  ;;  %v3687_v4 = vpop.permute.xlu0 %3686 }
 0x5b3   : > { %v3598_v38 = vsel %vm240_vm0, %v3594_v41, %v3596_v54  ;;  %v3692_v33 = vsel %vm240_vm0, %v3685_v35, %v3687_v4 }
 0x5b4   : > { %4450 = vst [vmem:[%s8697_s14 + $0x18] sm:$0xff] %v3598_v38 }
 0x5b5   : > { %4459 = vst [vmem:[%s8697_s14 + $0x20] sm:$0xff] %v3692_v33 }
 0x5b9   : > { %v3970_v52 = vpop.permute.xlu2 %3969 }
 0x5ba   : > { %v3689_v30 = vpop.permute.xlu1 %3688  ;;  %v3780_v62 = vpop.permute.xlu0 %3779 }
 0x5bb   : > { %v3693_v36 = vsel %vm240_vm0, %v3689_v30, %v3691_v53 }
 0x5bc   : > { %4460 = vst [vmem:[%s8697_s14 + $0x28] sm:$0xff] %v3693_v36 }
 0x5c1   : > { %v3976_v8 = vpop.permute.xlu2 %3975 }
 0x5c2   : > { %v3782_v39 = vpop.permute.xlu1 %3781  ;;  %v3786_v5 = vpop.permute.xlu0 %3785 }
 0x5c3   : > { %v3787_v34 = vsel %vm240_vm0, %v3780_v62, %v3782_v39  ;;  %v3788_v63 = vsel %vm240_vm0, %v3784_v47, %v3786_v5 }
 0x5c4   : > { %4469 = vst [vmem:[%s8697_s14 + $0x30] sm:$0xff] %v3787_v34 }
 0x5c5   : > { %4470 = vst [vmem:[%s8697_s14 + $0x38] sm:$0xff] %v3788_v63 }
 0x5c9   : > { %v4069_v49 = vpop.permute.xlu2 %4068 }
 0x5ca   : > { %v3875_v19 = vpop.permute.xlu1 %3874  ;;  %v3879_v58 = vpop.permute.xlu0 %3878 }
 0x5cb   : > { %v3882_v18 = vsel %vm240_vm0, %v3875_v19, %v3877_v10 }
 0x5cc   : > { %4479 = vst [vmem:[%s8697_s14 + $0x40] sm:$0xff] %v3882_v18 }
 0x5d1   : > { %v4162_v13 = vpop.permute.xlu2 %4161 }
 0x5d2   : > { %v3881_v24 = vpop.permute.xlu1 %3880  ;;  %v3972_v61 = vpop.permute.xlu0 %3971 }
 0x5d3   : > { %v3883_v60 = vsel %vm240_vm0, %v3879_v58, %v3881_v24  ;;  %v3977_v44 = vsel %vm240_vm0, %v3970_v52, %v3972_v61 }
 0x5d4   : > { %4480 = vst [vmem:[%s8697_s14 + $0x48] sm:$0xff] %v3883_v60 }
 0x5d5   : > { %4489 = vst [vmem:[%s8697_s14 + $0x50] sm:$0xff] %v3977_v44 }
 0x5da   : > { %v3974_v17 = vpop.permute.xlu1 %3973  ;;  %v4065_v28 = vpop.permute.xlu0 %4064 }
 0x5db   : > { %v3978_v7 = vsel %vm240_vm0, %v3974_v17, %v3976_v8 }
 0x5dc   : > { %4490 = vst [vmem:[%s8697_s14 + $0x58] sm:$0xff] %v3978_v7 }
 0x5e2   : > { %v4067_v55 = vpop.permute.xlu1 %4066  ;;  %v4071_v16 = vpop.permute.xlu0 %4070 }
 0x5e3   : > { %v4072_v9 = vsel %vm240_vm0, %v4065_v28, %v4067_v55  ;;  %v4073_v2 = vsel %vm240_vm0, %v4069_v49, %v4071_v16 }
 0x5e4   : > { %4499 = vst [vmem:[%s8697_s14 + $0x60] sm:$0xff] %v4072_v9 }
 0x5e5   : > { %4500 = vst [vmem:[%s8697_s14 + $0x68] sm:$0xff] %v4073_v2 }
 0x5ea   : > { %v4160_v3 = vpop.permute.xlu1 %4159  ;;  %v4164_v23 = vpop.permute.xlu0 %4163 }
 0x5eb   : > { %v4167_v27 = vsel %vm240_vm0, %v4160_v3, %v4162_v13 }
 0x5ec   : > { %4509 = vst [vmem:[%s8697_s14 + $0x70] sm:$0xff] %v4167_v27 }
 0x5f2   : > { %v4166_v42 = vpop.permute.xlu1 %4165 }
 0x5f3   : > { %v4168_v14 = vsel %vm240_vm0, %v4164_v23, %v4166_v42 }
 0x5f4   : > { %4510 = vst [vmem:[%s8697_s14 + $0x78] sm:$0xff] %v4168_v14 }
 0x5f5   : > { %4725 = shalt.err (!%p4722_p1)
}
 0x5f6   : > { %s4810_s18 = smov 128   ;;  %s4811_s23 = smov 8  }
 0x5f7   : > { %4528 = dma.vmem_to_hbm [thread:$0]  (%p4884_p8), %s4190_s7, 2048, %s4192_s1, %s4175_s15, %s4810_s18, %s4810_s18, %s4811_s23  }
 0x5f8 PF: > { %s4206_s19 = sand.u32 1, %s4768_s12   ;;  %p4542_p2 = pnand %p4306_p13, %p4888_p9 }
 0x5f9   : > { %s4207_s26 = scalar_lea.sflag [#allocation5], %s4206_s19 }
 0x5fa   : > { %p4543_p4 = pneg %p4542_p2 }
 0x5fc   : > { %4763 = dma.done.wait (%p4543_p4), %s4207_s26, 2048  }
 0x5fd   : > { %4765 = vsyncadd (%p4543_p4), %s4207_s26, 4294965248  ;;  %s21_s17 = sadd.s32 1, %s4788_s17   ;;  %s9152_s20 = sld [smem:[#allocation15_spill]] }
 0x5fe   : > { %p18_p6 = scmp.ge.s32.totalorder %s21_s17, 4   ;;  %s9153_s14 = sld [smem:[#allocation18_spill]] }
 0x5ff   : > { %s9154_s15 = sld [smem:[#allocation16_spill]]  ;;  %s9156_s12 = smov %s4772_s13 }
 0x600   : > { %s9155_s16 = sld [smem:[#allocation17_spill]]  ;;  %20 = sbr.rel (!%p18_p6) target bundleno = 12 (0xc), region = 96 }
 0x603   : > { %s9157_s13 = smov %s9152_s20 }
 0x605   :  { %4213 = vsyncpa [#allocation4], 1 }
 0x606   :  { %4215 = vsyncpa [#allocation4 + $0x1], 1 }
 0x607   :  { %4216 = vsyncpa [#allocation5], 1 }
 0x608   :  { %4218 = vsyncpa [#allocation5 + $0x1], 1 }
 0x609   :  { %4219 = vsyncpa [#allocation6], 1 }
 0x60a   :  { %4221 = vsyncpa [#allocation6 + $0x1], 1 }
 0x60b   :  { %4222 = vsyncpa [#allocation9], 1 }

</bundles_post_ra>
